<compile_context>
chip_gen: v5e
topology: v5e:2x2
jax: 0.10.0
libtpu: 0.0.40
codegen_flags: <defaults>
</compile_context>

<pallas_src>
import functools

import jax
import jax.numpy as jnp
from jax import lax
from jax.experimental import pallas as pl
from jax.experimental.pallas import tpu as pltpu


# ----------------------------- Pallas kernels ------------------------------ #

def _make_bilstm_kernel(T, H):
    """Fused bidirectional LSTM layer with the time loop inside the kernel."""

    def kernel(len_ref, x_ref, wf_ref, bf_ref, wr_ref, br_ref, out_ref,
               hf_ref, cf_ref, hb_ref, cb_ref):
        # Zero-init both directions' (h, c) state (kernel runs once, no grid).
        hf_ref[...] = jnp.zeros_like(hf_ref)
        cf_ref[...] = jnp.zeros_like(cf_ref)
        hb_ref[...] = jnp.zeros_like(hb_ref)
        cb_ref[...] = jnp.zeros_like(cb_ref)

        lens = len_ref[...]                                   # (B, 1) int32

        def cell(x_t, h_prev, c_prev, w_ref, b_ref, t_actual):
            # Single fused MXU contraction: [x_t | h_prev] @ [W_ih; W_hh].
            xh = jnp.concatenate([x_t, h_prev], axis=-1)      # (B, in+H)
            gates = jnp.dot(xh, w_ref[...],
                            preferred_element_type=jnp.float32) + b_ref[...]
            i = jax.nn.sigmoid(gates[:, 0 * H:1 * H])
            f = jax.nn.sigmoid(gates[:, 1 * H:2 * H])
            g = jnp.tanh(gates[:, 2 * H:3 * H])
            o = jax.nn.sigmoid(gates[:, 3 * H:4 * H])
            c_new = f * c_prev + i * g
            h_new = o * jnp.tanh(c_new)
            # pack/pad semantics: only sequences with t_actual < length are
            # present in the packed batch at this step.
            mask = t_actual < lens                            # (B, 1) bool
            h = jnp.where(mask, h_new, h_prev)
            c = jnp.where(mask, c_new, c_prev)
            y = jnp.where(mask, h_new, 0.0)
            return h, c, y

        def body(t, carry):
            # Forward direction at time t.
            hf, cf, yf = cell(x_ref[t], hf_ref[...], cf_ref[...],
                              wf_ref, bf_ref, t)
            hf_ref[...] = hf
            cf_ref[...] = cf
            out_ref[pl.ds(t, 1), :, pl.ds(0, H)] = yf[None]
            # Reverse direction at time T-1-t (starts from each sequence's own
            # last valid step because padded steps never update h/c).
            tr = T - 1 - t
            hb, cb, yb = cell(x_ref[tr], hb_ref[...], cb_ref[...],
                              wr_ref, br_ref, tr)
            hb_ref[...] = hb
            cb_ref[...] = cb
            out_ref[pl.ds(tr, 1), :, pl.ds(H, H)] = yb[None]
            return carry

        unroll = T if T <= 16 else 1
        lax.fori_loop(0, T, body, 0, unroll=unroll)

    return kernel


def bilstm_layer(x, len2d, w_f, b_f, w_r, b_r):
    """x: (T, B, in) f32; w_*: (in+H, 4H) stacked/pre-transposed; b_*: (1, 4H)."""
    T, B, _ = x.shape
    H = w_f.shape[1] // 4
    kernel = _make_bilstm_kernel(T, H)
    return pl.pallas_call(
        kernel,
        out_shape=jax.ShapeDtypeStruct((T, B, 2 * H), jnp.float32),
        scratch_shapes=[pltpu.VMEM((B, H), jnp.float32) for _ in range(4)],
    )(len2d, x, w_f, b_f, w_r, b_r)


def _linear_kernel(x_ref, w_ref, b_ref, o_ref):
    o_ref[...] = (
        jnp.dot(x_ref[...], w_ref[...], preferred_element_type=jnp.float32)
        + b_ref[...]
    )


def linear(x2d, w_t, b_row, *, row_block=512):
    """x2d: (N, F); w_t: (F, Np) pre-transposed & lane-padded; b_row: (1, Np)."""
    N, F = x2d.shape
    Np = w_t.shape[1]
    rb = min(row_block, N)
    n_pad = (-N) % rb
    if n_pad:
        x2d = jnp.pad(x2d, ((0, n_pad), (0, 0)))
    Ntot = N + n_pad
    out = pl.pallas_call(
        _linear_kernel,
        out_shape=jax.ShapeDtypeStruct((Ntot, Np), jnp.float32),
        grid=(Ntot // rb,),
        in_specs=[
            pl.BlockSpec((rb, F), lambda i: (i, 0)),
            pl.BlockSpec((F, Np), lambda i: (0, 0)),
            pl.BlockSpec((1, Np), lambda i: (0, 0)),
        ],
        out_specs=pl.BlockSpec((rb, Np), lambda i: (i, 0)),
        compiler_params=pltpu.CompilerParams(
            dimension_semantics=("parallel",)),
    )(x2d, w_t, b_row)
    return out[:N]


# ------------------------------ model wrapper ------------------------------ #

def _prep_dir_weights(wih, whh, bias):
    """nn.LSTM-convention (4H,in)/(4H,H) -> stacked (in+H,4H) + (1,4H) bias."""
    w = jnp.concatenate([wih.T, whh.T], axis=0)
    return w, bias.reshape(1, -1)


def rnn_tagger_forward(x, seq_len, params, nlayers, ntags):
    T, B, _ = x.shape
    # Pad batch to a multiple of 8 sublanes; padded rows get length 0 so the
    # in-kernel mask zeroes them everywhere, and they are sliced off at the end.
    B_pad = ((B + 7) // 8) * 8
    pad_b = B_pad - B
    if pad_b:
        x = jnp.pad(x, ((0, 0), (0, pad_b), (0, 0)))
        seq_len = jnp.pad(seq_len, (0, pad_b))
    len2d = seq_len.reshape(B_pad, 1).astype(jnp.int32)

    h = x
    for l in range(nlayers):
        p = params["lstm"][l]
        w_f, b_f = _prep_dir_weights(p["wih_f"], p["whh_f"], p["b_f"])
        w_r, b_r = _prep_dir_weights(p["wih_r"], p["whh_r"], p["b_r"])
        h = bilstm_layer(h, len2d, w_f, b_f, w_r, b_r)
        # TODO(synk): inter-layer dropout (training mode only) is omitted;
        # this implements the inference/eval forward pass.

    F = h.shape[-1]
    # Final linear on padded (zeroed) LSTM outputs, exactly as the PyTorch
    # forward does. Pre-transpose lin_w and pad ntags to a lane-dense 128.
    ntags_pad = ((ntags + 127) // 128) * 128
    w_t = jnp.zeros((F, ntags_pad), jnp.float32).at[:, :ntags].set(
        params["lin_w"].T)
    b_row = jnp.zeros((1, ntags_pad), jnp.float32).at[:, :ntags].set(
        params["lin_b"])
    logits = linear(h.reshape(T * B_pad, F), w_t, b_row)
    return logits.reshape(T, B_pad, ntags_pad)[:, :B, :ntags]


def init_params(key, nemb, nhid, nlayers, ntags):
    params = {"lstm": []}
    bound = 1.0 / float(jnp.sqrt(jnp.float32(nhid)))
    k = key
    in_size = nemb
    for _ in range(nlayers):
        layer = {}
        for tag in ("f", "r"):
            k, k1, k2, k3, k4 = jax.random.split(k, 5)
            layer[f"wih_{tag}"] = jax.random.uniform(
                k1, (4 * nhid, in_size), jnp.float32, -bound, bound)
            layer[f"whh_{tag}"] = jax.random.uniform(
                k2, (4 * nhid, nhid), jnp.float32, -bound, bound)
            b_ih = jax.random.uniform(k3, (4 * nhid,), jnp.float32, -bound, bound)
            b_hh = jax.random.uniform(k4, (4 * nhid,), jnp.float32, -bound, bound)
            layer[f"b_{tag}"] = b_ih + b_hh
        params["lstm"].append(layer)
        in_size = 2 * nhid
    lb = 1.0 / float(jnp.sqrt(jnp.float32(2 * nhid)))
    k, kw, kb = jax.random.split(k, 3)
    params["lin_w"] = jax.random.uniform(kw, (ntags, 2 * nhid), jnp.float32, -lb, lb)
    params["lin_b"] = jax.random.uniform(kb, (ntags,), jnp.float32, -lb, lb)
    return params


# ---------------------------- pure-JAX reference ---------------------------- #

def _ref_lstm_dir(x, lengths, wih, whh, b, reverse):
    T, B, _ = x.shape
    H = whh.shape[1]

    def step(carry, t):
        h, c = carry
        at = (T - 1 - t) if reverse else t
        xt = x[at]
        g = xt @ wih.T + h @ whh.T + b
        i = jax.nn.sigmoid(g[:, :H])
        f = jax.nn.sigmoid(g[:, H:2 * H])
        gg = jnp.tanh(g[:, 2 * H:3 * H])
        o = jax.nn.sigmoid(g[:, 3 * H:])
        c_new = f * c + i * gg
        h_new = o * jnp.tanh(c_new)
        mask = (at < lengths)[:, None]
        h = jnp.where(mask, h_new, h)
        c = jnp.where(mask, c_new, c)
        return (h, c), (at, jnp.where(mask, h_new, 0.0))

    init = (jnp.zeros((B, H), jnp.float32), jnp.zeros((B, H), jnp.float32))
    _, (ats, outs) = lax.scan(step, init, jnp.arange(T))
    return jnp.zeros((T, B, H), jnp.float32).at[ats].set(outs)


def _ref_forward(x, seq_len, params, nlayers):
    h = x
    for l in range(nlayers):
        p = params["lstm"][l]
        fwd = _ref_lstm_dir(h, seq_len, p["wih_f"], p["whh_f"], p["b_f"], False)
        bwd = _ref_lstm_dir(h, seq_len, p["wih_r"], p["whh_r"], p["b_r"], True)
        h = jnp.concatenate([fwd, bwd], axis=-1)
    return h @ params["lin_w"].T + params["lin_b"]


# ----------------------------------- main ----------------------------------- #

if __name__ == "__main__":
    nemb, nhid, nlayers, ntags = 16, 32, 2, 8
    T, B = 8, 2

    key = jax.random.PRNGKey(0)
    kx, kp = jax.random.split(key)
    x = jax.random.normal(kx, (T, B, nemb), jnp.float32)
    # pack_padded_sequence (enforce_sorted=True) requires descending lengths.
    seq_len = jnp.array([8, 5], jnp.int32)

    params = init_params(kp, nemb, nhid, nlayers, ntags)

    fwd_fn = jax.jit(functools.partial(rnn_tagger_forward,
                                       nlayers=nlayers, ntags=ntags))
    logits = fwd_fn(x, seq_len, params)
    logits = jax.block_until_ready(logits)
    assert logits.shape == (T, B, ntags)

    ref = _ref_forward(x, seq_len, params, nlayers)
    err = float(jnp.max(jnp.abs(logits - ref)))
    assert jnp.allclose(logits, ref, atol=5e-3, rtol=5e-3), f"max abs err {err}"

    print("KERNEL_OK")
</pallas_src>

<mosaic_0001>
module attributes {stable_mosaic.version = 11 : i64} {
  func.func @kernel(%arg0: memref<8x1xi32, #tpu.memory_space<vmem>>, %arg1: memref<8x8x16xf32, #tpu.memory_space<vmem>>, %arg2: memref<48x128xf32, #tpu.memory_space<vmem>>, %arg3: memref<1x128xf32, #tpu.memory_space<vmem>>, %arg4: memref<48x128xf32, #tpu.memory_space<vmem>>, %arg5: memref<1x128xf32, #tpu.memory_space<vmem>>, %arg6: memref<8x8x64xf32, #tpu.memory_space<vmem>>, %arg7: memref<8x32xf32, #tpu.memory_space<vmem>>, %arg8: memref<8x32xf32, #tpu.memory_space<vmem>>, %arg9: memref<8x32xf32, #tpu.memory_space<vmem>>, %arg10: memref<8x32xf32, #tpu.memory_space<vmem>>) attributes {dimension_semantics = [], scalar_prefetch = 0 : i64, scratch_operands = 4 : i64, tpu.core_type = #tpu.core_type<tc>} {
    %cst = arith.constant 0.000000e+00 : f32
    %0 = vector.broadcast %cst : f32 to vector<8x32xf32>
    %c0 = arith.constant 0 : index
    %c0_0 = arith.constant 0 : index
    %1 = vector.load %arg7[%c0, %c0_0] : memref<8x32xf32, #tpu.memory_space<vmem>>, vector<8x32xf32>
    tpu.vector_store %arg7[%c0, %c0_0], %0 {strides = array<i32>} : memref<8x32xf32, #tpu.memory_space<vmem>>, vector<8x32xf32>,
    %cst_1 = arith.constant 0.000000e+00 : f32
    %2 = vector.broadcast %cst_1 : f32 to vector<8x32xf32>
    %c0_2 = arith.constant 0 : index
    %c0_3 = arith.constant 0 : index
    %3 = vector.load %arg8[%c0_2, %c0_3] : memref<8x32xf32, #tpu.memory_space<vmem>>, vector<8x32xf32>
    tpu.vector_store %arg8[%c0_2, %c0_3], %2 {strides = array<i32>} : memref<8x32xf32, #tpu.memory_space<vmem>>, vector<8x32xf32>,
    %cst_4 = arith.constant 0.000000e+00 : f32
    %4 = vector.broadcast %cst_4 : f32 to vector<8x32xf32>
    %c0_5 = arith.constant 0 : index
    %c0_6 = arith.constant 0 : index
    %5 = vector.load %arg9[%c0_5, %c0_6] : memref<8x32xf32, #tpu.memory_space<vmem>>, vector<8x32xf32>
    tpu.vector_store %arg9[%c0_5, %c0_6], %4 {strides = array<i32>} : memref<8x32xf32, #tpu.memory_space<vmem>>, vector<8x32xf32>,
    %cst_7 = arith.constant 0.000000e+00 : f32
    %6 = vector.broadcast %cst_7 : f32 to vector<8x32xf32>
    %c0_8 = arith.constant 0 : index
    %c0_9 = arith.constant 0 : index
    %7 = vector.load %arg10[%c0_8, %c0_9] : memref<8x32xf32, #tpu.memory_space<vmem>>, vector<8x32xf32>
    tpu.vector_store %arg10[%c0_8, %c0_9], %6 {strides = array<i32>} : memref<8x32xf32, #tpu.memory_space<vmem>>, vector<8x32xf32>,
    %c0_10 = arith.constant 0 : index
    %c0_11 = arith.constant 0 : index
    %8 = vector.load %arg0[%c0_10, %c0_11] : memref<8x1xi32, #tpu.memory_space<vmem>>, vector<8x1xi32>
    %c0_i32 = arith.constant 0 : i32
    %9 = arith.index_cast %c0_i32 : i32 to index
    %c0_12 = arith.constant 0 : index
    %c0_13 = arith.constant 0 : index
    %10 = vector.load %arg1[%9, %c0_12, %c0_13] : memref<8x8x16xf32, #tpu.memory_space<vmem>>, vector<1x8x16xf32>
    %11 = vector.shape_cast %10 : vector<1x8x16xf32> to vector<8x16xf32>
    %c0_14 = arith.constant 0 : index
    %c0_15 = arith.constant 0 : index
    %12 = vector.load %arg7[%c0_14, %c0_15] : memref<8x32xf32, #tpu.memory_space<vmem>>, vector<8x32xf32>
    %c0_16 = arith.constant 0 : index
    %c0_17 = arith.constant 0 : index
    %13 = vector.load %arg8[%c0_16, %c0_17] : memref<8x32xf32, #tpu.memory_space<vmem>>, vector<8x32xf32>
    %14 = tpu.concatenate %11, %12 in 1 : vector<8x16xf32>, vector<8x32xf32> -> vector<8x48xf32>
    %c0_18 = arith.constant 0 : index
    %c0_19 = arith.constant 0 : index
    %15 = vector.load %arg2[%c0_18, %c0_19] : memref<48x128xf32, #tpu.memory_space<vmem>>, vector<48x128xf32>
    %cst_20 = arith.constant dense<0.000000e+00> : vector<8x128xf32>
    %16 = tpu.matmul %14, %15, %cst_20 {dimension_numbers = #tpu.dot_dimension_numbers<[1], [0], [0], [1], [0, 0, 1, 1], [], []>} : vector<8x48xf32>, vector<48x128xf32>, vector<8x128xf32> -> vector<8x128xf32>
    %c0_21 = arith.constant 0 : index
    %c0_22 = arith.constant 0 : index
    %17 = vector.load %arg3[%c0_21, %c0_22] : memref<1x128xf32, #tpu.memory_space<vmem>>, vector<1x128xf32>
    %18 = vector.broadcast %17 : vector<1x128xf32> to vector<8x128xf32>
    %19 = arith.addf %16, %18 : vector<8x128xf32>
    %20 = vector.extract_strided_slice %19 {offsets = [0, 0], sizes = [8, 32], strides = [1, 1]} : vector<8x128xf32> to vector<8x32xf32>
    %21 = arith.negf %20 : vector<8x32xf32>
    %22 = math.exp %21 : vector<8x32xf32>
    %cst_23 = arith.constant 1.000000e+00 : f32
    %23 = vector.broadcast %cst_23 : f32 to vector<8x32xf32>
    %24 = arith.addf %23, %22 : vector<8x32xf32>
    %25 = arith.divf %23, %24 : vector<8x32xf32>
    %26 = vector.extract_strided_slice %19 {offsets = [0, 32], sizes = [8, 32], strides = [1, 1]} : vector<8x128xf32> to vector<8x32xf32>
    %27 = arith.negf %26 : vector<8x32xf32>
    %28 = math.exp %27 : vector<8x32xf32>
    %cst_24 = arith.constant 1.000000e+00 : f32
    %29 = vector.broadcast %cst_24 : f32 to vector<8x32xf32>
    %30 = arith.addf %29, %28 : vector<8x32xf32>
    %31 = arith.divf %29, %30 : vector<8x32xf32>
    %32 = vector.extract_strided_slice %19 {offsets = [0, 64], sizes = [8, 32], strides = [1, 1]} : vector<8x128xf32> to vector<8x32xf32>
    %33 = math.tanh %32 : vector<8x32xf32>
    %34 = vector.extract_strided_slice %19 {offsets = [0, 96], sizes = [8, 32], strides = [1, 1]} : vector<8x128xf32> to vector<8x32xf32>
    %35 = arith.negf %34 : vector<8x32xf32>
    %36 = math.exp %35 : vector<8x32xf32>
    %cst_25 = arith.constant 1.000000e+00 : f32
    %37 = vector.broadcast %cst_25 : f32 to vector<8x32xf32>
    %38 = arith.addf %37, %36 : vector<8x32xf32>
    %39 = arith.divf %37, %38 : vector<8x32xf32>
    %40 = arith.mulf %31, %13 : vector<8x32xf32>
    %41 = arith.mulf %25, %33 : vector<8x32xf32>
    %42 = arith.addf %40, %41 : vector<8x32xf32>
    %43 = math.tanh %42 : vector<8x32xf32>
    %44 = arith.mulf %39, %43 : vector<8x32xf32>
    %45 = vector.broadcast %c0_i32 : i32 to vector<8x1xi32>
    %46 = arith.cmpi slt, %45, %8 : vector<8x1xi32>
    %47 = vector.shape_cast %46 : vector<8x1xi1> to vector<8x1xi1>
    %48 = vector.broadcast %47 : vector<8x1xi1> to vector<8x32xi1>
    %49 = arith.select %48, %44, %12 : vector<8x32xi1>, vector<8x32xf32>
    %50 = vector.shape_cast %46 : vector<8x1xi1> to vector<8x1xi1>
    %51 = vector.broadcast %50 : vector<8x1xi1> to vector<8x32xi1>
    %52 = arith.select %51, %42, %13 : vector<8x32xi1>, vector<8x32xf32>
    %cst_26 = arith.constant 0.000000e+00 : f32
    %53 = vector.shape_cast %46 : vector<8x1xi1> to vector<8x1xi1>
    %54 = vector.broadcast %53 : vector<8x1xi1> to vector<8x32xi1>
    %55 = vector.broadcast %cst_26 : f32 to vector<8x32xf32>
    %56 = arith.select %54, %44, %55 : vector<8x32xi1>, vector<8x32xf32>
    %c0_27 = arith.constant 0 : index
    %c0_28 = arith.constant 0 : index
    %57 = vector.load %arg7[%c0_27, %c0_28] : memref<8x32xf32, #tpu.memory_space<vmem>>, vector<8x32xf32>
    tpu.vector_store %arg7[%c0_27, %c0_28], %49 {strides = array<i32>} : memref<8x32xf32, #tpu.memory_space<vmem>>, vector<8x32xf32>,
    %c0_29 = arith.constant 0 : index
    %c0_30 = arith.constant 0 : index
    %58 = vector.load %arg8[%c0_29, %c0_30] : memref<8x32xf32, #tpu.memory_space<vmem>>, vector<8x32xf32>
    tpu.vector_store %arg8[%c0_29, %c0_30], %52 {strides = array<i32>} : memref<8x32xf32, #tpu.memory_space<vmem>>, vector<8x32xf32>,
    %59 = vector.shape_cast %56 : vector<8x32xf32> to vector<1x8x32xf32>
    %60 = arith.index_cast %c0_i32 : i32 to index
    %c0_31 = arith.constant 0 : index
    %c0_32 = arith.constant 0 : index
    %61 = vector.load %arg6[%60, %c0_31, %c0_32] : memref<8x8x64xf32, #tpu.memory_space<vmem>>, vector<1x8x32xf32>
    tpu.vector_store %arg6[%60, %c0_31, %c0_32], %59 {strides = array<i32>} : memref<8x8x64xf32, #tpu.memory_space<vmem>>, vector<1x8x32xf32>,
    %c7_i32 = arith.constant 7 : i32
    %62 = arith.subi %c7_i32, %c0_i32 : i32
    %63 = arith.index_cast %62 : i32 to index
    %c0_33 = arith.constant 0 : index
    %c0_34 = arith.constant 0 : index
    %64 = vector.load %arg1[%63, %c0_33, %c0_34] : memref<8x8x16xf32, #tpu.memory_space<vmem>>, vector<1x8x16xf32>
    %65 = vector.shape_cast %64 : vector<1x8x16xf32> to vector<8x16xf32>
    %c0_35 = arith.constant 0 : index
    %c0_36 = arith.constant 0 : index
    %66 = vector.load %arg9[%c0_35, %c0_36] : memref<8x32xf32, #tpu.memory_space<vmem>>, vector<8x32xf32>
    %c0_37 = arith.constant 0 : index
    %c0_38 = arith.constant 0 : index
    %67 = vector.load %arg10[%c0_37, %c0_38] : memref<8x32xf32, #tpu.memory_space<vmem>>, vector<8x32xf32>
    %68 = tpu.concatenate %65, %66 in 1 : vector<8x16xf32>, vector<8x32xf32> -> vector<8x48xf32>
    %c0_39 = arith.constant 0 : index
    %c0_40 = arith.constant 0 : index
    %69 = vector.load %arg4[%c0_39, %c0_40] : memref<48x128xf32, #tpu.memory_space<vmem>>, vector<48x128xf32>
    %cst_41 = arith.constant dense<0.000000e+00> : vector<8x128xf32>
    %70 = tpu.matmul %68, %69, %cst_41 {dimension_numbers = #tpu.dot_dimension_numbers<[1], [0], [0], [1], [0, 0, 1, 1], [], []>} : vector<8x48xf32>, vector<48x128xf32>, vector<8x128xf32> -> vector<8x128xf32>
    %c0_42 = arith.constant 0 : index
    %c0_43 = arith.constant 0 : index
    %71 = vector.load %arg5[%c0_42, %c0_43] : memref<1x128xf32, #tpu.memory_space<vmem>>, vector<1x128xf32>
    %72 = vector.broadcast %71 : vector<1x128xf32> to vector<8x128xf32>
    %73 = arith.addf %70, %72 : vector<8x128xf32>
    %74 = vector.extract_strided_slice %73 {offsets = [0, 0], sizes = [8, 32], strides = [1, 1]} : vector<8x128xf32> to vector<8x32xf32>
    %75 = arith.negf %74 : vector<8x32xf32>
    %76 = math.exp %75 : vector<8x32xf32>
    %cst_44 = arith.constant 1.000000e+00 : f32
    %77 = vector.broadcast %cst_44 : f32 to vector<8x32xf32>
    %78 = arith.addf %77, %76 : vector<8x32xf32>
    %79 = arith.divf %77, %78 : vector<8x32xf32>
    %80 = vector.extract_strided_slice %73 {offsets = [0, 32], sizes = [8, 32], strides = [1, 1]} : vector<8x128xf32> to vector<8x32xf32>
    %81 = arith.negf %80 : vector<8x32xf32>
    %82 = math.exp %81 : vector<8x32xf32>
    %cst_45 = arith.constant 1.000000e+00 : f32
    %83 = vector.broadcast %cst_45 : f32 to vector<8x32xf32>
    %84 = arith.addf %83, %82 : vector<8x32xf32>
    %85 = arith.divf %83, %84 : vector<8x32xf32>
    %86 = vector.extract_strided_slice %73 {offsets = [0, 64], sizes = [8, 32], strides = [1, 1]} : vector<8x128xf32> to vector<8x32xf32>
    %87 = math.tanh %86 : vector<8x32xf32>
    %88 = vector.extract_strided_slice %73 {offsets = [0, 96], sizes = [8, 32], strides = [1, 1]} : vector<8x128xf32> to vector<8x32xf32>
    %89 = arith.negf %88 : vector<8x32xf32>
    %90 = math.exp %89 : vector<8x32xf32>
    %cst_46 = arith.constant 1.000000e+00 : f32
    %91 = vector.broadcast %cst_46 : f32 to vector<8x32xf32>
    %92 = arith.addf %91, %90 : vector<8x32xf32>
    %93 = arith.divf %91, %92 : vector<8x32xf32>
    %94 = arith.mulf %85, %67 : vector<8x32xf32>
    %95 = arith.mulf %79, %87 : vector<8x32xf32>
    %96 = arith.addf %94, %95 : vector<8x32xf32>
    %97 = math.tanh %96 : vector<8x32xf32>
    %98 = arith.mulf %93, %97 : vector<8x32xf32>
    %99 = vector.broadcast %62 : i32 to vector<8x1xi32>
    %100 = arith.cmpi slt, %99, %8 : vector<8x1xi32>
    %101 = vector.shape_cast %100 : vector<8x1xi1> to vector<8x1xi1>
    %102 = vector.broadcast %101 : vector<8x1xi1> to vector<8x32xi1>
    %103 = arith.select %102, %98, %66 : vector<8x32xi1>, vector<8x32xf32>
    %104 = vector.shape_cast %100 : vector<8x1xi1> to vector<8x1xi1>
    %105 = vector.broadcast %104 : vector<8x1xi1> to vector<8x32xi1>
    %106 = arith.select %105, %96, %67 : vector<8x32xi1>, vector<8x32xf32>
    %cst_47 = arith.constant 0.000000e+00 : f32
    %107 = vector.shape_cast %100 : vector<8x1xi1> to vector<8x1xi1>
    %108 = vector.broadcast %107 : vector<8x1xi1> to vector<8x32xi1>
    %109 = vector.broadcast %cst_47 : f32 to vector<8x32xf32>
    %110 = arith.select %108, %98, %109 : vector<8x32xi1>, vector<8x32xf32>
    %c0_48 = arith.constant 0 : index
    %c0_49 = arith.constant 0 : index
    %111 = vector.load %arg9[%c0_48, %c0_49] : memref<8x32xf32, #tpu.memory_space<vmem>>, vector<8x32xf32>
    tpu.vector_store %arg9[%c0_48, %c0_49], %103 {strides = array<i32>} : memref<8x32xf32, #tpu.memory_space<vmem>>, vector<8x32xf32>,
    %c0_50 = arith.constant 0 : index
    %c0_51 = arith.constant 0 : index
    %112 = vector.load %arg10[%c0_50, %c0_51] : memref<8x32xf32, #tpu.memory_space<vmem>>, vector<8x32xf32>
    tpu.vector_store %arg10[%c0_50, %c0_51], %106 {strides = array<i32>} : memref<8x32xf32, #tpu.memory_space<vmem>>, vector<8x32xf32>,
    %113 = vector.shape_cast %110 : vector<8x32xf32> to vector<1x8x32xf32>
    %114 = arith.index_cast %62 : i32 to index
    %c0_52 = arith.constant 0 : index
    %c32 = arith.constant 32 : index
    %115 = vector.load %arg6[%114, %c0_52, %c32] : memref<8x8x64xf32, #tpu.memory_space<vmem>>, vector<1x8x32xf32>
    tpu.vector_store %arg6[%114, %c0_52, %c32], %113 {strides = array<i32>} : memref<8x8x64xf32, #tpu.memory_space<vmem>>, vector<1x8x32xf32>,
    %c1_i32 = arith.constant 1 : i32
    %116 = arith.index_cast %c1_i32 : i32 to index
    %c0_53 = arith.constant 0 : index
    %c0_54 = arith.constant 0 : index
    %117 = vector.load %arg1[%116, %c0_53, %c0_54] : memref<8x8x16xf32, #tpu.memory_space<vmem>>, vector<1x8x16xf32>
    %118 = vector.shape_cast %117 : vector<1x8x16xf32> to vector<8x16xf32>
    %c0_55 = arith.constant 0 : index
    %c0_56 = arith.constant 0 : index
    %119 = vector.load %arg7[%c0_55, %c0_56] : memref<8x32xf32, #tpu.memory_space<vmem>>, vector<8x32xf32>
    %c0_57 = arith.constant 0 : index
    %c0_58 = arith.constant 0 : index
    %120 = vector.load %arg8[%c0_57, %c0_58] : memref<8x32xf32, #tpu.memory_space<vmem>>, vector<8x32xf32>
    %121 = tpu.concatenate %118, %119 in 1 : vector<8x16xf32>, vector<8x32xf32> -> vector<8x48xf32>
    %c0_59 = arith.constant 0 : index
    %c0_60 = arith.constant 0 : index
    %122 = vector.load %arg2[%c0_59, %c0_60] : memref<48x128xf32, #tpu.memory_space<vmem>>, vector<48x128xf32>
    %cst_61 = arith.constant dense<0.000000e+00> : vector<8x128xf32>
    %123 = tpu.matmul %121, %122, %cst_61 {dimension_numbers = #tpu.dot_dimension_numbers<[1], [0], [0], [1], [0, 0, 1, 1], [], []>} : vector<8x48xf32>, vector<48x128xf32>, vector<8x128xf32> -> vector<8x128xf32>
    %c0_62 = arith.constant 0 : index
    %c0_63 = arith.constant 0 : index
    %124 = vector.load %arg3[%c0_62, %c0_63] : memref<1x128xf32, #tpu.memory_space<vmem>>, vector<1x128xf32>
    %125 = vector.broadcast %124 : vector<1x128xf32> to vector<8x128xf32>
    %126 = arith.addf %123, %125 : vector<8x128xf32>
    %127 = vector.extract_strided_slice %126 {offsets = [0, 0], sizes = [8, 32], strides = [1, 1]} : vector<8x128xf32> to vector<8x32xf32>
    %128 = arith.negf %127 : vector<8x32xf32>
    %129 = math.exp %128 : vector<8x32xf32>
    %cst_64 = arith.constant 1.000000e+00 : f32
    %130 = vector.broadcast %cst_64 : f32 to vector<8x32xf32>
    %131 = arith.addf %130, %129 : vector<8x32xf32>
    %132 = arith.divf %130, %131 : vector<8x32xf32>
    %133 = vector.extract_strided_slice %126 {offsets = [0, 32], sizes = [8, 32], strides = [1, 1]} : vector<8x128xf32> to vector<8x32xf32>
    %134 = arith.negf %133 : vector<8x32xf32>
    %135 = math.exp %134 : vector<8x32xf32>
    %cst_65 = arith.constant 1.000000e+00 : f32
    %136 = vector.broadcast %cst_65 : f32 to vector<8x32xf32>
    %137 = arith.addf %136, %135 : vector<8x32xf32>
    %138 = arith.divf %136, %137 : vector<8x32xf32>
    %139 = vector.extract_strided_slice %126 {offsets = [0, 64], sizes = [8, 32], strides = [1, 1]} : vector<8x128xf32> to vector<8x32xf32>
    %140 = math.tanh %139 : vector<8x32xf32>
    %141 = vector.extract_strided_slice %126 {offsets = [0, 96], sizes = [8, 32], strides = [1, 1]} : vector<8x128xf32> to vector<8x32xf32>
    %142 = arith.negf %141 : vector<8x32xf32>
    %143 = math.exp %142 : vector<8x32xf32>
    %cst_66 = arith.constant 1.000000e+00 : f32
    %144 = vector.broadcast %cst_66 : f32 to vector<8x32xf32>
    %145 = arith.addf %144, %143 : vector<8x32xf32>
    %146 = arith.divf %144, %145 : vector<8x32xf32>
    %147 = arith.mulf %138, %120 : vector<8x32xf32>
    %148 = arith.mulf %132, %140 : vector<8x32xf32>
    %149 = arith.addf %147, %148 : vector<8x32xf32>
    %150 = math.tanh %149 : vector<8x32xf32>
    %151 = arith.mulf %146, %150 : vector<8x32xf32>
    %152 = vector.broadcast %c1_i32 : i32 to vector<8x1xi32>
    %153 = arith.cmpi slt, %152, %8 : vector<8x1xi32>
    %154 = vector.shape_cast %153 : vector<8x1xi1> to vector<8x1xi1>
    %155 = vector.broadcast %154 : vector<8x1xi1> to vector<8x32xi1>
    %156 = arith.select %155, %151, %119 : vector<8x32xi1>, vector<8x32xf32>
    %157 = vector.shape_cast %153 : vector<8x1xi1> to vector<8x1xi1>
    %158 = vector.broadcast %157 : vector<8x1xi1> to vector<8x32xi1>
    %159 = arith.select %158, %149, %120 : vector<8x32xi1>, vector<8x32xf32>
    %cst_67 = arith.constant 0.000000e+00 : f32
    %160 = vector.shape_cast %153 : vector<8x1xi1> to vector<8x1xi1>
    %161 = vector.broadcast %160 : vector<8x1xi1> to vector<8x32xi1>
    %162 = vector.broadcast %cst_67 : f32 to vector<8x32xf32>
    %163 = arith.select %161, %151, %162 : vector<8x32xi1>, vector<8x32xf32>
    %c0_68 = arith.constant 0 : index
    %c0_69 = arith.constant 0 : index
    %164 = vector.load %arg7[%c0_68, %c0_69] : memref<8x32xf32, #tpu.memory_space<vmem>>, vector<8x32xf32>
    tpu.vector_store %arg7[%c0_68, %c0_69], %156 {strides = array<i32>} : memref<8x32xf32, #tpu.memory_space<vmem>>, vector<8x32xf32>,
    %c0_70 = arith.constant 0 : index
    %c0_71 = arith.constant 0 : index
    %165 = vector.load %arg8[%c0_70, %c0_71] : memref<8x32xf32, #tpu.memory_space<vmem>>, vector<8x32xf32>
    tpu.vector_store %arg8[%c0_70, %c0_71], %159 {strides = array<i32>} : memref<8x32xf32, #tpu.memory_space<vmem>>, vector<8x32xf32>,
    %166 = vector.shape_cast %163 : vector<8x32xf32> to vector<1x8x32xf32>
    %167 = arith.index_cast %c1_i32 : i32 to index
    %c0_72 = arith.constant 0 : index
    %c0_73 = arith.constant 0 : index
    %168 = vector.load %arg6[%167, %c0_72, %c0_73] : memref<8x8x64xf32, #tpu.memory_space<vmem>>, vector<1x8x32xf32>
    tpu.vector_store %arg6[%167, %c0_72, %c0_73], %166 {strides = array<i32>} : memref<8x8x64xf32, #tpu.memory_space<vmem>>, vector<1x8x32xf32>,
    %c7_i32_74 = arith.constant 7 : i32
    %169 = arith.subi %c7_i32_74, %c1_i32 : i32
    %170 = arith.index_cast %169 : i32 to index
    %c0_75 = arith.constant 0 : index
    %c0_76 = arith.constant 0 : index
    %171 = vector.load %arg1[%170, %c0_75, %c0_76] : memref<8x8x16xf32, #tpu.memory_space<vmem>>, vector<1x8x16xf32>
    %172 = vector.shape_cast %171 : vector<1x8x16xf32> to vector<8x16xf32>
    %c0_77 = arith.constant 0 : index
    %c0_78 = arith.constant 0 : index
    %173 = vector.load %arg9[%c0_77, %c0_78] : memref<8x32xf32, #tpu.memory_space<vmem>>, vector<8x32xf32>
    %c0_79 = arith.constant 0 : index
    %c0_80 = arith.constant 0 : index
    %174 = vector.load %arg10[%c0_79, %c0_80] : memref<8x32xf32, #tpu.memory_space<vmem>>, vector<8x32xf32>
    %175 = tpu.concatenate %172, %173 in 1 : vector<8x16xf32>, vector<8x32xf32> -> vector<8x48xf32>
    %c0_81 = arith.constant 0 : index
    %c0_82 = arith.constant 0 : index
    %176 = vector.load %arg4[%c0_81, %c0_82] : memref<48x128xf32, #tpu.memory_space<vmem>>, vector<48x128xf32>
    %cst_83 = arith.constant dense<0.000000e+00> : vector<8x128xf32>
    %177 = tpu.matmul %175, %176, %cst_83 {dimension_numbers = #tpu.dot_dimension_numbers<[1], [0], [0], [1], [0, 0, 1, 1], [], []>} : vector<8x48xf32>, vector<48x128xf32>, vector<8x128xf32> -> vector<8x128xf32>
    %c0_84 = arith.constant 0 : index
    %c0_85 = arith.constant 0 : index
    %178 = vector.load %arg5[%c0_84, %c0_85] : memref<1x128xf32, #tpu.memory_space<vmem>>, vector<1x128xf32>
    %179 = vector.broadcast %178 : vector<1x128xf32> to vector<8x128xf32>
    %180 = arith.addf %177, %179 : vector<8x128xf32>
    %181 = vector.extract_strided_slice %180 {offsets = [0, 0], sizes = [8, 32], strides = [1, 1]} : vector<8x128xf32> to vector<8x32xf32>
    %182 = arith.negf %181 : vector<8x32xf32>
    %183 = math.exp %182 : vector<8x32xf32>
    %cst_86 = arith.constant 1.000000e+00 : f32
    %184 = vector.broadcast %cst_86 : f32 to vector<8x32xf32>
    %185 = arith.addf %184, %183 : vector<8x32xf32>
    %186 = arith.divf %184, %185 : vector<8x32xf32>
    %187 = vector.extract_strided_slice %180 {offsets = [0, 32], sizes = [8, 32], strides = [1, 1]} : vector<8x128xf32> to vector<8x32xf32>
    %188 = arith.negf %187 : vector<8x32xf32>
    %189 = math.exp %188 : vector<8x32xf32>
    %cst_87 = arith.constant 1.000000e+00 : f32
    %190 = vector.broadcast %cst_87 : f32 to vector<8x32xf32>
    %191 = arith.addf %190, %189 : vector<8x32xf32>
    %192 = arith.divf %190, %191 : vector<8x32xf32>
    %193 = vector.extract_strided_slice %180 {offsets = [0, 64], sizes = [8, 32], strides = [1, 1]} : vector<8x128xf32> to vector<8x32xf32>
    %194 = math.tanh %193 : vector<8x32xf32>
    %195 = vector.extract_strided_slice %180 {offsets = [0, 96], sizes = [8, 32], strides = [1, 1]} : vector<8x128xf32> to vector<8x32xf32>
    %196 = arith.negf %195 : vector<8x32xf32>
    %197 = math.exp %196 : vector<8x32xf32>
    %cst_88 = arith.constant 1.000000e+00 : f32
    %198 = vector.broadcast %cst_88 : f32 to vector<8x32xf32>
    %199 = arith.addf %198, %197 : vector<8x32xf32>
    %200 = arith.divf %198, %199 : vector<8x32xf32>
    %201 = arith.mulf %192, %174 : vector<8x32xf32>
    %202 = arith.mulf %186, %194 : vector<8x32xf32>
    %203 = arith.addf %201, %202 : vector<8x32xf32>
    %204 = math.tanh %203 : vector<8x32xf32>
    %205 = arith.mulf %200, %204 : vector<8x32xf32>
    %206 = vector.broadcast %169 : i32 to vector<8x1xi32>
    %207 = arith.cmpi slt, %206, %8 : vector<8x1xi32>
    %208 = vector.shape_cast %207 : vector<8x1xi1> to vector<8x1xi1>
    %209 = vector.broadcast %208 : vector<8x1xi1> to vector<8x32xi1>
    %210 = arith.select %209, %205, %173 : vector<8x32xi1>, vector<8x32xf32>
    %211 = vector.shape_cast %207 : vector<8x1xi1> to vector<8x1xi1>
    %212 = vector.broadcast %211 : vector<8x1xi1> to vector<8x32xi1>
    %213 = arith.select %212, %203, %174 : vector<8x32xi1>, vector<8x32xf32>
    %cst_89 = arith.constant 0.000000e+00 : f32
    %214 = vector.shape_cast %207 : vector<8x1xi1> to vector<8x1xi1>
    %215 = vector.broadcast %214 : vector<8x1xi1> to vector<8x32xi1>
    %216 = vector.broadcast %cst_89 : f32 to vector<8x32xf32>
    %217 = arith.select %215, %205, %216 : vector<8x32xi1>, vector<8x32xf32>
    %c0_90 = arith.constant 0 : index
    %c0_91 = arith.constant 0 : index
    %218 = vector.load %arg9[%c0_90, %c0_91] : memref<8x32xf32, #tpu.memory_space<vmem>>, vector<8x32xf32>
    tpu.vector_store %arg9[%c0_90, %c0_91], %210 {strides = array<i32>} : memref<8x32xf32, #tpu.memory_space<vmem>>, vector<8x32xf32>,
    %c0_92 = arith.constant 0 : index
    %c0_93 = arith.constant 0 : index
    %219 = vector.load %arg10[%c0_92, %c0_93] : memref<8x32xf32, #tpu.memory_space<vmem>>, vector<8x32xf32>
    tpu.vector_store %arg10[%c0_92, %c0_93], %213 {strides = array<i32>} : memref<8x32xf32, #tpu.memory_space<vmem>>, vector<8x32xf32>,
    %220 = vector.shape_cast %217 : vector<8x32xf32> to vector<1x8x32xf32>
    %221 = arith.index_cast %169 : i32 to index
    %c0_94 = arith.constant 0 : index
    %c32_95 = arith.constant 32 : index
    %222 = vector.load %arg6[%221, %c0_94, %c32_95] : memref<8x8x64xf32, #tpu.memory_space<vmem>>, vector<1x8x32xf32>
    tpu.vector_store %arg6[%221, %c0_94, %c32_95], %220 {strides = array<i32>} : memref<8x8x64xf32, #tpu.memory_space<vmem>>, vector<1x8x32xf32>,
    %c2_i32 = arith.constant 2 : i32
    %223 = arith.index_cast %c2_i32 : i32 to index
    %c0_96 = arith.constant 0 : index
    %c0_97 = arith.constant 0 : index
    %224 = vector.load %arg1[%223, %c0_96, %c0_97] : memref<8x8x16xf32, #tpu.memory_space<vmem>>, vector<1x8x16xf32>
    %225 = vector.shape_cast %224 : vector<1x8x16xf32> to vector<8x16xf32>
    %c0_98 = arith.constant 0 : index
    %c0_99 = arith.constant 0 : index
    %226 = vector.load %arg7[%c0_98, %c0_99] : memref<8x32xf32, #tpu.memory_space<vmem>>, vector<8x32xf32>
    %c0_100 = arith.constant 0 : index
    %c0_101 = arith.constant 0 : index
    %227 = vector.load %arg8[%c0_100, %c0_101] : memref<8x32xf32, #tpu.memory_space<vmem>>, vector<8x32xf32>
    %228 = tpu.concatenate %225, %226 in 1 : vector<8x16xf32>, vector<8x32xf32> -> vector<8x48xf32>
    %c0_102 = arith.constant 0 : index
    %c0_103 = arith.constant 0 : index
    %229 = vector.load %arg2[%c0_102, %c0_103] : memref<48x128xf32, #tpu.memory_space<vmem>>, vector<48x128xf32>
    %cst_104 = arith.constant dense<0.000000e+00> : vector<8x128xf32>
    %230 = tpu.matmul %228, %229, %cst_104 {dimension_numbers = #tpu.dot_dimension_numbers<[1], [0], [0], [1], [0, 0, 1, 1], [], []>} : vector<8x48xf32>, vector<48x128xf32>, vector<8x128xf32> -> vector<8x128xf32>
    %c0_105 = arith.constant 0 : index
    %c0_106 = arith.constant 0 : index
    %231 = vector.load %arg3[%c0_105, %c0_106] : memref<1x128xf32, #tpu.memory_space<vmem>>, vector<1x128xf32>
    %232 = vector.broadcast %231 : vector<1x128xf32> to vector<8x128xf32>
    %233 = arith.addf %230, %232 : vector<8x128xf32>
    %234 = vector.extract_strided_slice %233 {offsets = [0, 0], sizes = [8, 32], strides = [1, 1]} : vector<8x128xf32> to vector<8x32xf32>
    %235 = arith.negf %234 : vector<8x32xf32>
    %236 = math.exp %235 : vector<8x32xf32>
    %cst_107 = arith.constant 1.000000e+00 : f32
    %237 = vector.broadcast %cst_107 : f32 to vector<8x32xf32>
    %238 = arith.addf %237, %236 : vector<8x32xf32>
    %239 = arith.divf %237, %238 : vector<8x32xf32>
    %240 = vector.extract_strided_slice %233 {offsets = [0, 32], sizes = [8, 32], strides = [1, 1]} : vector<8x128xf32> to vector<8x32xf32>
    %241 = arith.negf %240 : vector<8x32xf32>
    %242 = math.exp %241 : vector<8x32xf32>
    %cst_108 = arith.constant 1.000000e+00 : f32
    %243 = vector.broadcast %cst_108 : f32 to vector<8x32xf32>
    %244 = arith.addf %243, %242 : vector<8x32xf32>
    %245 = arith.divf %243, %244 : vector<8x32xf32>
    %246 = vector.extract_strided_slice %233 {offsets = [0, 64], sizes = [8, 32], strides = [1, 1]} : vector<8x128xf32> to vector<8x32xf32>
    %247 = math.tanh %246 : vector<8x32xf32>
    %248 = vector.extract_strided_slice %233 {offsets = [0, 96], sizes = [8, 32], strides = [1, 1]} : vector<8x128xf32> to vector<8x32xf32>
    %249 = arith.negf %248 : vector<8x32xf32>
    %250 = math.exp %249 : vector<8x32xf32>
    %cst_109 = arith.constant 1.000000e+00 : f32
    %251 = vector.broadcast %cst_109 : f32 to vector<8x32xf32>
    %252 = arith.addf %251, %250 : vector<8x32xf32>
    %253 = arith.divf %251, %252 : vector<8x32xf32>
    %254 = arith.mulf %245, %227 : vector<8x32xf32>
    %255 = arith.mulf %239, %247 : vector<8x32xf32>
    %256 = arith.addf %254, %255 : vector<8x32xf32>
    %257 = math.tanh %256 : vector<8x32xf32>
    %258 = arith.mulf %253, %257 : vector<8x32xf32>
    %259 = vector.broadcast %c2_i32 : i32 to vector<8x1xi32>
    %260 = arith.cmpi slt, %259, %8 : vector<8x1xi32>
    %261 = vector.shape_cast %260 : vector<8x1xi1> to vector<8x1xi1>
    %262 = vector.broadcast %261 : vector<8x1xi1> to vector<8x32xi1>
    %263 = arith.select %262, %258, %226 : vector<8x32xi1>, vector<8x32xf32>
    %264 = vector.shape_cast %260 : vector<8x1xi1> to vector<8x1xi1>
    %265 = vector.broadcast %264 : vector<8x1xi1> to vector<8x32xi1>
    %266 = arith.select %265, %256, %227 : vector<8x32xi1>, vector<8x32xf32>
    %cst_110 = arith.constant 0.000000e+00 : f32
    %267 = vector.shape_cast %260 : vector<8x1xi1> to vector<8x1xi1>
    %268 = vector.broadcast %267 : vector<8x1xi1> to vector<8x32xi1>
    %269 = vector.broadcast %cst_110 : f32 to vector<8x32xf32>
    %270 = arith.select %268, %258, %269 : vector<8x32xi1>, vector<8x32xf32>
    %c0_111 = arith.constant 0 : index
    %c0_112 = arith.constant 0 : index
    %271 = vector.load %arg7[%c0_111, %c0_112] : memref<8x32xf32, #tpu.memory_space<vmem>>, vector<8x32xf32>
    tpu.vector_store %arg7[%c0_111, %c0_112], %263 {strides = array<i32>} : memref<8x32xf32, #tpu.memory_space<vmem>>, vector<8x32xf32>,
    %c0_113 = arith.constant 0 : index
    %c0_114 = arith.constant 0 : index
    %272 = vector.load %arg8[%c0_113, %c0_114] : memref<8x32xf32, #tpu.memory_space<vmem>>, vector<8x32xf32>
    tpu.vector_store %arg8[%c0_113, %c0_114], %266 {strides = array<i32>} : memref<8x32xf32, #tpu.memory_space<vmem>>, vector<8x32xf32>,
    %273 = vector.shape_cast %270 : vector<8x32xf32> to vector<1x8x32xf32>
    %274 = arith.index_cast %c2_i32 : i32 to index
    %c0_115 = arith.constant 0 : index
    %c0_116 = arith.constant 0 : index
    %275 = vector.load %arg6[%274, %c0_115, %c0_116] : memref<8x8x64xf32, #tpu.memory_space<vmem>>, vector<1x8x32xf32>
    tpu.vector_store %arg6[%274, %c0_115, %c0_116], %273 {strides = array<i32>} : memref<8x8x64xf32, #tpu.memory_space<vmem>>, vector<1x8x32xf32>,
    %c7_i32_117 = arith.constant 7 : i32
    %276 = arith.subi %c7_i32_117, %c2_i32 : i32
    %277 = arith.index_cast %276 : i32 to index
    %c0_118 = arith.constant 0 : index
    %c0_119 = arith.constant 0 : index
    %278 = vector.load %arg1[%277, %c0_118, %c0_119] : memref<8x8x16xf32, #tpu.memory_space<vmem>>, vector<1x8x16xf32>
    %279 = vector.shape_cast %278 : vector<1x8x16xf32> to vector<8x16xf32>
    %c0_120 = arith.constant 0 : index
    %c0_121 = arith.constant 0 : index
    %280 = vector.load %arg9[%c0_120, %c0_121] : memref<8x32xf32, #tpu.memory_space<vmem>>, vector<8x32xf32>
    %c0_122 = arith.constant 0 : index
    %c0_123 = arith.constant 0 : index
    %281 = vector.load %arg10[%c0_122, %c0_123] : memref<8x32xf32, #tpu.memory_space<vmem>>, vector<8x32xf32>
    %282 = tpu.concatenate %279, %280 in 1 : vector<8x16xf32>, vector<8x32xf32> -> vector<8x48xf32>
    %c0_124 = arith.constant 0 : index
    %c0_125 = arith.constant 0 : index
    %283 = vector.load %arg4[%c0_124, %c0_125] : memref<48x128xf32, #tpu.memory_space<vmem>>, vector<48x128xf32>
    %cst_126 = arith.constant dense<0.000000e+00> : vector<8x128xf32>
    %284 = tpu.matmul %282, %283, %cst_126 {dimension_numbers = #tpu.dot_dimension_numbers<[1], [0], [0], [1], [0, 0, 1, 1], [], []>} : vector<8x48xf32>, vector<48x128xf32>, vector<8x128xf32> -> vector<8x128xf32>
    %c0_127 = arith.constant 0 : index
    %c0_128 = arith.constant 0 : index
    %285 = vector.load %arg5[%c0_127, %c0_128] : memref<1x128xf32, #tpu.memory_space<vmem>>, vector<1x128xf32>
    %286 = vector.broadcast %285 : vector<1x128xf32> to vector<8x128xf32>
    %287 = arith.addf %284, %286 : vector<8x128xf32>
    %288 = vector.extract_strided_slice %287 {offsets = [0, 0], sizes = [8, 32], strides = [1, 1]} : vector<8x128xf32> to vector<8x32xf32>
    %289 = arith.negf %288 : vector<8x32xf32>
    %290 = math.exp %289 : vector<8x32xf32>
    %cst_129 = arith.constant 1.000000e+00 : f32
    %291 = vector.broadcast %cst_129 : f32 to vector<8x32xf32>
    %292 = arith.addf %291, %290 : vector<8x32xf32>
    %293 = arith.divf %291, %292 : vector<8x32xf32>
    %294 = vector.extract_strided_slice %287 {offsets = [0, 32], sizes = [8, 32], strides = [1, 1]} : vector<8x128xf32> to vector<8x32xf32>
    %295 = arith.negf %294 : vector<8x32xf32>
    %296 = math.exp %295 : vector<8x32xf32>
    %cst_130 = arith.constant 1.000000e+00 : f32
    %297 = vector.broadcast %cst_130 : f32 to vector<8x32xf32>
    %298 = arith.addf %297, %296 : vector<8x32xf32>
    %299 = arith.divf %297, %298 : vector<8x32xf32>
    %300 = vector.extract_strided_slice %287 {offsets = [0, 64], sizes = [8, 32], strides = [1, 1]} : vector<8x128xf32> to vector<8x32xf32>
    %301 = math.tanh %300 : vector<8x32xf32>
    %302 = vector.extract_strided_slice %287 {offsets = [0, 96], sizes = [8, 32], strides = [1, 1]} : vector<8x128xf32> to vector<8x32xf32>
    %303 = arith.negf %302 : vector<8x32xf32>
    %304 = math.exp %303 : vector<8x32xf32>
    %cst_131 = arith.constant 1.000000e+00 : f32
    %305 = vector.broadcast %cst_131 : f32 to vector<8x32xf32>
    %306 = arith.addf %305, %304 : vector<8x32xf32>
    %307 = arith.divf %305, %306 : vector<8x32xf32>
    %308 = arith.mulf %299, %281 : vector<8x32xf32>
    %309 = arith.mulf %293, %301 : vector<8x32xf32>
    %310 = arith.addf %308, %309 : vector<8x32xf32>
    %311 = math.tanh %310 : vector<8x32xf32>
    %312 = arith.mulf %307, %311 : vector<8x32xf32>
    %313 = vector.broadcast %276 : i32 to vector<8x1xi32>
    %314 = arith.cmpi slt, %313, %8 : vector<8x1xi32>
    %315 = vector.shape_cast %314 : vector<8x1xi1> to vector<8x1xi1>
    %316 = vector.broadcast %315 : vector<8x1xi1> to vector<8x32xi1>
    %317 = arith.select %316, %312, %280 : vector<8x32xi1>, vector<8x32xf32>
    %318 = vector.shape_cast %314 : vector<8x1xi1> to vector<8x1xi1>
    %319 = vector.broadcast %318 : vector<8x1xi1> to vector<8x32xi1>
    %320 = arith.select %319, %310, %281 : vector<8x32xi1>, vector<8x32xf32>
    %cst_132 = arith.constant 0.000000e+00 : f32
    %321 = vector.shape_cast %314 : vector<8x1xi1> to vector<8x1xi1>
    %322 = vector.broadcast %321 : vector<8x1xi1> to vector<8x32xi1>
    %323 = vector.broadcast %cst_132 : f32 to vector<8x32xf32>
    %324 = arith.select %322, %312, %323 : vector<8x32xi1>, vector<8x32xf32>
    %c0_133 = arith.constant 0 : index
    %c0_134 = arith.constant 0 : index
    %325 = vector.load %arg9[%c0_133, %c0_134] : memref<8x32xf32, #tpu.memory_space<vmem>>, vector<8x32xf32>
    tpu.vector_store %arg9[%c0_133, %c0_134], %317 {strides = array<i32>} : memref<8x32xf32, #tpu.memory_space<vmem>>, vector<8x32xf32>,
    %c0_135 = arith.constant 0 : index
    %c0_136 = arith.constant 0 : index
    %326 = vector.load %arg10[%c0_135, %c0_136] : memref<8x32xf32, #tpu.memory_space<vmem>>, vector<8x32xf32>
    tpu.vector_store %arg10[%c0_135, %c0_136], %320 {strides = array<i32>} : memref<8x32xf32, #tpu.memory_space<vmem>>, vector<8x32xf32>,
    %327 = vector.shape_cast %324 : vector<8x32xf32> to vector<1x8x32xf32>
    %328 = arith.index_cast %276 : i32 to index
    %c0_137 = arith.constant 0 : index
    %c32_138 = arith.constant 32 : index
    %329 = vector.load %arg6[%328, %c0_137, %c32_138] : memref<8x8x64xf32, #tpu.memory_space<vmem>>, vector<1x8x32xf32>
    tpu.vector_store %arg6[%328, %c0_137, %c32_138], %327 {strides = array<i32>} : memref<8x8x64xf32, #tpu.memory_space<vmem>>, vector<1x8x32xf32>,
    %c3_i32 = arith.constant 3 : i32
    %330 = arith.index_cast %c3_i32 : i32 to index
    %c0_139 = arith.constant 0 : index
    %c0_140 = arith.constant 0 : index
    %331 = vector.load %arg1[%330, %c0_139, %c0_140] : memref<8x8x16xf32, #tpu.memory_space<vmem>>, vector<1x8x16xf32>
    %332 = vector.shape_cast %331 : vector<1x8x16xf32> to vector<8x16xf32>
    %c0_141 = arith.constant 0 : index
    %c0_142 = arith.constant 0 : index
    %333 = vector.load %arg7[%c0_141, %c0_142] : memref<8x32xf32, #tpu.memory_space<vmem>>, vector<8x32xf32>
    %c0_143 = arith.constant 0 : index
    %c0_144 = arith.constant 0 : index
    %334 = vector.load %arg8[%c0_143, %c0_144] : memref<8x32xf32, #tpu.memory_space<vmem>>, vector<8x32xf32>
    %335 = tpu.concatenate %332, %333 in 1 : vector<8x16xf32>, vector<8x32xf32> -> vector<8x48xf32>
    %c0_145 = arith.constant 0 : index
    %c0_146 = arith.constant 0 : index
    %336 = vector.load %arg2[%c0_145, %c0_146] : memref<48x128xf32, #tpu.memory_space<vmem>>, vector<48x128xf32>
    %cst_147 = arith.constant dense<0.000000e+00> : vector<8x128xf32>
    %337 = tpu.matmul %335, %336, %cst_147 {dimension_numbers = #tpu.dot_dimension_numbers<[1], [0], [0], [1], [0, 0, 1, 1], [], []>} : vector<8x48xf32>, vector<48x128xf32>, vector<8x128xf32> -> vector<8x128xf32>
    %c0_148 = arith.constant 0 : index
    %c0_149 = arith.constant 0 : index
    %338 = vector.load %arg3[%c0_148, %c0_149] : memref<1x128xf32, #tpu.memory_space<vmem>>, vector<1x128xf32>
    %339 = vector.broadcast %338 : vector<1x128xf32> to vector<8x128xf32>
    %340 = arith.addf %337, %339 : vector<8x128xf32>
    %341 = vector.extract_strided_slice %340 {offsets = [0, 0], sizes = [8, 32], strides = [1, 1]} : vector<8x128xf32> to vector<8x32xf32>
    %342 = arith.negf %341 : vector<8x32xf32>
    %343 = math.exp %342 : vector<8x32xf32>
    %cst_150 = arith.constant 1.000000e+00 : f32
    %344 = vector.broadcast %cst_150 : f32 to vector<8x32xf32>
    %345 = arith.addf %344, %343 : vector<8x32xf32>
    %346 = arith.divf %344, %345 : vector<8x32xf32>
    %347 = vector.extract_strided_slice %340 {offsets = [0, 32], sizes = [8, 32], strides = [1, 1]} : vector<8x128xf32> to vector<8x32xf32>
    %348 = arith.negf %347 : vector<8x32xf32>
    %349 = math.exp %348 : vector<8x32xf32>
    %cst_151 = arith.constant 1.000000e+00 : f32
    %350 = vector.broadcast %cst_151 : f32 to vector<8x32xf32>
    %351 = arith.addf %350, %349 : vector<8x32xf32>
    %352 = arith.divf %350, %351 : vector<8x32xf32>
    %353 = vector.extract_strided_slice %340 {offsets = [0, 64], sizes = [8, 32], strides = [1, 1]} : vector<8x128xf32> to vector<8x32xf32>
    %354 = math.tanh %353 : vector<8x32xf32>
    %355 = vector.extract_strided_slice %340 {offsets = [0, 96], sizes = [8, 32], strides = [1, 1]} : vector<8x128xf32> to vector<8x32xf32>
    %356 = arith.negf %355 : vector<8x32xf32>
    %357 = math.exp %356 : vector<8x32xf32>
    %cst_152 = arith.constant 1.000000e+00 : f32
    %358 = vector.broadcast %cst_152 : f32 to vector<8x32xf32>
    %359 = arith.addf %358, %357 : vector<8x32xf32>
    %360 = arith.divf %358, %359 : vector<8x32xf32>
    %361 = arith.mulf %352, %334 : vector<8x32xf32>
    %362 = arith.mulf %346, %354 : vector<8x32xf32>
    %363 = arith.addf %361, %362 : vector<8x32xf32>
    %364 = math.tanh %363 : vector<8x32xf32>
    %365 = arith.mulf %360, %364 : vector<8x32xf32>
    %366 = vector.broadcast %c3_i32 : i32 to vector<8x1xi32>
    %367 = arith.cmpi slt, %366, %8 : vector<8x1xi32>
    %368 = vector.shape_cast %367 : vector<8x1xi1> to vector<8x1xi1>
    %369 = vector.broadcast %368 : vector<8x1xi1> to vector<8x32xi1>
    %370 = arith.select %369, %365, %333 : vector<8x32xi1>, vector<8x32xf32>
    %371 = vector.shape_cast %367 : vector<8x1xi1> to vector<8x1xi1>
    %372 = vector.broadcast %371 : vector<8x1xi1> to vector<8x32xi1>
    %373 = arith.select %372, %363, %334 : vector<8x32xi1>, vector<8x32xf32>
    %cst_153 = arith.constant 0.000000e+00 : f32
    %374 = vector.shape_cast %367 : vector<8x1xi1> to vector<8x1xi1>
    %375 = vector.broadcast %374 : vector<8x1xi1> to vector<8x32xi1>
    %376 = vector.broadcast %cst_153 : f32 to vector<8x32xf32>
    %377 = arith.select %375, %365, %376 : vector<8x32xi1>, vector<8x32xf32>
    %c0_154 = arith.constant 0 : index
    %c0_155 = arith.constant 0 : index
    %378 = vector.load %arg7[%c0_154, %c0_155] : memref<8x32xf32, #tpu.memory_space<vmem>>, vector<8x32xf32>
    tpu.vector_store %arg7[%c0_154, %c0_155], %370 {strides = array<i32>} : memref<8x32xf32, #tpu.memory_space<vmem>>, vector<8x32xf32>,
    %c0_156 = arith.constant 0 : index
    %c0_157 = arith.constant 0 : index
    %379 = vector.load %arg8[%c0_156, %c0_157] : memref<8x32xf32, #tpu.memory_space<vmem>>, vector<8x32xf32>
    tpu.vector_store %arg8[%c0_156, %c0_157], %373 {strides = array<i32>} : memref<8x32xf32, #tpu.memory_space<vmem>>, vector<8x32xf32>,
    %380 = vector.shape_cast %377 : vector<8x32xf32> to vector<1x8x32xf32>
    %381 = arith.index_cast %c3_i32 : i32 to index
    %c0_158 = arith.constant 0 : index
    %c0_159 = arith.constant 0 : index
    %382 = vector.load %arg6[%381, %c0_158, %c0_159] : memref<8x8x64xf32, #tpu.memory_space<vmem>>, vector<1x8x32xf32>
    tpu.vector_store %arg6[%381, %c0_158, %c0_159], %380 {strides = array<i32>} : memref<8x8x64xf32, #tpu.memory_space<vmem>>, vector<1x8x32xf32>,
    %c7_i32_160 = arith.constant 7 : i32
    %383 = arith.subi %c7_i32_160, %c3_i32 : i32
    %384 = arith.index_cast %383 : i32 to index
    %c0_161 = arith.constant 0 : index
    %c0_162 = arith.constant 0 : index
    %385 = vector.load %arg1[%384, %c0_161, %c0_162] : memref<8x8x16xf32, #tpu.memory_space<vmem>>, vector<1x8x16xf32>
    %386 = vector.shape_cast %385 : vector<1x8x16xf32> to vector<8x16xf32>
    %c0_163 = arith.constant 0 : index
    %c0_164 = arith.constant 0 : index
    %387 = vector.load %arg9[%c0_163, %c0_164] : memref<8x32xf32, #tpu.memory_space<vmem>>, vector<8x32xf32>
    %c0_165 = arith.constant 0 : index
    %c0_166 = arith.constant 0 : index
    %388 = vector.load %arg10[%c0_165, %c0_166] : memref<8x32xf32, #tpu.memory_space<vmem>>, vector<8x32xf32>
    %389 = tpu.concatenate %386, %387 in 1 : vector<8x16xf32>, vector<8x32xf32> -> vector<8x48xf32>
    %c0_167 = arith.constant 0 : index
    %c0_168 = arith.constant 0 : index
    %390 = vector.load %arg4[%c0_167, %c0_168] : memref<48x128xf32, #tpu.memory_space<vmem>>, vector<48x128xf32>
    %cst_169 = arith.constant dense<0.000000e+00> : vector<8x128xf32>
    %391 = tpu.matmul %389, %390, %cst_169 {dimension_numbers = #tpu.dot_dimension_numbers<[1], [0], [0], [1], [0, 0, 1, 1], [], []>} : vector<8x48xf32>, vector<48x128xf32>, vector<8x128xf32> -> vector<8x128xf32>
    %c0_170 = arith.constant 0 : index
    %c0_171 = arith.constant 0 : index
    %392 = vector.load %arg5[%c0_170, %c0_171] : memref<1x128xf32, #tpu.memory_space<vmem>>, vector<1x128xf32>
    %393 = vector.broadcast %392 : vector<1x128xf32> to vector<8x128xf32>
    %394 = arith.addf %391, %393 : vector<8x128xf32>
    %395 = vector.extract_strided_slice %394 {offsets = [0, 0], sizes = [8, 32], strides = [1, 1]} : vector<8x128xf32> to vector<8x32xf32>
    %396 = arith.negf %395 : vector<8x32xf32>
    %397 = math.exp %396 : vector<8x32xf32>
    %cst_172 = arith.constant 1.000000e+00 : f32
    %398 = vector.broadcast %cst_172 : f32 to vector<8x32xf32>
    %399 = arith.addf %398, %397 : vector<8x32xf32>
    %400 = arith.divf %398, %399 : vector<8x32xf32>
    %401 = vector.extract_strided_slice %394 {offsets = [0, 32], sizes = [8, 32], strides = [1, 1]} : vector<8x128xf32> to vector<8x32xf32>
    %402 = arith.negf %401 : vector<8x32xf32>
    %403 = math.exp %402 : vector<8x32xf32>
    %cst_173 = arith.constant 1.000000e+00 : f32
    %404 = vector.broadcast %cst_173 : f32 to vector<8x32xf32>
    %405 = arith.addf %404, %403 : vector<8x32xf32>
    %406 = arith.divf %404, %405 : vector<8x32xf32>
    %407 = vector.extract_strided_slice %394 {offsets = [0, 64], sizes = [8, 32], strides = [1, 1]} : vector<8x128xf32> to vector<8x32xf32>
    %408 = math.tanh %407 : vector<8x32xf32>
    %409 = vector.extract_strided_slice %394 {offsets = [0, 96], sizes = [8, 32], strides = [1, 1]} : vector<8x128xf32> to vector<8x32xf32>
    %410 = arith.negf %409 : vector<8x32xf32>
    %411 = math.exp %410 : vector<8x32xf32>
    %cst_174 = arith.constant 1.000000e+00 : f32
    %412 = vector.broadcast %cst_174 : f32 to vector<8x32xf32>
    %413 = arith.addf %412, %411 : vector<8x32xf32>
    %414 = arith.divf %412, %413 : vector<8x32xf32>
    %415 = arith.mulf %406, %388 : vector<8x32xf32>
    %416 = arith.mulf %400, %408 : vector<8x32xf32>
    %417 = arith.addf %415, %416 : vector<8x32xf32>
    %418 = math.tanh %417 : vector<8x32xf32>
    %419 = arith.mulf %414, %418 : vector<8x32xf32>
    %420 = vector.broadcast %383 : i32 to vector<8x1xi32>
    %421 = arith.cmpi slt, %420, %8 : vector<8x1xi32>
    %422 = vector.shape_cast %421 : vector<8x1xi1> to vector<8x1xi1>
    %423 = vector.broadcast %422 : vector<8x1xi1> to vector<8x32xi1>
    %424 = arith.select %423, %419, %387 : vector<8x32xi1>, vector<8x32xf32>
    %425 = vector.shape_cast %421 : vector<8x1xi1> to vector<8x1xi1>
    %426 = vector.broadcast %425 : vector<8x1xi1> to vector<8x32xi1>
    %427 = arith.select %426, %417, %388 : vector<8x32xi1>, vector<8x32xf32>
    %cst_175 = arith.constant 0.000000e+00 : f32
    %428 = vector.shape_cast %421 : vector<8x1xi1> to vector<8x1xi1>
    %429 = vector.broadcast %428 : vector<8x1xi1> to vector<8x32xi1>
    %430 = vector.broadcast %cst_175 : f32 to vector<8x32xf32>
    %431 = arith.select %429, %419, %430 : vector<8x32xi1>, vector<8x32xf32>
    %c0_176 = arith.constant 0 : index
    %c0_177 = arith.constant 0 : index
    %432 = vector.load %arg9[%c0_176, %c0_177] : memref<8x32xf32, #tpu.memory_space<vmem>>, vector<8x32xf32>
    tpu.vector_store %arg9[%c0_176, %c0_177], %424 {strides = array<i32>} : memref<8x32xf32, #tpu.memory_space<vmem>>, vector<8x32xf32>,
    %c0_178 = arith.constant 0 : index
    %c0_179 = arith.constant 0 : index
    %433 = vector.load %arg10[%c0_178, %c0_179] : memref<8x32xf32, #tpu.memory_space<vmem>>, vector<8x32xf32>
    tpu.vector_store %arg10[%c0_178, %c0_179], %427 {strides = array<i32>} : memref<8x32xf32, #tpu.memory_space<vmem>>, vector<8x32xf32>,
    %434 = vector.shape_cast %431 : vector<8x32xf32> to vector<1x8x32xf32>
    %435 = arith.index_cast %383 : i32 to index
    %c0_180 = arith.constant 0 : index
    %c32_181 = arith.constant 32 : index
    %436 = vector.load %arg6[%435, %c0_180, %c32_181] : memref<8x8x64xf32, #tpu.memory_space<vmem>>, vector<1x8x32xf32>
    tpu.vector_store %arg6[%435, %c0_180, %c32_181], %434 {strides = array<i32>} : memref<8x8x64xf32, #tpu.memory_space<vmem>>, vector<1x8x32xf32>,
    %c4_i32 = arith.constant 4 : i32
    %437 = arith.index_cast %c4_i32 : i32 to index
    %c0_182 = arith.constant 0 : index
    %c0_183 = arith.constant 0 : index
    %438 = vector.load %arg1[%437, %c0_182, %c0_183] : memref<8x8x16xf32, #tpu.memory_space<vmem>>, vector<1x8x16xf32>
    %439 = vector.shape_cast %438 : vector<1x8x16xf32> to vector<8x16xf32>
    %c0_184 = arith.constant 0 : index
    %c0_185 = arith.constant 0 : index
    %440 = vector.load %arg7[%c0_184, %c0_185] : memref<8x32xf32, #tpu.memory_space<vmem>>, vector<8x32xf32>
    %c0_186 = arith.constant 0 : index
    %c0_187 = arith.constant 0 : index
    %441 = vector.load %arg8[%c0_186, %c0_187] : memref<8x32xf32, #tpu.memory_space<vmem>>, vector<8x32xf32>
    %442 = tpu.concatenate %439, %440 in 1 : vector<8x16xf32>, vector<8x32xf32> -> vector<8x48xf32>
    %c0_188 = arith.constant 0 : index
    %c0_189 = arith.constant 0 : index
    %443 = vector.load %arg2[%c0_188, %c0_189] : memref<48x128xf32, #tpu.memory_space<vmem>>, vector<48x128xf32>
    %cst_190 = arith.constant dense<0.000000e+00> : vector<8x128xf32>
    %444 = tpu.matmul %442, %443, %cst_190 {dimension_numbers = #tpu.dot_dimension_numbers<[1], [0], [0], [1], [0, 0, 1, 1], [], []>} : vector<8x48xf32>, vector<48x128xf32>, vector<8x128xf32> -> vector<8x128xf32>
    %c0_191 = arith.constant 0 : index
    %c0_192 = arith.constant 0 : index
    %445 = vector.load %arg3[%c0_191, %c0_192] : memref<1x128xf32, #tpu.memory_space<vmem>>, vector<1x128xf32>
    %446 = vector.broadcast %445 : vector<1x128xf32> to vector<8x128xf32>
    %447 = arith.addf %444, %446 : vector<8x128xf32>
    %448 = vector.extract_strided_slice %447 {offsets = [0, 0], sizes = [8, 32], strides = [1, 1]} : vector<8x128xf32> to vector<8x32xf32>
    %449 = arith.negf %448 : vector<8x32xf32>
    %450 = math.exp %449 : vector<8x32xf32>
    %cst_193 = arith.constant 1.000000e+00 : f32
    %451 = vector.broadcast %cst_193 : f32 to vector<8x32xf32>
    %452 = arith.addf %451, %450 : vector<8x32xf32>
    %453 = arith.divf %451, %452 : vector<8x32xf32>
    %454 = vector.extract_strided_slice %447 {offsets = [0, 32], sizes = [8, 32], strides = [1, 1]} : vector<8x128xf32> to vector<8x32xf32>
    %455 = arith.negf %454 : vector<8x32xf32>
    %456 = math.exp %455 : vector<8x32xf32>
    %cst_194 = arith.constant 1.000000e+00 : f32
    %457 = vector.broadcast %cst_194 : f32 to vector<8x32xf32>
    %458 = arith.addf %457, %456 : vector<8x32xf32>
    %459 = arith.divf %457, %458 : vector<8x32xf32>
    %460 = vector.extract_strided_slice %447 {offsets = [0, 64], sizes = [8, 32], strides = [1, 1]} : vector<8x128xf32> to vector<8x32xf32>
    %461 = math.tanh %460 : vector<8x32xf32>
    %462 = vector.extract_strided_slice %447 {offsets = [0, 96], sizes = [8, 32], strides = [1, 1]} : vector<8x128xf32> to vector<8x32xf32>
    %463 = arith.negf %462 : vector<8x32xf32>
    %464 = math.exp %463 : vector<8x32xf32>
    %cst_195 = arith.constant 1.000000e+00 : f32
    %465 = vector.broadcast %cst_195 : f32 to vector<8x32xf32>
    %466 = arith.addf %465, %464 : vector<8x32xf32>
    %467 = arith.divf %465, %466 : vector<8x32xf32>
    %468 = arith.mulf %459, %441 : vector<8x32xf32>
    %469 = arith.mulf %453, %461 : vector<8x32xf32>
    %470 = arith.addf %468, %469 : vector<8x32xf32>
    %471 = math.tanh %470 : vector<8x32xf32>
    %472 = arith.mulf %467, %471 : vector<8x32xf32>
    %473 = vector.broadcast %c4_i32 : i32 to vector<8x1xi32>
    %474 = arith.cmpi slt, %473, %8 : vector<8x1xi32>
    %475 = vector.shape_cast %474 : vector<8x1xi1> to vector<8x1xi1>
    %476 = vector.broadcast %475 : vector<8x1xi1> to vector<8x32xi1>
    %477 = arith.select %476, %472, %440 : vector<8x32xi1>, vector<8x32xf32>
    %478 = vector.shape_cast %474 : vector<8x1xi1> to vector<8x1xi1>
    %479 = vector.broadcast %478 : vector<8x1xi1> to vector<8x32xi1>
    %480 = arith.select %479, %470, %441 : vector<8x32xi1>, vector<8x32xf32>
    %cst_196 = arith.constant 0.000000e+00 : f32
    %481 = vector.shape_cast %474 : vector<8x1xi1> to vector<8x1xi1>
    %482 = vector.broadcast %481 : vector<8x1xi1> to vector<8x32xi1>
    %483 = vector.broadcast %cst_196 : f32 to vector<8x32xf32>
    %484 = arith.select %482, %472, %483 : vector<8x32xi1>, vector<8x32xf32>
    %c0_197 = arith.constant 0 : index
    %c0_198 = arith.constant 0 : index
    %485 = vector.load %arg7[%c0_197, %c0_198] : memref<8x32xf32, #tpu.memory_space<vmem>>, vector<8x32xf32>
    tpu.vector_store %arg7[%c0_197, %c0_198], %477 {strides = array<i32>} : memref<8x32xf32, #tpu.memory_space<vmem>>, vector<8x32xf32>,
    %c0_199 = arith.constant 0 : index
    %c0_200 = arith.constant 0 : index
    %486 = vector.load %arg8[%c0_199, %c0_200] : memref<8x32xf32, #tpu.memory_space<vmem>>, vector<8x32xf32>
    tpu.vector_store %arg8[%c0_199, %c0_200], %480 {strides = array<i32>} : memref<8x32xf32, #tpu.memory_space<vmem>>, vector<8x32xf32>,
    %487 = vector.shape_cast %484 : vector<8x32xf32> to vector<1x8x32xf32>
    %488 = arith.index_cast %c4_i32 : i32 to index
    %c0_201 = arith.constant 0 : index
    %c0_202 = arith.constant 0 : index
    %489 = vector.load %arg6[%488, %c0_201, %c0_202] : memref<8x8x64xf32, #tpu.memory_space<vmem>>, vector<1x8x32xf32>
    tpu.vector_store %arg6[%488, %c0_201, %c0_202], %487 {strides = array<i32>} : memref<8x8x64xf32, #tpu.memory_space<vmem>>, vector<1x8x32xf32>,
    %c7_i32_203 = arith.constant 7 : i32
    %490 = arith.subi %c7_i32_203, %c4_i32 : i32
    %491 = arith.index_cast %490 : i32 to index
    %c0_204 = arith.constant 0 : index
    %c0_205 = arith.constant 0 : index
    %492 = vector.load %arg1[%491, %c0_204, %c0_205] : memref<8x8x16xf32, #tpu.memory_space<vmem>>, vector<1x8x16xf32>
    %493 = vector.shape_cast %492 : vector<1x8x16xf32> to vector<8x16xf32>
    %c0_206 = arith.constant 0 : index
    %c0_207 = arith.constant 0 : index
    %494 = vector.load %arg9[%c0_206, %c0_207] : memref<8x32xf32, #tpu.memory_space<vmem>>, vector<8x32xf32>
    %c0_208 = arith.constant 0 : index
    %c0_209 = arith.constant 0 : index
    %495 = vector.load %arg10[%c0_208, %c0_209] : memref<8x32xf32, #tpu.memory_space<vmem>>, vector<8x32xf32>
    %496 = tpu.concatenate %493, %494 in 1 : vector<8x16xf32>, vector<8x32xf32> -> vector<8x48xf32>
    %c0_210 = arith.constant 0 : index
    %c0_211 = arith.constant 0 : index
    %497 = vector.load %arg4[%c0_210, %c0_211] : memref<48x128xf32, #tpu.memory_space<vmem>>, vector<48x128xf32>
    %cst_212 = arith.constant dense<0.000000e+00> : vector<8x128xf32>
    %498 = tpu.matmul %496, %497, %cst_212 {dimension_numbers = #tpu.dot_dimension_numbers<[1], [0], [0], [1], [0, 0, 1, 1], [], []>} : vector<8x48xf32>, vector<48x128xf32>, vector<8x128xf32> -> vector<8x128xf32>
    %c0_213 = arith.constant 0 : index
    %c0_214 = arith.constant 0 : index
    %499 = vector.load %arg5[%c0_213, %c0_214] : memref<1x128xf32, #tpu.memory_space<vmem>>, vector<1x128xf32>
    %500 = vector.broadcast %499 : vector<1x128xf32> to vector<8x128xf32>
    %501 = arith.addf %498, %500 : vector<8x128xf32>
    %502 = vector.extract_strided_slice %501 {offsets = [0, 0], sizes = [8, 32], strides = [1, 1]} : vector<8x128xf32> to vector<8x32xf32>
    %503 = arith.negf %502 : vector<8x32xf32>
    %504 = math.exp %503 : vector<8x32xf32>
    %cst_215 = arith.constant 1.000000e+00 : f32
    %505 = vector.broadcast %cst_215 : f32 to vector<8x32xf32>
    %506 = arith.addf %505, %504 : vector<8x32xf32>
    %507 = arith.divf %505, %506 : vector<8x32xf32>
    %508 = vector.extract_strided_slice %501 {offsets = [0, 32], sizes = [8, 32], strides = [1, 1]} : vector<8x128xf32> to vector<8x32xf32>
    %509 = arith.negf %508 : vector<8x32xf32>
    %510 = math.exp %509 : vector<8x32xf32>
    %cst_216 = arith.constant 1.000000e+00 : f32
    %511 = vector.broadcast %cst_216 : f32 to vector<8x32xf32>
    %512 = arith.addf %511, %510 : vector<8x32xf32>
    %513 = arith.divf %511, %512 : vector<8x32xf32>
    %514 = vector.extract_strided_slice %501 {offsets = [0, 64], sizes = [8, 32], strides = [1, 1]} : vector<8x128xf32> to vector<8x32xf32>
    %515 = math.tanh %514 : vector<8x32xf32>
    %516 = vector.extract_strided_slice %501 {offsets = [0, 96], sizes = [8, 32], strides = [1, 1]} : vector<8x128xf32> to vector<8x32xf32>
    %517 = arith.negf %516 : vector<8x32xf32>
    %518 = math.exp %517 : vector<8x32xf32>
    %cst_217 = arith.constant 1.000000e+00 : f32
    %519 = vector.broadcast %cst_217 : f32 to vector<8x32xf32>
    %520 = arith.addf %519, %518 : vector<8x32xf32>
    %521 = arith.divf %519, %520 : vector<8x32xf32>
    %522 = arith.mulf %513, %495 : vector<8x32xf32>
    %523 = arith.mulf %507, %515 : vector<8x32xf32>
    %524 = arith.addf %522, %523 : vector<8x32xf32>
    %525 = math.tanh %524 : vector<8x32xf32>
    %526 = arith.mulf %521, %525 : vector<8x32xf32>
    %527 = vector.broadcast %490 : i32 to vector<8x1xi32>
    %528 = arith.cmpi slt, %527, %8 : vector<8x1xi32>
    %529 = vector.shape_cast %528 : vector<8x1xi1> to vector<8x1xi1>
    %530 = vector.broadcast %529 : vector<8x1xi1> to vector<8x32xi1>
    %531 = arith.select %530, %526, %494 : vector<8x32xi1>, vector<8x32xf32>
    %532 = vector.shape_cast %528 : vector<8x1xi1> to vector<8x1xi1>
    %533 = vector.broadcast %532 : vector<8x1xi1> to vector<8x32xi1>
    %534 = arith.select %533, %524, %495 : vector<8x32xi1>, vector<8x32xf32>
    %cst_218 = arith.constant 0.000000e+00 : f32
    %535 = vector.shape_cast %528 : vector<8x1xi1> to vector<8x1xi1>
    %536 = vector.broadcast %535 : vector<8x1xi1> to vector<8x32xi1>
    %537 = vector.broadcast %cst_218 : f32 to vector<8x32xf32>
    %538 = arith.select %536, %526, %537 : vector<8x32xi1>, vector<8x32xf32>
    %c0_219 = arith.constant 0 : index
    %c0_220 = arith.constant 0 : index
    %539 = vector.load %arg9[%c0_219, %c0_220] : memref<8x32xf32, #tpu.memory_space<vmem>>, vector<8x32xf32>
    tpu.vector_store %arg9[%c0_219, %c0_220], %531 {strides = array<i32>} : memref<8x32xf32, #tpu.memory_space<vmem>>, vector<8x32xf32>,
    %c0_221 = arith.constant 0 : index
    %c0_222 = arith.constant 0 : index
    %540 = vector.load %arg10[%c0_221, %c0_222] : memref<8x32xf32, #tpu.memory_space<vmem>>, vector<8x32xf32>
    tpu.vector_store %arg10[%c0_221, %c0_222], %534 {strides = array<i32>} : memref<8x32xf32, #tpu.memory_space<vmem>>, vector<8x32xf32>,
    %541 = vector.shape_cast %538 : vector<8x32xf32> to vector<1x8x32xf32>
    %542 = arith.index_cast %490 : i32 to index
    %c0_223 = arith.constant 0 : index
    %c32_224 = arith.constant 32 : index
    %543 = vector.load %arg6[%542, %c0_223, %c32_224] : memref<8x8x64xf32, #tpu.memory_space<vmem>>, vector<1x8x32xf32>
    tpu.vector_store %arg6[%542, %c0_223, %c32_224], %541 {strides = array<i32>} : memref<8x8x64xf32, #tpu.memory_space<vmem>>, vector<1x8x32xf32>,
    %c5_i32 = arith.constant 5 : i32
    %544 = arith.index_cast %c5_i32 : i32 to index
    %c0_225 = arith.constant 0 : index
    %c0_226 = arith.constant 0 : index
    %545 = vector.load %arg1[%544, %c0_225, %c0_226] : memref<8x8x16xf32, #tpu.memory_space<vmem>>, vector<1x8x16xf32>
    %546 = vector.shape_cast %545 : vector<1x8x16xf32> to vector<8x16xf32>
    %c0_227 = arith.constant 0 : index
    %c0_228 = arith.constant 0 : index
    %547 = vector.load %arg7[%c0_227, %c0_228] : memref<8x32xf32, #tpu.memory_space<vmem>>, vector<8x32xf32>
    %c0_229 = arith.constant 0 : index
    %c0_230 = arith.constant 0 : index
    %548 = vector.load %arg8[%c0_229, %c0_230] : memref<8x32xf32, #tpu.memory_space<vmem>>, vector<8x32xf32>
    %549 = tpu.concatenate %546, %547 in 1 : vector<8x16xf32>, vector<8x32xf32> -> vector<8x48xf32>
    %c0_231 = arith.constant 0 : index
    %c0_232 = arith.constant 0 : index
    %550 = vector.load %arg2[%c0_231, %c0_232] : memref<48x128xf32, #tpu.memory_space<vmem>>, vector<48x128xf32>
    %cst_233 = arith.constant dense<0.000000e+00> : vector<8x128xf32>
    %551 = tpu.matmul %549, %550, %cst_233 {dimension_numbers = #tpu.dot_dimension_numbers<[1], [0], [0], [1], [0, 0, 1, 1], [], []>} : vector<8x48xf32>, vector<48x128xf32>, vector<8x128xf32> -> vector<8x128xf32>
    %c0_234 = arith.constant 0 : index
    %c0_235 = arith.constant 0 : index
    %552 = vector.load %arg3[%c0_234, %c0_235] : memref<1x128xf32, #tpu.memory_space<vmem>>, vector<1x128xf32>
    %553 = vector.broadcast %552 : vector<1x128xf32> to vector<8x128xf32>
    %554 = arith.addf %551, %553 : vector<8x128xf32>
    %555 = vector.extract_strided_slice %554 {offsets = [0, 0], sizes = [8, 32], strides = [1, 1]} : vector<8x128xf32> to vector<8x32xf32>
    %556 = arith.negf %555 : vector<8x32xf32>
    %557 = math.exp %556 : vector<8x32xf32>
    %cst_236 = arith.constant 1.000000e+00 : f32
    %558 = vector.broadcast %cst_236 : f32 to vector<8x32xf32>
    %559 = arith.addf %558, %557 : vector<8x32xf32>
    %560 = arith.divf %558, %559 : vector<8x32xf32>
    %561 = vector.extract_strided_slice %554 {offsets = [0, 32], sizes = [8, 32], strides = [1, 1]} : vector<8x128xf32> to vector<8x32xf32>
    %562 = arith.negf %561 : vector<8x32xf32>
    %563 = math.exp %562 : vector<8x32xf32>
    %cst_237 = arith.constant 1.000000e+00 : f32
    %564 = vector.broadcast %cst_237 : f32 to vector<8x32xf32>
    %565 = arith.addf %564, %563 : vector<8x32xf32>
    %566 = arith.divf %564, %565 : vector<8x32xf32>
    %567 = vector.extract_strided_slice %554 {offsets = [0, 64], sizes = [8, 32], strides = [1, 1]} : vector<8x128xf32> to vector<8x32xf32>
    %568 = math.tanh %567 : vector<8x32xf32>
    %569 = vector.extract_strided_slice %554 {offsets = [0, 96], sizes = [8, 32], strides = [1, 1]} : vector<8x128xf32> to vector<8x32xf32>
    %570 = arith.negf %569 : vector<8x32xf32>
    %571 = math.exp %570 : vector<8x32xf32>
    %cst_238 = arith.constant 1.000000e+00 : f32
    %572 = vector.broadcast %cst_238 : f32 to vector<8x32xf32>
    %573 = arith.addf %572, %571 : vector<8x32xf32>
    %574 = arith.divf %572, %573 : vector<8x32xf32>
    %575 = arith.mulf %566, %548 : vector<8x32xf32>
    %576 = arith.mulf %560, %568 : vector<8x32xf32>
    %577 = arith.addf %575, %576 : vector<8x32xf32>
    %578 = math.tanh %577 : vector<8x32xf32>
    %579 = arith.mulf %574, %578 : vector<8x32xf32>
    %580 = vector.broadcast %c5_i32 : i32 to vector<8x1xi32>
    %581 = arith.cmpi slt, %580, %8 : vector<8x1xi32>
    %582 = vector.shape_cast %581 : vector<8x1xi1> to vector<8x1xi1>
    %583 = vector.broadcast %582 : vector<8x1xi1> to vector<8x32xi1>
    %584 = arith.select %583, %579, %547 : vector<8x32xi1>, vector<8x32xf32>
    %585 = vector.shape_cast %581 : vector<8x1xi1> to vector<8x1xi1>
    %586 = vector.broadcast %585 : vector<8x1xi1> to vector<8x32xi1>
    %587 = arith.select %586, %577, %548 : vector<8x32xi1>, vector<8x32xf32>
    %cst_239 = arith.constant 0.000000e+00 : f32
    %588 = vector.shape_cast %581 : vector<8x1xi1> to vector<8x1xi1>
    %589 = vector.broadcast %588 : vector<8x1xi1> to vector<8x32xi1>
    %590 = vector.broadcast %cst_239 : f32 to vector<8x32xf32>
    %591 = arith.select %589, %579, %590 : vector<8x32xi1>, vector<8x32xf32>
    %c0_240 = arith.constant 0 : index
    %c0_241 = arith.constant 0 : index
    %592 = vector.load %arg7[%c0_240, %c0_241] : memref<8x32xf32, #tpu.memory_space<vmem>>, vector<8x32xf32>
    tpu.vector_store %arg7[%c0_240, %c0_241], %584 {strides = array<i32>} : memref<8x32xf32, #tpu.memory_space<vmem>>, vector<8x32xf32>,
    %c0_242 = arith.constant 0 : index
    %c0_243 = arith.constant 0 : index
    %593 = vector.load %arg8[%c0_242, %c0_243] : memref<8x32xf32, #tpu.memory_space<vmem>>, vector<8x32xf32>
    tpu.vector_store %arg8[%c0_242, %c0_243], %587 {strides = array<i32>} : memref<8x32xf32, #tpu.memory_space<vmem>>, vector<8x32xf32>,
    %594 = vector.shape_cast %591 : vector<8x32xf32> to vector<1x8x32xf32>
    %595 = arith.index_cast %c5_i32 : i32 to index
    %c0_244 = arith.constant 0 : index
    %c0_245 = arith.constant 0 : index
    %596 = vector.load %arg6[%595, %c0_244, %c0_245] : memref<8x8x64xf32, #tpu.memory_space<vmem>>, vector<1x8x32xf32>
    tpu.vector_store %arg6[%595, %c0_244, %c0_245], %594 {strides = array<i32>} : memref<8x8x64xf32, #tpu.memory_space<vmem>>, vector<1x8x32xf32>,
    %c7_i32_246 = arith.constant 7 : i32
    %597 = arith.subi %c7_i32_246, %c5_i32 : i32
    %598 = arith.index_cast %597 : i32 to index
    %c0_247 = arith.constant 0 : index
    %c0_248 = arith.constant 0 : index
    %599 = vector.load %arg1[%598, %c0_247, %c0_248] : memref<8x8x16xf32, #tpu.memory_space<vmem>>, vector<1x8x16xf32>
    %600 = vector.shape_cast %599 : vector<1x8x16xf32> to vector<8x16xf32>
    %c0_249 = arith.constant 0 : index
    %c0_250 = arith.constant 0 : index
    %601 = vector.load %arg9[%c0_249, %c0_250] : memref<8x32xf32, #tpu.memory_space<vmem>>, vector<8x32xf32>
    %c0_251 = arith.constant 0 : index
    %c0_252 = arith.constant 0 : index
    %602 = vector.load %arg10[%c0_251, %c0_252] : memref<8x32xf32, #tpu.memory_space<vmem>>, vector<8x32xf32>
    %603 = tpu.concatenate %600, %601 in 1 : vector<8x16xf32>, vector<8x32xf32> -> vector<8x48xf32>
    %c0_253 = arith.constant 0 : index
    %c0_254 = arith.constant 0 : index
    %604 = vector.load %arg4[%c0_253, %c0_254] : memref<48x128xf32, #tpu.memory_space<vmem>>, vector<48x128xf32>
    %cst_255 = arith.constant dense<0.000000e+00> : vector<8x128xf32>
    %605 = tpu.matmul %603, %604, %cst_255 {dimension_numbers = #tpu.dot_dimension_numbers<[1], [0], [0], [1], [0, 0, 1, 1], [], []>} : vector<8x48xf32>, vector<48x128xf32>, vector<8x128xf32> -> vector<8x128xf32>
    %c0_256 = arith.constant 0 : index
    %c0_257 = arith.constant 0 : index
    %606 = vector.load %arg5[%c0_256, %c0_257] : memref<1x128xf32, #tpu.memory_space<vmem>>, vector<1x128xf32>
    %607 = vector.broadcast %606 : vector<1x128xf32> to vector<8x128xf32>
    %608 = arith.addf %605, %607 : vector<8x128xf32>
    %609 = vector.extract_strided_slice %608 {offsets = [0, 0], sizes = [8, 32], strides = [1, 1]} : vector<8x128xf32> to vector<8x32xf32>
    %610 = arith.negf %609 : vector<8x32xf32>
    %611 = math.exp %610 : vector<8x32xf32>
    %cst_258 = arith.constant 1.000000e+00 : f32
    %612 = vector.broadcast %cst_258 : f32 to vector<8x32xf32>
    %613 = arith.addf %612, %611 : vector<8x32xf32>
    %614 = arith.divf %612, %613 : vector<8x32xf32>
    %615 = vector.extract_strided_slice %608 {offsets = [0, 32], sizes = [8, 32], strides = [1, 1]} : vector<8x128xf32> to vector<8x32xf32>
    %616 = arith.negf %615 : vector<8x32xf32>
    %617 = math.exp %616 : vector<8x32xf32>
    %cst_259 = arith.constant 1.000000e+00 : f32
    %618 = vector.broadcast %cst_259 : f32 to vector<8x32xf32>
    %619 = arith.addf %618, %617 : vector<8x32xf32>
    %620 = arith.divf %618, %619 : vector<8x32xf32>
    %621 = vector.extract_strided_slice %608 {offsets = [0, 64], sizes = [8, 32], strides = [1, 1]} : vector<8x128xf32> to vector<8x32xf32>
    %622 = math.tanh %621 : vector<8x32xf32>
    %623 = vector.extract_strided_slice %608 {offsets = [0, 96], sizes = [8, 32], strides = [1, 1]} : vector<8x128xf32> to vector<8x32xf32>
    %624 = arith.negf %623 : vector<8x32xf32>
    %625 = math.exp %624 : vector<8x32xf32>
    %cst_260 = arith.constant 1.000000e+00 : f32
    %626 = vector.broadcast %cst_260 : f32 to vector<8x32xf32>
    %627 = arith.addf %626, %625 : vector<8x32xf32>
    %628 = arith.divf %626, %627 : vector<8x32xf32>
    %629 = arith.mulf %620, %602 : vector<8x32xf32>
    %630 = arith.mulf %614, %622 : vector<8x32xf32>
    %631 = arith.addf %629, %630 : vector<8x32xf32>
    %632 = math.tanh %631 : vector<8x32xf32>
    %633 = arith.mulf %628, %632 : vector<8x32xf32>
    %634 = vector.broadcast %597 : i32 to vector<8x1xi32>
    %635 = arith.cmpi slt, %634, %8 : vector<8x1xi32>
    %636 = vector.shape_cast %635 : vector<8x1xi1> to vector<8x1xi1>
    %637 = vector.broadcast %636 : vector<8x1xi1> to vector<8x32xi1>
    %638 = arith.select %637, %633, %601 : vector<8x32xi1>, vector<8x32xf32>
    %639 = vector.shape_cast %635 : vector<8x1xi1> to vector<8x1xi1>
    %640 = vector.broadcast %639 : vector<8x1xi1> to vector<8x32xi1>
    %641 = arith.select %640, %631, %602 : vector<8x32xi1>, vector<8x32xf32>
    %cst_261 = arith.constant 0.000000e+00 : f32
    %642 = vector.shape_cast %635 : vector<8x1xi1> to vector<8x1xi1>
    %643 = vector.broadcast %642 : vector<8x1xi1> to vector<8x32xi1>
    %644 = vector.broadcast %cst_261 : f32 to vector<8x32xf32>
    %645 = arith.select %643, %633, %644 : vector<8x32xi1>, vector<8x32xf32>
    %c0_262 = arith.constant 0 : index
    %c0_263 = arith.constant 0 : index
    %646 = vector.load %arg9[%c0_262, %c0_263] : memref<8x32xf32, #tpu.memory_space<vmem>>, vector<8x32xf32>
    tpu.vector_store %arg9[%c0_262, %c0_263], %638 {strides = array<i32>} : memref<8x32xf32, #tpu.memory_space<vmem>>, vector<8x32xf32>,
    %c0_264 = arith.constant 0 : index
    %c0_265 = arith.constant 0 : index
    %647 = vector.load %arg10[%c0_264, %c0_265] : memref<8x32xf32, #tpu.memory_space<vmem>>, vector<8x32xf32>
    tpu.vector_store %arg10[%c0_264, %c0_265], %641 {strides = array<i32>} : memref<8x32xf32, #tpu.memory_space<vmem>>, vector<8x32xf32>,
    %648 = vector.shape_cast %645 : vector<8x32xf32> to vector<1x8x32xf32>
    %649 = arith.index_cast %597 : i32 to index
    %c0_266 = arith.constant 0 : index
    %c32_267 = arith.constant 32 : index
    %650 = vector.load %arg6[%649, %c0_266, %c32_267] : memref<8x8x64xf32, #tpu.memory_space<vmem>>, vector<1x8x32xf32>
    tpu.vector_store %arg6[%649, %c0_266, %c32_267], %648 {strides = array<i32>} : memref<8x8x64xf32, #tpu.memory_space<vmem>>, vector<1x8x32xf32>,
    %c6_i32 = arith.constant 6 : i32
    %651 = arith.index_cast %c6_i32 : i32 to index
    %c0_268 = arith.constant 0 : index
    %c0_269 = arith.constant 0 : index
    %652 = vector.load %arg1[%651, %c0_268, %c0_269] : memref<8x8x16xf32, #tpu.memory_space<vmem>>, vector<1x8x16xf32>
    %653 = vector.shape_cast %652 : vector<1x8x16xf32> to vector<8x16xf32>
    %c0_270 = arith.constant 0 : index
    %c0_271 = arith.constant 0 : index
    %654 = vector.load %arg7[%c0_270, %c0_271] : memref<8x32xf32, #tpu.memory_space<vmem>>, vector<8x32xf32>
    %c0_272 = arith.constant 0 : index
    %c0_273 = arith.constant 0 : index
    %655 = vector.load %arg8[%c0_272, %c0_273] : memref<8x32xf32, #tpu.memory_space<vmem>>, vector<8x32xf32>
    %656 = tpu.concatenate %653, %654 in 1 : vector<8x16xf32>, vector<8x32xf32> -> vector<8x48xf32>
    %c0_274 = arith.constant 0 : index
    %c0_275 = arith.constant 0 : index
    %657 = vector.load %arg2[%c0_274, %c0_275] : memref<48x128xf32, #tpu.memory_space<vmem>>, vector<48x128xf32>
    %cst_276 = arith.constant dense<0.000000e+00> : vector<8x128xf32>
    %658 = tpu.matmul %656, %657, %cst_276 {dimension_numbers = #tpu.dot_dimension_numbers<[1], [0], [0], [1], [0, 0, 1, 1], [], []>} : vector<8x48xf32>, vector<48x128xf32>, vector<8x128xf32> -> vector<8x128xf32>
    %c0_277 = arith.constant 0 : index
    %c0_278 = arith.constant 0 : index
    %659 = vector.load %arg3[%c0_277, %c0_278] : memref<1x128xf32, #tpu.memory_space<vmem>>, vector<1x128xf32>
    %660 = vector.broadcast %659 : vector<1x128xf32> to vector<8x128xf32>
    %661 = arith.addf %658, %660 : vector<8x128xf32>
    %662 = vector.extract_strided_slice %661 {offsets = [0, 0], sizes = [8, 32], strides = [1, 1]} : vector<8x128xf32> to vector<8x32xf32>
    %663 = arith.negf %662 : vector<8x32xf32>
    %664 = math.exp %663 : vector<8x32xf32>
    %cst_279 = arith.constant 1.000000e+00 : f32
    %665 = vector.broadcast %cst_279 : f32 to vector<8x32xf32>
    %666 = arith.addf %665, %664 : vector<8x32xf32>
    %667 = arith.divf %665, %666 : vector<8x32xf32>
    %668 = vector.extract_strided_slice %661 {offsets = [0, 32], sizes = [8, 32], strides = [1, 1]} : vector<8x128xf32> to vector<8x32xf32>
    %669 = arith.negf %668 : vector<8x32xf32>
    %670 = math.exp %669 : vector<8x32xf32>
    %cst_280 = arith.constant 1.000000e+00 : f32
    %671 = vector.broadcast %cst_280 : f32 to vector<8x32xf32>
    %672 = arith.addf %671, %670 : vector<8x32xf32>
    %673 = arith.divf %671, %672 : vector<8x32xf32>
    %674 = vector.extract_strided_slice %661 {offsets = [0, 64], sizes = [8, 32], strides = [1, 1]} : vector<8x128xf32> to vector<8x32xf32>
    %675 = math.tanh %674 : vector<8x32xf32>
    %676 = vector.extract_strided_slice %661 {offsets = [0, 96], sizes = [8, 32], strides = [1, 1]} : vector<8x128xf32> to vector<8x32xf32>
    %677 = arith.negf %676 : vector<8x32xf32>
    %678 = math.exp %677 : vector<8x32xf32>
    %cst_281 = arith.constant 1.000000e+00 : f32
    %679 = vector.broadcast %cst_281 : f32 to vector<8x32xf32>
    %680 = arith.addf %679, %678 : vector<8x32xf32>
    %681 = arith.divf %679, %680 : vector<8x32xf32>
    %682 = arith.mulf %673, %655 : vector<8x32xf32>
    %683 = arith.mulf %667, %675 : vector<8x32xf32>
    %684 = arith.addf %682, %683 : vector<8x32xf32>
    %685 = math.tanh %684 : vector<8x32xf32>
    %686 = arith.mulf %681, %685 : vector<8x32xf32>
    %687 = vector.broadcast %c6_i32 : i32 to vector<8x1xi32>
    %688 = arith.cmpi slt, %687, %8 : vector<8x1xi32>
    %689 = vector.shape_cast %688 : vector<8x1xi1> to vector<8x1xi1>
    %690 = vector.broadcast %689 : vector<8x1xi1> to vector<8x32xi1>
    %691 = arith.select %690, %686, %654 : vector<8x32xi1>, vector<8x32xf32>
    %692 = vector.shape_cast %688 : vector<8x1xi1> to vector<8x1xi1>
    %693 = vector.broadcast %692 : vector<8x1xi1> to vector<8x32xi1>
    %694 = arith.select %693, %684, %655 : vector<8x32xi1>, vector<8x32xf32>
    %cst_282 = arith.constant 0.000000e+00 : f32
    %695 = vector.shape_cast %688 : vector<8x1xi1> to vector<8x1xi1>
    %696 = vector.broadcast %695 : vector<8x1xi1> to vector<8x32xi1>
    %697 = vector.broadcast %cst_282 : f32 to vector<8x32xf32>
    %698 = arith.select %696, %686, %697 : vector<8x32xi1>, vector<8x32xf32>
    %c0_283 = arith.constant 0 : index
    %c0_284 = arith.constant 0 : index
    %699 = vector.load %arg7[%c0_283, %c0_284] : memref<8x32xf32, #tpu.memory_space<vmem>>, vector<8x32xf32>
    tpu.vector_store %arg7[%c0_283, %c0_284], %691 {strides = array<i32>} : memref<8x32xf32, #tpu.memory_space<vmem>>, vector<8x32xf32>,
    %c0_285 = arith.constant 0 : index
    %c0_286 = arith.constant 0 : index
    %700 = vector.load %arg8[%c0_285, %c0_286] : memref<8x32xf32, #tpu.memory_space<vmem>>, vector<8x32xf32>
    tpu.vector_store %arg8[%c0_285, %c0_286], %694 {strides = array<i32>} : memref<8x32xf32, #tpu.memory_space<vmem>>, vector<8x32xf32>,
    %701 = vector.shape_cast %698 : vector<8x32xf32> to vector<1x8x32xf32>
    %702 = arith.index_cast %c6_i32 : i32 to index
    %c0_287 = arith.constant 0 : index
    %c0_288 = arith.constant 0 : index
    %703 = vector.load %arg6[%702, %c0_287, %c0_288] : memref<8x8x64xf32, #tpu.memory_space<vmem>>, vector<1x8x32xf32>
    tpu.vector_store %arg6[%702, %c0_287, %c0_288], %701 {strides = array<i32>} : memref<8x8x64xf32, #tpu.memory_space<vmem>>, vector<1x8x32xf32>,
    %c7_i32_289 = arith.constant 7 : i32
    %704 = arith.subi %c7_i32_289, %c6_i32 : i32
    %705 = arith.index_cast %704 : i32 to index
    %c0_290 = arith.constant 0 : index
    %c0_291 = arith.constant 0 : index
    %706 = vector.load %arg1[%705, %c0_290, %c0_291] : memref<8x8x16xf32, #tpu.memory_space<vmem>>, vector<1x8x16xf32>
    %707 = vector.shape_cast %706 : vector<1x8x16xf32> to vector<8x16xf32>
    %c0_292 = arith.constant 0 : index
    %c0_293 = arith.constant 0 : index
    %708 = vector.load %arg9[%c0_292, %c0_293] : memref<8x32xf32, #tpu.memory_space<vmem>>, vector<8x32xf32>
    %c0_294 = arith.constant 0 : index
    %c0_295 = arith.constant 0 : index
    %709 = vector.load %arg10[%c0_294, %c0_295] : memref<8x32xf32, #tpu.memory_space<vmem>>, vector<8x32xf32>
    %710 = tpu.concatenate %707, %708 in 1 : vector<8x16xf32>, vector<8x32xf32> -> vector<8x48xf32>
    %c0_296 = arith.constant 0 : index
    %c0_297 = arith.constant 0 : index
    %711 = vector.load %arg4[%c0_296, %c0_297] : memref<48x128xf32, #tpu.memory_space<vmem>>, vector<48x128xf32>
    %cst_298 = arith.constant dense<0.000000e+00> : vector<8x128xf32>
    %712 = tpu.matmul %710, %711, %cst_298 {dimension_numbers = #tpu.dot_dimension_numbers<[1], [0], [0], [1], [0, 0, 1, 1], [], []>} : vector<8x48xf32>, vector<48x128xf32>, vector<8x128xf32> -> vector<8x128xf32>
    %c0_299 = arith.constant 0 : index
    %c0_300 = arith.constant 0 : index
    %713 = vector.load %arg5[%c0_299, %c0_300] : memref<1x128xf32, #tpu.memory_space<vmem>>, vector<1x128xf32>
    %714 = vector.broadcast %713 : vector<1x128xf32> to vector<8x128xf32>
    %715 = arith.addf %712, %714 : vector<8x128xf32>
    %716 = vector.extract_strided_slice %715 {offsets = [0, 0], sizes = [8, 32], strides = [1, 1]} : vector<8x128xf32> to vector<8x32xf32>
    %717 = arith.negf %716 : vector<8x32xf32>
    %718 = math.exp %717 : vector<8x32xf32>
    %cst_301 = arith.constant 1.000000e+00 : f32
    %719 = vector.broadcast %cst_301 : f32 to vector<8x32xf32>
    %720 = arith.addf %719, %718 : vector<8x32xf32>
    %721 = arith.divf %719, %720 : vector<8x32xf32>
    %722 = vector.extract_strided_slice %715 {offsets = [0, 32], sizes = [8, 32], strides = [1, 1]} : vector<8x128xf32> to vector<8x32xf32>
    %723 = arith.negf %722 : vector<8x32xf32>
    %724 = math.exp %723 : vector<8x32xf32>
    %cst_302 = arith.constant 1.000000e+00 : f32
    %725 = vector.broadcast %cst_302 : f32 to vector<8x32xf32>
    %726 = arith.addf %725, %724 : vector<8x32xf32>
    %727 = arith.divf %725, %726 : vector<8x32xf32>
    %728 = vector.extract_strided_slice %715 {offsets = [0, 64], sizes = [8, 32], strides = [1, 1]} : vector<8x128xf32> to vector<8x32xf32>
    %729 = math.tanh %728 : vector<8x32xf32>
    %730 = vector.extract_strided_slice %715 {offsets = [0, 96], sizes = [8, 32], strides = [1, 1]} : vector<8x128xf32> to vector<8x32xf32>
    %731 = arith.negf %730 : vector<8x32xf32>
    %732 = math.exp %731 : vector<8x32xf32>
    %cst_303 = arith.constant 1.000000e+00 : f32
    %733 = vector.broadcast %cst_303 : f32 to vector<8x32xf32>
    %734 = arith.addf %733, %732 : vector<8x32xf32>
    %735 = arith.divf %733, %734 : vector<8x32xf32>
    %736 = arith.mulf %727, %709 : vector<8x32xf32>
    %737 = arith.mulf %721, %729 : vector<8x32xf32>
    %738 = arith.addf %736, %737 : vector<8x32xf32>
    %739 = math.tanh %738 : vector<8x32xf32>
    %740 = arith.mulf %735, %739 : vector<8x32xf32>
    %741 = vector.broadcast %704 : i32 to vector<8x1xi32>
    %742 = arith.cmpi slt, %741, %8 : vector<8x1xi32>
    %743 = vector.shape_cast %742 : vector<8x1xi1> to vector<8x1xi1>
    %744 = vector.broadcast %743 : vector<8x1xi1> to vector<8x32xi1>
    %745 = arith.select %744, %740, %708 : vector<8x32xi1>, vector<8x32xf32>
    %746 = vector.shape_cast %742 : vector<8x1xi1> to vector<8x1xi1>
    %747 = vector.broadcast %746 : vector<8x1xi1> to vector<8x32xi1>
    %748 = arith.select %747, %738, %709 : vector<8x32xi1>, vector<8x32xf32>
    %cst_304 = arith.constant 0.000000e+00 : f32
    %749 = vector.shape_cast %742 : vector<8x1xi1> to vector<8x1xi1>
    %750 = vector.broadcast %749 : vector<8x1xi1> to vector<8x32xi1>
    %751 = vector.broadcast %cst_304 : f32 to vector<8x32xf32>
    %752 = arith.select %750, %740, %751 : vector<8x32xi1>, vector<8x32xf32>
    %c0_305 = arith.constant 0 : index
    %c0_306 = arith.constant 0 : index
    %753 = vector.load %arg9[%c0_305, %c0_306] : memref<8x32xf32, #tpu.memory_space<vmem>>, vector<8x32xf32>
    tpu.vector_store %arg9[%c0_305, %c0_306], %745 {strides = array<i32>} : memref<8x32xf32, #tpu.memory_space<vmem>>, vector<8x32xf32>,
    %c0_307 = arith.constant 0 : index
    %c0_308 = arith.constant 0 : index
    %754 = vector.load %arg10[%c0_307, %c0_308] : memref<8x32xf32, #tpu.memory_space<vmem>>, vector<8x32xf32>
    tpu.vector_store %arg10[%c0_307, %c0_308], %748 {strides = array<i32>} : memref<8x32xf32, #tpu.memory_space<vmem>>, vector<8x32xf32>,
    %755 = vector.shape_cast %752 : vector<8x32xf32> to vector<1x8x32xf32>
    %756 = arith.index_cast %704 : i32 to index
    %c0_309 = arith.constant 0 : index
    %c32_310 = arith.constant 32 : index
    %757 = vector.load %arg6[%756, %c0_309, %c32_310] : memref<8x8x64xf32, #tpu.memory_space<vmem>>, vector<1x8x32xf32>
    tpu.vector_store %arg6[%756, %c0_309, %c32_310], %755 {strides = array<i32>} : memref<8x8x64xf32, #tpu.memory_space<vmem>>, vector<1x8x32xf32>,
    %c7_i32_311 = arith.constant 7 : i32
    %758 = arith.index_cast %c7_i32_311 : i32 to index
    %c0_312 = arith.constant 0 : index
    %c0_313 = arith.constant 0 : index
    %759 = vector.load %arg1[%758, %c0_312, %c0_313] : memref<8x8x16xf32, #tpu.memory_space<vmem>>, vector<1x8x16xf32>
    %760 = vector.shape_cast %759 : vector<1x8x16xf32> to vector<8x16xf32>
    %c0_314 = arith.constant 0 : index
    %c0_315 = arith.constant 0 : index
    %761 = vector.load %arg7[%c0_314, %c0_315] : memref<8x32xf32, #tpu.memory_space<vmem>>, vector<8x32xf32>
    %c0_316 = arith.constant 0 : index
    %c0_317 = arith.constant 0 : index
    %762 = vector.load %arg8[%c0_316, %c0_317] : memref<8x32xf32, #tpu.memory_space<vmem>>, vector<8x32xf32>
    %763 = tpu.concatenate %760, %761 in 1 : vector<8x16xf32>, vector<8x32xf32> -> vector<8x48xf32>
    %c0_318 = arith.constant 0 : index
    %c0_319 = arith.constant 0 : index
    %764 = vector.load %arg2[%c0_318, %c0_319] : memref<48x128xf32, #tpu.memory_space<vmem>>, vector<48x128xf32>
    %cst_320 = arith.constant dense<0.000000e+00> : vector<8x128xf32>
    %765 = tpu.matmul %763, %764, %cst_320 {dimension_numbers = #tpu.dot_dimension_numbers<[1], [0], [0], [1], [0, 0, 1, 1], [], []>} : vector<8x48xf32>, vector<48x128xf32>, vector<8x128xf32> -> vector<8x128xf32>
    %c0_321 = arith.constant 0 : index
    %c0_322 = arith.constant 0 : index
    %766 = vector.load %arg3[%c0_321, %c0_322] : memref<1x128xf32, #tpu.memory_space<vmem>>, vector<1x128xf32>
    %767 = vector.broadcast %766 : vector<1x128xf32> to vector<8x128xf32>
    %768 = arith.addf %765, %767 : vector<8x128xf32>
    %769 = vector.extract_strided_slice %768 {offsets = [0, 0], sizes = [8, 32], strides = [1, 1]} : vector<8x128xf32> to vector<8x32xf32>
    %770 = arith.negf %769 : vector<8x32xf32>
    %771 = math.exp %770 : vector<8x32xf32>
    %cst_323 = arith.constant 1.000000e+00 : f32
    %772 = vector.broadcast %cst_323 : f32 to vector<8x32xf32>
    %773 = arith.addf %772, %771 : vector<8x32xf32>
    %774 = arith.divf %772, %773 : vector<8x32xf32>
    %775 = vector.extract_strided_slice %768 {offsets = [0, 32], sizes = [8, 32], strides = [1, 1]} : vector<8x128xf32> to vector<8x32xf32>
    %776 = arith.negf %775 : vector<8x32xf32>
    %777 = math.exp %776 : vector<8x32xf32>
    %cst_324 = arith.constant 1.000000e+00 : f32
    %778 = vector.broadcast %cst_324 : f32 to vector<8x32xf32>
    %779 = arith.addf %778, %777 : vector<8x32xf32>
    %780 = arith.divf %778, %779 : vector<8x32xf32>
    %781 = vector.extract_strided_slice %768 {offsets = [0, 64], sizes = [8, 32], strides = [1, 1]} : vector<8x128xf32> to vector<8x32xf32>
    %782 = math.tanh %781 : vector<8x32xf32>
    %783 = vector.extract_strided_slice %768 {offsets = [0, 96], sizes = [8, 32], strides = [1, 1]} : vector<8x128xf32> to vector<8x32xf32>
    %784 = arith.negf %783 : vector<8x32xf32>
    %785 = math.exp %784 : vector<8x32xf32>
    %cst_325 = arith.constant 1.000000e+00 : f32
    %786 = vector.broadcast %cst_325 : f32 to vector<8x32xf32>
    %787 = arith.addf %786, %785 : vector<8x32xf32>
    %788 = arith.divf %786, %787 : vector<8x32xf32>
    %789 = arith.mulf %780, %762 : vector<8x32xf32>
    %790 = arith.mulf %774, %782 : vector<8x32xf32>
    %791 = arith.addf %789, %790 : vector<8x32xf32>
    %792 = math.tanh %791 : vector<8x32xf32>
    %793 = arith.mulf %788, %792 : vector<8x32xf32>
    %794 = vector.broadcast %c7_i32_311 : i32 to vector<8x1xi32>
    %795 = arith.cmpi slt, %794, %8 : vector<8x1xi32>
    %796 = vector.shape_cast %795 : vector<8x1xi1> to vector<8x1xi1>
    %797 = vector.broadcast %796 : vector<8x1xi1> to vector<8x32xi1>
    %798 = arith.select %797, %793, %761 : vector<8x32xi1>, vector<8x32xf32>
    %799 = vector.shape_cast %795 : vector<8x1xi1> to vector<8x1xi1>
    %800 = vector.broadcast %799 : vector<8x1xi1> to vector<8x32xi1>
    %801 = arith.select %800, %791, %762 : vector<8x32xi1>, vector<8x32xf32>
    %cst_326 = arith.constant 0.000000e+00 : f32
    %802 = vector.shape_cast %795 : vector<8x1xi1> to vector<8x1xi1>
    %803 = vector.broadcast %802 : vector<8x1xi1> to vector<8x32xi1>
    %804 = vector.broadcast %cst_326 : f32 to vector<8x32xf32>
    %805 = arith.select %803, %793, %804 : vector<8x32xi1>, vector<8x32xf32>
    %c0_327 = arith.constant 0 : index
    %c0_328 = arith.constant 0 : index
    %806 = vector.load %arg7[%c0_327, %c0_328] : memref<8x32xf32, #tpu.memory_space<vmem>>, vector<8x32xf32>
    tpu.vector_store %arg7[%c0_327, %c0_328], %798 {strides = array<i32>} : memref<8x32xf32, #tpu.memory_space<vmem>>, vector<8x32xf32>,
    %c0_329 = arith.constant 0 : index
    %c0_330 = arith.constant 0 : index
    %807 = vector.load %arg8[%c0_329, %c0_330] : memref<8x32xf32, #tpu.memory_space<vmem>>, vector<8x32xf32>
    tpu.vector_store %arg8[%c0_329, %c0_330], %801 {strides = array<i32>} : memref<8x32xf32, #tpu.memory_space<vmem>>, vector<8x32xf32>,
    %808 = vector.shape_cast %805 : vector<8x32xf32> to vector<1x8x32xf32>
    %809 = arith.index_cast %c7_i32_311 : i32 to index
    %c0_331 = arith.constant 0 : index
    %c0_332 = arith.constant 0 : index
    %810 = vector.load %arg6[%809, %c0_331, %c0_332] : memref<8x8x64xf32, #tpu.memory_space<vmem>>, vector<1x8x32xf32>
    tpu.vector_store %arg6[%809, %c0_331, %c0_332], %808 {strides = array<i32>} : memref<8x8x64xf32, #tpu.memory_space<vmem>>, vector<1x8x32xf32>,
    %c7_i32_333 = arith.constant 7 : i32
    %811 = arith.subi %c7_i32_333, %c7_i32_311 : i32
    %812 = arith.index_cast %811 : i32 to index
    %c0_334 = arith.constant 0 : index
    %c0_335 = arith.constant 0 : index
    %813 = vector.load %arg1[%812, %c0_334, %c0_335] : memref<8x8x16xf32, #tpu.memory_space<vmem>>, vector<1x8x16xf32>
    %814 = vector.shape_cast %813 : vector<1x8x16xf32> to vector<8x16xf32>
    %c0_336 = arith.constant 0 : index
    %c0_337 = arith.constant 0 : index
    %815 = vector.load %arg9[%c0_336, %c0_337] : memref<8x32xf32, #tpu.memory_space<vmem>>, vector<8x32xf32>
    %c0_338 = arith.constant 0 : index
    %c0_339 = arith.constant 0 : index
    %816 = vector.load %arg10[%c0_338, %c0_339] : memref<8x32xf32, #tpu.memory_space<vmem>>, vector<8x32xf32>
    %817 = tpu.concatenate %814, %815 in 1 : vector<8x16xf32>, vector<8x32xf32> -> vector<8x48xf32>
    %c0_340 = arith.constant 0 : index
    %c0_341 = arith.constant 0 : index
    %818 = vector.load %arg4[%c0_340, %c0_341] : memref<48x128xf32, #tpu.memory_space<vmem>>, vector<48x128xf32>
    %cst_342 = arith.constant dense<0.000000e+00> : vector<8x128xf32>
    %819 = tpu.matmul %817, %818, %cst_342 {dimension_numbers = #tpu.dot_dimension_numbers<[1], [0], [0], [1], [0, 0, 1, 1], [], []>} : vector<8x48xf32>, vector<48x128xf32>, vector<8x128xf32> -> vector<8x128xf32>
    %c0_343 = arith.constant 0 : index
    %c0_344 = arith.constant 0 : index
    %820 = vector.load %arg5[%c0_343, %c0_344] : memref<1x128xf32, #tpu.memory_space<vmem>>, vector<1x128xf32>
    %821 = vector.broadcast %820 : vector<1x128xf32> to vector<8x128xf32>
    %822 = arith.addf %819, %821 : vector<8x128xf32>
    %823 = vector.extract_strided_slice %822 {offsets = [0, 0], sizes = [8, 32], strides = [1, 1]} : vector<8x128xf32> to vector<8x32xf32>
    %824 = arith.negf %823 : vector<8x32xf32>
    %825 = math.exp %824 : vector<8x32xf32>
    %cst_345 = arith.constant 1.000000e+00 : f32
    %826 = vector.broadcast %cst_345 : f32 to vector<8x32xf32>
    %827 = arith.addf %826, %825 : vector<8x32xf32>
    %828 = arith.divf %826, %827 : vector<8x32xf32>
    %829 = vector.extract_strided_slice %822 {offsets = [0, 32], sizes = [8, 32], strides = [1, 1]} : vector<8x128xf32> to vector<8x32xf32>
    %830 = arith.negf %829 : vector<8x32xf32>
    %831 = math.exp %830 : vector<8x32xf32>
    %cst_346 = arith.constant 1.000000e+00 : f32
    %832 = vector.broadcast %cst_346 : f32 to vector<8x32xf32>
    %833 = arith.addf %832, %831 : vector<8x32xf32>
    %834 = arith.divf %832, %833 : vector<8x32xf32>
    %835 = vector.extract_strided_slice %822 {offsets = [0, 64], sizes = [8, 32], strides = [1, 1]} : vector<8x128xf32> to vector<8x32xf32>
    %836 = math.tanh %835 : vector<8x32xf32>
    %837 = vector.extract_strided_slice %822 {offsets = [0, 96], sizes = [8, 32], strides = [1, 1]} : vector<8x128xf32> to vector<8x32xf32>
    %838 = arith.negf %837 : vector<8x32xf32>
    %839 = math.exp %838 : vector<8x32xf32>
    %cst_347 = arith.constant 1.000000e+00 : f32
    %840 = vector.broadcast %cst_347 : f32 to vector<8x32xf32>
    %841 = arith.addf %840, %839 : vector<8x32xf32>
    %842 = arith.divf %840, %841 : vector<8x32xf32>
    %843 = arith.mulf %834, %816 : vector<8x32xf32>
    %844 = arith.mulf %828, %836 : vector<8x32xf32>
    %845 = arith.addf %843, %844 : vector<8x32xf32>
    %846 = math.tanh %845 : vector<8x32xf32>
    %847 = arith.mulf %842, %846 : vector<8x32xf32>
    %848 = vector.broadcast %811 : i32 to vector<8x1xi32>
    %849 = arith.cmpi slt, %848, %8 : vector<8x1xi32>
    %850 = vector.shape_cast %849 : vector<8x1xi1> to vector<8x1xi1>
    %851 = vector.broadcast %850 : vector<8x1xi1> to vector<8x32xi1>
    %852 = arith.select %851, %847, %815 : vector<8x32xi1>, vector<8x32xf32>
    %853 = vector.shape_cast %849 : vector<8x1xi1> to vector<8x1xi1>
    %854 = vector.broadcast %853 : vector<8x1xi1> to vector<8x32xi1>
    %855 = arith.select %854, %845, %816 : vector<8x32xi1>, vector<8x32xf32>
    %cst_348 = arith.constant 0.000000e+00 : f32
    %856 = vector.shape_cast %849 : vector<8x1xi1> to vector<8x1xi1>
    %857 = vector.broadcast %856 : vector<8x1xi1> to vector<8x32xi1>
    %858 = vector.broadcast %cst_348 : f32 to vector<8x32xf32>
    %859 = arith.select %857, %847, %858 : vector<8x32xi1>, vector<8x32xf32>
    %c0_349 = arith.constant 0 : index
    %c0_350 = arith.constant 0 : index
    %860 = vector.load %arg9[%c0_349, %c0_350] : memref<8x32xf32, #tpu.memory_space<vmem>>, vector<8x32xf32>
    tpu.vector_store %arg9[%c0_349, %c0_350], %852 {strides = array<i32>} : memref<8x32xf32, #tpu.memory_space<vmem>>, vector<8x32xf32>,
    %c0_351 = arith.constant 0 : index
    %c0_352 = arith.constant 0 : index
    %861 = vector.load %arg10[%c0_351, %c0_352] : memref<8x32xf32, #tpu.memory_space<vmem>>, vector<8x32xf32>
    tpu.vector_store %arg10[%c0_351, %c0_352], %855 {strides = array<i32>} : memref<8x32xf32, #tpu.memory_space<vmem>>, vector<8x32xf32>,
    %862 = vector.shape_cast %859 : vector<8x32xf32> to vector<1x8x32xf32>
    %863 = arith.index_cast %811 : i32 to index
    %c0_353 = arith.constant 0 : index
    %c32_354 = arith.constant 32 : index
    %864 = vector.load %arg6[%863, %c0_353, %c32_354] : memref<8x8x64xf32, #tpu.memory_space<vmem>>, vector<1x8x32xf32>
    tpu.vector_store %arg6[%863, %c0_353, %c32_354], %862 {strides = array<i32>} : memref<8x8x64xf32, #tpu.memory_space<vmem>>, vector<1x8x32xf32>,
    %c8_i32 = arith.constant 8 : i32
    return
  }
}

module attributes {stable_mosaic.version = 11 : i64} {
  func.func @kernel(%arg0: memref<8x1xi32, #tpu.memory_space<vmem>>, %arg1: memref<8x8x64xf32, #tpu.memory_space<vmem>>, %arg2: memref<96x128xf32, #tpu.memory_space<vmem>>, %arg3: memref<1x128xf32, #tpu.memory_space<vmem>>, %arg4: memref<96x128xf32, #tpu.memory_space<vmem>>, %arg5: memref<1x128xf32, #tpu.memory_space<vmem>>, %arg6: memref<8x8x64xf32, #tpu.memory_space<vmem>>, %arg7: memref<8x32xf32, #tpu.memory_space<vmem>>, %arg8: memref<8x32xf32, #tpu.memory_space<vmem>>, %arg9: memref<8x32xf32, #tpu.memory_space<vmem>>, %arg10: memref<8x32xf32, #tpu.memory_space<vmem>>) attributes {dimension_semantics = [], scalar_prefetch = 0 : i64, scratch_operands = 4 : i64, tpu.core_type = #tpu.core_type<tc>} {
    %cst = arith.constant 0.000000e+00 : f32
    %0 = vector.broadcast %cst : f32 to vector<8x32xf32>
    %c0 = arith.constant 0 : index
    %c0_0 = arith.constant 0 : index
    %1 = vector.load %arg7[%c0, %c0_0] : memref<8x32xf32, #tpu.memory_space<vmem>>, vector<8x32xf32>
    tpu.vector_store %arg7[%c0, %c0_0], %0 {strides = array<i32>} : memref<8x32xf32, #tpu.memory_space<vmem>>, vector<8x32xf32>,
    %cst_1 = arith.constant 0.000000e+00 : f32
    %2 = vector.broadcast %cst_1 : f32 to vector<8x32xf32>
    %c0_2 = arith.constant 0 : index
    %c0_3 = arith.constant 0 : index
    %3 = vector.load %arg8[%c0_2, %c0_3] : memref<8x32xf32, #tpu.memory_space<vmem>>, vector<8x32xf32>
    tpu.vector_store %arg8[%c0_2, %c0_3], %2 {strides = array<i32>} : memref<8x32xf32, #tpu.memory_space<vmem>>, vector<8x32xf32>,
    %cst_4 = arith.constant 0.000000e+00 : f32
    %4 = vector.broadcast %cst_4 : f32 to vector<8x32xf32>
    %c0_5 = arith.constant 0 : index
    %c0_6 = arith.constant 0 : index
    %5 = vector.load %arg9[%c0_5, %c0_6] : memref<8x32xf32, #tpu.memory_space<vmem>>, vector<8x32xf32>
    tpu.vector_store %arg9[%c0_5, %c0_6], %4 {strides = array<i32>} : memref<8x32xf32, #tpu.memory_space<vmem>>, vector<8x32xf32>,
    %cst_7 = arith.constant 0.000000e+00 : f32
    %6 = vector.broadcast %cst_7 : f32 to vector<8x32xf32>
    %c0_8 = arith.constant 0 : index
    %c0_9 = arith.constant 0 : index
    %7 = vector.load %arg10[%c0_8, %c0_9] : memref<8x32xf32, #tpu.memory_space<vmem>>, vector<8x32xf32>
    tpu.vector_store %arg10[%c0_8, %c0_9], %6 {strides = array<i32>} : memref<8x32xf32, #tpu.memory_space<vmem>>, vector<8x32xf32>,
    %c0_10 = arith.constant 0 : index
    %c0_11 = arith.constant 0 : index
    %8 = vector.load %arg0[%c0_10, %c0_11] : memref<8x1xi32, #tpu.memory_space<vmem>>, vector<8x1xi32>
    %c0_i32 = arith.constant 0 : i32
    %9 = arith.index_cast %c0_i32 : i32 to index
    %c0_12 = arith.constant 0 : index
    %c0_13 = arith.constant 0 : index
    %10 = vector.load %arg1[%9, %c0_12, %c0_13] : memref<8x8x64xf32, #tpu.memory_space<vmem>>, vector<1x8x64xf32>
    %11 = vector.shape_cast %10 : vector<1x8x64xf32> to vector<8x64xf32>
    %c0_14 = arith.constant 0 : index
    %c0_15 = arith.constant 0 : index
    %12 = vector.load %arg7[%c0_14, %c0_15] : memref<8x32xf32, #tpu.memory_space<vmem>>, vector<8x32xf32>
    %c0_16 = arith.constant 0 : index
    %c0_17 = arith.constant 0 : index
    %13 = vector.load %arg8[%c0_16, %c0_17] : memref<8x32xf32, #tpu.memory_space<vmem>>, vector<8x32xf32>
    %14 = tpu.concatenate %11, %12 in 1 : vector<8x64xf32>, vector<8x32xf32> -> vector<8x96xf32>
    %c0_18 = arith.constant 0 : index
    %c0_19 = arith.constant 0 : index
    %15 = vector.load %arg2[%c0_18, %c0_19] : memref<96x128xf32, #tpu.memory_space<vmem>>, vector<96x128xf32>
    %cst_20 = arith.constant dense<0.000000e+00> : vector<8x128xf32>
    %16 = tpu.matmul %14, %15, %cst_20 {dimension_numbers = #tpu.dot_dimension_numbers<[1], [0], [0], [1], [0, 0, 1, 1], [], []>} : vector<8x96xf32>, vector<96x128xf32>, vector<8x128xf32> -> vector<8x128xf32>
    %c0_21 = arith.constant 0 : index
    %c0_22 = arith.constant 0 : index
    %17 = vector.load %arg3[%c0_21, %c0_22] : memref<1x128xf32, #tpu.memory_space<vmem>>, vector<1x128xf32>
    %18 = vector.broadcast %17 : vector<1x128xf32> to vector<8x128xf32>
    %19 = arith.addf %16, %18 : vector<8x128xf32>
    %20 = vector.extract_strided_slice %19 {offsets = [0, 0], sizes = [8, 32], strides = [1, 1]} : vector<8x128xf32> to vector<8x32xf32>
    %21 = arith.negf %20 : vector<8x32xf32>
    %22 = math.exp %21 : vector<8x32xf32>
    %cst_23 = arith.constant 1.000000e+00 : f32
    %23 = vector.broadcast %cst_23 : f32 to vector<8x32xf32>
    %24 = arith.addf %23, %22 : vector<8x32xf32>
    %25 = arith.divf %23, %24 : vector<8x32xf32>
    %26 = vector.extract_strided_slice %19 {offsets = [0, 32], sizes = [8, 32], strides = [1, 1]} : vector<8x128xf32> to vector<8x32xf32>
    %27 = arith.negf %26 : vector<8x32xf32>
    %28 = math.exp %27 : vector<8x32xf32>
    %cst_24 = arith.constant 1.000000e+00 : f32
    %29 = vector.broadcast %cst_24 : f32 to vector<8x32xf32>
    %30 = arith.addf %29, %28 : vector<8x32xf32>
    %31 = arith.divf %29, %30 : vector<8x32xf32>
    %32 = vector.extract_strided_slice %19 {offsets = [0, 64], sizes = [8, 32], strides = [1, 1]} : vector<8x128xf32> to vector<8x32xf32>
    %33 = math.tanh %32 : vector<8x32xf32>
    %34 = vector.extract_strided_slice %19 {offsets = [0, 96], sizes = [8, 32], strides = [1, 1]} : vector<8x128xf32> to vector<8x32xf32>
    %35 = arith.negf %34 : vector<8x32xf32>
    %36 = math.exp %35 : vector<8x32xf32>
    %cst_25 = arith.constant 1.000000e+00 : f32
    %37 = vector.broadcast %cst_25 : f32 to vector<8x32xf32>
    %38 = arith.addf %37, %36 : vector<8x32xf32>
    %39 = arith.divf %37, %38 : vector<8x32xf32>
    %40 = arith.mulf %31, %13 : vector<8x32xf32>
    %41 = arith.mulf %25, %33 : vector<8x32xf32>
    %42 = arith.addf %40, %41 : vector<8x32xf32>
    %43 = math.tanh %42 : vector<8x32xf32>
    %44 = arith.mulf %39, %43 : vector<8x32xf32>
    %45 = vector.broadcast %c0_i32 : i32 to vector<8x1xi32>
    %46 = arith.cmpi slt, %45, %8 : vector<8x1xi32>
    %47 = vector.shape_cast %46 : vector<8x1xi1> to vector<8x1xi1>
    %48 = vector.broadcast %47 : vector<8x1xi1> to vector<8x32xi1>
    %49 = arith.select %48, %44, %12 : vector<8x32xi1>, vector<8x32xf32>
    %50 = vector.shape_cast %46 : vector<8x1xi1> to vector<8x1xi1>
    %51 = vector.broadcast %50 : vector<8x1xi1> to vector<8x32xi1>
    %52 = arith.select %51, %42, %13 : vector<8x32xi1>, vector<8x32xf32>
    %cst_26 = arith.constant 0.000000e+00 : f32
    %53 = vector.shape_cast %46 : vector<8x1xi1> to vector<8x1xi1>
    %54 = vector.broadcast %53 : vector<8x1xi1> to vector<8x32xi1>
    %55 = vector.broadcast %cst_26 : f32 to vector<8x32xf32>
    %56 = arith.select %54, %44, %55 : vector<8x32xi1>, vector<8x32xf32>
    %c0_27 = arith.constant 0 : index
    %c0_28 = arith.constant 0 : index
    %57 = vector.load %arg7[%c0_27, %c0_28] : memref<8x32xf32, #tpu.memory_space<vmem>>, vector<8x32xf32>
    tpu.vector_store %arg7[%c0_27, %c0_28], %49 {strides = array<i32>} : memref<8x32xf32, #tpu.memory_space<vmem>>, vector<8x32xf32>,
    %c0_29 = arith.constant 0 : index
    %c0_30 = arith.constant 0 : index
    %58 = vector.load %arg8[%c0_29, %c0_30] : memref<8x32xf32, #tpu.memory_space<vmem>>, vector<8x32xf32>
    tpu.vector_store %arg8[%c0_29, %c0_30], %52 {strides = array<i32>} : memref<8x32xf32, #tpu.memory_space<vmem>>, vector<8x32xf32>,
    %59 = vector.shape_cast %56 : vector<8x32xf32> to vector<1x8x32xf32>
    %60 = arith.index_cast %c0_i32 : i32 to index
    %c0_31 = arith.constant 0 : index
    %c0_32 = arith.constant 0 : index
    %61 = vector.load %arg6[%60, %c0_31, %c0_32] : memref<8x8x64xf32, #tpu.memory_space<vmem>>, vector<1x8x32xf32>
    tpu.vector_store %arg6[%60, %c0_31, %c0_32], %59 {strides = array<i32>} : memref<8x8x64xf32, #tpu.memory_space<vmem>>, vector<1x8x32xf32>,
    %c7_i32 = arith.constant 7 : i32
    %62 = arith.subi %c7_i32, %c0_i32 : i32
    %63 = arith.index_cast %62 : i32 to index
    %c0_33 = arith.constant 0 : index
    %c0_34 = arith.constant 0 : index
    %64 = vector.load %arg1[%63, %c0_33, %c0_34] : memref<8x8x64xf32, #tpu.memory_space<vmem>>, vector<1x8x64xf32>
    %65 = vector.shape_cast %64 : vector<1x8x64xf32> to vector<8x64xf32>
    %c0_35 = arith.constant 0 : index
    %c0_36 = arith.constant 0 : index
    %66 = vector.load %arg9[%c0_35, %c0_36] : memref<8x32xf32, #tpu.memory_space<vmem>>, vector<8x32xf32>
    %c0_37 = arith.constant 0 : index
    %c0_38 = arith.constant 0 : index
    %67 = vector.load %arg10[%c0_37, %c0_38] : memref<8x32xf32, #tpu.memory_space<vmem>>, vector<8x32xf32>
    %68 = tpu.concatenate %65, %66 in 1 : vector<8x64xf32>, vector<8x32xf32> -> vector<8x96xf32>
    %c0_39 = arith.constant 0 : index
    %c0_40 = arith.constant 0 : index
    %69 = vector.load %arg4[%c0_39, %c0_40] : memref<96x128xf32, #tpu.memory_space<vmem>>, vector<96x128xf32>
    %cst_41 = arith.constant dense<0.000000e+00> : vector<8x128xf32>
    %70 = tpu.matmul %68, %69, %cst_41 {dimension_numbers = #tpu.dot_dimension_numbers<[1], [0], [0], [1], [0, 0, 1, 1], [], []>} : vector<8x96xf32>, vector<96x128xf32>, vector<8x128xf32> -> vector<8x128xf32>
    %c0_42 = arith.constant 0 : index
    %c0_43 = arith.constant 0 : index
    %71 = vector.load %arg5[%c0_42, %c0_43] : memref<1x128xf32, #tpu.memory_space<vmem>>, vector<1x128xf32>
    %72 = vector.broadcast %71 : vector<1x128xf32> to vector<8x128xf32>
    %73 = arith.addf %70, %72 : vector<8x128xf32>
    %74 = vector.extract_strided_slice %73 {offsets = [0, 0], sizes = [8, 32], strides = [1, 1]} : vector<8x128xf32> to vector<8x32xf32>
    %75 = arith.negf %74 : vector<8x32xf32>
    %76 = math.exp %75 : vector<8x32xf32>
    %cst_44 = arith.constant 1.000000e+00 : f32
    %77 = vector.broadcast %cst_44 : f32 to vector<8x32xf32>
    %78 = arith.addf %77, %76 : vector<8x32xf32>
    %79 = arith.divf %77, %78 : vector<8x32xf32>
    %80 = vector.extract_strided_slice %73 {offsets = [0, 32], sizes = [8, 32], strides = [1, 1]} : vector<8x128xf32> to vector<8x32xf32>
    %81 = arith.negf %80 : vector<8x32xf32>
    %82 = math.exp %81 : vector<8x32xf32>
    %cst_45 = arith.constant 1.000000e+00 : f32
    %83 = vector.broadcast %cst_45 : f32 to vector<8x32xf32>
    %84 = arith.addf %83, %82 : vector<8x32xf32>
    %85 = arith.divf %83, %84 : vector<8x32xf32>
    %86 = vector.extract_strided_slice %73 {offsets = [0, 64], sizes = [8, 32], strides = [1, 1]} : vector<8x128xf32> to vector<8x32xf32>
    %87 = math.tanh %86 : vector<8x32xf32>
    %88 = vector.extract_strided_slice %73 {offsets = [0, 96], sizes = [8, 32], strides = [1, 1]} : vector<8x128xf32> to vector<8x32xf32>
    %89 = arith.negf %88 : vector<8x32xf32>
    %90 = math.exp %89 : vector<8x32xf32>
    %cst_46 = arith.constant 1.000000e+00 : f32
    %91 = vector.broadcast %cst_46 : f32 to vector<8x32xf32>
    %92 = arith.addf %91, %90 : vector<8x32xf32>
    %93 = arith.divf %91, %92 : vector<8x32xf32>
    %94 = arith.mulf %85, %67 : vector<8x32xf32>
    %95 = arith.mulf %79, %87 : vector<8x32xf32>
    %96 = arith.addf %94, %95 : vector<8x32xf32>
    %97 = math.tanh %96 : vector<8x32xf32>
    %98 = arith.mulf %93, %97 : vector<8x32xf32>
    %99 = vector.broadcast %62 : i32 to vector<8x1xi32>
    %100 = arith.cmpi slt, %99, %8 : vector<8x1xi32>
    %101 = vector.shape_cast %100 : vector<8x1xi1> to vector<8x1xi1>
    %102 = vector.broadcast %101 : vector<8x1xi1> to vector<8x32xi1>
    %103 = arith.select %102, %98, %66 : vector<8x32xi1>, vector<8x32xf32>
    %104 = vector.shape_cast %100 : vector<8x1xi1> to vector<8x1xi1>
    %105 = vector.broadcast %104 : vector<8x1xi1> to vector<8x32xi1>
    %106 = arith.select %105, %96, %67 : vector<8x32xi1>, vector<8x32xf32>
    %cst_47 = arith.constant 0.000000e+00 : f32
    %107 = vector.shape_cast %100 : vector<8x1xi1> to vector<8x1xi1>
    %108 = vector.broadcast %107 : vector<8x1xi1> to vector<8x32xi1>
    %109 = vector.broadcast %cst_47 : f32 to vector<8x32xf32>
    %110 = arith.select %108, %98, %109 : vector<8x32xi1>, vector<8x32xf32>
    %c0_48 = arith.constant 0 : index
    %c0_49 = arith.constant 0 : index
    %111 = vector.load %arg9[%c0_48, %c0_49] : memref<8x32xf32, #tpu.memory_space<vmem>>, vector<8x32xf32>
    tpu.vector_store %arg9[%c0_48, %c0_49], %103 {strides = array<i32>} : memref<8x32xf32, #tpu.memory_space<vmem>>, vector<8x32xf32>,
    %c0_50 = arith.constant 0 : index
    %c0_51 = arith.constant 0 : index
    %112 = vector.load %arg10[%c0_50, %c0_51] : memref<8x32xf32, #tpu.memory_space<vmem>>, vector<8x32xf32>
    tpu.vector_store %arg10[%c0_50, %c0_51], %106 {strides = array<i32>} : memref<8x32xf32, #tpu.memory_space<vmem>>, vector<8x32xf32>,
    %113 = vector.shape_cast %110 : vector<8x32xf32> to vector<1x8x32xf32>
    %114 = arith.index_cast %62 : i32 to index
    %c0_52 = arith.constant 0 : index
    %c32 = arith.constant 32 : index
    %115 = vector.load %arg6[%114, %c0_52, %c32] : memref<8x8x64xf32, #tpu.memory_space<vmem>>, vector<1x8x32xf32>
    tpu.vector_store %arg6[%114, %c0_52, %c32], %113 {strides = array<i32>} : memref<8x8x64xf32, #tpu.memory_space<vmem>>, vector<1x8x32xf32>,
    %c1_i32 = arith.constant 1 : i32
    %116 = arith.index_cast %c1_i32 : i32 to index
    %c0_53 = arith.constant 0 : index
    %c0_54 = arith.constant 0 : index
    %117 = vector.load %arg1[%116, %c0_53, %c0_54] : memref<8x8x64xf32, #tpu.memory_space<vmem>>, vector<1x8x64xf32>
    %118 = vector.shape_cast %117 : vector<1x8x64xf32> to vector<8x64xf32>
    %c0_55 = arith.constant 0 : index
    %c0_56 = arith.constant 0 : index
    %119 = vector.load %arg7[%c0_55, %c0_56] : memref<8x32xf32, #tpu.memory_space<vmem>>, vector<8x32xf32>
    %c0_57 = arith.constant 0 : index
    %c0_58 = arith.constant 0 : index
    %120 = vector.load %arg8[%c0_57, %c0_58] : memref<8x32xf32, #tpu.memory_space<vmem>>, vector<8x32xf32>
    %121 = tpu.concatenate %118, %119 in 1 : vector<8x64xf32>, vector<8x32xf32> -> vector<8x96xf32>
    %c0_59 = arith.constant 0 : index
    %c0_60 = arith.constant 0 : index
    %122 = vector.load %arg2[%c0_59, %c0_60] : memref<96x128xf32, #tpu.memory_space<vmem>>, vector<96x128xf32>
    %cst_61 = arith.constant dense<0.000000e+00> : vector<8x128xf32>
    %123 = tpu.matmul %121, %122, %cst_61 {dimension_numbers = #tpu.dot_dimension_numbers<[1], [0], [0], [1], [0, 0, 1, 1], [], []>} : vector<8x96xf32>, vector<96x128xf32>, vector<8x128xf32> -> vector<8x128xf32>
    %c0_62 = arith.constant 0 : index
    %c0_63 = arith.constant 0 : index
    %124 = vector.load %arg3[%c0_62, %c0_63] : memref<1x128xf32, #tpu.memory_space<vmem>>, vector<1x128xf32>
    %125 = vector.broadcast %124 : vector<1x128xf32> to vector<8x128xf32>
    %126 = arith.addf %123, %125 : vector<8x128xf32>
    %127 = vector.extract_strided_slice %126 {offsets = [0, 0], sizes = [8, 32], strides = [1, 1]} : vector<8x128xf32> to vector<8x32xf32>
    %128 = arith.negf %127 : vector<8x32xf32>
    %129 = math.exp %128 : vector<8x32xf32>
    %cst_64 = arith.constant 1.000000e+00 : f32
    %130 = vector.broadcast %cst_64 : f32 to vector<8x32xf32>
    %131 = arith.addf %130, %129 : vector<8x32xf32>
    %132 = arith.divf %130, %131 : vector<8x32xf32>
    %133 = vector.extract_strided_slice %126 {offsets = [0, 32], sizes = [8, 32], strides = [1, 1]} : vector<8x128xf32> to vector<8x32xf32>
    %134 = arith.negf %133 : vector<8x32xf32>
    %135 = math.exp %134 : vector<8x32xf32>
    %cst_65 = arith.constant 1.000000e+00 : f32
    %136 = vector.broadcast %cst_65 : f32 to vector<8x32xf32>
    %137 = arith.addf %136, %135 : vector<8x32xf32>
    %138 = arith.divf %136, %137 : vector<8x32xf32>
    %139 = vector.extract_strided_slice %126 {offsets = [0, 64], sizes = [8, 32], strides = [1, 1]} : vector<8x128xf32> to vector<8x32xf32>
    %140 = math.tanh %139 : vector<8x32xf32>
    %141 = vector.extract_strided_slice %126 {offsets = [0, 96], sizes = [8, 32], strides = [1, 1]} : vector<8x128xf32> to vector<8x32xf32>
    %142 = arith.negf %141 : vector<8x32xf32>
    %143 = math.exp %142 : vector<8x32xf32>
    %cst_66 = arith.constant 1.000000e+00 : f32
    %144 = vector.broadcast %cst_66 : f32 to vector<8x32xf32>
    %145 = arith.addf %144, %143 : vector<8x32xf32>
    %146 = arith.divf %144, %145 : vector<8x32xf32>
    %147 = arith.mulf %138, %120 : vector<8x32xf32>
    %148 = arith.mulf %132, %140 : vector<8x32xf32>
    %149 = arith.addf %147, %148 : vector<8x32xf32>
    %150 = math.tanh %149 : vector<8x32xf32>
    %151 = arith.mulf %146, %150 : vector<8x32xf32>
    %152 = vector.broadcast %c1_i32 : i32 to vector<8x1xi32>
    %153 = arith.cmpi slt, %152, %8 : vector<8x1xi32>
    %154 = vector.shape_cast %153 : vector<8x1xi1> to vector<8x1xi1>
    %155 = vector.broadcast %154 : vector<8x1xi1> to vector<8x32xi1>
    %156 = arith.select %155, %151, %119 : vector<8x32xi1>, vector<8x32xf32>
    %157 = vector.shape_cast %153 : vector<8x1xi1> to vector<8x1xi1>
    %158 = vector.broadcast %157 : vector<8x1xi1> to vector<8x32xi1>
    %159 = arith.select %158, %149, %120 : vector<8x32xi1>, vector<8x32xf32>
    %cst_67 = arith.constant 0.000000e+00 : f32
    %160 = vector.shape_cast %153 : vector<8x1xi1> to vector<8x1xi1>
    %161 = vector.broadcast %160 : vector<8x1xi1> to vector<8x32xi1>
    %162 = vector.broadcast %cst_67 : f32 to vector<8x32xf32>
    %163 = arith.select %161, %151, %162 : vector<8x32xi1>, vector<8x32xf32>
    %c0_68 = arith.constant 0 : index
    %c0_69 = arith.constant 0 : index
    %164 = vector.load %arg7[%c0_68, %c0_69] : memref<8x32xf32, #tpu.memory_space<vmem>>, vector<8x32xf32>
    tpu.vector_store %arg7[%c0_68, %c0_69], %156 {strides = array<i32>} : memref<8x32xf32, #tpu.memory_space<vmem>>, vector<8x32xf32>,
    %c0_70 = arith.constant 0 : index
    %c0_71 = arith.constant 0 : index
    %165 = vector.load %arg8[%c0_70, %c0_71] : memref<8x32xf32, #tpu.memory_space<vmem>>, vector<8x32xf32>
    tpu.vector_store %arg8[%c0_70, %c0_71], %159 {strides = array<i32>} : memref<8x32xf32, #tpu.memory_space<vmem>>, vector<8x32xf32>,
    %166 = vector.shape_cast %163 : vector<8x32xf32> to vector<1x8x32xf32>
    %167 = arith.index_cast %c1_i32 : i32 to index
    %c0_72 = arith.constant 0 : index
    %c0_73 = arith.constant 0 : index
    %168 = vector.load %arg6[%167, %c0_72, %c0_73] : memref<8x8x64xf32, #tpu.memory_space<vmem>>, vector<1x8x32xf32>
    tpu.vector_store %arg6[%167, %c0_72, %c0_73], %166 {strides = array<i32>} : memref<8x8x64xf32, #tpu.memory_space<vmem>>, vector<1x8x32xf32>,
    %c7_i32_74 = arith.constant 7 : i32
    %169 = arith.subi %c7_i32_74, %c1_i32 : i32
    %170 = arith.index_cast %169 : i32 to index
    %c0_75 = arith.constant 0 : index
    %c0_76 = arith.constant 0 : index
    %171 = vector.load %arg1[%170, %c0_75, %c0_76] : memref<8x8x64xf32, #tpu.memory_space<vmem>>, vector<1x8x64xf32>
    %172 = vector.shape_cast %171 : vector<1x8x64xf32> to vector<8x64xf32>
    %c0_77 = arith.constant 0 : index
    %c0_78 = arith.constant 0 : index
    %173 = vector.load %arg9[%c0_77, %c0_78] : memref<8x32xf32, #tpu.memory_space<vmem>>, vector<8x32xf32>
    %c0_79 = arith.constant 0 : index
    %c0_80 = arith.constant 0 : index
    %174 = vector.load %arg10[%c0_79, %c0_80] : memref<8x32xf32, #tpu.memory_space<vmem>>, vector<8x32xf32>
    %175 = tpu.concatenate %172, %173 in 1 : vector<8x64xf32>, vector<8x32xf32> -> vector<8x96xf32>
    %c0_81 = arith.constant 0 : index
    %c0_82 = arith.constant 0 : index
    %176 = vector.load %arg4[%c0_81, %c0_82] : memref<96x128xf32, #tpu.memory_space<vmem>>, vector<96x128xf32>
    %cst_83 = arith.constant dense<0.000000e+00> : vector<8x128xf32>
    %177 = tpu.matmul %175, %176, %cst_83 {dimension_numbers = #tpu.dot_dimension_numbers<[1], [0], [0], [1], [0, 0, 1, 1], [], []>} : vector<8x96xf32>, vector<96x128xf32>, vector<8x128xf32> -> vector<8x128xf32>
    %c0_84 = arith.constant 0 : index
    %c0_85 = arith.constant 0 : index
    %178 = vector.load %arg5[%c0_84, %c0_85] : memref<1x128xf32, #tpu.memory_space<vmem>>, vector<1x128xf32>
    %179 = vector.broadcast %178 : vector<1x128xf32> to vector<8x128xf32>
    %180 = arith.addf %177, %179 : vector<8x128xf32>
    %181 = vector.extract_strided_slice %180 {offsets = [0, 0], sizes = [8, 32], strides = [1, 1]} : vector<8x128xf32> to vector<8x32xf32>
    %182 = arith.negf %181 : vector<8x32xf32>
    %183 = math.exp %182 : vector<8x32xf32>
    %cst_86 = arith.constant 1.000000e+00 : f32
    %184 = vector.broadcast %cst_86 : f32 to vector<8x32xf32>
    %185 = arith.addf %184, %183 : vector<8x32xf32>
    %186 = arith.divf %184, %185 : vector<8x32xf32>
    %187 = vector.extract_strided_slice %180 {offsets = [0, 32], sizes = [8, 32], strides = [1, 1]} : vector<8x128xf32> to vector<8x32xf32>
    %188 = arith.negf %187 : vector<8x32xf32>
    %189 = math.exp %188 : vector<8x32xf32>
    %cst_87 = arith.constant 1.000000e+00 : f32
    %190 = vector.broadcast %cst_87 : f32 to vector<8x32xf32>
    %191 = arith.addf %190, %189 : vector<8x32xf32>
    %192 = arith.divf %190, %191 : vector<8x32xf32>
    %193 = vector.extract_strided_slice %180 {offsets = [0, 64], sizes = [8, 32], strides = [1, 1]} : vector<8x128xf32> to vector<8x32xf32>
    %194 = math.tanh %193 : vector<8x32xf32>
    %195 = vector.extract_strided_slice %180 {offsets = [0, 96], sizes = [8, 32], strides = [1, 1]} : vector<8x128xf32> to vector<8x32xf32>
    %196 = arith.negf %195 : vector<8x32xf32>
    %197 = math.exp %196 : vector<8x32xf32>
    %cst_88 = arith.constant 1.000000e+00 : f32
    %198 = vector.broadcast %cst_88 : f32 to vector<8x32xf32>
    %199 = arith.addf %198, %197 : vector<8x32xf32>
    %200 = arith.divf %198, %199 : vector<8x32xf32>
    %201 = arith.mulf %192, %174 : vector<8x32xf32>
    %202 = arith.mulf %186, %194 : vector<8x32xf32>
    %203 = arith.addf %201, %202 : vector<8x32xf32>
    %204 = math.tanh %203 : vector<8x32xf32>
    %205 = arith.mulf %200, %204 : vector<8x32xf32>
    %206 = vector.broadcast %169 : i32 to vector<8x1xi32>
    %207 = arith.cmpi slt, %206, %8 : vector<8x1xi32>
    %208 = vector.shape_cast %207 : vector<8x1xi1> to vector<8x1xi1>
    %209 = vector.broadcast %208 : vector<8x1xi1> to vector<8x32xi1>
    %210 = arith.select %209, %205, %173 : vector<8x32xi1>, vector<8x32xf32>
    %211 = vector.shape_cast %207 : vector<8x1xi1> to vector<8x1xi1>
    %212 = vector.broadcast %211 : vector<8x1xi1> to vector<8x32xi1>
    %213 = arith.select %212, %203, %174 : vector<8x32xi1>, vector<8x32xf32>
    %cst_89 = arith.constant 0.000000e+00 : f32
    %214 = vector.shape_cast %207 : vector<8x1xi1> to vector<8x1xi1>
    %215 = vector.broadcast %214 : vector<8x1xi1> to vector<8x32xi1>
    %216 = vector.broadcast %cst_89 : f32 to vector<8x32xf32>
    %217 = arith.select %215, %205, %216 : vector<8x32xi1>, vector<8x32xf32>
    %c0_90 = arith.constant 0 : index
    %c0_91 = arith.constant 0 : index
    %218 = vector.load %arg9[%c0_90, %c0_91] : memref<8x32xf32, #tpu.memory_space<vmem>>, vector<8x32xf32>
    tpu.vector_store %arg9[%c0_90, %c0_91], %210 {strides = array<i32>} : memref<8x32xf32, #tpu.memory_space<vmem>>, vector<8x32xf32>,
    %c0_92 = arith.constant 0 : index
    %c0_93 = arith.constant 0 : index
    %219 = vector.load %arg10[%c0_92, %c0_93] : memref<8x32xf32, #tpu.memory_space<vmem>>, vector<8x32xf32>
    tpu.vector_store %arg10[%c0_92, %c0_93], %213 {strides = array<i32>} : memref<8x32xf32, #tpu.memory_space<vmem>>, vector<8x32xf32>,
    %220 = vector.shape_cast %217 : vector<8x32xf32> to vector<1x8x32xf32>
    %221 = arith.index_cast %169 : i32 to index
    %c0_94 = arith.constant 0 : index
    %c32_95 = arith.constant 32 : index
    %222 = vector.load %arg6[%221, %c0_94, %c32_95] : memref<8x8x64xf32, #tpu.memory_space<vmem>>, vector<1x8x32xf32>
    tpu.vector_store %arg6[%221, %c0_94, %c32_95], %220 {strides = array<i32>} : memref<8x8x64xf32, #tpu.memory_space<vmem>>, vector<1x8x32xf32>,
    %c2_i32 = arith.constant 2 : i32
    %223 = arith.index_cast %c2_i32 : i32 to index
    %c0_96 = arith.constant 0 : index
    %c0_97 = arith.constant 0 : index
    %224 = vector.load %arg1[%223, %c0_96, %c0_97] : memref<8x8x64xf32, #tpu.memory_space<vmem>>, vector<1x8x64xf32>
    %225 = vector.shape_cast %224 : vector<1x8x64xf32> to vector<8x64xf32>
    %c0_98 = arith.constant 0 : index
    %c0_99 = arith.constant 0 : index
    %226 = vector.load %arg7[%c0_98, %c0_99] : memref<8x32xf32, #tpu.memory_space<vmem>>, vector<8x32xf32>
    %c0_100 = arith.constant 0 : index
    %c0_101 = arith.constant 0 : index
    %227 = vector.load %arg8[%c0_100, %c0_101] : memref<8x32xf32, #tpu.memory_space<vmem>>, vector<8x32xf32>
    %228 = tpu.concatenate %225, %226 in 1 : vector<8x64xf32>, vector<8x32xf32> -> vector<8x96xf32>
    %c0_102 = arith.constant 0 : index
    %c0_103 = arith.constant 0 : index
    %229 = vector.load %arg2[%c0_102, %c0_103] : memref<96x128xf32, #tpu.memory_space<vmem>>, vector<96x128xf32>
    %cst_104 = arith.constant dense<0.000000e+00> : vector<8x128xf32>
    %230 = tpu.matmul %228, %229, %cst_104 {dimension_numbers = #tpu.dot_dimension_numbers<[1], [0], [0], [1], [0, 0, 1, 1], [], []>} : vector<8x96xf32>, vector<96x128xf32>, vector<8x128xf32> -> vector<8x128xf32>
    %c0_105 = arith.constant 0 : index
    %c0_106 = arith.constant 0 : index
    %231 = vector.load %arg3[%c0_105, %c0_106] : memref<1x128xf32, #tpu.memory_space<vmem>>, vector<1x128xf32>
    %232 = vector.broadcast %231 : vector<1x128xf32> to vector<8x128xf32>
    %233 = arith.addf %230, %232 : vector<8x128xf32>
    %234 = vector.extract_strided_slice %233 {offsets = [0, 0], sizes = [8, 32], strides = [1, 1]} : vector<8x128xf32> to vector<8x32xf32>
    %235 = arith.negf %234 : vector<8x32xf32>
    %236 = math.exp %235 : vector<8x32xf32>
    %cst_107 = arith.constant 1.000000e+00 : f32
    %237 = vector.broadcast %cst_107 : f32 to vector<8x32xf32>
    %238 = arith.addf %237, %236 : vector<8x32xf32>
    %239 = arith.divf %237, %238 : vector<8x32xf32>
    %240 = vector.extract_strided_slice %233 {offsets = [0, 32], sizes = [8, 32], strides = [1, 1]} : vector<8x128xf32> to vector<8x32xf32>
    %241 = arith.negf %240 : vector<8x32xf32>
    %242 = math.exp %241 : vector<8x32xf32>
    %cst_108 = arith.constant 1.000000e+00 : f32
    %243 = vector.broadcast %cst_108 : f32 to vector<8x32xf32>
    %244 = arith.addf %243, %242 : vector<8x32xf32>
    %245 = arith.divf %243, %244 : vector<8x32xf32>
    %246 = vector.extract_strided_slice %233 {offsets = [0, 64], sizes = [8, 32], strides = [1, 1]} : vector<8x128xf32> to vector<8x32xf32>
    %247 = math.tanh %246 : vector<8x32xf32>
    %248 = vector.extract_strided_slice %233 {offsets = [0, 96], sizes = [8, 32], strides = [1, 1]} : vector<8x128xf32> to vector<8x32xf32>
    %249 = arith.negf %248 : vector<8x32xf32>
    %250 = math.exp %249 : vector<8x32xf32>
    %cst_109 = arith.constant 1.000000e+00 : f32
    %251 = vector.broadcast %cst_109 : f32 to vector<8x32xf32>
    %252 = arith.addf %251, %250 : vector<8x32xf32>
    %253 = arith.divf %251, %252 : vector<8x32xf32>
    %254 = arith.mulf %245, %227 : vector<8x32xf32>
    %255 = arith.mulf %239, %247 : vector<8x32xf32>
    %256 = arith.addf %254, %255 : vector<8x32xf32>
    %257 = math.tanh %256 : vector<8x32xf32>
    %258 = arith.mulf %253, %257 : vector<8x32xf32>
    %259 = vector.broadcast %c2_i32 : i32 to vector<8x1xi32>
    %260 = arith.cmpi slt, %259, %8 : vector<8x1xi32>
    %261 = vector.shape_cast %260 : vector<8x1xi1> to vector<8x1xi1>
    %262 = vector.broadcast %261 : vector<8x1xi1> to vector<8x32xi1>
    %263 = arith.select %262, %258, %226 : vector<8x32xi1>, vector<8x32xf32>
    %264 = vector.shape_cast %260 : vector<8x1xi1> to vector<8x1xi1>
    %265 = vector.broadcast %264 : vector<8x1xi1> to vector<8x32xi1>
    %266 = arith.select %265, %256, %227 : vector<8x32xi1>, vector<8x32xf32>
    %cst_110 = arith.constant 0.000000e+00 : f32
    %267 = vector.shape_cast %260 : vector<8x1xi1> to vector<8x1xi1>
    %268 = vector.broadcast %267 : vector<8x1xi1> to vector<8x32xi1>
    %269 = vector.broadcast %cst_110 : f32 to vector<8x32xf32>
    %270 = arith.select %268, %258, %269 : vector<8x32xi1>, vector<8x32xf32>
    %c0_111 = arith.constant 0 : index
    %c0_112 = arith.constant 0 : index
    %271 = vector.load %arg7[%c0_111, %c0_112] : memref<8x32xf32, #tpu.memory_space<vmem>>, vector<8x32xf32>
    tpu.vector_store %arg7[%c0_111, %c0_112], %263 {strides = array<i32>} : memref<8x32xf32, #tpu.memory_space<vmem>>, vector<8x32xf32>,
    %c0_113 = arith.constant 0 : index
    %c0_114 = arith.constant 0 : index
    %272 = vector.load %arg8[%c0_113, %c0_114] : memref<8x32xf32, #tpu.memory_space<vmem>>, vector<8x32xf32>
    tpu.vector_store %arg8[%c0_113, %c0_114], %266 {strides = array<i32>} : memref<8x32xf32, #tpu.memory_space<vmem>>, vector<8x32xf32>,
    %273 = vector.shape_cast %270 : vector<8x32xf32> to vector<1x8x32xf32>
    %274 = arith.index_cast %c2_i32 : i32 to index
    %c0_115 = arith.constant 0 : index
    %c0_116 = arith.constant 0 : index
    %275 = vector.load %arg6[%274, %c0_115, %c0_116] : memref<8x8x64xf32, #tpu.memory_space<vmem>>, vector<1x8x32xf32>
    tpu.vector_store %arg6[%274, %c0_115, %c0_116], %273 {strides = array<i32>} : memref<8x8x64xf32, #tpu.memory_space<vmem>>, vector<1x8x32xf32>,
    %c7_i32_117 = arith.constant 7 : i32
    %276 = arith.subi %c7_i32_117, %c2_i32 : i32
    %277 = arith.index_cast %276 : i32 to index
    %c0_118 = arith.constant 0 : index
    %c0_119 = arith.constant 0 : index
    %278 = vector.load %arg1[%277, %c0_118, %c0_119] : memref<8x8x64xf32, #tpu.memory_space<vmem>>, vector<1x8x64xf32>
    %279 = vector.shape_cast %278 : vector<1x8x64xf32> to vector<8x64xf32>
    %c0_120 = arith.constant 0 : index
    %c0_121 = arith.constant 0 : index
    %280 = vector.load %arg9[%c0_120, %c0_121] : memref<8x32xf32, #tpu.memory_space<vmem>>, vector<8x32xf32>
    %c0_122 = arith.constant 0 : index
    %c0_123 = arith.constant 0 : index
    %281 = vector.load %arg10[%c0_122, %c0_123] : memref<8x32xf32, #tpu.memory_space<vmem>>, vector<8x32xf32>
    %282 = tpu.concatenate %279, %280 in 1 : vector<8x64xf32>, vector<8x32xf32> -> vector<8x96xf32>
    %c0_124 = arith.constant 0 : index
    %c0_125 = arith.constant 0 : index
    %283 = vector.load %arg4[%c0_124, %c0_125] : memref<96x128xf32, #tpu.memory_space<vmem>>, vector<96x128xf32>
    %cst_126 = arith.constant dense<0.000000e+00> : vector<8x128xf32>
    %284 = tpu.matmul %282, %283, %cst_126 {dimension_numbers = #tpu.dot_dimension_numbers<[1], [0], [0], [1], [0, 0, 1, 1], [], []>} : vector<8x96xf32>, vector<96x128xf32>, vector<8x128xf32> -> vector<8x128xf32>
    %c0_127 = arith.constant 0 : index
    %c0_128 = arith.constant 0 : index
    %285 = vector.load %arg5[%c0_127, %c0_128] : memref<1x128xf32, #tpu.memory_space<vmem>>, vector<1x128xf32>
    %286 = vector.broadcast %285 : vector<1x128xf32> to vector<8x128xf32>
    %287 = arith.addf %284, %286 : vector<8x128xf32>
    %288 = vector.extract_strided_slice %287 {offsets = [0, 0], sizes = [8, 32], strides = [1, 1]} : vector<8x128xf32> to vector<8x32xf32>
    %289 = arith.negf %288 : vector<8x32xf32>
    %290 = math.exp %289 : vector<8x32xf32>
    %cst_129 = arith.constant 1.000000e+00 : f32
    %291 = vector.broadcast %cst_129 : f32 to vector<8x32xf32>
    %292 = arith.addf %291, %290 : vector<8x32xf32>
    %293 = arith.divf %291, %292 : vector<8x32xf32>
    %294 = vector.extract_strided_slice %287 {offsets = [0, 32], sizes = [8, 32], strides = [1, 1]} : vector<8x128xf32> to vector<8x32xf32>
    %295 = arith.negf %294 : vector<8x32xf32>
    %296 = math.exp %295 : vector<8x32xf32>
    %cst_130 = arith.constant 1.000000e+00 : f32
    %297 = vector.broadcast %cst_130 : f32 to vector<8x32xf32>
    %298 = arith.addf %297, %296 : vector<8x32xf32>
    %299 = arith.divf %297, %298 : vector<8x32xf32>
    %300 = vector.extract_strided_slice %287 {offsets = [0, 64], sizes = [8, 32], strides = [1, 1]} : vector<8x128xf32> to vector<8x32xf32>
    %301 = math.tanh %300 : vector<8x32xf32>
    %302 = vector.extract_strided_slice %287 {offsets = [0, 96], sizes = [8, 32], strides = [1, 1]} : vector<8x128xf32> to vector<8x32xf32>
    %303 = arith.negf %302 : vector<8x32xf32>
    %304 = math.exp %303 : vector<8x32xf32>
    %cst_131 = arith.constant 1.000000e+00 : f32
    %305 = vector.broadcast %cst_131 : f32 to vector<8x32xf32>
    %306 = arith.addf %305, %304 : vector<8x32xf32>
    %307 = arith.divf %305, %306 : vector<8x32xf32>
    %308 = arith.mulf %299, %281 : vector<8x32xf32>
    %309 = arith.mulf %293, %301 : vector<8x32xf32>
    %310 = arith.addf %308, %309 : vector<8x32xf32>
    %311 = math.tanh %310 : vector<8x32xf32>
    %312 = arith.mulf %307, %311 : vector<8x32xf32>
    %313 = vector.broadcast %276 : i32 to vector<8x1xi32>
    %314 = arith.cmpi slt, %313, %8 : vector<8x1xi32>
    %315 = vector.shape_cast %314 : vector<8x1xi1> to vector<8x1xi1>
    %316 = vector.broadcast %315 : vector<8x1xi1> to vector<8x32xi1>
    %317 = arith.select %316, %312, %280 : vector<8x32xi1>, vector<8x32xf32>
    %318 = vector.shape_cast %314 : vector<8x1xi1> to vector<8x1xi1>
    %319 = vector.broadcast %318 : vector<8x1xi1> to vector<8x32xi1>
    %320 = arith.select %319, %310, %281 : vector<8x32xi1>, vector<8x32xf32>
    %cst_132 = arith.constant 0.000000e+00 : f32
    %321 = vector.shape_cast %314 : vector<8x1xi1> to vector<8x1xi1>
    %322 = vector.broadcast %321 : vector<8x1xi1> to vector<8x32xi1>
    %323 = vector.broadcast %cst_132 : f32 to vector<8x32xf32>
    %324 = arith.select %322, %312, %323 : vector<8x32xi1>, vector<8x32xf32>
    %c0_133 = arith.constant 0 : index
    %c0_134 = arith.constant 0 : index
    %325 = vector.load %arg9[%c0_133, %c0_134] : memref<8x32xf32, #tpu.memory_space<vmem>>, vector<8x32xf32>
    tpu.vector_store %arg9[%c0_133, %c0_134], %317 {strides = array<i32>} : memref<8x32xf32, #tpu.memory_space<vmem>>, vector<8x32xf32>,
    %c0_135 = arith.constant 0 : index
    %c0_136 = arith.constant 0 : index
    %326 = vector.load %arg10[%c0_135, %c0_136] : memref<8x32xf32, #tpu.memory_space<vmem>>, vector<8x32xf32>
    tpu.vector_store %arg10[%c0_135, %c0_136], %320 {strides = array<i32>} : memref<8x32xf32, #tpu.memory_space<vmem>>, vector<8x32xf32>,
    %327 = vector.shape_cast %324 : vector<8x32xf32> to vector<1x8x32xf32>
    %328 = arith.index_cast %276 : i32 to index
    %c0_137 = arith.constant 0 : index
    %c32_138 = arith.constant 32 : index
    %329 = vector.load %arg6[%328, %c0_137, %c32_138] : memref<8x8x64xf32, #tpu.memory_space<vmem>>, vector<1x8x32xf32>
    tpu.vector_store %arg6[%328, %c0_137, %c32_138], %327 {strides = array<i32>} : memref<8x8x64xf32, #tpu.memory_space<vmem>>, vector<1x8x32xf32>,
    %c3_i32 = arith.constant 3 : i32
    %330 = arith.index_cast %c3_i32 : i32 to index
    %c0_139 = arith.constant 0 : index
    %c0_140 = arith.constant 0 : index
    %331 = vector.load %arg1[%330, %c0_139, %c0_140] : memref<8x8x64xf32, #tpu.memory_space<vmem>>, vector<1x8x64xf32>
    %332 = vector.shape_cast %331 : vector<1x8x64xf32> to vector<8x64xf32>
    %c0_141 = arith.constant 0 : index
    %c0_142 = arith.constant 0 : index
    %333 = vector.load %arg7[%c0_141, %c0_142] : memref<8x32xf32, #tpu.memory_space<vmem>>, vector<8x32xf32>
    %c0_143 = arith.constant 0 : index
    %c0_144 = arith.constant 0 : index
    %334 = vector.load %arg8[%c0_143, %c0_144] : memref<8x32xf32, #tpu.memory_space<vmem>>, vector<8x32xf32>
    %335 = tpu.concatenate %332, %333 in 1 : vector<8x64xf32>, vector<8x32xf32> -> vector<8x96xf32>
    %c0_145 = arith.constant 0 : index
    %c0_146 = arith.constant 0 : index
    %336 = vector.load %arg2[%c0_145, %c0_146] : memref<96x128xf32, #tpu.memory_space<vmem>>, vector<96x128xf32>
    %cst_147 = arith.constant dense<0.000000e+00> : vector<8x128xf32>
    %337 = tpu.matmul %335, %336, %cst_147 {dimension_numbers = #tpu.dot_dimension_numbers<[1], [0], [0], [1], [0, 0, 1, 1], [], []>} : vector<8x96xf32>, vector<96x128xf32>, vector<8x128xf32> -> vector<8x128xf32>
    %c0_148 = arith.constant 0 : index
    %c0_149 = arith.constant 0 : index
    %338 = vector.load %arg3[%c0_148, %c0_149] : memref<1x128xf32, #tpu.memory_space<vmem>>, vector<1x128xf32>
    %339 = vector.broadcast %338 : vector<1x128xf32> to vector<8x128xf32>
    %340 = arith.addf %337, %339 : vector<8x128xf32>
    %341 = vector.extract_strided_slice %340 {offsets = [0, 0], sizes = [8, 32], strides = [1, 1]} : vector<8x128xf32> to vector<8x32xf32>
    %342 = arith.negf %341 : vector<8x32xf32>
    %343 = math.exp %342 : vector<8x32xf32>
    %cst_150 = arith.constant 1.000000e+00 : f32
    %344 = vector.broadcast %cst_150 : f32 to vector<8x32xf32>
    %345 = arith.addf %344, %343 : vector<8x32xf32>
    %346 = arith.divf %344, %345 : vector<8x32xf32>
    %347 = vector.extract_strided_slice %340 {offsets = [0, 32], sizes = [8, 32], strides = [1, 1]} : vector<8x128xf32> to vector<8x32xf32>
    %348 = arith.negf %347 : vector<8x32xf32>
    %349 = math.exp %348 : vector<8x32xf32>
    %cst_151 = arith.constant 1.000000e+00 : f32
    %350 = vector.broadcast %cst_151 : f32 to vector<8x32xf32>
    %351 = arith.addf %350, %349 : vector<8x32xf32>
    %352 = arith.divf %350, %351 : vector<8x32xf32>
    %353 = vector.extract_strided_slice %340 {offsets = [0, 64], sizes = [8, 32], strides = [1, 1]} : vector<8x128xf32> to vector<8x32xf32>
    %354 = math.tanh %353 : vector<8x32xf32>
    %355 = vector.extract_strided_slice %340 {offsets = [0, 96], sizes = [8, 32], strides = [1, 1]} : vector<8x128xf32> to vector<8x32xf32>
    %356 = arith.negf %355 : vector<8x32xf32>
    %357 = math.exp %356 : vector<8x32xf32>
    %cst_152 = arith.constant 1.000000e+00 : f32
    %358 = vector.broadcast %cst_152 : f32 to vector<8x32xf32>
    %359 = arith.addf %358, %357 : vector<8x32xf32>
    %360 = arith.divf %358, %359 : vector<8x32xf32>
    %361 = arith.mulf %352, %334 : vector<8x32xf32>
    %362 = arith.mulf %346, %354 : vector<8x32xf32>
    %363 = arith.addf %361, %362 : vector<8x32xf32>
    %364 = math.tanh %363 : vector<8x32xf32>
    %365 = arith.mulf %360, %364 : vector<8x32xf32>
    %366 = vector.broadcast %c3_i32 : i32 to vector<8x1xi32>
    %367 = arith.cmpi slt, %366, %8 : vector<8x1xi32>
    %368 = vector.shape_cast %367 : vector<8x1xi1> to vector<8x1xi1>
    %369 = vector.broadcast %368 : vector<8x1xi1> to vector<8x32xi1>
    %370 = arith.select %369, %365, %333 : vector<8x32xi1>, vector<8x32xf32>
    %371 = vector.shape_cast %367 : vector<8x1xi1> to vector<8x1xi1>
    %372 = vector.broadcast %371 : vector<8x1xi1> to vector<8x32xi1>
    %373 = arith.select %372, %363, %334 : vector<8x32xi1>, vector<8x32xf32>
    %cst_153 = arith.constant 0.000000e+00 : f32
    %374 = vector.shape_cast %367 : vector<8x1xi1> to vector<8x1xi1>
    %375 = vector.broadcast %374 : vector<8x1xi1> to vector<8x32xi1>
    %376 = vector.broadcast %cst_153 : f32 to vector<8x32xf32>
    %377 = arith.select %375, %365, %376 : vector<8x32xi1>, vector<8x32xf32>
    %c0_154 = arith.constant 0 : index
    %c0_155 = arith.constant 0 : index
    %378 = vector.load %arg7[%c0_154, %c0_155] : memref<8x32xf32, #tpu.memory_space<vmem>>, vector<8x32xf32>
    tpu.vector_store %arg7[%c0_154, %c0_155], %370 {strides = array<i32>} : memref<8x32xf32, #tpu.memory_space<vmem>>, vector<8x32xf32>,
    %c0_156 = arith.constant 0 : index
    %c0_157 = arith.constant 0 : index
    %379 = vector.load %arg8[%c0_156, %c0_157] : memref<8x32xf32, #tpu.memory_space<vmem>>, vector<8x32xf32>
    tpu.vector_store %arg8[%c0_156, %c0_157], %373 {strides = array<i32>} : memref<8x32xf32, #tpu.memory_space<vmem>>, vector<8x32xf32>,
    %380 = vector.shape_cast %377 : vector<8x32xf32> to vector<1x8x32xf32>
    %381 = arith.index_cast %c3_i32 : i32 to index
    %c0_158 = arith.constant 0 : index
    %c0_159 = arith.constant 0 : index
    %382 = vector.load %arg6[%381, %c0_158, %c0_159] : memref<8x8x64xf32, #tpu.memory_space<vmem>>, vector<1x8x32xf32>
    tpu.vector_store %arg6[%381, %c0_158, %c0_159], %380 {strides = array<i32>} : memref<8x8x64xf32, #tpu.memory_space<vmem>>, vector<1x8x32xf32>,
    %c7_i32_160 = arith.constant 7 : i32
    %383 = arith.subi %c7_i32_160, %c3_i32 : i32
    %384 = arith.index_cast %383 : i32 to index
    %c0_161 = arith.constant 0 : index
    %c0_162 = arith.constant 0 : index
    %385 = vector.load %arg1[%384, %c0_161, %c0_162] : memref<8x8x64xf32, #tpu.memory_space<vmem>>, vector<1x8x64xf32>
    %386 = vector.shape_cast %385 : vector<1x8x64xf32> to vector<8x64xf32>
    %c0_163 = arith.constant 0 : index
    %c0_164 = arith.constant 0 : index
    %387 = vector.load %arg9[%c0_163, %c0_164] : memref<8x32xf32, #tpu.memory_space<vmem>>, vector<8x32xf32>
    %c0_165 = arith.constant 0 : index
    %c0_166 = arith.constant 0 : index
    %388 = vector.load %arg10[%c0_165, %c0_166] : memref<8x32xf32, #tpu.memory_space<vmem>>, vector<8x32xf32>
    %389 = tpu.concatenate %386, %387 in 1 : vector<8x64xf32>, vector<8x32xf32> -> vector<8x96xf32>
    %c0_167 = arith.constant 0 : index
    %c0_168 = arith.constant 0 : index
    %390 = vector.load %arg4[%c0_167, %c0_168] : memref<96x128xf32, #tpu.memory_space<vmem>>, vector<96x128xf32>
    %cst_169 = arith.constant dense<0.000000e+00> : vector<8x128xf32>
    %391 = tpu.matmul %389, %390, %cst_169 {dimension_numbers = #tpu.dot_dimension_numbers<[1], [0], [0], [1], [0, 0, 1, 1], [], []>} : vector<8x96xf32>, vector<96x128xf32>, vector<8x128xf32> -> vector<8x128xf32>
    %c0_170 = arith.constant 0 : index
    %c0_171 = arith.constant 0 : index
    %392 = vector.load %arg5[%c0_170, %c0_171] : memref<1x128xf32, #tpu.memory_space<vmem>>, vector<1x128xf32>
    %393 = vector.broadcast %392 : vector<1x128xf32> to vector<8x128xf32>
    %394 = arith.addf %391, %393 : vector<8x128xf32>
    %395 = vector.extract_strided_slice %394 {offsets = [0, 0], sizes = [8, 32], strides = [1, 1]} : vector<8x128xf32> to vector<8x32xf32>
    %396 = arith.negf %395 : vector<8x32xf32>
    %397 = math.exp %396 : vector<8x32xf32>
    %cst_172 = arith.constant 1.000000e+00 : f32
    %398 = vector.broadcast %cst_172 : f32 to vector<8x32xf32>
    %399 = arith.addf %398, %397 : vector<8x32xf32>
    %400 = arith.divf %398, %399 : vector<8x32xf32>
    %401 = vector.extract_strided_slice %394 {offsets = [0, 32], sizes = [8, 32], strides = [1, 1]} : vector<8x128xf32> to vector<8x32xf32>
    %402 = arith.negf %401 : vector<8x32xf32>
    %403 = math.exp %402 : vector<8x32xf32>
    %cst_173 = arith.constant 1.000000e+00 : f32
    %404 = vector.broadcast %cst_173 : f32 to vector<8x32xf32>
    %405 = arith.addf %404, %403 : vector<8x32xf32>
    %406 = arith.divf %404, %405 : vector<8x32xf32>
    %407 = vector.extract_strided_slice %394 {offsets = [0, 64], sizes = [8, 32], strides = [1, 1]} : vector<8x128xf32> to vector<8x32xf32>
    %408 = math.tanh %407 : vector<8x32xf32>
    %409 = vector.extract_strided_slice %394 {offsets = [0, 96], sizes = [8, 32], strides = [1, 1]} : vector<8x128xf32> to vector<8x32xf32>
    %410 = arith.negf %409 : vector<8x32xf32>
    %411 = math.exp %410 : vector<8x32xf32>
    %cst_174 = arith.constant 1.000000e+00 : f32
    %412 = vector.broadcast %cst_174 : f32 to vector<8x32xf32>
    %413 = arith.addf %412, %411 : vector<8x32xf32>
    %414 = arith.divf %412, %413 : vector<8x32xf32>
    %415 = arith.mulf %406, %388 : vector<8x32xf32>
    %416 = arith.mulf %400, %408 : vector<8x32xf32>
    %417 = arith.addf %415, %416 : vector<8x32xf32>
    %418 = math.tanh %417 : vector<8x32xf32>
    %419 = arith.mulf %414, %418 : vector<8x32xf32>
    %420 = vector.broadcast %383 : i32 to vector<8x1xi32>
    %421 = arith.cmpi slt, %420, %8 : vector<8x1xi32>
    %422 = vector.shape_cast %421 : vector<8x1xi1> to vector<8x1xi1>
    %423 = vector.broadcast %422 : vector<8x1xi1> to vector<8x32xi1>
    %424 = arith.select %423, %419, %387 : vector<8x32xi1>, vector<8x32xf32>
    %425 = vector.shape_cast %421 : vector<8x1xi1> to vector<8x1xi1>
    %426 = vector.broadcast %425 : vector<8x1xi1> to vector<8x32xi1>
    %427 = arith.select %426, %417, %388 : vector<8x32xi1>, vector<8x32xf32>
    %cst_175 = arith.constant 0.000000e+00 : f32
    %428 = vector.shape_cast %421 : vector<8x1xi1> to vector<8x1xi1>
    %429 = vector.broadcast %428 : vector<8x1xi1> to vector<8x32xi1>
    %430 = vector.broadcast %cst_175 : f32 to vector<8x32xf32>
    %431 = arith.select %429, %419, %430 : vector<8x32xi1>, vector<8x32xf32>
    %c0_176 = arith.constant 0 : index
    %c0_177 = arith.constant 0 : index
    %432 = vector.load %arg9[%c0_176, %c0_177] : memref<8x32xf32, #tpu.memory_space<vmem>>, vector<8x32xf32>
    tpu.vector_store %arg9[%c0_176, %c0_177], %424 {strides = array<i32>} : memref<8x32xf32, #tpu.memory_space<vmem>>, vector<8x32xf32>,
    %c0_178 = arith.constant 0 : index
    %c0_179 = arith.constant 0 : index
    %433 = vector.load %arg10[%c0_178, %c0_179] : memref<8x32xf32, #tpu.memory_space<vmem>>, vector<8x32xf32>
    tpu.vector_store %arg10[%c0_178, %c0_179], %427 {strides = array<i32>} : memref<8x32xf32, #tpu.memory_space<vmem>>, vector<8x32xf32>,
    %434 = vector.shape_cast %431 : vector<8x32xf32> to vector<1x8x32xf32>
    %435 = arith.index_cast %383 : i32 to index
    %c0_180 = arith.constant 0 : index
    %c32_181 = arith.constant 32 : index
    %436 = vector.load %arg6[%435, %c0_180, %c32_181] : memref<8x8x64xf32, #tpu.memory_space<vmem>>, vector<1x8x32xf32>
    tpu.vector_store %arg6[%435, %c0_180, %c32_181], %434 {strides = array<i32>} : memref<8x8x64xf32, #tpu.memory_space<vmem>>, vector<1x8x32xf32>,
    %c4_i32 = arith.constant 4 : i32
    %437 = arith.index_cast %c4_i32 : i32 to index
    %c0_182 = arith.constant 0 : index
    %c0_183 = arith.constant 0 : index
    %438 = vector.load %arg1[%437, %c0_182, %c0_183] : memref<8x8x64xf32, #tpu.memory_space<vmem>>, vector<1x8x64xf32>
    %439 = vector.shape_cast %438 : vector<1x8x64xf32> to vector<8x64xf32>
    %c0_184 = arith.constant 0 : index
    %c0_185 = arith.constant 0 : index
    %440 = vector.load %arg7[%c0_184, %c0_185] : memref<8x32xf32, #tpu.memory_space<vmem>>, vector<8x32xf32>
    %c0_186 = arith.constant 0 : index
    %c0_187 = arith.constant 0 : index
    %441 = vector.load %arg8[%c0_186, %c0_187] : memref<8x32xf32, #tpu.memory_space<vmem>>, vector<8x32xf32>
    %442 = tpu.concatenate %439, %440 in 1 : vector<8x64xf32>, vector<8x32xf32> -> vector<8x96xf32>
    %c0_188 = arith.constant 0 : index
    %c0_189 = arith.constant 0 : index
    %443 = vector.load %arg2[%c0_188, %c0_189] : memref<96x128xf32, #tpu.memory_space<vmem>>, vector<96x128xf32>
    %cst_190 = arith.constant dense<0.000000e+00> : vector<8x128xf32>
    %444 = tpu.matmul %442, %443, %cst_190 {dimension_numbers = #tpu.dot_dimension_numbers<[1], [0], [0], [1], [0, 0, 1, 1], [], []>} : vector<8x96xf32>, vector<96x128xf32>, vector<8x128xf32> -> vector<8x128xf32>
    %c0_191 = arith.constant 0 : index
    %c0_192 = arith.constant 0 : index
    %445 = vector.load %arg3[%c0_191, %c0_192] : memref<1x128xf32, #tpu.memory_space<vmem>>, vector<1x128xf32>
    %446 = vector.broadcast %445 : vector<1x128xf32> to vector<8x128xf32>
    %447 = arith.addf %444, %446 : vector<8x128xf32>
    %448 = vector.extract_strided_slice %447 {offsets = [0, 0], sizes = [8, 32], strides = [1, 1]} : vector<8x128xf32> to vector<8x32xf32>
    %449 = arith.negf %448 : vector<8x32xf32>
    %450 = math.exp %449 : vector<8x32xf32>
    %cst_193 = arith.constant 1.000000e+00 : f32
    %451 = vector.broadcast %cst_193 : f32 to vector<8x32xf32>
    %452 = arith.addf %451, %450 : vector<8x32xf32>
    %453 = arith.divf %451, %452 : vector<8x32xf32>
    %454 = vector.extract_strided_slice %447 {offsets = [0, 32], sizes = [8, 32], strides = [1, 1]} : vector<8x128xf32> to vector<8x32xf32>
    %455 = arith.negf %454 : vector<8x32xf32>
    %456 = math.exp %455 : vector<8x32xf32>
    %cst_194 = arith.constant 1.000000e+00 : f32
    %457 = vector.broadcast %cst_194 : f32 to vector<8x32xf32>
    %458 = arith.addf %457, %456 : vector<8x32xf32>
    %459 = arith.divf %457, %458 : vector<8x32xf32>
    %460 = vector.extract_strided_slice %447 {offsets = [0, 64], sizes = [8, 32], strides = [1, 1]} : vector<8x128xf32> to vector<8x32xf32>
    %461 = math.tanh %460 : vector<8x32xf32>
    %462 = vector.extract_strided_slice %447 {offsets = [0, 96], sizes = [8, 32], strides = [1, 1]} : vector<8x128xf32> to vector<8x32xf32>
    %463 = arith.negf %462 : vector<8x32xf32>
    %464 = math.exp %463 : vector<8x32xf32>
    %cst_195 = arith.constant 1.000000e+00 : f32
    %465 = vector.broadcast %cst_195 : f32 to vector<8x32xf32>
    %466 = arith.addf %465, %464 : vector<8x32xf32>
    %467 = arith.divf %465, %466 : vector<8x32xf32>
    %468 = arith.mulf %459, %441 : vector<8x32xf32>
    %469 = arith.mulf %453, %461 : vector<8x32xf32>
    %470 = arith.addf %468, %469 : vector<8x32xf32>
    %471 = math.tanh %470 : vector<8x32xf32>
    %472 = arith.mulf %467, %471 : vector<8x32xf32>
    %473 = vector.broadcast %c4_i32 : i32 to vector<8x1xi32>
    %474 = arith.cmpi slt, %473, %8 : vector<8x1xi32>
    %475 = vector.shape_cast %474 : vector<8x1xi1> to vector<8x1xi1>
    %476 = vector.broadcast %475 : vector<8x1xi1> to vector<8x32xi1>
    %477 = arith.select %476, %472, %440 : vector<8x32xi1>, vector<8x32xf32>
    %478 = vector.shape_cast %474 : vector<8x1xi1> to vector<8x1xi1>
    %479 = vector.broadcast %478 : vector<8x1xi1> to vector<8x32xi1>
    %480 = arith.select %479, %470, %441 : vector<8x32xi1>, vector<8x32xf32>
    %cst_196 = arith.constant 0.000000e+00 : f32
    %481 = vector.shape_cast %474 : vector<8x1xi1> to vector<8x1xi1>
    %482 = vector.broadcast %481 : vector<8x1xi1> to vector<8x32xi1>
    %483 = vector.broadcast %cst_196 : f32 to vector<8x32xf32>
    %484 = arith.select %482, %472, %483 : vector<8x32xi1>, vector<8x32xf32>
    %c0_197 = arith.constant 0 : index
    %c0_198 = arith.constant 0 : index
    %485 = vector.load %arg7[%c0_197, %c0_198] : memref<8x32xf32, #tpu.memory_space<vmem>>, vector<8x32xf32>
    tpu.vector_store %arg7[%c0_197, %c0_198], %477 {strides = array<i32>} : memref<8x32xf32, #tpu.memory_space<vmem>>, vector<8x32xf32>,
    %c0_199 = arith.constant 0 : index
    %c0_200 = arith.constant 0 : index
    %486 = vector.load %arg8[%c0_199, %c0_200] : memref<8x32xf32, #tpu.memory_space<vmem>>, vector<8x32xf32>
    tpu.vector_store %arg8[%c0_199, %c0_200], %480 {strides = array<i32>} : memref<8x32xf32, #tpu.memory_space<vmem>>, vector<8x32xf32>,
    %487 = vector.shape_cast %484 : vector<8x32xf32> to vector<1x8x32xf32>
    %488 = arith.index_cast %c4_i32 : i32 to index
    %c0_201 = arith.constant 0 : index
    %c0_202 = arith.constant 0 : index
    %489 = vector.load %arg6[%488, %c0_201, %c0_202] : memref<8x8x64xf32, #tpu.memory_space<vmem>>, vector<1x8x32xf32>
    tpu.vector_store %arg6[%488, %c0_201, %c0_202], %487 {strides = array<i32>} : memref<8x8x64xf32, #tpu.memory_space<vmem>>, vector<1x8x32xf32>,
    %c7_i32_203 = arith.constant 7 : i32
    %490 = arith.subi %c7_i32_203, %c4_i32 : i32
    %491 = arith.index_cast %490 : i32 to index
    %c0_204 = arith.constant 0 : index
    %c0_205 = arith.constant 0 : index
    %492 = vector.load %arg1[%491, %c0_204, %c0_205] : memref<8x8x64xf32, #tpu.memory_space<vmem>>, vector<1x8x64xf32>
    %493 = vector.shape_cast %492 : vector<1x8x64xf32> to vector<8x64xf32>
    %c0_206 = arith.constant 0 : index
    %c0_207 = arith.constant 0 : index
    %494 = vector.load %arg9[%c0_206, %c0_207] : memref<8x32xf32, #tpu.memory_space<vmem>>, vector<8x32xf32>
    %c0_208 = arith.constant 0 : index
    %c0_209 = arith.constant 0 : index
    %495 = vector.load %arg10[%c0_208, %c0_209] : memref<8x32xf32, #tpu.memory_space<vmem>>, vector<8x32xf32>
    %496 = tpu.concatenate %493, %494 in 1 : vector<8x64xf32>, vector<8x32xf32> -> vector<8x96xf32>
    %c0_210 = arith.constant 0 : index
    %c0_211 = arith.constant 0 : index
    %497 = vector.load %arg4[%c0_210, %c0_211] : memref<96x128xf32, #tpu.memory_space<vmem>>, vector<96x128xf32>
    %cst_212 = arith.constant dense<0.000000e+00> : vector<8x128xf32>
    %498 = tpu.matmul %496, %497, %cst_212 {dimension_numbers = #tpu.dot_dimension_numbers<[1], [0], [0], [1], [0, 0, 1, 1], [], []>} : vector<8x96xf32>, vector<96x128xf32>, vector<8x128xf32> -> vector<8x128xf32>
    %c0_213 = arith.constant 0 : index
    %c0_214 = arith.constant 0 : index
    %499 = vector.load %arg5[%c0_213, %c0_214] : memref<1x128xf32, #tpu.memory_space<vmem>>, vector<1x128xf32>
    %500 = vector.broadcast %499 : vector<1x128xf32> to vector<8x128xf32>
    %501 = arith.addf %498, %500 : vector<8x128xf32>
    %502 = vector.extract_strided_slice %501 {offsets = [0, 0], sizes = [8, 32], strides = [1, 1]} : vector<8x128xf32> to vector<8x32xf32>
    %503 = arith.negf %502 : vector<8x32xf32>
    %504 = math.exp %503 : vector<8x32xf32>
    %cst_215 = arith.constant 1.000000e+00 : f32
    %505 = vector.broadcast %cst_215 : f32 to vector<8x32xf32>
    %506 = arith.addf %505, %504 : vector<8x32xf32>
    %507 = arith.divf %505, %506 : vector<8x32xf32>
    %508 = vector.extract_strided_slice %501 {offsets = [0, 32], sizes = [8, 32], strides = [1, 1]} : vector<8x128xf32> to vector<8x32xf32>
    %509 = arith.negf %508 : vector<8x32xf32>
    %510 = math.exp %509 : vector<8x32xf32>
    %cst_216 = arith.constant 1.000000e+00 : f32
    %511 = vector.broadcast %cst_216 : f32 to vector<8x32xf32>
    %512 = arith.addf %511, %510 : vector<8x32xf32>
    %513 = arith.divf %511, %512 : vector<8x32xf32>
    %514 = vector.extract_strided_slice %501 {offsets = [0, 64], sizes = [8, 32], strides = [1, 1]} : vector<8x128xf32> to vector<8x32xf32>
    %515 = math.tanh %514 : vector<8x32xf32>
    %516 = vector.extract_strided_slice %501 {offsets = [0, 96], sizes = [8, 32], strides = [1, 1]} : vector<8x128xf32> to vector<8x32xf32>
    %517 = arith.negf %516 : vector<8x32xf32>
    %518 = math.exp %517 : vector<8x32xf32>
    %cst_217 = arith.constant 1.000000e+00 : f32
    %519 = vector.broadcast %cst_217 : f32 to vector<8x32xf32>
    %520 = arith.addf %519, %518 : vector<8x32xf32>
    %521 = arith.divf %519, %520 : vector<8x32xf32>
    %522 = arith.mulf %513, %495 : vector<8x32xf32>
    %523 = arith.mulf %507, %515 : vector<8x32xf32>
    %524 = arith.addf %522, %523 : vector<8x32xf32>
    %525 = math.tanh %524 : vector<8x32xf32>
    %526 = arith.mulf %521, %525 : vector<8x32xf32>
    %527 = vector.broadcast %490 : i32 to vector<8x1xi32>
    %528 = arith.cmpi slt, %527, %8 : vector<8x1xi32>
    %529 = vector.shape_cast %528 : vector<8x1xi1> to vector<8x1xi1>
    %530 = vector.broadcast %529 : vector<8x1xi1> to vector<8x32xi1>
    %531 = arith.select %530, %526, %494 : vector<8x32xi1>, vector<8x32xf32>
    %532 = vector.shape_cast %528 : vector<8x1xi1> to vector<8x1xi1>
    %533 = vector.broadcast %532 : vector<8x1xi1> to vector<8x32xi1>
    %534 = arith.select %533, %524, %495 : vector<8x32xi1>, vector<8x32xf32>
    %cst_218 = arith.constant 0.000000e+00 : f32
    %535 = vector.shape_cast %528 : vector<8x1xi1> to vector<8x1xi1>
    %536 = vector.broadcast %535 : vector<8x1xi1> to vector<8x32xi1>
    %537 = vector.broadcast %cst_218 : f32 to vector<8x32xf32>
    %538 = arith.select %536, %526, %537 : vector<8x32xi1>, vector<8x32xf32>
    %c0_219 = arith.constant 0 : index
    %c0_220 = arith.constant 0 : index
    %539 = vector.load %arg9[%c0_219, %c0_220] : memref<8x32xf32, #tpu.memory_space<vmem>>, vector<8x32xf32>
    tpu.vector_store %arg9[%c0_219, %c0_220], %531 {strides = array<i32>} : memref<8x32xf32, #tpu.memory_space<vmem>>, vector<8x32xf32>,
    %c0_221 = arith.constant 0 : index
    %c0_222 = arith.constant 0 : index
    %540 = vector.load %arg10[%c0_221, %c0_222] : memref<8x32xf32, #tpu.memory_space<vmem>>, vector<8x32xf32>
    tpu.vector_store %arg10[%c0_221, %c0_222], %534 {strides = array<i32>} : memref<8x32xf32, #tpu.memory_space<vmem>>, vector<8x32xf32>,
    %541 = vector.shape_cast %538 : vector<8x32xf32> to vector<1x8x32xf32>
    %542 = arith.index_cast %490 : i32 to index
    %c0_223 = arith.constant 0 : index
    %c32_224 = arith.constant 32 : index
    %543 = vector.load %arg6[%542, %c0_223, %c32_224] : memref<8x8x64xf32, #tpu.memory_space<vmem>>, vector<1x8x32xf32>
    tpu.vector_store %arg6[%542, %c0_223, %c32_224], %541 {strides = array<i32>} : memref<8x8x64xf32, #tpu.memory_space<vmem>>, vector<1x8x32xf32>,
    %c5_i32 = arith.constant 5 : i32
    %544 = arith.index_cast %c5_i32 : i32 to index
    %c0_225 = arith.constant 0 : index
    %c0_226 = arith.constant 0 : index
    %545 = vector.load %arg1[%544, %c0_225, %c0_226] : memref<8x8x64xf32, #tpu.memory_space<vmem>>, vector<1x8x64xf32>
    %546 = vector.shape_cast %545 : vector<1x8x64xf32> to vector<8x64xf32>
    %c0_227 = arith.constant 0 : index
    %c0_228 = arith.constant 0 : index
    %547 = vector.load %arg7[%c0_227, %c0_228] : memref<8x32xf32, #tpu.memory_space<vmem>>, vector<8x32xf32>
    %c0_229 = arith.constant 0 : index
    %c0_230 = arith.constant 0 : index
    %548 = vector.load %arg8[%c0_229, %c0_230] : memref<8x32xf32, #tpu.memory_space<vmem>>, vector<8x32xf32>
    %549 = tpu.concatenate %546, %547 in 1 : vector<8x64xf32>, vector<8x32xf32> -> vector<8x96xf32>
    %c0_231 = arith.constant 0 : index
    %c0_232 = arith.constant 0 : index
    %550 = vector.load %arg2[%c0_231, %c0_232] : memref<96x128xf32, #tpu.memory_space<vmem>>, vector<96x128xf32>
    %cst_233 = arith.constant dense<0.000000e+00> : vector<8x128xf32>
    %551 = tpu.matmul %549, %550, %cst_233 {dimension_numbers = #tpu.dot_dimension_numbers<[1], [0], [0], [1], [0, 0, 1, 1], [], []>} : vector<8x96xf32>, vector<96x128xf32>, vector<8x128xf32> -> vector<8x128xf32>
    %c0_234 = arith.constant 0 : index
    %c0_235 = arith.constant 0 : index
    %552 = vector.load %arg3[%c0_234, %c0_235] : memref<1x128xf32, #tpu.memory_space<vmem>>, vector<1x128xf32>
    %553 = vector.broadcast %552 : vector<1x128xf32> to vector<8x128xf32>
    %554 = arith.addf %551, %553 : vector<8x128xf32>
    %555 = vector.extract_strided_slice %554 {offsets = [0, 0], sizes = [8, 32], strides = [1, 1]} : vector<8x128xf32> to vector<8x32xf32>
    %556 = arith.negf %555 : vector<8x32xf32>
    %557 = math.exp %556 : vector<8x32xf32>
    %cst_236 = arith.constant 1.000000e+00 : f32
    %558 = vector.broadcast %cst_236 : f32 to vector<8x32xf32>
    %559 = arith.addf %558, %557 : vector<8x32xf32>
    %560 = arith.divf %558, %559 : vector<8x32xf32>
    %561 = vector.extract_strided_slice %554 {offsets = [0, 32], sizes = [8, 32], strides = [1, 1]} : vector<8x128xf32> to vector<8x32xf32>
    %562 = arith.negf %561 : vector<8x32xf32>
    %563 = math.exp %562 : vector<8x32xf32>
    %cst_237 = arith.constant 1.000000e+00 : f32
    %564 = vector.broadcast %cst_237 : f32 to vector<8x32xf32>
    %565 = arith.addf %564, %563 : vector<8x32xf32>
    %566 = arith.divf %564, %565 : vector<8x32xf32>
    %567 = vector.extract_strided_slice %554 {offsets = [0, 64], sizes = [8, 32], strides = [1, 1]} : vector<8x128xf32> to vector<8x32xf32>
    %568 = math.tanh %567 : vector<8x32xf32>
    %569 = vector.extract_strided_slice %554 {offsets = [0, 96], sizes = [8, 32], strides = [1, 1]} : vector<8x128xf32> to vector<8x32xf32>
    %570 = arith.negf %569 : vector<8x32xf32>
    %571 = math.exp %570 : vector<8x32xf32>
    %cst_238 = arith.constant 1.000000e+00 : f32
    %572 = vector.broadcast %cst_238 : f32 to vector<8x32xf32>
    %573 = arith.addf %572, %571 : vector<8x32xf32>
    %574 = arith.divf %572, %573 : vector<8x32xf32>
    %575 = arith.mulf %566, %548 : vector<8x32xf32>
    %576 = arith.mulf %560, %568 : vector<8x32xf32>
    %577 = arith.addf %575, %576 : vector<8x32xf32>
    %578 = math.tanh %577 : vector<8x32xf32>
    %579 = arith.mulf %574, %578 : vector<8x32xf32>
    %580 = vector.broadcast %c5_i32 : i32 to vector<8x1xi32>
    %581 = arith.cmpi slt, %580, %8 : vector<8x1xi32>
    %582 = vector.shape_cast %581 : vector<8x1xi1> to vector<8x1xi1>
    %583 = vector.broadcast %582 : vector<8x1xi1> to vector<8x32xi1>
    %584 = arith.select %583, %579, %547 : vector<8x32xi1>, vector<8x32xf32>
    %585 = vector.shape_cast %581 : vector<8x1xi1> to vector<8x1xi1>
    %586 = vector.broadcast %585 : vector<8x1xi1> to vector<8x32xi1>
    %587 = arith.select %586, %577, %548 : vector<8x32xi1>, vector<8x32xf32>
    %cst_239 = arith.constant 0.000000e+00 : f32
    %588 = vector.shape_cast %581 : vector<8x1xi1> to vector<8x1xi1>
    %589 = vector.broadcast %588 : vector<8x1xi1> to vector<8x32xi1>
    %590 = vector.broadcast %cst_239 : f32 to vector<8x32xf32>
    %591 = arith.select %589, %579, %590 : vector<8x32xi1>, vector<8x32xf32>
    %c0_240 = arith.constant 0 : index
    %c0_241 = arith.constant 0 : index
    %592 = vector.load %arg7[%c0_240, %c0_241] : memref<8x32xf32, #tpu.memory_space<vmem>>, vector<8x32xf32>
    tpu.vector_store %arg7[%c0_240, %c0_241], %584 {strides = array<i32>} : memref<8x32xf32, #tpu.memory_space<vmem>>, vector<8x32xf32>,
    %c0_242 = arith.constant 0 : index
    %c0_243 = arith.constant 0 : index
    %593 = vector.load %arg8[%c0_242, %c0_243] : memref<8x32xf32, #tpu.memory_space<vmem>>, vector<8x32xf32>
    tpu.vector_store %arg8[%c0_242, %c0_243], %587 {strides = array<i32>} : memref<8x32xf32, #tpu.memory_space<vmem>>, vector<8x32xf32>,
    %594 = vector.shape_cast %591 : vector<8x32xf32> to vector<1x8x32xf32>
    %595 = arith.index_cast %c5_i32 : i32 to index
    %c0_244 = arith.constant 0 : index
    %c0_245 = arith.constant 0 : index
    %596 = vector.load %arg6[%595, %c0_244, %c0_245] : memref<8x8x64xf32, #tpu.memory_space<vmem>>, vector<1x8x32xf32>
    tpu.vector_store %arg6[%595, %c0_244, %c0_245], %594 {strides = array<i32>} : memref<8x8x64xf32, #tpu.memory_space<vmem>>, vector<1x8x32xf32>,
    %c7_i32_246 = arith.constant 7 : i32
    %597 = arith.subi %c7_i32_246, %c5_i32 : i32
    %598 = arith.index_cast %597 : i32 to index
    %c0_247 = arith.constant 0 : index
    %c0_248 = arith.constant 0 : index
    %599 = vector.load %arg1[%598, %c0_247, %c0_248] : memref<8x8x64xf32, #tpu.memory_space<vmem>>, vector<1x8x64xf32>
    %600 = vector.shape_cast %599 : vector<1x8x64xf32> to vector<8x64xf32>
    %c0_249 = arith.constant 0 : index
    %c0_250 = arith.constant 0 : index
    %601 = vector.load %arg9[%c0_249, %c0_250] : memref<8x32xf32, #tpu.memory_space<vmem>>, vector<8x32xf32>
    %c0_251 = arith.constant 0 : index
    %c0_252 = arith.constant 0 : index
    %602 = vector.load %arg10[%c0_251, %c0_252] : memref<8x32xf32, #tpu.memory_space<vmem>>, vector<8x32xf32>
    %603 = tpu.concatenate %600, %601 in 1 : vector<8x64xf32>, vector<8x32xf32> -> vector<8x96xf32>
    %c0_253 = arith.constant 0 : index
    %c0_254 = arith.constant 0 : index
    %604 = vector.load %arg4[%c0_253, %c0_254] : memref<96x128xf32, #tpu.memory_space<vmem>>, vector<96x128xf32>
    %cst_255 = arith.constant dense<0.000000e+00> : vector<8x128xf32>
    %605 = tpu.matmul %603, %604, %cst_255 {dimension_numbers = #tpu.dot_dimension_numbers<[1], [0], [0], [1], [0, 0, 1, 1], [], []>} : vector<8x96xf32>, vector<96x128xf32>, vector<8x128xf32> -> vector<8x128xf32>
    %c0_256 = arith.constant 0 : index
    %c0_257 = arith.constant 0 : index
    %606 = vector.load %arg5[%c0_256, %c0_257] : memref<1x128xf32, #tpu.memory_space<vmem>>, vector<1x128xf32>
    %607 = vector.broadcast %606 : vector<1x128xf32> to vector<8x128xf32>
    %608 = arith.addf %605, %607 : vector<8x128xf32>
    %609 = vector.extract_strided_slice %608 {offsets = [0, 0], sizes = [8, 32], strides = [1, 1]} : vector<8x128xf32> to vector<8x32xf32>
    %610 = arith.negf %609 : vector<8x32xf32>
    %611 = math.exp %610 : vector<8x32xf32>
    %cst_258 = arith.constant 1.000000e+00 : f32
    %612 = vector.broadcast %cst_258 : f32 to vector<8x32xf32>
    %613 = arith.addf %612, %611 : vector<8x32xf32>
    %614 = arith.divf %612, %613 : vector<8x32xf32>
    %615 = vector.extract_strided_slice %608 {offsets = [0, 32], sizes = [8, 32], strides = [1, 1]} : vector<8x128xf32> to vector<8x32xf32>
    %616 = arith.negf %615 : vector<8x32xf32>
    %617 = math.exp %616 : vector<8x32xf32>
    %cst_259 = arith.constant 1.000000e+00 : f32
    %618 = vector.broadcast %cst_259 : f32 to vector<8x32xf32>
    %619 = arith.addf %618, %617 : vector<8x32xf32>
    %620 = arith.divf %618, %619 : vector<8x32xf32>
    %621 = vector.extract_strided_slice %608 {offsets = [0, 64], sizes = [8, 32], strides = [1, 1]} : vector<8x128xf32> to vector<8x32xf32>
    %622 = math.tanh %621 : vector<8x32xf32>
    %623 = vector.extract_strided_slice %608 {offsets = [0, 96], sizes = [8, 32], strides = [1, 1]} : vector<8x128xf32> to vector<8x32xf32>
    %624 = arith.negf %623 : vector<8x32xf32>
    %625 = math.exp %624 : vector<8x32xf32>
    %cst_260 = arith.constant 1.000000e+00 : f32
    %626 = vector.broadcast %cst_260 : f32 to vector<8x32xf32>
    %627 = arith.addf %626, %625 : vector<8x32xf32>
    %628 = arith.divf %626, %627 : vector<8x32xf32>
    %629 = arith.mulf %620, %602 : vector<8x32xf32>
    %630 = arith.mulf %614, %622 : vector<8x32xf32>
    %631 = arith.addf %629, %630 : vector<8x32xf32>
    %632 = math.tanh %631 : vector<8x32xf32>
    %633 = arith.mulf %628, %632 : vector<8x32xf32>
    %634 = vector.broadcast %597 : i32 to vector<8x1xi32>
    %635 = arith.cmpi slt, %634, %8 : vector<8x1xi32>
    %636 = vector.shape_cast %635 : vector<8x1xi1> to vector<8x1xi1>
    %637 = vector.broadcast %636 : vector<8x1xi1> to vector<8x32xi1>
    %638 = arith.select %637, %633, %601 : vector<8x32xi1>, vector<8x32xf32>
    %639 = vector.shape_cast %635 : vector<8x1xi1> to vector<8x1xi1>
    %640 = vector.broadcast %639 : vector<8x1xi1> to vector<8x32xi1>
    %641 = arith.select %640, %631, %602 : vector<8x32xi1>, vector<8x32xf32>
    %cst_261 = arith.constant 0.000000e+00 : f32
    %642 = vector.shape_cast %635 : vector<8x1xi1> to vector<8x1xi1>
    %643 = vector.broadcast %642 : vector<8x1xi1> to vector<8x32xi1>
    %644 = vector.broadcast %cst_261 : f32 to vector<8x32xf32>
    %645 = arith.select %643, %633, %644 : vector<8x32xi1>, vector<8x32xf32>
    %c0_262 = arith.constant 0 : index
    %c0_263 = arith.constant 0 : index
    %646 = vector.load %arg9[%c0_262, %c0_263] : memref<8x32xf32, #tpu.memory_space<vmem>>, vector<8x32xf32>
    tpu.vector_store %arg9[%c0_262, %c0_263], %638 {strides = array<i32>} : memref<8x32xf32, #tpu.memory_space<vmem>>, vector<8x32xf32>,
    %c0_264 = arith.constant 0 : index
    %c0_265 = arith.constant 0 : index
    %647 = vector.load %arg10[%c0_264, %c0_265] : memref<8x32xf32, #tpu.memory_space<vmem>>, vector<8x32xf32>
    tpu.vector_store %arg10[%c0_264, %c0_265], %641 {strides = array<i32>} : memref<8x32xf32, #tpu.memory_space<vmem>>, vector<8x32xf32>,
    %648 = vector.shape_cast %645 : vector<8x32xf32> to vector<1x8x32xf32>
    %649 = arith.index_cast %597 : i32 to index
    %c0_266 = arith.constant 0 : index
    %c32_267 = arith.constant 32 : index
    %650 = vector.load %arg6[%649, %c0_266, %c32_267] : memref<8x8x64xf32, #tpu.memory_space<vmem>>, vector<1x8x32xf32>
    tpu.vector_store %arg6[%649, %c0_266, %c32_267], %648 {strides = array<i32>} : memref<8x8x64xf32, #tpu.memory_space<vmem>>, vector<1x8x32xf32>,
    %c6_i32 = arith.constant 6 : i32
    %651 = arith.index_cast %c6_i32 : i32 to index
    %c0_268 = arith.constant 0 : index
    %c0_269 = arith.constant 0 : index
    %652 = vector.load %arg1[%651, %c0_268, %c0_269] : memref<8x8x64xf32, #tpu.memory_space<vmem>>, vector<1x8x64xf32>
    %653 = vector.shape_cast %652 : vector<1x8x64xf32> to vector<8x64xf32>
    %c0_270 = arith.constant 0 : index
    %c0_271 = arith.constant 0 : index
    %654 = vector.load %arg7[%c0_270, %c0_271] : memref<8x32xf32, #tpu.memory_space<vmem>>, vector<8x32xf32>
    %c0_272 = arith.constant 0 : index
    %c0_273 = arith.constant 0 : index
    %655 = vector.load %arg8[%c0_272, %c0_273] : memref<8x32xf32, #tpu.memory_space<vmem>>, vector<8x32xf32>
    %656 = tpu.concatenate %653, %654 in 1 : vector<8x64xf32>, vector<8x32xf32> -> vector<8x96xf32>
    %c0_274 = arith.constant 0 : index
    %c0_275 = arith.constant 0 : index
    %657 = vector.load %arg2[%c0_274, %c0_275] : memref<96x128xf32, #tpu.memory_space<vmem>>, vector<96x128xf32>
    %cst_276 = arith.constant dense<0.000000e+00> : vector<8x128xf32>
    %658 = tpu.matmul %656, %657, %cst_276 {dimension_numbers = #tpu.dot_dimension_numbers<[1], [0], [0], [1], [0, 0, 1, 1], [], []>} : vector<8x96xf32>, vector<96x128xf32>, vector<8x128xf32> -> vector<8x128xf32>
    %c0_277 = arith.constant 0 : index
    %c0_278 = arith.constant 0 : index
    %659 = vector.load %arg3[%c0_277, %c0_278] : memref<1x128xf32, #tpu.memory_space<vmem>>, vector<1x128xf32>
    %660 = vector.broadcast %659 : vector<1x128xf32> to vector<8x128xf32>
    %661 = arith.addf %658, %660 : vector<8x128xf32>
    %662 = vector.extract_strided_slice %661 {offsets = [0, 0], sizes = [8, 32], strides = [1, 1]} : vector<8x128xf32> to vector<8x32xf32>
    %663 = arith.negf %662 : vector<8x32xf32>
    %664 = math.exp %663 : vector<8x32xf32>
    %cst_279 = arith.constant 1.000000e+00 : f32
    %665 = vector.broadcast %cst_279 : f32 to vector<8x32xf32>
    %666 = arith.addf %665, %664 : vector<8x32xf32>
    %667 = arith.divf %665, %666 : vector<8x32xf32>
    %668 = vector.extract_strided_slice %661 {offsets = [0, 32], sizes = [8, 32], strides = [1, 1]} : vector<8x128xf32> to vector<8x32xf32>
    %669 = arith.negf %668 : vector<8x32xf32>
    %670 = math.exp %669 : vector<8x32xf32>
    %cst_280 = arith.constant 1.000000e+00 : f32
    %671 = vector.broadcast %cst_280 : f32 to vector<8x32xf32>
    %672 = arith.addf %671, %670 : vector<8x32xf32>
    %673 = arith.divf %671, %672 : vector<8x32xf32>
    %674 = vector.extract_strided_slice %661 {offsets = [0, 64], sizes = [8, 32], strides = [1, 1]} : vector<8x128xf32> to vector<8x32xf32>
    %675 = math.tanh %674 : vector<8x32xf32>
    %676 = vector.extract_strided_slice %661 {offsets = [0, 96], sizes = [8, 32], strides = [1, 1]} : vector<8x128xf32> to vector<8x32xf32>
    %677 = arith.negf %676 : vector<8x32xf32>
    %678 = math.exp %677 : vector<8x32xf32>
    %cst_281 = arith.constant 1.000000e+00 : f32
    %679 = vector.broadcast %cst_281 : f32 to vector<8x32xf32>
    %680 = arith.addf %679, %678 : vector<8x32xf32>
    %681 = arith.divf %679, %680 : vector<8x32xf32>
    %682 = arith.mulf %673, %655 : vector<8x32xf32>
    %683 = arith.mulf %667, %675 : vector<8x32xf32>
    %684 = arith.addf %682, %683 : vector<8x32xf32>
    %685 = math.tanh %684 : vector<8x32xf32>
    %686 = arith.mulf %681, %685 : vector<8x32xf32>
    %687 = vector.broadcast %c6_i32 : i32 to vector<8x1xi32>
    %688 = arith.cmpi slt, %687, %8 : vector<8x1xi32>
    %689 = vector.shape_cast %688 : vector<8x1xi1> to vector<8x1xi1>
    %690 = vector.broadcast %689 : vector<8x1xi1> to vector<8x32xi1>
    %691 = arith.select %690, %686, %654 : vector<8x32xi1>, vector<8x32xf32>
    %692 = vector.shape_cast %688 : vector<8x1xi1> to vector<8x1xi1>
    %693 = vector.broadcast %692 : vector<8x1xi1> to vector<8x32xi1>
    %694 = arith.select %693, %684, %655 : vector<8x32xi1>, vector<8x32xf32>
    %cst_282 = arith.constant 0.000000e+00 : f32
    %695 = vector.shape_cast %688 : vector<8x1xi1> to vector<8x1xi1>
    %696 = vector.broadcast %695 : vector<8x1xi1> to vector<8x32xi1>
    %697 = vector.broadcast %cst_282 : f32 to vector<8x32xf32>
    %698 = arith.select %696, %686, %697 : vector<8x32xi1>, vector<8x32xf32>
    %c0_283 = arith.constant 0 : index
    %c0_284 = arith.constant 0 : index
    %699 = vector.load %arg7[%c0_283, %c0_284] : memref<8x32xf32, #tpu.memory_space<vmem>>, vector<8x32xf32>
    tpu.vector_store %arg7[%c0_283, %c0_284], %691 {strides = array<i32>} : memref<8x32xf32, #tpu.memory_space<vmem>>, vector<8x32xf32>,
    %c0_285 = arith.constant 0 : index
    %c0_286 = arith.constant 0 : index
    %700 = vector.load %arg8[%c0_285, %c0_286] : memref<8x32xf32, #tpu.memory_space<vmem>>, vector<8x32xf32>
    tpu.vector_store %arg8[%c0_285, %c0_286], %694 {strides = array<i32>} : memref<8x32xf32, #tpu.memory_space<vmem>>, vector<8x32xf32>,
    %701 = vector.shape_cast %698 : vector<8x32xf32> to vector<1x8x32xf32>
    %702 = arith.index_cast %c6_i32 : i32 to index
    %c0_287 = arith.constant 0 : index
    %c0_288 = arith.constant 0 : index
    %703 = vector.load %arg6[%702, %c0_287, %c0_288] : memref<8x8x64xf32, #tpu.memory_space<vmem>>, vector<1x8x32xf32>
    tpu.vector_store %arg6[%702, %c0_287, %c0_288], %701 {strides = array<i32>} : memref<8x8x64xf32, #tpu.memory_space<vmem>>, vector<1x8x32xf32>,
    %c7_i32_289 = arith.constant 7 : i32
    %704 = arith.subi %c7_i32_289, %c6_i32 : i32
    %705 = arith.index_cast %704 : i32 to index
    %c0_290 = arith.constant 0 : index
    %c0_291 = arith.constant 0 : index
    %706 = vector.load %arg1[%705, %c0_290, %c0_291] : memref<8x8x64xf32, #tpu.memory_space<vmem>>, vector<1x8x64xf32>
    %707 = vector.shape_cast %706 : vector<1x8x64xf32> to vector<8x64xf32>
    %c0_292 = arith.constant 0 : index
    %c0_293 = arith.constant 0 : index
    %708 = vector.load %arg9[%c0_292, %c0_293] : memref<8x32xf32, #tpu.memory_space<vmem>>, vector<8x32xf32>
    %c0_294 = arith.constant 0 : index
    %c0_295 = arith.constant 0 : index
    %709 = vector.load %arg10[%c0_294, %c0_295] : memref<8x32xf32, #tpu.memory_space<vmem>>, vector<8x32xf32>
    %710 = tpu.concatenate %707, %708 in 1 : vector<8x64xf32>, vector<8x32xf32> -> vector<8x96xf32>
    %c0_296 = arith.constant 0 : index
    %c0_297 = arith.constant 0 : index
    %711 = vector.load %arg4[%c0_296, %c0_297] : memref<96x128xf32, #tpu.memory_space<vmem>>, vector<96x128xf32>
    %cst_298 = arith.constant dense<0.000000e+00> : vector<8x128xf32>
    %712 = tpu.matmul %710, %711, %cst_298 {dimension_numbers = #tpu.dot_dimension_numbers<[1], [0], [0], [1], [0, 0, 1, 1], [], []>} : vector<8x96xf32>, vector<96x128xf32>, vector<8x128xf32> -> vector<8x128xf32>
    %c0_299 = arith.constant 0 : index
    %c0_300 = arith.constant 0 : index
    %713 = vector.load %arg5[%c0_299, %c0_300] : memref<1x128xf32, #tpu.memory_space<vmem>>, vector<1x128xf32>
    %714 = vector.broadcast %713 : vector<1x128xf32> to vector<8x128xf32>
    %715 = arith.addf %712, %714 : vector<8x128xf32>
    %716 = vector.extract_strided_slice %715 {offsets = [0, 0], sizes = [8, 32], strides = [1, 1]} : vector<8x128xf32> to vector<8x32xf32>
    %717 = arith.negf %716 : vector<8x32xf32>
    %718 = math.exp %717 : vector<8x32xf32>
    %cst_301 = arith.constant 1.000000e+00 : f32
    %719 = vector.broadcast %cst_301 : f32 to vector<8x32xf32>
    %720 = arith.addf %719, %718 : vector<8x32xf32>
    %721 = arith.divf %719, %720 : vector<8x32xf32>
    %722 = vector.extract_strided_slice %715 {offsets = [0, 32], sizes = [8, 32], strides = [1, 1]} : vector<8x128xf32> to vector<8x32xf32>
    %723 = arith.negf %722 : vector<8x32xf32>
    %724 = math.exp %723 : vector<8x32xf32>
    %cst_302 = arith.constant 1.000000e+00 : f32
    %725 = vector.broadcast %cst_302 : f32 to vector<8x32xf32>
    %726 = arith.addf %725, %724 : vector<8x32xf32>
    %727 = arith.divf %725, %726 : vector<8x32xf32>
    %728 = vector.extract_strided_slice %715 {offsets = [0, 64], sizes = [8, 32], strides = [1, 1]} : vector<8x128xf32> to vector<8x32xf32>
    %729 = math.tanh %728 : vector<8x32xf32>
    %730 = vector.extract_strided_slice %715 {offsets = [0, 96], sizes = [8, 32], strides = [1, 1]} : vector<8x128xf32> to vector<8x32xf32>
    %731 = arith.negf %730 : vector<8x32xf32>
    %732 = math.exp %731 : vector<8x32xf32>
    %cst_303 = arith.constant 1.000000e+00 : f32
    %733 = vector.broadcast %cst_303 : f32 to vector<8x32xf32>
    %734 = arith.addf %733, %732 : vector<8x32xf32>
    %735 = arith.divf %733, %734 : vector<8x32xf32>
    %736 = arith.mulf %727, %709 : vector<8x32xf32>
    %737 = arith.mulf %721, %729 : vector<8x32xf32>
    %738 = arith.addf %736, %737 : vector<8x32xf32>
    %739 = math.tanh %738 : vector<8x32xf32>
    %740 = arith.mulf %735, %739 : vector<8x32xf32>
    %741 = vector.broadcast %704 : i32 to vector<8x1xi32>
    %742 = arith.cmpi slt, %741, %8 : vector<8x1xi32>
    %743 = vector.shape_cast %742 : vector<8x1xi1> to vector<8x1xi1>
    %744 = vector.broadcast %743 : vector<8x1xi1> to vector<8x32xi1>
    %745 = arith.select %744, %740, %708 : vector<8x32xi1>, vector<8x32xf32>
    %746 = vector.shape_cast %742 : vector<8x1xi1> to vector<8x1xi1>
    %747 = vector.broadcast %746 : vector<8x1xi1> to vector<8x32xi1>
    %748 = arith.select %747, %738, %709 : vector<8x32xi1>, vector<8x32xf32>
    %cst_304 = arith.constant 0.000000e+00 : f32
    %749 = vector.shape_cast %742 : vector<8x1xi1> to vector<8x1xi1>
    %750 = vector.broadcast %749 : vector<8x1xi1> to vector<8x32xi1>
    %751 = vector.broadcast %cst_304 : f32 to vector<8x32xf32>
    %752 = arith.select %750, %740, %751 : vector<8x32xi1>, vector<8x32xf32>
    %c0_305 = arith.constant 0 : index
    %c0_306 = arith.constant 0 : index
    %753 = vector.load %arg9[%c0_305, %c0_306] : memref<8x32xf32, #tpu.memory_space<vmem>>, vector<8x32xf32>
    tpu.vector_store %arg9[%c0_305, %c0_306], %745 {strides = array<i32>} : memref<8x32xf32, #tpu.memory_space<vmem>>, vector<8x32xf32>,
    %c0_307 = arith.constant 0 : index
    %c0_308 = arith.constant 0 : index
    %754 = vector.load %arg10[%c0_307, %c0_308] : memref<8x32xf32, #tpu.memory_space<vmem>>, vector<8x32xf32>
    tpu.vector_store %arg10[%c0_307, %c0_308], %748 {strides = array<i32>} : memref<8x32xf32, #tpu.memory_space<vmem>>, vector<8x32xf32>,
    %755 = vector.shape_cast %752 : vector<8x32xf32> to vector<1x8x32xf32>
    %756 = arith.index_cast %704 : i32 to index
    %c0_309 = arith.constant 0 : index
    %c32_310 = arith.constant 32 : index
    %757 = vector.load %arg6[%756, %c0_309, %c32_310] : memref<8x8x64xf32, #tpu.memory_space<vmem>>, vector<1x8x32xf32>
    tpu.vector_store %arg6[%756, %c0_309, %c32_310], %755 {strides = array<i32>} : memref<8x8x64xf32, #tpu.memory_space<vmem>>, vector<1x8x32xf32>,
    %c7_i32_311 = arith.constant 7 : i32
    %758 = arith.index_cast %c7_i32_311 : i32 to index
    %c0_312 = arith.constant 0 : index
    %c0_313 = arith.constant 0 : index
    %759 = vector.load %arg1[%758, %c0_312, %c0_313] : memref<8x8x64xf32, #tpu.memory_space<vmem>>, vector<1x8x64xf32>
    %760 = vector.shape_cast %759 : vector<1x8x64xf32> to vector<8x64xf32>
    %c0_314 = arith.constant 0 : index
    %c0_315 = arith.constant 0 : index
    %761 = vector.load %arg7[%c0_314, %c0_315] : memref<8x32xf32, #tpu.memory_space<vmem>>, vector<8x32xf32>
    %c0_316 = arith.constant 0 : index
    %c0_317 = arith.constant 0 : index
    %762 = vector.load %arg8[%c0_316, %c0_317] : memref<8x32xf32, #tpu.memory_space<vmem>>, vector<8x32xf32>
    %763 = tpu.concatenate %760, %761 in 1 : vector<8x64xf32>, vector<8x32xf32> -> vector<8x96xf32>
    %c0_318 = arith.constant 0 : index
    %c0_319 = arith.constant 0 : index
    %764 = vector.load %arg2[%c0_318, %c0_319] : memref<96x128xf32, #tpu.memory_space<vmem>>, vector<96x128xf32>
    %cst_320 = arith.constant dense<0.000000e+00> : vector<8x128xf32>
    %765 = tpu.matmul %763, %764, %cst_320 {dimension_numbers = #tpu.dot_dimension_numbers<[1], [0], [0], [1], [0, 0, 1, 1], [], []>} : vector<8x96xf32>, vector<96x128xf32>, vector<8x128xf32> -> vector<8x128xf32>
    %c0_321 = arith.constant 0 : index
    %c0_322 = arith.constant 0 : index
    %766 = vector.load %arg3[%c0_321, %c0_322] : memref<1x128xf32, #tpu.memory_space<vmem>>, vector<1x128xf32>
    %767 = vector.broadcast %766 : vector<1x128xf32> to vector<8x128xf32>
    %768 = arith.addf %765, %767 : vector<8x128xf32>
    %769 = vector.extract_strided_slice %768 {offsets = [0, 0], sizes = [8, 32], strides = [1, 1]} : vector<8x128xf32> to vector<8x32xf32>
    %770 = arith.negf %769 : vector<8x32xf32>
    %771 = math.exp %770 : vector<8x32xf32>
    %cst_323 = arith.constant 1.000000e+00 : f32
    %772 = vector.broadcast %cst_323 : f32 to vector<8x32xf32>
    %773 = arith.addf %772, %771 : vector<8x32xf32>
    %774 = arith.divf %772, %773 : vector<8x32xf32>
    %775 = vector.extract_strided_slice %768 {offsets = [0, 32], sizes = [8, 32], strides = [1, 1]} : vector<8x128xf32> to vector<8x32xf32>
    %776 = arith.negf %775 : vector<8x32xf32>
    %777 = math.exp %776 : vector<8x32xf32>
    %cst_324 = arith.constant 1.000000e+00 : f32
    %778 = vector.broadcast %cst_324 : f32 to vector<8x32xf32>
    %779 = arith.addf %778, %777 : vector<8x32xf32>
    %780 = arith.divf %778, %779 : vector<8x32xf32>
    %781 = vector.extract_strided_slice %768 {offsets = [0, 64], sizes = [8, 32], strides = [1, 1]} : vector<8x128xf32> to vector<8x32xf32>
    %782 = math.tanh %781 : vector<8x32xf32>
    %783 = vector.extract_strided_slice %768 {offsets = [0, 96], sizes = [8, 32], strides = [1, 1]} : vector<8x128xf32> to vector<8x32xf32>
    %784 = arith.negf %783 : vector<8x32xf32>
    %785 = math.exp %784 : vector<8x32xf32>
    %cst_325 = arith.constant 1.000000e+00 : f32
    %786 = vector.broadcast %cst_325 : f32 to vector<8x32xf32>
    %787 = arith.addf %786, %785 : vector<8x32xf32>
    %788 = arith.divf %786, %787 : vector<8x32xf32>
    %789 = arith.mulf %780, %762 : vector<8x32xf32>
    %790 = arith.mulf %774, %782 : vector<8x32xf32>
    %791 = arith.addf %789, %790 : vector<8x32xf32>
    %792 = math.tanh %791 : vector<8x32xf32>
    %793 = arith.mulf %788, %792 : vector<8x32xf32>
    %794 = vector.broadcast %c7_i32_311 : i32 to vector<8x1xi32>
    %795 = arith.cmpi slt, %794, %8 : vector<8x1xi32>
    %796 = vector.shape_cast %795 : vector<8x1xi1> to vector<8x1xi1>
    %797 = vector.broadcast %796 : vector<8x1xi1> to vector<8x32xi1>
    %798 = arith.select %797, %793, %761 : vector<8x32xi1>, vector<8x32xf32>
    %799 = vector.shape_cast %795 : vector<8x1xi1> to vector<8x1xi1>
    %800 = vector.broadcast %799 : vector<8x1xi1> to vector<8x32xi1>
    %801 = arith.select %800, %791, %762 : vector<8x32xi1>, vector<8x32xf32>
    %cst_326 = arith.constant 0.000000e+00 : f32
    %802 = vector.shape_cast %795 : vector<8x1xi1> to vector<8x1xi1>
    %803 = vector.broadcast %802 : vector<8x1xi1> to vector<8x32xi1>
    %804 = vector.broadcast %cst_326 : f32 to vector<8x32xf32>
    %805 = arith.select %803, %793, %804 : vector<8x32xi1>, vector<8x32xf32>
    %c0_327 = arith.constant 0 : index
    %c0_328 = arith.constant 0 : index
    %806 = vector.load %arg7[%c0_327, %c0_328] : memref<8x32xf32, #tpu.memory_space<vmem>>, vector<8x32xf32>
    tpu.vector_store %arg7[%c0_327, %c0_328], %798 {strides = array<i32>} : memref<8x32xf32, #tpu.memory_space<vmem>>, vector<8x32xf32>,
    %c0_329 = arith.constant 0 : index
    %c0_330 = arith.constant 0 : index
    %807 = vector.load %arg8[%c0_329, %c0_330] : memref<8x32xf32, #tpu.memory_space<vmem>>, vector<8x32xf32>
    tpu.vector_store %arg8[%c0_329, %c0_330], %801 {strides = array<i32>} : memref<8x32xf32, #tpu.memory_space<vmem>>, vector<8x32xf32>,
    %808 = vector.shape_cast %805 : vector<8x32xf32> to vector<1x8x32xf32>
    %809 = arith.index_cast %c7_i32_311 : i32 to index
    %c0_331 = arith.constant 0 : index
    %c0_332 = arith.constant 0 : index
    %810 = vector.load %arg6[%809, %c0_331, %c0_332] : memref<8x8x64xf32, #tpu.memory_space<vmem>>, vector<1x8x32xf32>
    tpu.vector_store %arg6[%809, %c0_331, %c0_332], %808 {strides = array<i32>} : memref<8x8x64xf32, #tpu.memory_space<vmem>>, vector<1x8x32xf32>,
    %c7_i32_333 = arith.constant 7 : i32
    %811 = arith.subi %c7_i32_333, %c7_i32_311 : i32
    %812 = arith.index_cast %811 : i32 to index
    %c0_334 = arith.constant 0 : index
    %c0_335 = arith.constant 0 : index
    %813 = vector.load %arg1[%812, %c0_334, %c0_335] : memref<8x8x64xf32, #tpu.memory_space<vmem>>, vector<1x8x64xf32>
    %814 = vector.shape_cast %813 : vector<1x8x64xf32> to vector<8x64xf32>
    %c0_336 = arith.constant 0 : index
    %c0_337 = arith.constant 0 : index
    %815 = vector.load %arg9[%c0_336, %c0_337] : memref<8x32xf32, #tpu.memory_space<vmem>>, vector<8x32xf32>
    %c0_338 = arith.constant 0 : index
    %c0_339 = arith.constant 0 : index
    %816 = vector.load %arg10[%c0_338, %c0_339] : memref<8x32xf32, #tpu.memory_space<vmem>>, vector<8x32xf32>
    %817 = tpu.concatenate %814, %815 in 1 : vector<8x64xf32>, vector<8x32xf32> -> vector<8x96xf32>
    %c0_340 = arith.constant 0 : index
    %c0_341 = arith.constant 0 : index
    %818 = vector.load %arg4[%c0_340, %c0_341] : memref<96x128xf32, #tpu.memory_space<vmem>>, vector<96x128xf32>
    %cst_342 = arith.constant dense<0.000000e+00> : vector<8x128xf32>
    %819 = tpu.matmul %817, %818, %cst_342 {dimension_numbers = #tpu.dot_dimension_numbers<[1], [0], [0], [1], [0, 0, 1, 1], [], []>} : vector<8x96xf32>, vector<96x128xf32>, vector<8x128xf32> -> vector<8x128xf32>
    %c0_343 = arith.constant 0 : index
    %c0_344 = arith.constant 0 : index
    %820 = vector.load %arg5[%c0_343, %c0_344] : memref<1x128xf32, #tpu.memory_space<vmem>>, vector<1x128xf32>
    %821 = vector.broadcast %820 : vector<1x128xf32> to vector<8x128xf32>
    %822 = arith.addf %819, %821 : vector<8x128xf32>
    %823 = vector.extract_strided_slice %822 {offsets = [0, 0], sizes = [8, 32], strides = [1, 1]} : vector<8x128xf32> to vector<8x32xf32>
    %824 = arith.negf %823 : vector<8x32xf32>
    %825 = math.exp %824 : vector<8x32xf32>
    %cst_345 = arith.constant 1.000000e+00 : f32
    %826 = vector.broadcast %cst_345 : f32 to vector<8x32xf32>
    %827 = arith.addf %826, %825 : vector<8x32xf32>
    %828 = arith.divf %826, %827 : vector<8x32xf32>
    %829 = vector.extract_strided_slice %822 {offsets = [0, 32], sizes = [8, 32], strides = [1, 1]} : vector<8x128xf32> to vector<8x32xf32>
    %830 = arith.negf %829 : vector<8x32xf32>
    %831 = math.exp %830 : vector<8x32xf32>
    %cst_346 = arith.constant 1.000000e+00 : f32
    %832 = vector.broadcast %cst_346 : f32 to vector<8x32xf32>
    %833 = arith.addf %832, %831 : vector<8x32xf32>
    %834 = arith.divf %832, %833 : vector<8x32xf32>
    %835 = vector.extract_strided_slice %822 {offsets = [0, 64], sizes = [8, 32], strides = [1, 1]} : vector<8x128xf32> to vector<8x32xf32>
    %836 = math.tanh %835 : vector<8x32xf32>
    %837 = vector.extract_strided_slice %822 {offsets = [0, 96], sizes = [8, 32], strides = [1, 1]} : vector<8x128xf32> to vector<8x32xf32>
    %838 = arith.negf %837 : vector<8x32xf32>
    %839 = math.exp %838 : vector<8x32xf32>
    %cst_347 = arith.constant 1.000000e+00 : f32
    %840 = vector.broadcast %cst_347 : f32 to vector<8x32xf32>
    %841 = arith.addf %840, %839 : vector<8x32xf32>
    %842 = arith.divf %840, %841 : vector<8x32xf32>
    %843 = arith.mulf %834, %816 : vector<8x32xf32>
    %844 = arith.mulf %828, %836 : vector<8x32xf32>
    %845 = arith.addf %843, %844 : vector<8x32xf32>
    %846 = math.tanh %845 : vector<8x32xf32>
    %847 = arith.mulf %842, %846 : vector<8x32xf32>
    %848 = vector.broadcast %811 : i32 to vector<8x1xi32>
    %849 = arith.cmpi slt, %848, %8 : vector<8x1xi32>
    %850 = vector.shape_cast %849 : vector<8x1xi1> to vector<8x1xi1>
    %851 = vector.broadcast %850 : vector<8x1xi1> to vector<8x32xi1>
    %852 = arith.select %851, %847, %815 : vector<8x32xi1>, vector<8x32xf32>
    %853 = vector.shape_cast %849 : vector<8x1xi1> to vector<8x1xi1>
    %854 = vector.broadcast %853 : vector<8x1xi1> to vector<8x32xi1>
    %855 = arith.select %854, %845, %816 : vector<8x32xi1>, vector<8x32xf32>
    %cst_348 = arith.constant 0.000000e+00 : f32
    %856 = vector.shape_cast %849 : vector<8x1xi1> to vector<8x1xi1>
    %857 = vector.broadcast %856 : vector<8x1xi1> to vector<8x32xi1>
    %858 = vector.broadcast %cst_348 : f32 to vector<8x32xf32>
    %859 = arith.select %857, %847, %858 : vector<8x32xi1>, vector<8x32xf32>
    %c0_349 = arith.constant 0 : index
    %c0_350 = arith.constant 0 : index
    %860 = vector.load %arg9[%c0_349, %c0_350] : memref<8x32xf32, #tpu.memory_space<vmem>>, vector<8x32xf32>
    tpu.vector_store %arg9[%c0_349, %c0_350], %852 {strides = array<i32>} : memref<8x32xf32, #tpu.memory_space<vmem>>, vector<8x32xf32>,
    %c0_351 = arith.constant 0 : index
    %c0_352 = arith.constant 0 : index
    %861 = vector.load %arg10[%c0_351, %c0_352] : memref<8x32xf32, #tpu.memory_space<vmem>>, vector<8x32xf32>
    tpu.vector_store %arg10[%c0_351, %c0_352], %855 {strides = array<i32>} : memref<8x32xf32, #tpu.memory_space<vmem>>, vector<8x32xf32>,
    %862 = vector.shape_cast %859 : vector<8x32xf32> to vector<1x8x32xf32>
    %863 = arith.index_cast %811 : i32 to index
    %c0_353 = arith.constant 0 : index
    %c32_354 = arith.constant 32 : index
    %864 = vector.load %arg6[%863, %c0_353, %c32_354] : memref<8x8x64xf32, #tpu.memory_space<vmem>>, vector<1x8x32xf32>
    tpu.vector_store %arg6[%863, %c0_353, %c32_354], %862 {strides = array<i32>} : memref<8x8x64xf32, #tpu.memory_space<vmem>>, vector<1x8x32xf32>,
    %c8_i32 = arith.constant 8 : i32
    return
  }
}

module attributes {stable_mosaic.version = 11 : i64} {
  func.func @_linear_kernel(%arg0: i32, %arg1: memref<64x64xf32, #tpu.memory_space<vmem>>, %arg2: memref<64x128xf32, #tpu.memory_space<vmem>>, %arg3: memref<1x128xf32, #tpu.memory_space<vmem>>, %arg4: memref<64x128xf32, #tpu.memory_space<vmem>>) attributes {dimension_semantics = [#tpu.dimension_semantics<parallel>], iteration_bounds = array<i64: 1>, scalar_prefetch = 0 : i64, scratch_operands = 0 : i64, tpu.core_type = #tpu.core_type<tc>, window_params = [{transform_indices = @transform_0, window_bounds = array<i64: 64, 64>}, {pipeline_mode = #tpu.pipeline_mode<synchronous>, transform_indices = @transform_1, window_bounds = array<i64: 64, 128>}, {pipeline_mode = #tpu.pipeline_mode<synchronous>, transform_indices = @transform_2, window_bounds = array<i64: 1, 128>}, {transform_indices = @transform_3, window_bounds = array<i64: 64, 128>}]} {
    %c0 = arith.constant 0 : index
    %c0_0 = arith.constant 0 : index
    %0 = vector.load %arg1[%c0, %c0_0] : memref<64x64xf32, #tpu.memory_space<vmem>>, vector<64x64xf32>
    %c0_1 = arith.constant 0 : index
    %c0_2 = arith.constant 0 : index
    %1 = vector.load %arg2[%c0_1, %c0_2] : memref<64x128xf32, #tpu.memory_space<vmem>>, vector<64x128xf32>
    %cst = arith.constant dense<0.000000e+00> : vector<64x128xf32>
    %2 = tpu.matmul %0, %1, %cst {dimension_numbers = #tpu.dot_dimension_numbers<[1], [0], [0], [1], [0, 0, 1, 1], [], []>} : vector<64x64xf32>, vector<64x128xf32>, vector<64x128xf32> -> vector<64x128xf32>
    %c0_3 = arith.constant 0 : index
    %c0_4 = arith.constant 0 : index
    %3 = vector.load %arg3[%c0_3, %c0_4] : memref<1x128xf32, #tpu.memory_space<vmem>>, vector<1x128xf32>
    %4 = vector.broadcast %3 : vector<1x128xf32> to vector<64x128xf32>
    %5 = arith.addf %2, %4 : vector<64x128xf32>
    %c0_5 = arith.constant 0 : index
    %c0_6 = arith.constant 0 : index
    %6 = vector.load %arg4[%c0_5, %c0_6] : memref<64x128xf32, #tpu.memory_space<vmem>>, vector<64x128xf32>
    tpu.vector_store %arg4[%c0_5, %c0_6], %5 {strides = array<i32>} : memref<64x128xf32, #tpu.memory_space<vmem>>, vector<64x128xf32>,
    return
  }
  func.func @transform_0(%arg0: i32) -> (i32, i32) {
    %c0_i32 = arith.constant 0 : i32
    %c0_i32_0 = arith.constant 0 : i32
    return %arg0, %c0_i32 : i32, i32
  }
  func.func @transform_1(%arg0: i32) -> (i32, i32) {
    %c0_i32 = arith.constant 0 : i32
    %c0_i32_0 = arith.constant 0 : i32
    %c0_i32_1 = arith.constant 0 : i32
    return %c0_i32, %c0_i32_0 : i32, i32
  }
  func.func @transform_2(%arg0: i32) -> (i32, i32) {
    %c0_i32 = arith.constant 0 : i32
    %c0_i32_0 = arith.constant 0 : i32
    %c0_i32_1 = arith.constant 0 : i32
    return %c0_i32, %c0_i32_0 : i32, i32
  }
  func.func @transform_3(%arg0: i32) -> (i32, i32) {
    %c0_i32 = arith.constant 0 : i32
    %c0_i32_0 = arith.constant 0 : i32
    return %arg0, %c0_i32 : i32, i32
  }
}

</mosaic_0001>

<bundles_post_ra>
// kernel: rnn_tagger_forward.5
= control target key start
LH: loop header
LB: loop body
LE: loop exit
PB: predicated region body
PF: predicated region fallthrough
CT: control target
= control target key end

     0   :  { %vm34_vm0 = vcmask 523264   ;;  %s248_s1 = inlined_call_operand.vmem [shape: f32[64,128], index: 1, kind: input, shape index: {}]   ;;  %s249_s2 = inlined_call_operand.vmem [shape: f32[1,128], index: 2, kind: input, shape index: {}]   ;;  %s250_s0 = inlined_call_operand.vmem [shape: f32[64,64], index: 0, kind: input, shape index: {}]   ;;  %s251_s3 = inlined_call_operand.vmem [shape: f32[64,128], index: 3, kind: output, shape index: {}]  }
   0x1   :  { %v29_v0 = vld [vmem:[%s248_s1 + $0x38] sm:$0xff]  ;;  %v28_v1 = vld [vmem:[%s248_s1 + $0x30] sm:$0xff]  ;;  %v27_v2 = vld [vmem:[%s248_s1 + $0x28] sm:$0xff] }
   0x2   :  { %121 = vmatpush.msra.mxu2 %v29_v0  ;;  %122 = vmatpush.msra.mxu3 %v29_v0  ;;  %v26_v3 = vld [vmem:[%s248_s1 + $0x20] sm:$0xff]  ;;  %v25_v4 = vld [vmem:[%s248_s1 + $0x18] sm:$0xff]  ;;  %v24_v5 = vld [vmem:[%s248_s1 + $0x10] sm:$0xff] }
   0x3   :  { %67 = vmatpush.msra.mxu0 %v29_v0  ;;  %120 = vmatpush.msra.mxu1 %v29_v0  ;;  %v23_v6 = vld [vmem:[%s248_s1 + $0x8] sm:$0xff]  ;;  %v22_v7 = vld [vmem:[%s248_s1] sm:$0xff]  ;;  %v20_v9 = vld [vmem:[%s250_s0 + $0x30] sm:$0xff] }
   0x4   :  { %124 = vmatpush.msra.mxu2 %v28_v1  ;;  %125 = vmatpush.msra.mxu3 %v28_v1  ;;  %v18_v8 = vld [vmem:[%s250_s0 + $0x20] sm:$0xff]  ;;  %v16_v11 = vld [vmem:[%s250_s0 + $0x10] sm:$0xff]  ;;  %v19_v12 = vld [vmem:[%s250_s0 + $0x28] sm:$0xff] }
   0x5   :  { %68 = vmatpush.msra.mxu0 %v28_v1  ;;  %123 = vmatpush.msra.mxu1 %v28_v1  ;;  %v14_v10 = vld [vmem:[%s250_s0] sm:$0xff]  ;;  %v21_v13 = vld [vmem:[%s250_s0 + $0x38] sm:$0xff]  ;;  %v15_v14 = vld [vmem:[%s250_s0 + $0x8] sm:$0xff] }
   0x6   :  { %127 = vmatpush.msra.mxu2 %v27_v2  ;;  %128 = vmatpush.msra.mxu3 %v27_v2  ;;  %v17_v15 = vld [vmem:[%s250_s0 + $0x18] sm:$0xff]  ;;  %v144_v16 = vld [vmem:[%s249_s2] ss:$0 sm:$0xff] }
   0x7   :  { %69 = vmatpush.msra.mxu0 %v27_v2  ;;  %126 = vmatpush.msra.mxu1 %v27_v2 }
   0x8   :  { %130 = vmatpush.msra.mxu2 %v26_v3  ;;  %131 = vmatpush.msra.mxu3 %v26_v3 }
   0x9   :  { %70 = vmatpush.msra.mxu0 %v26_v3  ;;  %129 = vmatpush.msra.mxu1 %v26_v3 }
   0xa   :  { %133 = vmatpush.msra.mxu2 %v25_v4  ;;  %134 = vmatpush.msra.mxu3 %v25_v4 }
   0xb   :  { %71 = vmatpush.msra.mxu0 %v25_v4  ;;  %132 = vmatpush.msra.mxu1 %v25_v4 }
   0xc   :  { %136 = vmatpush.msra.mxu2 %v24_v5  ;;  %137 = vmatpush.msra.mxu3 %v24_v5 }
   0xd   :  { %72 = vmatpush.msra.mxu0 %v24_v5  ;;  %135 = vmatpush.msra.mxu1 %v24_v5 }
   0xe   :  { %139 = vmatpush.msra.mxu2 %v23_v6  ;;  %140 = vmatpush.msra.mxu3 %v23_v6 }
   0xf   :  { %73 = vmatpush.msra.mxu0 %v23_v6  ;;  %138 = vmatpush.msra.mxu1 %v23_v6 }
  0x10   :  { %142 = vmatpush.msra.mxu2 %v22_v7  ;;  %143 = vmatpush.msra.mxu3 %v22_v7 }
  0x11   :  { %116 = vmatmul.msk.f32.vlgmr.msra.gmra.mxu2 %vm34_vm0, %v18_v8  ;;  %118 = vmatmul.msk.f32.vlgmr.msra.gmra.mxu3 %vm34_vm0, %v20_v9 }
  0x12   :  { %74 = vmatpush.msra.mxu0 %v22_v7  ;;  %141 = vmatpush.msra.mxu1 %v22_v7 }
  0x13   :  { %112 = vmatmul.msk.f32.vlgmr.msra.gmra.mxu0 %vm34_vm0, %v14_v10  ;;  %114 = vmatmul.msk.f32.vlgmr.msra.gmra.mxu1 %vm34_vm0, %v16_v11 }
  0x19   :  { %117 = vmatmul.msk.f32.gmra.mxu2 %vm34_vm0, %v19_v12  ;;  %119 = vmatmul.msk.f32.gmra.mxu3 %vm34_vm0, %v21_v13 }
  0x1b   :  { %113 = vmatmul.msk.f32.gmra.mxu0 %vm34_vm0, %v15_v14  ;;  %115 = vmatmul.msk.f32.gmra.mxu1 %vm34_vm0, %v17_v15 }
  0x90   :  { %v76_v17 = vpop.f32.mrf.mxu0  ;;  %v82_v18 = vpop.f32.mrf.mxu1 }
  0x91   :  { %v77_v19 = vadd.f32 %v144_v16, %v76_v17  ;;  %v83_v20 = vadd.f32 %v144_v16, %v82_v18 }
  0x93   :  { %100 = vst [vmem:[%s251_s3] sm:$0xff] %v77_v19 }
  0x94   :  { %102 = vst [vmem:[%s251_s3 + $0x10] sm:$0xff] %v83_v20  ;;  %v88_v21 = vpop.f32.mrf.mxu2  ;;  %v94_v22 = vpop.f32.mrf.mxu3 }
  0x95   :  { %v89_v23 = vadd.f32 %v144_v16, %v88_v21  ;;  %v95_v24 = vadd.f32 %v144_v16, %v94_v22 }
  0x97   :  { %104 = vst [vmem:[%s251_s3 + $0x20] sm:$0xff] %v89_v23 }
  0x98   :  { %106 = vst [vmem:[%s251_s3 + $0x30] sm:$0xff] %v95_v24  ;;  %v79_v25 = vpop.f32.mrf.mxu0  ;;  %v85_v26 = vpop.f32.mrf.mxu1 }
  0x99   :  { %v80_v27 = vadd.f32 %v144_v16, %v79_v25  ;;  %v86_v28 = vadd.f32 %v144_v16, %v85_v26 }
  0x9b   :  { %101 = vst [vmem:[%s251_s3 + $0x8] sm:$0xff] %v80_v27 }
  0x9c   :  { %103 = vst [vmem:[%s251_s3 + $0x18] sm:$0xff] %v86_v28  ;;  %v91_v29 = vpop.f32.mrf.mxu2  ;;  %v97_v30 = vpop.f32.mrf.mxu3 }
  0x9d   :  { %v92_v31 = vadd.f32 %v144_v16, %v91_v29  ;;  %v98_v32 = vadd.f32 %v144_v16, %v97_v30 }
  0x9f   :  { %105 = vst [vmem:[%s251_s3 + $0x28] sm:$0xff] %v92_v31 }
  0xa0   :  { %107 = vst [vmem:[%s251_s3 + $0x38] sm:$0xff] %v98_v32 }

// kernel: rnn_tagger_forward.3
= control target key start
LH: loop header
LB: loop body
LE: loop exit
PB: predicated region body
PF: predicated region fallthrough
CT: control target
= control target key end

     0   :  { %vm23_vm0 = vcmask 261120   ;;  %v1959_v0 = vmov 0.0   ;;  %s1960_s9 = smov 16   ;;  %s1961_s22 = smov 32   ;;  %vm36_vm1 = vcmask 130048   ;;  %vm48_vm2 = vcmask 392192   ;;  %s2718_s2 = inlined_call_operand.vmem [shape: f32[48,128], index: 2, kind: input, shape index: {}]   ;;  %s2719_s4 = inlined_call_operand.vmem [shape: f32[48,128], index: 4, kind: input, shape index: {}]   ;;  %s2720_s3 = inlined_call_operand.vmem [shape: f32[1,128], index: 3, kind: input, shape index: {}]   ;;  %s2721_s1 = inlined_call_operand.vmem [shape: f32[8,8,16], index: 1, kind: input, shape index: {}]   ;;  %s2722_s5 = inlined_call_operand.vmem [shape: f32[1,128], index: 5, kind: input, shape index: {}]   ;;  %s2723_s0 = inlined_call_operand.vmem [shape: s32[8,1], index: 0, kind: input, shape index: {}]   ;;  %s2724_s6 = inlined_call_operand.vmem [shape: f32[8,8,64], index: 6, kind: output, shape index: {}]  }
   0x1   :  { %24 = vst.msk [vmem:[#allocation2] sm:$0xff] %vm23_vm0, %v1959_v0  ;;  %v43_v1 = vld [vmem:[%s2718_s2 + $0x28] sm:$0xff]  ;;  %v42_v2 = vld [vmem:[%s2718_s2 + $0x20] sm:$0xff]  ;;  %v41_v4 = vld [vmem:[%s2718_s2 + $0x18] sm:$0xff]  ;;  %s1962_s7 = smov 64   ;;  %v1963_v38 = vmov 0  }
   0x2   :  { %25 = vst.msk [vmem:[#allocation3] sm:$0xff] %vm23_vm0, %v1959_v0  ;;  %62 = vmatpush.msra.mxu0 %v43_v1  ;;  %v154_v3 = vld [vmem:[%s2719_s4 + $0x28] sm:$0xff]  ;;  %284 = vmatpush.msra.mxu2 %v43_v1  ;;  %v40_v5 = vld [vmem:[%s2718_s2 + $0x10] sm:$0xff]  ;;  %v38_v9 = vld [vmem:[%s2718_s2] sm:$0xff]  ;;  %s1964_s11 = smov 96  }
   0x3   :  { %26 = vst.msk [vmem:[#allocation4] sm:$0xff] %vm23_vm0, %v1959_v0  ;;  %172 = vmatpush.msra.mxu1 %v154_v3  ;;  %395 = vmatpush.msra.mxu3 %v154_v3  ;;  %v39_v6 = vld [vmem:[%s2718_s2 + $0x8] sm:$0xff]  ;;  %v153_v10 = vld [vmem:[%s2719_s4 + $0x20] sm:$0xff]  ;;  %v152_v11 = vld [vmem:[%s2719_s4 + $0x18] sm:$0xff] }
   0x4   :  { %27 = vst.msk [vmem:[#allocation5] sm:$0xff] %vm23_vm0, %v1959_v0  ;;  %63 = vmatpush.msra.mxu0 %v42_v2  ;;  %285 = vmatpush.msra.mxu2 %v42_v2  ;;  %v151_v12 = vld [vmem:[%s2719_s4 + $0x10] sm:$0xff]  ;;  %v150_v13 = vld [vmem:[%s2719_s4 + $0x8] sm:$0xff]  ;;  %v149_v14 = vld [vmem:[%s2719_s4] sm:$0xff] }
   0x5   :  { %173 = vmatpush.msra.mxu1 %v153_v10  ;;  %396 = vmatpush.msra.mxu3 %v153_v10  ;;  %v29_v17 = vld [vmem:[%s2721_s1] sm:$0xff]  ;;  %v1748_v20 = vld [vmem:[%s2721_s1 + $0x38] sm:$0xff] }
   0x6   :  { %64 = vmatpush.msra.mxu0 %v41_v4  ;;  %286 = vmatpush.msra.mxu2 %v41_v4  ;;  %v1815_v23 = vld [vmem:[%s2720_s3] ss:$0 sm:$0xff] }
   0x7   :  { %174 = vmatpush.msra.mxu1 %v152_v11  ;;  %397 = vmatpush.msra.mxu3 %v152_v11  ;;  %v1816_v26 = vld [vmem:[%s2722_s5] ss:$0 sm:$0xff] }
   0x8   :  { %v2022_v7 = vld [vmem:[#allocation2] sm:$0xff]  ;;  %65 = vmatpush.msra.mxu0 %v40_v5  ;;  %287 = vmatpush.msra.mxu2 %v40_v5 }
   0x9   :  { %33 = vrot.lane.b32.xlu0 %v2022_v7, %s1960_s9  ;;  %175 = vmatpush.msra.mxu1 %v151_v12  ;;  %v31_v15 = vld [vmem:[#allocation3] sm:$0xff]  ;;  %v2075_v62 = vld [vmem:[%s2723_s0] sm:$0xff] }
   0xa   :  { %66 = vmatpush.msra.mxu0 %v39_v6  ;;  %288 = vmatpush.msra.mxu2 %v39_v6  ;;  %v2026_v8 = vld [vmem:[#allocation4] sm:$0xff]  ;;  %vm113_vm11 = vcmp.gt.s32.totalorder %v2075_v62, 0  ;;  %vm223_vm12 = vcmp.gt.s32.totalorder %v2075_v62, 7 }
   0xb   :  { %398 = vmatpush.msra.mxu3 %v151_v12  ;;  %176 = vmatpush.msra.mxu1 %v150_v13  ;;  %v143_v16 = vld [vmem:[#allocation5] sm:$0xff]  ;;  %v114_v63 = vsel %vm113_vm11, 1, %v1963_v38  ;;  %vm446_vm11 = vcmp.gt.s32.totalorder %v2075_v62, 6 }
   0xc   :  { %67 = vmatpush.msra.mxu0 %v38_v9  ;;  %289 = vmatpush.msra.mxu2 %v38_v9 }
   0xd   :  { %399 = vmatpush.msra.mxu3 %v150_v13  ;;  %177 = vmatpush.msra.mxu1 %v149_v14 }
   0xe   :  { %506 = vmatpush.msrb.mxu0 %v43_v1  ;;  %728 = vmatpush.msrb.mxu2 %v43_v1 }
   0xf   :  { %400 = vmatpush.msra.mxu3 %v149_v14  ;;  %617 = vmatpush.msrb.mxu1 %v154_v3 }
  0x10   :  { %507 = vmatpush.msrb.mxu0 %v42_v2  ;;  %729 = vmatpush.msrb.mxu2 %v42_v2 }
  0x11   :  { %145 = vrot.lane.b32.xlu0 %v2026_v8, %s1960_s9  ;;  %93 = vrot.lane.b32.xlu2 %v31_v15, %s1961_s22 }
  0x12   :  { %508 = vmatpush.msrb.mxu0 %v41_v4  ;;  %730 = vmatpush.msrb.mxu2 %v41_v4 }
  0x13   :  { %618 = vmatpush.msrb.mxu1 %v153_v10  ;;  %839 = vmatpush.msrb.mxu3 %v154_v3 }
  0x14   :  { %509 = vmatpush.msrb.mxu0 %v40_v5  ;;  %731 = vmatpush.msrb.mxu2 %v40_v5 }
  0x15   :  { %619 = vmatpush.msrb.mxu1 %v152_v11  ;;  %840 = vmatpush.msrb.mxu3 %v153_v10 }
  0x16   :  { %510 = vmatpush.msrb.mxu0 %v39_v6  ;;  %732 = vmatpush.msrb.mxu2 %v39_v6 }
  0x17   :  { %620 = vmatpush.msrb.mxu1 %v151_v12  ;;  %841 = vmatpush.msrb.mxu3 %v152_v11  ;;  %v224_v11 = vsel %vm223_vm12, 1, %v1963_v38 }
  0x18   :  { %511 = vmatpush.msrb.mxu0 %v38_v9  ;;  %733 = vmatpush.msrb.mxu2 %v38_v9 }
  0x19   :  { %621 = vmatpush.msrb.mxu1 %v150_v13  ;;  %842 = vmatpush.msrb.mxu3 %v151_v12 }
  0x1a   :  { %203 = vrot.lane.b32.xlu2 %v143_v16, %s1961_s22  ;;  %1812 = vset.pattern.permute.xlu1 %v1963_v38 }
  0x1b   :  { %622 = vmatpush.msrb.mxu1 %v149_v14  ;;  %843 = vmatpush.msrb.mxu3 %v150_v13 }
  0x1c   :  { %1813 = vset.pattern.permute.xlu2 %v1963_v38  ;;  %1814 = vset.pattern.permute.xlu0 %v1963_v38 }
  0x1d   :  { %844 = vmatpush.msrb.mxu3 %v149_v14 }
  0x6b   :  { %v94_v0 = vpop.permute.xlu2 %93 }
  0x74   :  { %v204_v4 = vpop.permute.xlu2 %203 }
  0x7b   :  { %v34_v18 = vpop.permute.xlu0 %33 }
  0x7c   :  { %v37_v19 = vsel %vm36_vm1, %v29_v17, %v34_v18 }
  0x7d   :  { %1746 = vmatmul.msk.f32.vlgmr.msra.gmra.mxu0 %vm48_vm2, %v37_v19 }
  0x83   :  { %v146_v21 = vpop.permute.xlu0 %145 }
  0x84   :  { %v148_v22 = vsel %vm36_vm1, %v1748_v20, %v146_v21 }
  0x85   :  { %1749 = vmatmul.msk.f32.vlgmr.msra.gmra.mxu1 %vm48_vm2, %v148_v22 }
  0xfa   :  { %v69_v24 = vpop.f32.mrf.mxu0 }
  0xfb   :  { %v70_v25 = vadd.f32 %v1815_v23, %v69_v24 }
  0xfd   :  { %1831 = vtanh.f32 %v70_v25  ;;  %v1747_v31 = vmul.f32 -1.442695, %v70_v25 }
 0x102   :  { %v179_v27 = vpop.f32.mrf.mxu1 }
 0x103   :  { %v1832_v28 = vpop.eup %1831  ;;  %v180_v29 = vadd.f32 %v1816_v26, %v179_v27 }
 0x104   :  { %98 = vrot.lane.b32.xlu1 %v1832_v28, %s1962_s7 }
 0x105   :  { %1833 = vtanh.f32 %v180_v29  ;;  %v1750_v32 = vmul.f32 -1.442695, %v180_v29  ;;  %v1756_v29 = vld [vmem:[%s2721_s1 + $0x30] sm:$0xff] }
 0x106   :  { %1835 = vpow2.f32 %v1747_v31 }
 0x107   :  { %1837 = vpow2.f32 %v1750_v32  ;;  %v1752_v32 = vld [vmem:[%s2721_s1 + $0x8] sm:$0xff] }
 0x10b   :  { %v1834_v30 = vpop.eup %1833 }
 0x10c   :  { %208 = vrot.lane.b32.xlu1 %v1834_v30, %s1962_s7  ;;  %v1836_v33 = vpop.eup %1835 }
 0x10d   :  { %v75_v34 = vadd.f32 1.0, %v1836_v33  ;;  %v1838_v35 = vpop.eup %1837 }
 0x10e   :  { %v185_v36 = vadd.f32 1.0, %v1838_v35 }
 0x10f   :  { %1839 = vrcp.f32 %v75_v34  ;;  %v87_v46 = vand.u32 2147483648, %v75_v34  ;;  %vm81_vm4 = vweird.f32 %v75_v34  ;;  %v85_v47 = vand.u32 2147483647, %v75_v34 }
 0x110   :  { %1841 = vrcp.f32 %v185_v36  ;;  %v197_v55 = vand.u32 2147483648, %v185_v36  ;;  %vm191_vm8 = vweird.f32 %v185_v36  ;;  %v195_v56 = vand.u32 2147483647, %v185_v36 }
 0x111   :  { %v88_v50 = vor.u32 1.1754944e-38, %v87_v46  ;;  %vm86_vm6 = vcmp.eq.f32.partialorder %v85_v47, 8.507059e+37 }
 0x112   :  { %v198_v58 = vor.u32 1.1754944e-38, %v197_v55  ;;  %vm196_vm10 = vcmp.eq.f32.partialorder %v195_v56, 8.507059e+37 }
 0x115   :  { %v1840_v37 = vpop.eup %1839 }
 0x116   :  { %v77_v39 = vmul.f32 %v1840_v37, %v75_v34  ;;  %v1842_v41 = vpop.eup %1841  ;;  %vm82_vm3 = vweird.f32 %v1840_v37 }
 0x117   :  { %v187_v42 = vmul.f32 %v1842_v41, %v185_v36  ;;  %vm83_vm5 = vmor %vm81_vm4, %vm82_vm3  ;;  %vm192_vm7 = vweird.f32 %v1842_v41  ;;  %v1817_v36 = vld [vmem:[%s2722_s5] ss:$0 sm:$0xff] }
 0x118   :  { %v78_v40 = vsub.f32 1.0, %v77_v39  ;;  %vm193_vm9 = vmor %vm191_vm8, %vm192_vm7 }
 0x119   :  { %v188_v44 = vsub.f32 1.0, %v187_v42 }
 0x11a   :  { %v79_v43 = vmul.f32 %v1840_v37, %v78_v40  ;;  %v1818_v40 = vld [vmem:[%s2720_s3] ss:$0 sm:$0xff] }
 0x11b   :  { %v189_v48 = vmul.f32 %v1842_v41, %v188_v44 }
 0x11c   :  { %v80_v45 = vadd.f32 %v1840_v37, %v79_v43 }
 0x11d   :  { %v190_v53 = vadd.f32 %v1842_v41, %v189_v48 }
 0x11e   :  { %v84_v49 = vsel %vm83_vm5, %v1840_v37, %v80_v45 }
 0x11f   :  { %v89_v52 = vsel %vm86_vm6, %v88_v50, %v84_v49  ;;  %v194_v57 = vsel %vm193_vm9, %v1842_v41, %v190_v53 }
 0x120   :  { %v199_v59 = vsel %vm196_vm10, %v198_v58, %v194_v57  ;;  %v96_v1 = vmul.f32 %v94_v0, %v89_v52  ;;  %vm335_vm10 = vcmp.gt.s32.totalorder %v2075_v62, 1 }
 0x121   :  { %v206_v5 = vmul.f32 %v204_v4, %v199_v59 }
 0x176   :  { %v99_v51 = vpop.permute.xlu1 %98 }
 0x177   :  { %v101_v54 = vmul.f32 %v99_v51, %v89_v52 }
 0x179   :  { %103 = vrot.lane.b32.xlu0 %v101_v54, %s1961_s22 }
 0x17e   :  { %v209_v60 = vpop.permute.xlu1 %208 }
 0x17f   :  { %v211_v61 = vmul.f32 %v209_v60, %v199_v59 }
 0x181   :  { %213 = vrot.lane.b32.xlu1 %v211_v61, %s1961_s22 }
 0x189   :  { %116 = vperm.xlu1 %1812, %v114_v63  }
 0x191   :  { %229 = vrot.lane.b32.xlu1 %v2026_v8, %s1964_s11 }
 0x1eb   :  { %v104_v2 = vpop.permute.xlu0 %103 }
 0x1ec   :  { %v106_v3 = vadd.f32 %v104_v2, %v96_v1 }
 0x1ee   :  { %1843 = vtanh.f32 %v106_v3 }
 0x1f3   :  { %v214_v6 = vpop.permute.xlu1 %213 }
 0x1f4   :  { %v1844_v9 = vpop.eup %1843  ;;  %v216_v10 = vadd.f32 %v214_v6, %v206_v5 }
 0x1f5   :  { %109 = vrot.lane.b32.xlu2 %v1844_v9, %s1962_s7 }
 0x1f6   :  { %1845 = vtanh.f32 %v216_v10 }
 0x1fb   :  { %v2088_v13 = vpop.permute.xlu1 %116 }
 0x1fc   :  { %v1846_v12 = vpop.eup %1845  ;;  %vm2726_vm14 = vcmp.eq.s32.totalorder %v2088_v13, 1 }
 0x1fd   :  { %219 = vrot.lane.b32.xlu0 %v1846_v12, %s1962_s7  ;;  %226 = vperm.xlu2 %1813, %v224_v11   ;;  %v123_v21 = vsel %vm2726_vm14, %v106_v3, %v94_v0 }
 0x203   :  { %v230_v16 = vpop.permute.xlu1 %229 }
 0x205   :  { %119 = vrot.lane.b32.xlu0 %v2022_v7, %s1964_s11 }
 0x24f   :  { %v110_v8 = vpop.permute.xlu2 %109 }
 0x250   :  { %v2099_v19 = vmul.f32 %v110_v8, %v89_v52 }
 0x257   :  { %v2090_v14 = vpop.permute.xlu2 %226 }
 0x258   :  { %vm2725_vm13 = vcmp.eq.s32.totalorder %v2090_v14, 1 }
 0x259   :  { %v233_v24 = vsel %vm2725_vm13, %v216_v10, %v204_v4 }
 0x26f   :  { %v220_v15 = vpop.permute.xlu0 %219 }
 0x270   :  { %v2092_v17 = vmul.f32 %v220_v15, %v199_v59 }
 0x272   :  { %v232_v18 = vsel %vm2725_vm13, %v2092_v17, %v230_v16  ;;  %v336_v16 = vsel %vm335_vm10, 1, %v1963_v38 }
 0x273   :  { %236 = vrot.lane.b32.xlu0 %v232_v18, %s1961_s22 }
 0x277   :  { %v120_v7 = vpop.permute.xlu0 %119 }
 0x278   :  { %v122_v20 = vsel %vm2726_vm14, %v2099_v19, %v120_v7 }
 0x279   :  { %126 = vrot.lane.b32.xlu2 %v122_v20, %s1961_s22 }
 0x27b   :  { %131 = vrot.lane.b32.xlu0 %v123_v21, %s1964_s11 }
 0x2d3   :  { %v127_v22 = vpop.permute.xlu2 %126 }
 0x2d4   :  { %129 = vst.msk [vmem:[#allocation2] sm:$0xff] %vm23_vm0, %v127_v22 }
 0x2db   :  { %v2110_v23 = vld [vmem:[#allocation2] sm:$0xff] }
 0x2dc   :  { %257 = vrot.lane.b32.xlu1 %v2110_v23, %s1960_s9 }
 0x2e4   :  { %241 = vrot.lane.b32.xlu1 %v233_v24, %s1964_s11 }
 0x2e5   :  { %v237_v25 = vpop.permute.xlu0 %236 }
 0x2e6   :  { %239 = vst.msk [vmem:[#allocation4] sm:$0xff] %vm23_vm0, %v237_v25  ;;  %v447_v25 = vsel %vm446_vm11, 1, %v1963_v38  ;;  %vm557_vm11 = vcmp.gt.s32.totalorder %v2075_v62, 2 }
 0x2ed   :  { %v132_v26 = vpop.permute.xlu0 %131  ;;  %v2118_v27 = vld [vmem:[#allocation4] sm:$0xff] }
 0x2ee   :  { %134 = vst.msk [vmem:[#allocation3] sm:$0xff] %vm23_vm0, %v132_v26  ;;  %368 = vrot.lane.b32.xlu2 %v2118_v27, %s1960_s9 }
 0x2f5   :  { %v255_v28 = vld [vmem:[#allocation3] sm:$0xff] }
 0x2f6   :  { %315 = vrot.lane.b32.xlu1 %v255_v28, %s1961_s22 }
 0x348   :  { %v369_v30 = vpop.permute.xlu2 %368 }
 0x349   :  { %v371_v31 = vsel %vm36_vm1, %v1756_v29, %v369_v30 }
 0x34a   :  { %1757 = vmatmul.msk.f32.vlgmr.msra.gmra.mxu3 %vm48_vm2, %v371_v31 }
 0x34e   :  { %v258_v33 = vpop.permute.xlu1 %257 }
 0x34f   :  { %v260_v34 = vsel %vm36_vm1, %v1752_v32, %v258_v33 }
 0x350   :  { %1753 = vmatmul.msk.f32.vlgmr.msra.gmra.mxu2 %vm48_vm2, %v260_v34 }
 0x356   :  { %v242_v35 = vpop.permute.xlu1 %241 }
 0x357   :  { %244 = vst.msk [vmem:[#allocation5] sm:$0xff] %vm23_vm0, %v242_v35 }
 0x35e   :  { %v366_v45 = vld [vmem:[#allocation5] sm:$0xff] }
 0x368   :  { %v316_v18 = vpop.permute.xlu1 %315 }
 0x3cd   :  { %v402_v37 = vpop.f32.mrf.mxu3 }
 0x3ce   :  { %v403_v39 = vadd.f32 %v1817_v36, %v402_v37 }
 0x3d0   :  { %1847 = vtanh.f32 %v403_v39  ;;  %v1758_v49 = vmul.f32 -1.442695, %v403_v39 }
 0x3d3   :  { %v291_v41 = vpop.f32.mrf.mxu2 }
 0x3d4   :  { %v292_v42 = vadd.f32 %v1818_v40, %v291_v41 }
 0x3d6   :  { %v1848_v43 = vpop.eup %1847  ;;  %1849 = vtanh.f32 %v292_v42  ;;  %v1754_v46 = vmul.f32 -1.442695, %v292_v42 }
 0x3d7   :  { %431 = vrot.lane.b32.xlu0 %v1848_v43, %s1962_s7 }
 0x3d8   :  { %1851 = vpow2.f32 %v1754_v46 }
 0x3dc   :  { %v1850_v44 = vpop.eup %1849 }
 0x3dd   :  { %320 = vrot.lane.b32.xlu2 %v1850_v44, %s1962_s7 }
 0x3de   :  { %v1852_v47 = vpop.eup %1851 }
 0x3df   :  { %v297_v48 = vadd.f32 1.0, %v1852_v47 }
 0x3e1   :  { %1853 = vrcp.f32 %v297_v48  ;;  %v309_v57 = vand.u32 2147483648, %v297_v48  ;;  %vm303_vm3 = vweird.f32 %v297_v48  ;;  %v307_v58 = vand.u32 2147483647, %v297_v48 }
 0x3e2   :  { %1855 = vpow2.f32 %v1758_v49 }
 0x3e3   :  { %v310_v61 = vor.u32 1.1754944e-38, %v309_v57  ;;  %vm308_vm5 = vcmp.eq.f32.partialorder %v307_v58, 8.507059e+37  ;;  %v1820_v58 = vld [vmem:[%s2720_s3] ss:$0 sm:$0xff] }
 0x3e5   :  { %426 = vrot.lane.b32.xlu2 %v366_v45, %s1961_s22 }
 0x3e7   :  { %v1854_v50 = vpop.eup %1853 }
 0x3e8   :  { %v299_v51 = vmul.f32 %v1854_v50, %v297_v48  ;;  %v1856_v52 = vpop.eup %1855  ;;  %vm304_vm15 = vweird.f32 %v1854_v50  ;;  %v2195_v48 = vld [vmem:[%s2721_s1 + $0x28] sm:$0xff] }
 0x3e9   :  { %v408_v54 = vadd.f32 1.0, %v1856_v52  ;;  %vm305_vm4 = vmor %vm303_vm3, %vm304_vm15 }
 0x3ea   :  { %v300_v53 = vsub.f32 1.0, %v299_v51  ;;  %v2203_v51 = vld [vmem:[%s2721_s1 + $0x10] sm:$0xff] }
 0x3eb   :  { %1857 = vrcp.f32 %v408_v54  ;;  %v420_v6 = vand.u32 2147483648, %v408_v54  ;;  %vm414_vm7 = vweird.f32 %v408_v54  ;;  %v418_v9 = vand.u32 2147483647, %v408_v54 }
 0x3ec   :  { %v301_v55 = vmul.f32 %v1854_v50, %v300_v53 }
 0x3ed   :  { %v421_v11 = vor.u32 1.1754944e-38, %v420_v6  ;;  %vm419_vm9 = vcmp.eq.f32.partialorder %v418_v9, 8.507059e+37 }
 0x3ee   :  { %v302_v56 = vadd.f32 %v1854_v50, %v301_v55  ;;  %v1819_v55 = vld [vmem:[%s2722_s5] ss:$0 sm:$0xff] }
 0x3f0   :  { %v306_v60 = vsel %vm305_vm4, %v1854_v50, %v302_v56 }
 0x3f1   :  { %v1858_v59 = vpop.eup %1857  ;;  %v311_v1 = vsel %vm308_vm5, %v310_v61, %v306_v60 }
 0x3f2   :  { %v410_v63 = vmul.f32 %v1858_v59, %v408_v54  ;;  %vm415_vm6 = vweird.f32 %v1858_v59  ;;  %v318_v7 = vmul.f32 %v316_v18, %v311_v1 }
 0x3f3   :  { %vm416_vm8 = vmor %vm414_vm7, %vm415_vm6 }
 0x3f4   :  { %v411_v3 = vsub.f32 1.0, %v410_v63 }
 0x3f6   :  { %v412_v4 = vmul.f32 %v1858_v59, %v411_v3 }
 0x3f8   :  { %v413_v5 = vadd.f32 %v1858_v59, %v412_v4 }
 0x3fa   :  { %v417_v10 = vsel %vm416_vm8, %v1858_v59, %v413_v5 }
 0x3fb   :  { %v422_v12 = vsel %vm419_vm9, %v421_v11, %v417_v10 }
 0x437   :  { %v321_v0 = vpop.permute.xlu2 %320 }
 0x438   :  { %v323_v2 = vmul.f32 %v321_v0, %v311_v1 }
 0x43a   :  { %325 = vrot.lane.b32.xlu0 %v323_v2, %s1961_s22 }
 0x43f   :  { %v427_v24 = vpop.permute.xlu2 %426 }
 0x440   :  { %v429_v26 = vmul.f32 %v427_v24, %v422_v12 }
 0x449   :  { %v432_v8 = vpop.permute.xlu0 %431 }
 0x44a   :  { %v434_v15 = vmul.f32 %v432_v8, %v422_v12 }
 0x44c   :  { %436 = vrot.lane.b32.xlu1 %v434_v15, %s1961_s22 }
 0x454   :  { %338 = vperm.xlu1 %1812, %v336_v16  }
 0x45c   :  { %452 = vrot.lane.b32.xlu1 %v2118_v27, %s1964_s11 }
 0x4ac   :  { %v326_v20 = vpop.permute.xlu0 %325 }
 0x4ad   :  { %v328_v21 = vadd.f32 %v326_v20, %v318_v7 }
 0x4af   :  { %1859 = vtanh.f32 %v328_v21 }
 0x4b5   :  { %v1860_v22 = vpop.eup %1859 }
 0x4b6   :  { %331 = vrot.lane.b32.xlu2 %v1860_v22, %s1962_s7 }
 0x4be   :  { %449 = vperm.xlu2 %1813, %v447_v25   ;;  %v437_v28 = vpop.permute.xlu1 %436 }
 0x4bf   :  { %v439_v29 = vadd.f32 %v437_v28, %v429_v26 }
 0x4c1   :  { %1861 = vtanh.f32 %v439_v29 }
 0x4c6   :  { %v2156_v31 = vpop.permute.xlu1 %338 }
 0x4c7   :  { %v1862_v30 = vpop.eup %1861  ;;  %vm340_vm15 = vcmp.eq.s32.totalorder %v2156_v31, 1 }
 0x4c8   :  { %442 = vrot.lane.b32.xlu0 %v1862_v30, %s1962_s7  ;;  %v345_v40 = vsel %vm340_vm15, %v328_v21, %v316_v18 }
 0x4ce   :  { %v453_v35 = vpop.permute.xlu1 %452 }
 0x4d0   :  { %341 = vrot.lane.b32.xlu0 %v2110_v23, %s1964_s11 }
 0x510   :  { %v332_v27 = vpop.permute.xlu2 %331 }
 0x511   :  { %v2167_v37 = vmul.f32 %v332_v27, %v311_v1 }
 0x518   :  { %v2158_v32 = vpop.permute.xlu2 %449 }
 0x519   :  { %vm451_vm12 = vcmp.eq.s32.totalorder %v2158_v32, 1 }
 0x51a   :  { %v456_v43 = vsel %vm451_vm12, %v439_v29, %v427_v24 }
 0x53a   :  { %v443_v33 = vpop.permute.xlu0 %442 }
 0x53b   :  { %v2160_v34 = vmul.f32 %v443_v33, %v422_v12 }
 0x53d   :  { %v455_v36 = vsel %vm451_vm12, %v2160_v34, %v453_v35 }
 0x53e   :  { %459 = vrot.lane.b32.xlu0 %v455_v36, %s1961_s22 }
 0x542   :  { %v342_v23 = vpop.permute.xlu0 %341 }
 0x543   :  { %v344_v39 = vsel %vm340_vm15, %v2167_v37, %v342_v23 }
 0x544   :  { %348 = vrot.lane.b32.xlu2 %v344_v39, %s1961_s22 }
 0x546   :  { %353 = vrot.lane.b32.xlu0 %v345_v40, %s1964_s11  ;;  %v558_v40 = vsel %vm557_vm11, 1, %v1963_v38 }
 0x59e   :  { %v349_v41 = vpop.permute.xlu2 %348 }
 0x59f   :  { %351 = vst.msk [vmem:[#allocation2] sm:$0xff] %vm23_vm0, %v349_v41 }
 0x5a6   :  { %v2178_v42 = vld [vmem:[#allocation2] sm:$0xff] }
 0x5a7   :  { %479 = vrot.lane.b32.xlu1 %v2178_v42, %s1960_s9 }
 0x5af   :  { %464 = vrot.lane.b32.xlu1 %v456_v43, %s1964_s11 }
 0x5b0   :  { %v460_v44 = vpop.permute.xlu0 %459 }
 0x5b1   :  { %462 = vst.msk [vmem:[#allocation4] sm:$0xff] %vm23_vm0, %v460_v44 }
 0x5b8   :  { %v354_v45 = vpop.permute.xlu0 %353  ;;  %v2186_v46 = vld [vmem:[#allocation4] sm:$0xff] }
 0x5b9   :  { %356 = vst.msk [vmem:[#allocation3] sm:$0xff] %vm23_vm0, %v354_v45  ;;  %590 = vrot.lane.b32.xlu2 %v2186_v46, %s1960_s9 }
 0x5c0   :  { %v477_v47 = vld [vmem:[#allocation3] sm:$0xff] }
 0x5c1   :  { %537 = vrot.lane.b32.xlu1 %v477_v47, %s1961_s22 }
 0x613   :  { %v591_v49 = vpop.permute.xlu2 %590 }
 0x614   :  { %v593_v50 = vsel %vm36_vm1, %v2195_v48, %v591_v49 }
 0x615   :  { %1765 = vmatmul.msk.f32.vlgmr.msrb.gmra.mxu1 %vm48_vm2, %v593_v50 }
 0x619   :  { %v480_v52 = vpop.permute.xlu1 %479 }
 0x61a   :  { %v482_v53 = vsel %vm36_vm1, %v2203_v51, %v480_v52 }
 0x61b   :  { %1761 = vmatmul.msk.f32.vlgmr.msrb.gmra.mxu0 %vm48_vm2, %v482_v53 }
 0x621   :  { %v465_v54 = vpop.permute.xlu1 %464 }
 0x622   :  { %467 = vst.msk [vmem:[#allocation5] sm:$0xff] %vm23_vm0, %v465_v54 }
 0x629   :  { %v588_v0 = vld [vmem:[#allocation5] sm:$0xff] }
 0x633   :  { %v538_v41 = vpop.permute.xlu1 %537 }
 0x692   :  { %v624_v56 = vpop.f32.mrf.mxu1 }
 0x693   :  { %v625_v57 = vadd.f32 %v1819_v55, %v624_v56 }
 0x695   :  { %1863 = vtanh.f32 %v625_v57  ;;  %v1766_v4 = vmul.f32 -1.442695, %v625_v57 }
 0x698   :  { %v513_v59 = vpop.f32.mrf.mxu0 }
 0x699   :  { %v514_v60 = vadd.f32 %v1820_v58, %v513_v59 }
 0x69b   :  { %v1864_v61 = vpop.eup %1863  ;;  %1865 = vtanh.f32 %v514_v60  ;;  %v1762_v1 = vmul.f32 -1.442695, %v514_v60 }
 0x69c   :  { %653 = vrot.lane.b32.xlu0 %v1864_v61, %s1962_s7 }
 0x69d   :  { %1867 = vpow2.f32 %v1762_v1 }
 0x6a1   :  { %v1866_v63 = vpop.eup %1865 }
 0x6a2   :  { %542 = vrot.lane.b32.xlu2 %v1866_v63, %s1962_s7 }
 0x6a3   :  { %v1868_v2 = vpop.eup %1867 }
 0x6a4   :  { %v519_v3 = vadd.f32 1.0, %v1868_v2 }
 0x6a6   :  { %1869 = vrcp.f32 %v519_v3  ;;  %v531_v15 = vand.u32 2147483648, %v519_v3  ;;  %vm525_vm4 = vweird.f32 %v519_v3  ;;  %v529_v16 = vand.u32 2147483647, %v519_v3 }
 0x6a7   :  { %1871 = vpow2.f32 %v1766_v4 }
 0x6a8   :  { %v532_v20 = vor.u32 1.1754944e-38, %v531_v15  ;;  %vm530_vm6 = vcmp.eq.f32.partialorder %v529_v16, 8.507059e+37  ;;  %v2277_v15 = vld [vmem:[%s2721_s1 + $0x18] sm:$0xff] }
 0x6aa   :  { %648 = vrot.lane.b32.xlu2 %v588_v0, %s1961_s22 }
 0x6ac   :  { %v1870_v5 = vpop.eup %1869 }
 0x6ad   :  { %v521_v6 = vmul.f32 %v1870_v5, %v519_v3  ;;  %v1872_v9 = vpop.eup %1871  ;;  %vm526_vm3 = vweird.f32 %v1870_v5 }
 0x6ae   :  { %v630_v11 = vadd.f32 1.0, %v1872_v9  ;;  %vm527_vm5 = vmor %vm525_vm4, %vm526_vm3  ;;  %vm668_vm3 = vcmp.gt.s32.totalorder %v2075_v62, 5 }
 0x6af   :  { %v522_v10 = vsub.f32 1.0, %v521_v6  ;;  %v669_v50 = vsel %vm668_vm3, 1, %v1963_v38 }
 0x6b0   :  { %1873 = vrcp.f32 %v630_v11  ;;  %v642_v30 = vand.u32 2147483648, %v630_v11  ;;  %vm636_vm8 = vweird.f32 %v630_v11  ;;  %v640_v27 = vand.u32 2147483647, %v630_v11 }
 0x6b1   :  { %v523_v12 = vmul.f32 %v1870_v5, %v522_v10 }
 0x6b2   :  { %v643_v35 = vor.u32 1.1754944e-38, %v642_v30  ;;  %vm641_vm10 = vcmp.eq.f32.partialorder %v640_v27, 8.507059e+37 }
 0x6b3   :  { %v524_v8 = vadd.f32 %v1870_v5, %v523_v12 }
 0x6b5   :  { %v528_v7 = vsel %vm527_vm5, %v1870_v5, %v524_v8 }
 0x6b6   :  { %v1874_v18 = vpop.eup %1873  ;;  %v533_v24 = vsel %vm530_vm6, %v532_v20, %v528_v7  ;;  %v1821_v20 = vld [vmem:[%s2722_s5] ss:$0 sm:$0xff] }
 0x6b7   :  { %v632_v21 = vmul.f32 %v1874_v18, %v630_v11  ;;  %vm637_vm7 = vweird.f32 %v1874_v18  ;;  %v540_v43 = vmul.f32 %v538_v41, %v533_v24  ;;  %v2269_v11 = vld [vmem:[%s2721_s1 + $0x20] sm:$0xff] }
 0x6b8   :  { %vm638_vm9 = vmor %vm636_vm8, %vm637_vm7 }
 0x6b9   :  { %v633_v26 = vsub.f32 1.0, %v632_v21 }
 0x6bb   :  { %v634_v28 = vmul.f32 %v1874_v18, %v633_v26 }
 0x6bd   :  { %v635_v29 = vadd.f32 %v1874_v18, %v634_v28 }
 0x6bf   :  { %v639_v33 = vsel %vm638_vm9, %v1874_v18, %v635_v29 }
 0x6c0   :  { %v644_v36 = vsel %vm641_vm10, %v643_v35, %v639_v33 }
 0x6fc   :  { %v543_v22 = vpop.permute.xlu2 %542 }
 0x6fd   :  { %v545_v25 = vmul.f32 %v543_v22, %v533_v24 }
 0x6ff   :  { %547 = vrot.lane.b32.xlu0 %v545_v25, %s1961_s22 }
 0x704   :  { %v649_v49 = vpop.permute.xlu2 %648 }
 0x705   :  { %v651_v52 = vmul.f32 %v649_v49, %v644_v36 }
 0x70e   :  { %v654_v23 = vpop.permute.xlu0 %653 }
 0x70f   :  { %v656_v39 = vmul.f32 %v654_v23, %v644_v36 }
 0x711   :  { %658 = vrot.lane.b32.xlu1 %v656_v39, %s1961_s22 }
 0x719   :  { %560 = vperm.xlu1 %1812, %v558_v40  }
 0x721   :  { %674 = vrot.lane.b32.xlu1 %v2186_v46, %s1964_s11 }
 0x771   :  { %v548_v44 = vpop.permute.xlu0 %547 }
 0x772   :  { %v550_v45 = vadd.f32 %v548_v44, %v540_v43 }
 0x774   :  { %1875 = vtanh.f32 %v550_v45 }
 0x77a   :  { %v1876_v47 = vpop.eup %1875 }
 0x77b   :  { %553 = vrot.lane.b32.xlu2 %v1876_v47, %s1962_s7 }
 0x783   :  { %671 = vperm.xlu2 %1813, %v669_v50   ;;  %v659_v53 = vpop.permute.xlu1 %658 }
 0x784   :  { %v661_v54 = vadd.f32 %v659_v53, %v651_v52 }
 0x786   :  { %1877 = vtanh.f32 %v661_v54 }
 0x78b   :  { %v2230_v56 = vpop.permute.xlu1 %560 }
 0x78c   :  { %v1878_v55 = vpop.eup %1877  ;;  %vm562_vm5 = vcmp.eq.s32.totalorder %v2230_v56, 1 }
 0x78d   :  { %664 = vrot.lane.b32.xlu0 %v1878_v55, %s1962_s7  ;;  %v567_v1 = vsel %vm562_vm5, %v550_v45, %v538_v41 }
 0x793   :  { %v675_v60 = vpop.permute.xlu1 %674 }
 0x795   :  { %563 = vrot.lane.b32.xlu0 %v2178_v42, %s1964_s11 }
 0x7d5   :  { %v554_v46 = vpop.permute.xlu2 %553 }
 0x7d6   :  { %v2241_v63 = vmul.f32 %v554_v46, %v533_v24  ;;  %v1822_v24 = vld [vmem:[%s2720_s3] ss:$0 sm:$0xff] }
 0x7dd   :  { %v2232_v57 = vpop.permute.xlu2 %671 }
 0x7de   :  { %vm673_vm4 = vcmp.eq.s32.totalorder %v2232_v57, 1 }
 0x7df   :  { %v678_v4 = vsel %vm673_vm4, %v661_v54, %v649_v49 }
 0x7ff   :  { %v665_v58 = vpop.permute.xlu0 %664 }
 0x800   :  { %v2234_v59 = vmul.f32 %v665_v58, %v644_v36 }
 0x802   :  { %v677_v61 = vsel %vm673_vm4, %v2234_v59, %v675_v60 }
 0x803   :  { %681 = vrot.lane.b32.xlu0 %v677_v61, %s1961_s22 }
 0x807   :  { %v564_v42 = vpop.permute.xlu0 %563 }
 0x808   :  { %v566_v0 = vsel %vm562_vm5, %v2241_v63, %v564_v42 }
 0x809   :  { %570 = vrot.lane.b32.xlu2 %v566_v0, %s1961_s22 }
 0x80b   :  { %575 = vrot.lane.b32.xlu0 %v567_v1, %s1964_s11 }
 0x863   :  { %v571_v2 = vpop.permute.xlu2 %570 }
 0x864   :  { %573 = vst.msk [vmem:[#allocation2] sm:$0xff] %vm23_vm0, %v571_v2 }
 0x86b   :  { %v2252_v3 = vld [vmem:[#allocation2] sm:$0xff] }
 0x86c   :  { %701 = vrot.lane.b32.xlu1 %v2252_v3, %s1960_s9 }
 0x874   :  { %686 = vrot.lane.b32.xlu1 %v678_v4, %s1964_s11 }
 0x875   :  { %v682_v5 = vpop.permute.xlu0 %681 }
 0x876   :  { %684 = vst.msk [vmem:[#allocation4] sm:$0xff] %vm23_vm0, %v682_v5 }
 0x87d   :  { %v576_v6 = vpop.permute.xlu0 %575  ;;  %v2260_v9 = vld [vmem:[#allocation4] sm:$0xff] }
 0x87e   :  { %578 = vst.msk [vmem:[#allocation3] sm:$0xff] %vm23_vm0, %v576_v6  ;;  %812 = vrot.lane.b32.xlu2 %v2260_v9, %s1960_s9 }
 0x885   :  { %v699_v10 = vld [vmem:[#allocation3] sm:$0xff] }
 0x886   :  { %759 = vrot.lane.b32.xlu1 %v699_v10, %s1961_s22 }
 0x8d8   :  { %v813_v12 = vpop.permute.xlu2 %812 }
 0x8d9   :  { %v815_v8 = vsel %vm36_vm1, %v2269_v11, %v813_v12 }
 0x8da   :  { %1773 = vmatmul.msk.f32.vlgmr.msrb.gmra.mxu3 %vm48_vm2, %v815_v8 }
 0x8de   :  { %v702_v16 = vpop.permute.xlu1 %701 }
 0x8df   :  { %v704_v18 = vsel %vm36_vm1, %v2277_v15, %v702_v16 }
 0x8e0   :  { %1769 = vmatmul.msk.f32.vlgmr.msrb.gmra.mxu2 %vm48_vm2, %v704_v18 }
 0x8e6   :  { %v687_v7 = vpop.permute.xlu1 %686 }
 0x8e7   :  { %689 = vst.msk [vmem:[#allocation5] sm:$0xff] %vm23_vm0, %v687_v7 }
 0x8ee   :  { %v810_v30 = vld [vmem:[#allocation5] sm:$0xff] }
 0x8f8   :  { %v760_v8 = vpop.permute.xlu1 %759 }
 0x95d   :  { %v846_v21 = vpop.f32.mrf.mxu3 }
 0x95e   :  { %v847_v22 = vadd.f32 %v1821_v20, %v846_v21 }
 0x960   :  { %1879 = vtanh.f32 %v847_v22  ;;  %v1774_v36 = vmul.f32 -1.442695, %v847_v22 }
 0x963   :  { %v735_v25 = vpop.f32.mrf.mxu2 }
 0x964   :  { %v736_v26 = vadd.f32 %v1822_v24, %v735_v25 }
 0x966   :  { %v1880_v28 = vpop.eup %1879  ;;  %1881 = vtanh.f32 %v736_v26  ;;  %v1770_v27 = vmul.f32 -1.442695, %v736_v26 }
 0x967   :  { %875 = vrot.lane.b32.xlu0 %v1880_v28, %s1962_s7 }
 0x968   :  { %1883 = vpow2.f32 %v1770_v27 }
 0x96c   :  { %v1882_v29 = vpop.eup %1881 }
 0x96d   :  { %764 = vrot.lane.b32.xlu2 %v1882_v29, %s1962_s7 }
 0x96e   :  { %v1884_v33 = vpop.eup %1883 }
 0x96f   :  { %v741_v35 = vadd.f32 1.0, %v1884_v33 }
 0x971   :  { %1885 = vrcp.f32 %v741_v35  ;;  %v753_v47 = vand.u32 2147483648, %v741_v35  ;;  %vm747_vm7 = vweird.f32 %v741_v35  ;;  %v751_v49 = vand.u32 2147483647, %v741_v35 }
 0x972   :  { %1887 = vpow2.f32 %v1774_v36 }
 0x973   :  { %v754_v53 = vor.u32 1.1754944e-38, %v753_v47  ;;  %vm752_vm9 = vcmp.eq.f32.partialorder %v751_v49, 8.507059e+37  ;;  %v1031_v47 = vld [vmem:[%s2719_s4 + $0x10] sm:$0xff] }
 0x975   :  { %870 = vrot.lane.b32.xlu2 %v810_v30, %s1961_s22 }
 0x977   :  { %v1886_v23 = vpop.eup %1885 }
 0x978   :  { %v743_v39 = vmul.f32 %v1886_v23, %v741_v35  ;;  %v1888_v40 = vpop.eup %1887  ;;  %vm748_vm6 = vweird.f32 %v1886_v23 }
 0x979   :  { %v852_v43 = vadd.f32 1.0, %v1888_v40  ;;  %vm749_vm8 = vmor %vm747_vm7, %vm748_vm6  ;;  %vm779_vm7 = vcmp.gt.s32.totalorder %v2075_v62, 3  ;;  %v1034_v40 = vld [vmem:[%s2719_s4 + $0x28] sm:$0xff] }
 0x97a   :  { %v744_v41 = vsub.f32 1.0, %v743_v39  ;;  %v780_v12 = vsel %vm779_vm7, 1, %v1963_v38  ;;  %1052 = vmatpush.msra.mxu1 %v1034_v40  ;;  %1258 = vmatpush.msra.mxu3 %v1034_v40 }
 0x97b   :  { %1889 = vrcp.f32 %v852_v43  ;;  %v864_v0 = vand.u32 2147483648, %v852_v43  ;;  %vm858_vm11 = vweird.f32 %v852_v43  ;;  %v862_v1 = vand.u32 2147483647, %v852_v43 }
 0x97c   :  { %v745_v44 = vmul.f32 %v1886_v23, %v744_v41  ;;  %v1033_v41 = vld [vmem:[%s2719_s4 + $0x20] sm:$0xff] }
 0x97d   :  { %v865_v4 = vor.u32 1.1754944e-38, %v864_v0  ;;  %vm863_vm6 = vcmp.eq.f32.partialorder %v862_v1, 8.507059e+37  ;;  %1053 = vmatpush.msra.mxu1 %v1033_v41  ;;  %1259 = vmatpush.msra.mxu3 %v1033_v41  ;;  %v926_v0 = vld [vmem:[%s2718_s2] sm:$0xff] }
 0x97e   :  { %v746_v45 = vadd.f32 %v1886_v23, %v745_v44  ;;  %v930_v44 = vld [vmem:[%s2718_s2 + $0x20] sm:$0xff] }
 0x980   :  { %v750_v52 = vsel %vm749_vm8, %v1886_v23, %v746_v45  ;;  %vm890_vm8 = vcmp.gt.s32.totalorder %v2075_v62, 4  ;;  %v1032_v45 = vld [vmem:[%s2719_s4 + $0x18] sm:$0xff] }
 0x981   :  { %v1890_v50 = vpop.eup %1889  ;;  %v755_v46 = vsel %vm752_vm9, %v754_v53, %v750_v52  ;;  %v891_v22 = vsel %vm890_vm8, 1, %v1963_v38  ;;  %1054 = vmatpush.msra.mxu1 %v1032_v45  ;;  %1260 = vmatpush.msra.mxu3 %v1032_v45 }
 0x982   :  { %v854_v54 = vmul.f32 %v1890_v50, %v852_v43  ;;  %vm859_vm10 = vweird.f32 %v1890_v50  ;;  %v762_v16 = vmul.f32 %v760_v8, %v755_v46  ;;  %v931_v43 = vld [vmem:[%s2718_s2 + $0x28] sm:$0xff] }
 0x983   :  { %vm860_vm3 = vmor %vm858_vm11, %vm859_vm10  ;;  %949 = vmatpush.msra.mxu0 %v931_v43  ;;  %1155 = vmatpush.msra.mxu2 %v931_v43 }
 0x984   :  { %v855_v60 = vsub.f32 1.0, %v854_v54  ;;  %1055 = vmatpush.msra.mxu1 %v1031_v47  ;;  %1261 = vmatpush.msra.mxu3 %v1031_v47 }
 0x985   :  { %950 = vmatpush.msra.mxu0 %v930_v44  ;;  %1156 = vmatpush.msra.mxu2 %v930_v44 }
 0x986   :  { %v856_v61 = vmul.f32 %v1890_v50, %v855_v60  ;;  %v1029_v60 = vld [vmem:[%s2719_s4] sm:$0xff] }
 0x988   :  { %v857_v42 = vadd.f32 %v1890_v50, %v856_v61  ;;  %v928_v61 = vld [vmem:[%s2718_s2 + $0x10] sm:$0xff] }
 0x98a   :  { %v861_v2 = vsel %vm860_vm3, %v1890_v50, %v857_v42  ;;  %v1030_v50 = vld [vmem:[%s2719_s4 + $0x8] sm:$0xff] }
 0x98b   :  { %v866_v5 = vsel %vm863_vm6, %v865_v4, %v861_v2  ;;  %1056 = vmatpush.msra.mxu1 %v1030_v50  ;;  %1262 = vmatpush.msra.mxu3 %v1030_v50  ;;  %v927_v42 = vld [vmem:[%s2718_s2 + $0x8] sm:$0xff] }
 0x98d   :  { %1057 = vmatpush.msra.mxu1 %v1029_v60  ;;  %1263 = vmatpush.msra.mxu3 %v1029_v60 }
 0x98f   :  { %1464 = vmatpush.msrb.mxu1 %v1034_v40  ;;  %1670 = vmatpush.msrb.mxu3 %v1034_v40 }
 0x991   :  { %1465 = vmatpush.msrb.mxu1 %v1033_v41  ;;  %1671 = vmatpush.msrb.mxu3 %v1033_v41 }
 0x993   :  { %1466 = vmatpush.msrb.mxu1 %v1032_v45  ;;  %1672 = vmatpush.msrb.mxu3 %v1032_v45 }
 0x995   :  { %1467 = vmatpush.msrb.mxu1 %v1031_v47  ;;  %1673 = vmatpush.msrb.mxu3 %v1031_v47 }
 0x997   :  { %1468 = vmatpush.msrb.mxu1 %v1030_v50  ;;  %1674 = vmatpush.msrb.mxu3 %v1030_v50 }
 0x999   :  { %1469 = vmatpush.msrb.mxu1 %v1029_v60  ;;  %1675 = vmatpush.msrb.mxu3 %v1029_v60 }
 0x9c7   :  { %v765_v55 = vpop.permute.xlu2 %764 }
 0x9c8   :  { %v767_v58 = vmul.f32 %v765_v55, %v755_v46 }
 0x9ca   :  { %769 = vrot.lane.b32.xlu0 %v767_v58, %s1961_s22  ;;  %v929_v58 = vld [vmem:[%s2718_s2 + $0x18] sm:$0xff] }
 0x9cb   :  { %951 = vmatpush.msra.mxu0 %v929_v58  ;;  %1157 = vmatpush.msra.mxu2 %v929_v58 }
 0x9cd   :  { %952 = vmatpush.msra.mxu0 %v928_v61  ;;  %1158 = vmatpush.msra.mxu2 %v928_v61 }
 0x9cf   :  { %v871_v21 = vpop.permute.xlu2 %870  ;;  %953 = vmatpush.msra.mxu0 %v927_v42  ;;  %1159 = vmatpush.msra.mxu2 %v927_v42 }
 0x9d0   :  { %v873_v24 = vmul.f32 %v871_v21, %v866_v5 }
 0x9d1   :  { %954 = vmatpush.msra.mxu0 %v926_v0  ;;  %1160 = vmatpush.msra.mxu2 %v926_v0 }
 0x9d3   :  { %1361 = vmatpush.msrb.mxu0 %v931_v43  ;;  %1567 = vmatpush.msrb.mxu2 %v931_v43 }
 0x9d5   :  { %1362 = vmatpush.msrb.mxu0 %v930_v44  ;;  %1568 = vmatpush.msrb.mxu2 %v930_v44 }
 0x9d7   :  { %1363 = vmatpush.msrb.mxu0 %v929_v58  ;;  %1569 = vmatpush.msrb.mxu2 %v929_v58 }
 0x9d9   :  { %v876_v6 = vpop.permute.xlu0 %875  ;;  %1364 = vmatpush.msrb.mxu0 %v928_v61  ;;  %1570 = vmatpush.msrb.mxu2 %v928_v61 }
 0x9da   :  { %v878_v10 = vmul.f32 %v876_v6, %v866_v5 }
 0x9db   :  { %1365 = vmatpush.msrb.mxu0 %v927_v42  ;;  %1571 = vmatpush.msrb.mxu2 %v927_v42 }
 0x9dc   :  { %880 = vrot.lane.b32.xlu1 %v878_v10, %s1961_s22  ;;  %v1823_v10 = vld [vmem:[%s2722_s5] ss:$0 sm:$0xff] }
 0x9dd   :  { %1366 = vmatpush.msrb.mxu0 %v926_v0  ;;  %1572 = vmatpush.msrb.mxu2 %v926_v0 }
 0x9e4   :  { %782 = vperm.xlu1 %1812, %v780_v12  }
 0x9ec   :  { %896 = vrot.lane.b32.xlu1 %v2260_v9, %s1964_s11 }
 0xa3c   :  { %v770_v18 = vpop.permute.xlu0 %769 }
 0xa3d   :  { %v772_v7 = vadd.f32 %v770_v18, %v762_v16 }
 0xa3f   :  { %1891 = vtanh.f32 %v772_v7 }
 0xa45   :  { %v1892_v20 = vpop.eup %1891 }
 0xa46   :  { %775 = vrot.lane.b32.xlu2 %v1892_v20, %s1962_s7 }
 0xa4e   :  { %893 = vperm.xlu2 %1813, %v891_v22   ;;  %v881_v25 = vpop.permute.xlu1 %880 }
 0xa4f   :  { %v883_v26 = vadd.f32 %v881_v25, %v873_v24 }
 0xa51   :  { %1893 = vtanh.f32 %v883_v26 }
 0xa56   :  { %v2304_v29 = vpop.permute.xlu1 %782 }
 0xa57   :  { %v1894_v28 = vpop.eup %1893  ;;  %vm2727_vm10 = vcmp.eq.s32.totalorder %v2304_v29, 1 }
 0xa58   :  { %886 = vrot.lane.b32.xlu0 %v1894_v28, %s1962_s7  ;;  %v789_v23 = vsel %vm2727_vm10, %v772_v7, %v760_v8 }
 0xa5e   :  { %v897_v38 = vpop.permute.xlu1 %896 }
 0xa60   :  { %785 = vrot.lane.b32.xlu0 %v2252_v3, %s1964_s11 }
 0xaa0   :  { %v776_v9 = vpop.permute.xlu2 %775 }
 0xaa1   :  { %v2315_v35 = vmul.f32 %v776_v9, %v755_v46 }
 0xaa8   :  { %v2306_v30 = vpop.permute.xlu2 %893 }
 0xaa9   :  { %vm895_vm9 = vcmp.eq.s32.totalorder %v2306_v30, 1  ;;  %v457_v30 = vsel %vm451_vm12, %v2160_v34, 0.0 }
 0xaaa   :  { %v900_v52 = vsel %vm895_vm9, %v883_v26, %v871_v21 }
 0xaca   :  { %v887_v62 = vpop.permute.xlu0 %886 }
 0xacb   :  { %v2308_v27 = vmul.f32 %v887_v62, %v866_v5 }
 0xacd   :  { %v899_v33 = vsel %vm895_vm9, %v2308_v27, %v897_v38 }
 0xace   :  { %903 = vrot.lane.b32.xlu0 %v899_v33, %s1961_s22 }
 0xad2   :  { %v786_v3 = vpop.permute.xlu0 %785 }
 0xad3   :  { %v788_v36 = vsel %vm2727_vm10, %v2315_v35, %v786_v3 }
 0xad4   :  { %792 = vrot.lane.b32.xlu2 %v788_v36, %s1961_s22 }
 0xad6   :  { %797 = vrot.lane.b32.xlu0 %v789_v23, %s1964_s11 }
 0xb2e   :  { %v793_v39 = vpop.permute.xlu2 %792 }
 0xb2f   :  { %795 = vst.msk [vmem:[#allocation2] sm:$0xff] %vm23_vm0, %v793_v39 }
 0xb36   :  { %v2344_v49 = vld [vmem:[#allocation2] sm:$0xff] }
 0xb37   :  { %922 = vrot.lane.b32.xlu1 %v2344_v49, %s1960_s9 }
 0xb3f   :  { %908 = vrot.lane.b32.xlu1 %v900_v52, %s1964_s11 }
 0xb40   :  { %v904_v53 = vpop.permute.xlu0 %903 }
 0xb41   :  { %906 = vst.msk [vmem:[#allocation4] sm:$0xff] %vm23_vm0, %v904_v53 }
 0xb48   :  { %v798_v54 = vpop.permute.xlu0 %797  ;;  %v2355_v55 = vld [vmem:[#allocation4] sm:$0xff] }
 0xb49   :  { %800 = vst.msk [vmem:[#allocation3] sm:$0xff] %vm23_vm0, %v798_v54  ;;  %1025 = vrot.lane.b32.xlu2 %v2355_v55, %s1960_s9 }
 0xb50   :  { %v920_v46 = vld [vmem:[#allocation3] sm:$0xff] }
 0xb51   :  { %980 = vrot.lane.b32.xlu1 %v920_v46, %s1961_s22 }
 0xba3   :  { %v1026_v1 = vpop.permute.xlu2 %1025 }
 0xba4   :  { %v1028_v2 = vsel %vm36_vm1, %v2277_v15, %v1026_v1  ;;  %v1824_v15 = vld [vmem:[%s2720_s3] ss:$0 sm:$0xff] }
 0xba5   :  { %1781 = vmatmul.msk.f32.vlgmr.msra.gmra.mxu1 %vm48_vm2, %v1028_v2 }
 0xba9   :  { %v923_v4 = vpop.permute.xlu1 %922 }
 0xbaa   :  { %v925_v5 = vsel %vm36_vm1, %v2269_v11, %v923_v4 }
 0xbab   :  { %1777 = vmatmul.msk.f32.vlgmr.msra.gmra.mxu0 %vm48_vm2, %v925_v5 }
 0xbb1   :  { %v909_v6 = vpop.permute.xlu1 %908 }
 0xbb2   :  { %911 = vst.msk [vmem:[#allocation5] sm:$0xff] %vm23_vm0, %v909_v6 }
 0xbb9   :  { %v1023_v20 = vld [vmem:[#allocation5] sm:$0xff] }
 0xbc3   :  { %v981_v1 = vpop.permute.xlu1 %980 }
 0xc22   :  { %v1059_v12 = vpop.f32.mrf.mxu1 }
 0xc23   :  { %v1060_v8 = vadd.f32 %v1823_v10, %v1059_v12 }
 0xc25   :  { %1895 = vtanh.f32 %v1060_v8  ;;  %v1782_v25 = vmul.f32 -1.442695, %v1060_v8 }
 0xc28   :  { %v956_v16 = vpop.f32.mrf.mxu0 }
 0xc29   :  { %v957_v18 = vadd.f32 %v1824_v15, %v956_v16 }
 0xc2b   :  { %v1896_v7 = vpop.eup %1895  ;;  %1897 = vtanh.f32 %v957_v18  ;;  %v1778_v21 = vmul.f32 -1.442695, %v957_v18 }
 0xc2c   :  { %1088 = vrot.lane.b32.xlu0 %v1896_v7, %s1962_s7 }
 0xc2d   :  { %1899 = vpow2.f32 %v1778_v21 }
 0xc31   :  { %v1898_v11 = vpop.eup %1897 }
 0xc32   :  { %985 = vrot.lane.b32.xlu2 %v1898_v11, %s1962_s7 }
 0xc33   :  { %v1900_v22 = vpop.eup %1899 }
 0xc34   :  { %v962_v24 = vadd.f32 1.0, %v1900_v22 }
 0xc36   :  { %1901 = vrcp.f32 %v962_v24  ;;  %v974_v36 = vand.u32 2147483648, %v962_v24  ;;  %vm968_vm3 = vweird.f32 %v962_v24  ;;  %v972_v23 = vand.u32 2147483647, %v962_v24 }
 0xc37   :  { %1903 = vpow2.f32 %v1782_v25 }
 0xc38   :  { %v975_v41 = vor.u32 1.1754944e-38, %v974_v36  ;;  %vm973_vm7 = vcmp.eq.f32.partialorder %v972_v23, 8.507059e+37 }
 0xc3a   :  { %1083 = vrot.lane.b32.xlu2 %v1023_v20, %s1961_s22 }
 0xc3c   :  { %v1902_v26 = vpop.eup %1901 }
 0xc3d   :  { %v964_v28 = vmul.f32 %v1902_v26, %v962_v24  ;;  %v1904_v9 = vpop.eup %1903  ;;  %vm969_vm11 = vweird.f32 %v1902_v26 }
 0xc3e   :  { %v1065_v38 = vadd.f32 1.0, %v1904_v9  ;;  %vm970_vm6 = vmor %vm968_vm3, %vm969_vm11 }
 0xc3f   :  { %v965_v62 = vsub.f32 1.0, %v964_v28 }
 0xc40   :  { %1905 = vrcp.f32 %v1065_v38  ;;  %v1077_v54 = vand.u32 2147483648, %v1065_v38  ;;  %vm1071_vm13 = vweird.f32 %v1065_v38  ;;  %v1075_v46 = vand.u32 2147483647, %v1065_v38 }
 0xc41   :  { %v966_v33 = vmul.f32 %v1902_v26, %v965_v62 }
 0xc42   :  { %v1078_v60 = vor.u32 1.1754944e-38, %v1077_v54  ;;  %vm1076_vm11 = vcmp.eq.f32.partialorder %v1075_v46, 8.507059e+37 }
 0xc43   :  { %v967_v3 = vadd.f32 %v1902_v26, %v966_v33 }
 0xc45   :  { %v971_v40 = vsel %vm970_vm6, %v1902_v26, %v967_v3 }
 0xc46   :  { %v1906_v39 = vpop.eup %1905  ;;  %v976_v45 = vsel %vm973_vm7, %v975_v41, %v971_v40  ;;  %v1825_v41 = vld [vmem:[%s2720_s3] ss:$0 sm:$0xff] }
 0xc47   :  { %v1067_v43 = vmul.f32 %v1906_v39, %v1065_v38  ;;  %vm1072_vm8 = vweird.f32 %v1906_v39  ;;  %v983_v2 = vmul.f32 %v981_v1, %v976_v45 }
 0xc48   :  { %vm1073_vm14 = vmor %vm1071_vm13, %vm1072_vm8 }
 0xc49   :  { %v1068_v50 = vsub.f32 1.0, %v1067_v43 }
 0xc4b   :  { %v1069_v52 = vmul.f32 %v1906_v39, %v1068_v50 }
 0xc4d   :  { %v1070_v53 = vadd.f32 %v1906_v39, %v1069_v52 }
 0xc4f   :  { %v1074_v58 = vsel %vm1073_vm14, %v1906_v39, %v1070_v53 }
 0xc50   :  { %v1079_v61 = vsel %vm1076_vm11, %v1078_v60, %v1074_v58 }
 0xc8c   :  { %v986_v44 = vpop.permute.xlu2 %985 }
 0xc8d   :  { %v988_v47 = vmul.f32 %v986_v44, %v976_v45 }
 0xc8f   :  { %990 = vrot.lane.b32.xlu0 %v988_v47, %s1961_s22  ;;  %v1826_v47 = vld [vmem:[%s2722_s5] ss:$0 sm:$0xff] }
 0xc94   :  { %v1084_v10 = vpop.permute.xlu2 %1083 }
 0xc95   :  { %v1086_v12 = vmul.f32 %v1084_v10, %v1079_v61 }
 0xc9e   :  { %v1089_v42 = vpop.permute.xlu0 %1088 }
 0xc9f   :  { %v1091_v0 = vmul.f32 %v1089_v42, %v1079_v61 }
 0xca1   :  { %1093 = vrot.lane.b32.xlu1 %v1091_v0, %s1961_s22 }
 0xca9   :  { %1000 = vrot.lane.b32.xlu1 %v2344_v49, %s1964_s11 }
 0xd01   :  { %v991_v4 = vpop.permute.xlu0 %990 }
 0xd02   :  { %v993_v5 = vadd.f32 %v991_v4, %v983_v2 }
 0xd04   :  { %1907 = vtanh.f32 %v993_v5  ;;  %v1004_v24 = vsel %vm895_vm9, %v993_v5, %v981_v1 }
 0xd0a   :  { %v1908_v6 = vpop.eup %1907 }
 0xd0b   :  { %996 = vrot.lane.b32.xlu2 %v1908_v6, %s1962_s7 }
 0xd13   :  { %1103 = vrot.lane.b32.xlu2 %v2355_v55, %s1964_s11  ;;  %v1094_v8 = vpop.permute.xlu1 %1093 }
 0xd14   :  { %v1096_v15 = vadd.f32 %v1094_v8, %v1086_v12 }
 0xd16   :  { %1909 = vtanh.f32 %v1096_v15  ;;  %v1107_v28 = vsel %vm2727_vm10, %v1096_v15, %v1084_v10 }
 0xd1b   :  { %v1001_v7 = vpop.permute.xlu1 %1000 }
 0xd1c   :  { %v1910_v16 = vpop.eup %1909 }
 0xd1d   :  { %1099 = vrot.lane.b32.xlu0 %v1910_v16, %s1962_s7 }
 0xd65   :  { %v997_v49 = vpop.permute.xlu2 %996 }
 0xd66   :  { %v2400_v18 = vmul.f32 %v997_v49, %v976_v45 }
 0xd68   :  { %v1003_v11 = vsel %vm895_vm9, %v2400_v18, %v1001_v7 }
 0xd69   :  { %1007 = vrot.lane.b32.xlu0 %v1003_v11, %s1961_s22 }
 0xd6d   :  { %v1104_v55 = vpop.permute.xlu2 %1103 }
 0xd8f   :  { %v1100_v20 = vpop.permute.xlu0 %1099 }
 0xd90   :  { %v2406_v21 = vmul.f32 %v1100_v20, %v1079_v61 }
 0xd92   :  { %v1106_v22 = vsel %vm2727_vm10, %v2406_v21, %v1104_v55 }
 0xd93   :  { %1110 = vrot.lane.b32.xlu1 %v1106_v22, %s1961_s22 }
 0xd9b   :  { %1012 = vrot.lane.b32.xlu1 %v1004_v24, %s1964_s11 }
 0xddb   :  { %v1008_v25 = vpop.permute.xlu0 %1007 }
 0xddc   :  { %1010 = vst.msk [vmem:[#allocation2] sm:$0xff] %vm23_vm0, %v1008_v25 }
 0xde3   :  { %v2416_v26 = vld [vmem:[#allocation2] sm:$0xff] }
 0xde4   :  { %1128 = vrot.lane.b32.xlu2 %v2416_v26, %s1960_s9 }
 0xdec   :  { %1115 = vrot.lane.b32.xlu2 %v1107_v28, %s1964_s11 }
 0xe05   :  { %v1111_v9 = vpop.permute.xlu1 %1110 }
 0xe06   :  { %1113 = vst.msk [vmem:[#allocation4] sm:$0xff] %vm23_vm0, %v1111_v9 }
 0xe0d   :  { %v1013_v62 = vpop.permute.xlu1 %1012  ;;  %v2424_v38 = vld [vmem:[#allocation4] sm:$0xff] }
 0xe0e   :  { %1015 = vst.msk [vmem:[#allocation3] sm:$0xff] %vm23_vm0, %v1013_v62  ;;  %1231 = vrot.lane.b32.xlu0 %v2424_v38, %s1960_s9 }
 0xe15   :  { %v1126_v33 = vld [vmem:[#allocation3] sm:$0xff] }
 0xe16   :  { %1186 = vrot.lane.b32.xlu2 %v1126_v33, %s1961_s22 }
 0xe3e   :  { %v1129_v3 = vpop.permute.xlu2 %1128 }
 0xe3f   :  { %v1131_v36 = vsel %vm36_vm1, %v2195_v48, %v1129_v3 }
 0xe40   :  { %1785 = vmatmul.msk.f32.vlgmr.msra.gmra.mxu2 %vm48_vm2, %v1131_v36 }
 0xe46   :  { %v1116_v23 = vpop.permute.xlu2 %1115 }
 0xe47   :  { %1118 = vst.msk [vmem:[#allocation5] sm:$0xff] %vm23_vm0, %v1116_v23 }
 0xe4e   :  { %v1229_v48 = vld [vmem:[#allocation5] sm:$0xff] }
 0xe70   :  { %v1187_v3 = vpop.permute.xlu2 %1186 }
 0xe80   :  { %v1232_v39 = vpop.permute.xlu0 %1231 }
 0xe81   :  { %v1234_v40 = vsel %vm36_vm1, %v2203_v51, %v1232_v39 }
 0xe82   :  { %1789 = vmatmul.msk.f32.vlgmr.msra.gmra.mxu3 %vm48_vm2, %v1234_v40 }
 0xec3   :  { %v1162_v43 = vpop.f32.mrf.mxu2 }
 0xec4   :  { %v1163_v44 = vadd.f32 %v1825_v41, %v1162_v43 }
 0xec6   :  { %1911 = vtanh.f32 %v1163_v44  ;;  %v1786_v53 = vmul.f32 -1.442695, %v1163_v44 }
 0xecc   :  { %v1912_v45 = vpop.eup %1911 }
 0xecd   :  { %1191 = vrot.lane.b32.xlu0 %v1912_v45, %s1962_s7 }
 0xed5   :  { %1289 = vrot.lane.b32.xlu0 %v1229_v48, %s1961_s22 }
 0xf05   :  { %v1265_v51 = vpop.f32.mrf.mxu3 }
 0xf06   :  { %v1266_v50 = vadd.f32 %v1826_v47, %v1265_v51 }
 0xf08   :  { %1913 = vtanh.f32 %v1266_v50  ;;  %v1790_v8 = vmul.f32 -1.442695, %v1266_v50 }
 0xf09   :  { %1915 = vpow2.f32 %v1786_v53 }
 0xf0e   :  { %v1914_v52 = vpop.eup %1913 }
 0xf0f   :  { %1294 = vrot.lane.b32.xlu1 %v1914_v52, %s1962_s7  ;;  %v1916_v54 = vpop.eup %1915 }
 0xf10   :  { %v1168_v46 = vadd.f32 1.0, %v1916_v54 }
 0xf12   :  { %1917 = vrcp.f32 %v1168_v46  ;;  %v1180_v1 = vand.u32 2147483648, %v1168_v46  ;;  %vm1174_vm14 = vweird.f32 %v1168_v46  ;;  %v1178_v2 = vand.u32 2147483647, %v1168_v46 }
 0xf13   :  { %1919 = vpow2.f32 %v1790_v8 }
 0xf14   :  { %v1181_v5 = vor.u32 1.1754944e-38, %v1180_v1  ;;  %vm1179_vm6 = vcmp.eq.f32.partialorder %v1178_v2, 8.507059e+37 }
 0xf18   :  { %v1918_v58 = vpop.eup %1917 }
 0xf19   :  { %v1170_v60 = vmul.f32 %v1918_v58, %v1168_v46  ;;  %vm1175_vm13 = vweird.f32 %v1918_v58  ;;  %v1920_v15 = vpop.eup %1919 }
 0xf1a   :  { %vm1176_vm3 = vmor %vm1174_vm14, %vm1175_vm13  ;;  %v1271_v16 = vadd.f32 1.0, %v1920_v15 }
 0xf1b   :  { %v1171_v61 = vsub.f32 1.0, %v1170_v60 }
 0xf1c   :  { %1921 = vrcp.f32 %v1271_v16  ;;  %v1283_v22 = vand.u32 2147483648, %v1271_v16  ;;  %vm1277_vm8 = vweird.f32 %v1271_v16  ;;  %v1281_v24 = vand.u32 2147483647, %v1271_v16 }
 0xf1d   :  { %v1172_v42 = vmul.f32 %v1918_v58, %v1171_v61 }
 0xf1e   :  { %v1284_v28 = vor.u32 1.1754944e-38, %v1283_v22  ;;  %vm1282_vm13 = vcmp.eq.f32.partialorder %v1281_v24, 8.507059e+37 }
 0xf1f   :  { %v1173_v0 = vadd.f32 %v1918_v58, %v1172_v42 }
 0xf21   :  { %v1177_v4 = vsel %vm1176_vm3, %v1918_v58, %v1173_v0 }
 0xf22   :  { %v1182_v6 = vsel %vm1179_vm6, %v1181_v5, %v1177_v4  ;;  %v1922_v49 = vpop.eup %1921  ;;  %v1792_v4 = vld [vmem:[%s2721_s1 + $0x30] sm:$0xff] }
 0xf23   :  { %v1273_v7 = vmul.f32 %v1922_v49, %v1271_v16  ;;  %vm1278_vm7 = vweird.f32 %v1922_v49  ;;  %v1189_v36 = vmul.f32 %v1187_v3, %v1182_v6  ;;  %v1827_v16 = vld [vmem:[%s2720_s3] ss:$0 sm:$0xff] }
 0xf24   :  { %vm1279_vm11 = vmor %vm1277_vm8, %vm1278_vm7 }
 0xf25   :  { %v1274_v11 = vsub.f32 1.0, %v1273_v7 }
 0xf27   :  { %v1275_v20 = vmul.f32 %v1922_v49, %v1274_v11 }
 0xf29   :  { %v1276_v55 = vadd.f32 %v1922_v49, %v1275_v20  ;;  %v1828_v20 = vld [vmem:[%s2722_s5] ss:$0 sm:$0xff] }
 0xf2b   :  { %v1280_v25 = vsel %vm1279_vm11, %v1922_v49, %v1276_v55 }
 0xf2c   :  { %v1285_v9 = vsel %vm1282_vm13, %v1284_v28, %v1280_v25 }
 0xf3f   :  { %v1192_v10 = vpop.permute.xlu0 %1191 }
 0xf40   :  { %v1194_v12 = vmul.f32 %v1192_v10, %v1182_v6 }
 0xf42   :  { %1196 = vrot.lane.b32.xlu1 %v1194_v12, %s1961_s22  ;;  %v1796_v12 = vld [vmem:[%s2721_s1 + $0x8] sm:$0xff] }
 0xf47   :  { %v1290_v41 = vpop.permute.xlu0 %1289 }
 0xf48   :  { %v1292_v43 = vmul.f32 %v1290_v41, %v1285_v9 }
 0xf81   :  { %v1295_v62 = vpop.permute.xlu1 %1294 }
 0xf82   :  { %v1297_v33 = vmul.f32 %v1295_v62, %v1285_v9 }
 0xf84   :  { %1299 = vrot.lane.b32.xlu2 %v1297_v33, %s1961_s22 }
 0xf8c   :  { %1206 = vrot.lane.b32.xlu2 %v2416_v26, %s1964_s11 }
 0xfb4   :  { %v1197_v23 = vpop.permute.xlu1 %1196 }
 0xfb5   :  { %v1199_v39 = vadd.f32 %v1197_v23, %v1189_v36 }
 0xfb7   :  { %1923 = vtanh.f32 %v1199_v39  ;;  %v1210_v46 = vsel %vm673_vm4, %v1199_v39, %v1187_v3 }
 0xfbd   :  { %v1924_v40 = vpop.eup %1923 }
 0xfbe   :  { %1202 = vrot.lane.b32.xlu0 %v1924_v40, %s1962_s7 }
 0xfc6   :  { %1309 = vrot.lane.b32.xlu0 %v2424_v38, %s1964_s11 }
 0xfde   :  { %v1300_v44 = vpop.permute.xlu2 %1299 }
 0xfdf   :  { %v1302_v45 = vadd.f32 %v1300_v44, %v1292_v43 }
 0xfe1   :  { %1925 = vtanh.f32 %v1302_v45  ;;  %v1313_v61 = vsel %vm562_vm5, %v1302_v45, %v1290_v41 }
 0xfe6   :  { %v1207_v51 = vpop.permute.xlu2 %1206 }
 0xfe7   :  { %v1926_v48 = vpop.eup %1925 }
 0xfe8   :  { %1305 = vrot.lane.b32.xlu1 %v1926_v48, %s1962_s7 }
0x1030   :  { %v1203_v26 = vpop.permute.xlu0 %1202 }
0x1031   :  { %v2454_v47 = vmul.f32 %v1203_v26, %v1182_v6 }
0x1033   :  { %v1209_v50 = vsel %vm673_vm4, %v2454_v47, %v1207_v51 }
0x1034   :  { %1213 = vrot.lane.b32.xlu1 %v1209_v50, %s1961_s22 }
0x1038   :  { %v1310_v53 = vpop.permute.xlu0 %1309 }
0x105a   :  { %v1306_v52 = vpop.permute.xlu1 %1305 }
0x105b   :  { %v2460_v38 = vmul.f32 %v1306_v52, %v1285_v9 }
0x105d   :  { %v1312_v54 = vsel %vm562_vm5, %v2460_v38, %v1310_v53  ;;  %v1314_v57 = vsel %vm562_vm5, %v2460_v38, 0.0 }
0x105e   :  { %1316 = vrot.lane.b32.xlu2 %v1312_v54, %s1961_s22 }
0x1066   :  { %1218 = vrot.lane.b32.xlu2 %v1210_v46, %s1964_s11 }
0x10a6   :  { %v1214_v58 = vpop.permute.xlu1 %1213 }
0x10a7   :  { %1216 = vst.msk [vmem:[#allocation2] sm:$0xff] %vm23_vm0, %v1214_v58 }
0x10ae   :  { %v2470_v60 = vld [vmem:[#allocation2] sm:$0xff] }
0x10af   :  { %1334 = vrot.lane.b32.xlu0 %v2470_v60, %s1960_s9 }
0x10b7   :  { %1321 = vrot.lane.b32.xlu0 %v1313_v61, %s1964_s11 }
0x10b8   :  { %v1317_v42 = vpop.permute.xlu2 %1316 }
0x10b9   :  { %1319 = vst.msk [vmem:[#allocation4] sm:$0xff] %vm23_vm0, %v1317_v42 }
0x10c0   :  { %v1219_v0 = vpop.permute.xlu2 %1218  ;;  %v2478_v1 = vld [vmem:[#allocation4] sm:$0xff] }
0x10c1   :  { %1221 = vst.msk [vmem:[#allocation3] sm:$0xff] %vm23_vm0, %v1219_v0  ;;  %1437 = vrot.lane.b32.xlu1 %v2478_v1, %s1960_s9 }
0x10c8   :  { %v1332_v2 = vld [vmem:[#allocation3] sm:$0xff] }
0x10c9   :  { %1392 = vrot.lane.b32.xlu0 %v1332_v2, %s1961_s22 }
0x1121   :  { %v1335_v5 = vpop.permute.xlu0 %1334 }
0x1122   :  { %v1337_v6 = vsel %vm36_vm1, %v1792_v4, %v1335_v5 }
0x1123   :  { %1793 = vmatmul.msk.f32.vlgmr.msrb.gmra.mxu0 %vm48_vm2, %v1337_v6 }
0x1129   :  { %v1322_v10 = vpop.permute.xlu0 %1321 }
0x112a   :  { %1324 = vst.msk [vmem:[#allocation5] sm:$0xff] %vm23_vm0, %v1322_v10 }
0x1131   :  { %v1435_v55 = vld [vmem:[#allocation5] sm:$0xff] }
0x1133   :  { %v1438_v8 = vpop.permute.xlu1 %1437 }
0x1134   :  { %v1440_v15 = vsel %vm36_vm1, %v1796_v12, %v1438_v8 }
0x1135   :  { %1797 = vmatmul.msk.f32.vlgmr.msrb.gmra.mxu1 %vm48_vm2, %v1440_v15 }
0x113b   :  { %v1393_v12 = vpop.permute.xlu0 %1392 }
0x11a0   :  { %v1368_v49 = vpop.f32.mrf.mxu0 }
0x11a1   :  { %v1369_v7 = vadd.f32 %v1827_v16, %v1368_v49 }
0x11a3   :  { %1927 = vtanh.f32 %v1369_v7  ;;  %v1794_v9 = vmul.f32 -1.442695, %v1369_v7 }
0x11a9   :  { %v1928_v11 = vpop.eup %1927 }
0x11aa   :  { %1397 = vrot.lane.b32.xlu1 %v1928_v11, %s1962_s7 }
0x11b2   :  { %1495 = vrot.lane.b32.xlu1 %v1435_v55, %s1961_s22  ;;  %v1471_v22 = vpop.f32.mrf.mxu1 }
0x11b3   :  { %v1472_v24 = vadd.f32 %v1828_v20, %v1471_v22 }
0x11b5   :  { %1929 = vtanh.f32 %v1472_v24  ;;  %v1798_v28 = vmul.f32 -1.442695, %v1472_v24 }
0x11b7   :  { %1931 = vpow2.f32 %v1798_v28 }
0x11b8   :  { %1933 = vpow2.f32 %v1794_v9 }
0x11bb   :  { %v1930_v25 = vpop.eup %1929 }
0x11bc   :  { %1500 = vrot.lane.b32.xlu2 %v1930_v25, %s1962_s7 }
0x11bd   :  { %v1932_v62 = vpop.eup %1931 }
0x11be   :  { %v1477_v33 = vadd.f32 1.0, %v1932_v62  ;;  %v1934_v3 = vpop.eup %1933 }
0x11bf   :  { %v1374_v36 = vadd.f32 1.0, %v1934_v3 }
0x11c0   :  { %1935 = vrcp.f32 %v1477_v33  ;;  %v1489_v26 = vand.u32 2147483648, %v1477_v33  ;;  %vm1483_vm3 = vweird.f32 %v1477_v33  ;;  %v1487_v51 = vand.u32 2147483647, %v1477_v33 }
0x11c1   :  { %1937 = vrcp.f32 %v1374_v36  ;;  %v1386_v61 = vand.u32 2147483648, %v1374_v36  ;;  %vm1380_vm11 = vweird.f32 %v1374_v36  ;;  %v1384_v0 = vand.u32 2147483647, %v1374_v36 }
0x11c2   :  { %v1490_v53 = vor.u32 1.1754944e-38, %v1489_v26  ;;  %vm1488_vm7 = vcmp.eq.f32.partialorder %v1487_v51, 8.507059e+37  ;;  %v1639_v51 = vld [vmem:[%s2721_s1] sm:$0xff] }
0x11c3   :  { %v1387_v4 = vor.u32 1.1754944e-38, %v1386_v61  ;;  %vm1385_vm10 = vcmp.eq.f32.partialorder %v1384_v0, 8.507059e+37  ;;  %v1830_v61 = vld [vmem:[%s2722_s5] ss:$0 sm:$0xff] }
0x11c6   :  { %v1936_v23 = vpop.eup %1935 }
0x11c7   :  { %v1479_v39 = vmul.f32 %v1936_v23, %v1477_v33  ;;  %v1938_v40 = vpop.eup %1937  ;;  %vm1484_vm14 = vweird.f32 %v1936_v23 }
0x11c8   :  { %v1376_v43 = vmul.f32 %v1938_v40, %v1374_v36  ;;  %vm1485_vm6 = vmor %vm1483_vm3, %vm1484_vm14  ;;  %vm1381_vm8 = vweird.f32 %v1938_v40  ;;  %vm2728_vm3 = vcmp.eq.s32.totalorder %v2088_v13, 1 }
0x11c9   :  { %v1480_v41 = vsub.f32 1.0, %v1479_v39  ;;  %vm1382_vm13 = vmor %vm1380_vm11, %vm1381_vm8 }
0x11ca   :  { %v1377_v45 = vsub.f32 1.0, %v1376_v43 }
0x11cb   :  { %v1481_v44 = vmul.f32 %v1936_v23, %v1480_v41 }
0x11cc   :  { %v1378_v50 = vmul.f32 %v1938_v40, %v1377_v45  ;;  %v1800_v45 = vld [vmem:[%s2721_s1 + $0x38] sm:$0xff] }
0x11cd   :  { %v1482_v48 = vadd.f32 %v1936_v23, %v1481_v44 }
0x11ce   :  { %v1379_v54 = vadd.f32 %v1938_v40, %v1378_v50 }
0x11cf   :  { %v1486_v52 = vsel %vm1485_vm6, %v1936_v23, %v1482_v48 }
0x11d0   :  { %v1491_v58 = vsel %vm1488_vm7, %v1490_v53, %v1486_v52  ;;  %v1383_v2 = vsel %vm1382_vm13, %v1938_v40, %v1379_v54  ;;  %v1829_v54 = vld [vmem:[%s2720_s3] ss:$0 sm:$0xff]  ;;  %vm2729_vm13 = vcmp.eq.s32.totalorder %v2090_v14, 1 }
0x11d1   :  { %v1388_v5 = vsel %vm1385_vm10, %v1387_v4, %v1383_v2 }
0x11d2   :  { %v1395_v8 = vmul.f32 %v1393_v12, %v1388_v5 }
0x1216   :  { %v1501_v46 = vpop.permute.xlu2 %1500 }
0x1217   :  { %v1503_v42 = vmul.f32 %v1501_v46, %v1491_v58 }
0x1219   :  { %1505 = vrot.lane.b32.xlu0 %v1503_v42, %s1961_s22 }
0x121c   :  { %v1398_v6 = vpop.permute.xlu1 %1397 }
0x121d   :  { %v1400_v10 = vmul.f32 %v1398_v6, %v1388_v5 }
0x121f   :  { %1402 = vrot.lane.b32.xlu2 %v1400_v10, %s1961_s22 }
0x1221   :  { %1412 = vrot.lane.b32.xlu0 %v2470_v60, %s1964_s11 }
0x1224   :  { %v1496_v7 = vpop.permute.xlu1 %1495 }
0x1225   :  { %v1498_v11 = vmul.f32 %v1496_v7, %v1491_v58 }
0x1279   :  { %v1403_v15 = vpop.permute.xlu2 %1402 }
0x127a   :  { %v1405_v16 = vadd.f32 %v1403_v15, %v1395_v8 }
0x127c   :  { %1939 = vtanh.f32 %v1405_v16  ;;  %v1416_v3 = vsel %vm451_vm12, %v1405_v16, %v1393_v12 }
0x1282   :  { %v1940_v49 = vpop.eup %1939 }
0x1283   :  { %1408 = vrot.lane.b32.xlu1 %v1940_v49, %s1962_s7 }
0x128b   :  { %v1506_v20 = vpop.permute.xlu0 %1505  ;;  %1515 = vrot.lane.b32.xlu1 %v2478_v1, %s1964_s11 }
0x128c   :  { %v1508_v55 = vadd.f32 %v1506_v20, %v1498_v11 }
0x128e   :  { %1941 = vtanh.f32 %v1508_v55  ;;  %v1519_v39 = vsel %vm340_vm15, %v1508_v55, %v1496_v7 }
0x1293   :  { %v1413_v25 = vpop.permute.xlu0 %1412 }
0x1294   :  { %v1942_v22 = vpop.eup %1941 }
0x1295   :  { %1511 = vrot.lane.b32.xlu2 %v1942_v22, %s1962_s7 }
0x12ef   :  { %v1512_v9 = vpop.permute.xlu2 %1511 }
0x12f0   :  { %v2518_v62 = vmul.f32 %v1512_v9, %v1491_v58 }
0x12f5   :  { %v1409_v60 = vpop.permute.xlu1 %1408 }
0x12f6   :  { %v2512_v24 = vmul.f32 %v1409_v60, %v1388_v5 }
0x12f8   :  { %v1415_v28 = vsel %vm451_vm12, %v2512_v24, %v1413_v25 }
0x12f9   :  { %1419 = vrot.lane.b32.xlu2 %v1415_v28, %s1961_s22 }
0x12fd   :  { %v1516_v33 = vpop.permute.xlu1 %1515 }
0x12fe   :  { %v1518_v1 = vsel %vm340_vm15, %v2518_v62, %v1516_v33 }
0x12ff   :  { %1522 = vrot.lane.b32.xlu0 %v1518_v1, %s1961_s22 }
0x1307   :  { %1424 = vrot.lane.b32.xlu0 %v1416_v3, %s1964_s11 }
0x1353   :  { %v1420_v36 = vpop.permute.xlu2 %1419 }
0x1354   :  { %1422 = vst.msk [vmem:[#allocation2] sm:$0xff] %vm23_vm0, %v1420_v36  ;;  %v124_v36 = vsel %vm2728_vm3, %v2099_v19, 0.0  ;;  %v234_v19 = vsel %vm2729_vm13, %v2092_v17, 0.0  ;;  %v1520_v17 = vsel %vm340_vm15, %v2518_v62, 0.0  ;;  %v679_v62 = vsel %vm673_vm4, %v2234_v59, 0.0 }
0x135b   :  { %v2528_v23 = vld [vmem:[#allocation2] sm:$0xff] }
0x135c   :  { %1540 = vrot.lane.b32.xlu1 %v2528_v23, %s1960_s9 }
0x1364   :  { %1527 = vrot.lane.b32.xlu1 %v1519_v39, %s1964_s11 }
0x1371   :  { %v1523_v40 = vpop.permute.xlu0 %1522 }
0x1372   :  { %1525 = vst.msk [vmem:[#allocation4] sm:$0xff] %vm23_vm0, %v1523_v40 }
0x1379   :  { %v1425_v41 = vpop.permute.xlu0 %1424  ;;  %v1640_v43 = vld [vmem:[#allocation4] sm:$0xff] }
0x137a   :  { %1427 = vst.msk [vmem:[#allocation3] sm:$0xff] %vm23_vm0, %v1425_v41  ;;  %1643 = vrot.lane.b32.xlu2 %v1640_v43, %s1960_s9 }
0x1381   :  { %v1538_v44 = vld [vmem:[#allocation3] sm:$0xff] }
0x1382   :  { %1598 = vrot.lane.b32.xlu1 %v1538_v44, %s1961_s22 }
0x13ce   :  { %v1541_v48 = vpop.permute.xlu1 %1540 }
0x13cf   :  { %v1543_v26 = vsel %vm36_vm1, %v1800_v45, %v1541_v48 }
0x13d0   :  { %1801 = vmatmul.msk.f32.vlgmr.msrb.gmra.mxu2 %vm48_vm2, %v1543_v26 }
0x13d4   :  { %v1644_v50 = vpop.permute.xlu2 %1643 }
0x13d5   :  { %v1646_v52 = vsel %vm36_vm1, %v1639_v51, %v1644_v50 }
0x13d6   :  { %1804 = vmatmul.msk.f32.vlgmr.msrb.gmra.mxu3 %vm48_vm2, %v1646_v52  ;;  %v1528_v53 = vpop.permute.xlu1 %1527 }
0x13d7   :  { %1530 = vst.msk [vmem:[#allocation5] sm:$0xff] %vm23_vm0, %v1528_v53  ;;  %v568_v53 = vsel %vm562_vm5, %v2241_v63, 0.0 }
0x13de   :  { %v1641_v5 = vld [vmem:[#allocation5] sm:$0xff] }
0x13f4   :  { %v1599_v63 = vpop.permute.xlu1 %1598 }
0x1453   :  { %v1574_v46 = vpop.f32.mrf.mxu2 }
0x1454   :  { %v1575_v58 = vadd.f32 %v1829_v54, %v1574_v46  ;;  %v901_v54 = vsel %vm895_vm9, %v2308_v27, 0.0 }
0x1456   :  { %1943 = vtanh.f32 %v1575_v58  ;;  %v1802_v6 = vmul.f32 -1.442695, %v1575_v58 }
0x1459   :  { %v1677_v42 = vpop.f32.mrf.mxu3 }
0x145a   :  { %v1678_v0 = vadd.f32 %v1830_v61, %v1677_v42 }
0x145c   :  { %v1944_v2 = vpop.eup %1943  ;;  %1945 = vtanh.f32 %v1678_v0  ;;  %v1805_v16 = vmul.f32 -1.442695, %v1678_v0 }
0x145d   :  { %1603 = vrot.lane.b32.xlu2 %v1944_v2, %s1962_s7  ;;  %1947 = vpow2.f32 %v1802_v6  ;;  %v1005_v6 = vsel %vm895_vm9, %v2400_v18, 0.0  ;;  %vm2732_vm9 = vmmov %vm2729_vm13 }
0x1462   :  { %v1946_v4 = vpop.eup %1945 }
0x1463   :  { %1706 = vrot.lane.b32.xlu0 %v1946_v4, %s1962_s7  ;;  %v1948_v10 = vpop.eup %1947 }
0x1464   :  { %v1580_v12 = vadd.f32 1.0, %v1948_v10  ;;  %v1417_v10 = vsel %vm451_vm12, %v2512_v24, 0.0 }
0x1465   :  { %1701 = vrot.lane.b32.xlu2 %v1641_v5, %s1961_s22 }
0x1466   :  { %1949 = vrcp.f32 %v1580_v12  ;;  %v1592_v20 = vand.u32 2147483648, %v1580_v12  ;;  %vm1586_vm2 = vweird.f32 %v1580_v12  ;;  %v1590_v22 = vand.u32 2147483647, %v1580_v12 }
0x1467   :  { %1951 = vpow2.f32 %v1805_v16 }
0x1468   :  { %v1593_v28 = vor.u32 1.1754944e-38, %v1592_v20  ;;  %vm1591_vm14 = vcmp.eq.f32.partialorder %v1590_v22, 8.507059e+37 }
0x146c   :  { %v1950_v8 = vpop.eup %1949 }
0x146d   :  { %1721 = vrot.lane.b32.xlu2 %v1640_v43, %s1964_s11  ;;  %v1582_v15 = vmul.f32 %v1950_v8, %v1580_v12  ;;  %vm1587_vm1 = vweird.f32 %v1950_v8  ;;  %v1952_v55 = vpop.eup %1951 }
0x146e   :  { %vm1588_vm10 = vmor %vm1586_vm2, %vm1587_vm1  ;;  %v1683_v25 = vadd.f32 1.0, %v1952_v55 }
0x146f   :  { %v1583_v49 = vsub.f32 1.0, %v1582_v15  ;;  %vm2733_vm1 = vmmov %vm2728_vm3 }
0x1470   :  { %1953 = vrcp.f32 %v1683_v25  ;;  %v1695_v44 = vand.u32 2147483648, %v1683_v25  ;;  %vm1689_vm7 = vweird.f32 %v1683_v25  ;;  %v1693_v45 = vand.u32 2147483647, %v1683_v25  ;;  %vm2734_vm2 = vmmov %vm2732_vm9 }
0x1471   :  { %v1584_v7 = vmul.f32 %v1950_v8, %v1583_v49  ;;  %vm2735_vm12 = vmmov %vm2734_vm2 }
0x1472   :  { %v1696_v26 = vor.u32 1.1754944e-38, %v1695_v44  ;;  %vm1694_vm11 = vcmp.eq.f32.partialorder %v1693_v45, 8.507059e+37 }
0x1473   :  { %v1585_v11 = vadd.f32 %v1950_v8, %v1584_v7 }
0x1475   :  { %v1589_v60 = vsel %vm1588_vm10, %v1950_v8, %v1585_v11  ;;  %vm2736_vm10 = vmmov %vm2733_vm1 }
0x1476   :  { %v2560_v33 = vsel %vm1591_vm14, %v1593_v28, %v1589_v60  ;;  %v1954_v3 = vpop.eup %1953  ;;  %vm2737_vm14 = vmmov %vm2733_vm1 }
0x1477   :  { %v1685_v39 = vmul.f32 %v1954_v3, %v1683_v25  ;;  %vm1690_vm6 = vweird.f32 %v1954_v3  ;;  %v1601_v46 = vmul.f32 %v1599_v63, %v2560_v33 }
0x1478   :  { %vm1691_vm8 = vmor %vm1689_vm7, %vm1690_vm6 }
0x1479   :  { %v1686_v40 = vsub.f32 1.0, %v1685_v39 }
0x147b   :  { %v1687_v41 = vmul.f32 %v1954_v3, %v1686_v40 }
0x147d   :  { %v1688_v43 = vadd.f32 %v1954_v3, %v1687_v41 }
0x147f   :  { %v1692_v48 = vsel %vm1691_vm8, %v1954_v3, %v1688_v43 }
0x1480   :  { %v2568_v51 = vsel %vm1694_vm11, %v1696_v26, %v1692_v48 }
0x14b7   :  { %v1604_v9 = vpop.permute.xlu2 %1603 }
0x14b8   :  { %v1606_v1 = vmul.f32 %v1604_v9, %v2560_v33 }
0x14ba   :  { %1608 = vrot.lane.b32.xlu0 %v1606_v1, %s1961_s22 }
0x14bf   :  { %v1702_v0 = vpop.permute.xlu2 %1701 }
0x14c0   :  { %v1704_v2 = vmul.f32 %v1702_v0, %v2568_v51 }
0x14c2   :  { %136 = vrot.lane.b32.xlu0 %v124_v36, %s1961_s22 }
0x14d5   :  { %v1707_v50 = vpop.permute.xlu0 %1706 }
0x14d6   :  { %v1709_v52 = vmul.f32 %v1707_v50, %v2568_v51 }
0x14d8   :  { %1711 = vrot.lane.b32.xlu1 %v1709_v52, %s1961_s22 }
0x14e0   :  { %1618 = vrot.lane.b32.xlu1 %v2528_v23, %s1964_s11  ;;  %v1211_v23 = vsel %vm673_vm4, %v2454_v47, 0.0  ;;  %v346_v47 = vsel %vm340_vm15, %v2167_v37, 0.0  ;;  %vm250_vm15 = vcmask 523520   ;;  %vm2730_vm4 = vcmp.eq.s32.totalorder %v2304_v29, 1  ;;  %v1722_v29 = vpop.permute.xlu2 %1721 }
0x14e1   :  { %v790_v56 = vsel %vm2730_vm4, %v2315_v35, 0.0  ;;  %vm2731_vm5 = vmmov %vm2730_vm4 }
0x14e2   :  { %v1108_v34 = vsel %vm2731_vm5, %v2406_v21, 0.0 }
0x14e8   :  { %246 = vrot.lane.b32.xlu1 %v234_v19, %s1962_s7 }
0x14f0   :  { %580 = vrot.lane.b32.xlu1 %v568_v53, %s1961_s22 }
0x14f8   :  { %913 = vrot.lane.b32.xlu1 %v901_v54, %s1962_s7 }
0x1500   :  { %1223 = vrot.lane.b32.xlu1 %v1211_v23, %s1961_s22 }
0x1508   :  { %1532 = vrot.lane.b32.xlu1 %v1520_v17, %s1962_s7 }
0x152c   :  { %v1609_v58 = vpop.permute.xlu0 %1608 }
0x152d   :  { %v1611_v61 = vadd.f32 %v1609_v58, %v1601_v46 }
0x152f   :  { %1955 = vtanh.f32 %v1611_v61  ;;  %v1622_v35 = vsel %vm2732_vm9, %v1611_v61, %v1599_v63 }
0x1534   :  { %v137_v27 = vpop.permute.xlu0 %136 }
0x1535   :  { %v1956_v42 = vpop.eup %1955  ;;  %139 = vst.msk [vmem:[%s2724_s6] sm:$0xff] %vm23_vm0, %v137_v27 }
0x1536   :  { %1614 = vrot.lane.b32.xlu2 %v1956_v42, %s1962_s7 }
0x153e   :  { %358 = vrot.lane.b32.xlu2 %v346_v47, %s1961_s22 }
0x1546   :  { %691 = vrot.lane.b32.xlu2 %v679_v62, %s1962_s7 }
0x154a   :  { %v1712_v4 = vpop.permute.xlu1 %1711 }
0x154b   :  { %v1714_v5 = vadd.f32 %v1712_v4, %v1704_v2 }
0x154d   :  { %1957 = vtanh.f32 %v1714_v5  ;;  %v1725_v12 = vsel %vm2733_vm1, %v1714_v5, %v1702_v0 }
0x154e   :  { %1017 = vrot.lane.b32.xlu2 %v1005_v6, %s1961_s22 }
0x1552   :  { %v1619_v31 = vpop.permute.xlu1 %1618 }
0x1553   :  { %v1958_v37 = vpop.eup %1957 }
0x1554   :  { %1717 = vrot.lane.b32.xlu0 %v1958_v37, %s1962_s7 }
0x1556   :  { %1326 = vrot.lane.b32.xlu2 %v1314_v57, %s1962_s7 }
0x155a   :  { %v247_v59 = vpop.permute.xlu1 %246 }
0x155b   :  { %1751 = vst.msk [vmem:[%s2724_s6 + $0x38] sm:$0xff] %vm250_vm15, %v247_v59 }
0x155c   :  { %469 = vrot.lane.b32.xlu0 %v457_v30, %s1962_s7 }
0x1562   :  { %v581_v18 = vpop.permute.xlu1 %580 }
0x1563   :  { %1763 = vst.msk [vmem:[%s2724_s6 + $0x10] sm:$0xff] %vm23_vm0, %v581_v18 }
0x1564   :  { %802 = vrot.lane.b32.xlu0 %v790_v56, %s1961_s22 }
0x156a   :  { %v914_v38 = vpop.permute.xlu1 %913 }
0x156b   :  { %1775 = vst.msk [vmem:[%s2724_s6 + $0x20] sm:$0xff] %vm250_vm15, %v914_v38 }
0x156c   :  { %1120 = vrot.lane.b32.xlu0 %v1108_v34, %s1962_s7 }
0x1572   :  { %v1224_v21 = vpop.permute.xlu1 %1223 }
0x1574   :  { %1429 = vrot.lane.b32.xlu0 %v1417_v10, %s1961_s22 }
0x157a   :  { %v1533_v49 = vpop.permute.xlu1 %1532 }
0x157c   :  { %1630 = vrot.lane.b32.xlu0 %v1622_v35, %s1964_s11 }
0x1584   :  { %1733 = vrot.lane.b32.xlu0 %v1725_v12, %s1964_s11 }
0x1590   :  { %v1615_v8 = vpop.permute.xlu2 %1614 }
0x1591   :  { %v1617_v15 = vmul.f32 %v1615_v8, %v2560_v33 }
0x1593   :  { %v1623_v32 = vsel %vm2734_vm2, %v1617_v15, 0.0  ;;  %v1621_v24 = vsel %vm2735_vm12, %v1617_v15, %v1619_v31 }
0x1594   :  { %1635 = vrot.lane.b32.xlu1 %v1623_v32, %s1961_s22  ;;  %1625 = vrot.lane.b32.xlu2 %v1621_v24, %s1961_s22 }
0x1598   :  { %v359_v16 = vpop.permute.xlu2 %358 }
0x1599   :  { %1755 = vst.msk [vmem:[%s2724_s6 + $0x8] sm:$0xff] %vm23_vm0, %v359_v16 }
0x159a   :  { %1799 = vst.msk [vmem:[%s2724_s6 + $0x8] sm:$0xff] %vm250_vm15, %v1533_v49 }
0x15a0   :  { %v692_v7 = vpop.permute.xlu2 %691 }
0x15a1   :  { %1767 = vst.msk [vmem:[%s2724_s6 + $0x28] sm:$0xff] %vm250_vm15, %v692_v7 }
0x15a2   :  { %1787 = vst.msk [vmem:[%s2724_s6 + $0x28] sm:$0xff] %vm23_vm0, %v1224_v21 }
0x15a8   :  { %v1018_v14 = vpop.permute.xlu2 %1017 }
0x15a9   :  { %1779 = vst.msk [vmem:[%s2724_s6 + $0x20] sm:$0xff] %vm23_vm0, %v1018_v14 }
0x15b0   :  { %v1327_v11 = vpop.permute.xlu2 %1326 }
0x15b1   :  { %1791 = vst.msk [vmem:[%s2724_s6 + $0x10] sm:$0xff] %vm250_vm15, %v1327_v11 }
0x15c6   :  { %v1718_v20 = vpop.permute.xlu0 %1717 }
0x15c7   :  { %v1720_v55 = vmul.f32 %v1718_v20, %v2568_v51 }
0x15c9   :  { %v1726_v22 = vsel %vm2736_vm10, %v1720_v55, 0.0  ;;  %v1724_v60 = vsel %vm2737_vm14, %v1720_v55, %v1722_v29 }
0x15ca   :  { %1738 = vrot.lane.b32.xlu1 %v1726_v22, %s1962_s7  ;;  %1728 = vrot.lane.b32.xlu2 %v1724_v60, %s1961_s22 }
0x15ce   :  { %v470_v25 = vpop.permute.xlu0 %469 }
0x15cf   :  { %1759 = vst.msk [vmem:[%s2724_s6 + $0x30] sm:$0xff] %vm250_vm15, %v470_v25 }
0x15d6   :  { %v803_v28 = vpop.permute.xlu0 %802 }
0x15d7   :  { %1771 = vst.msk [vmem:[%s2724_s6 + $0x18] sm:$0xff] %vm23_vm0, %v803_v28 }
0x15de   :  { %v1121_v9 = vpop.permute.xlu0 %1120 }
0x15df   :  { %1783 = vst.msk [vmem:[%s2724_s6 + $0x18] sm:$0xff] %vm250_vm15, %v1121_v9 }
0x15e6   :  { %v1430_v13 = vpop.permute.xlu0 %1429 }
0x15e7   :  { %1795 = vst.msk [vmem:[%s2724_s6 + $0x30] sm:$0xff] %vm23_vm0, %v1430_v13 }
0x15ee   :  { %v1631_v33 = vpop.permute.xlu0 %1630  ;;  %v1626_v1 = vpop.permute.xlu2 %1625 }
0x15ef   :  { %1633 = vst.msk [vmem:[#allocation3] sm:$0xff] %vm23_vm0, %v1631_v33 }
0x15f0   :  { %1628 = vst.msk [vmem:[#allocation2] sm:$0xff] %vm23_vm0, %v1626_v1 }
0x15f6   :  { %v1734_v3 = vpop.permute.xlu0 %1733 }
0x15f7   :  { %1736 = vst.msk [vmem:[#allocation5] sm:$0xff] %vm23_vm0, %v1734_v3 }
0x1606   :  { %v1636_v36 = vpop.permute.xlu1 %1635 }
0x1607   :  { %1803 = vst.msk [vmem:[%s2724_s6 + $0x38] sm:$0xff] %vm23_vm0, %v1636_v36 }
0x1624   :  { %v1729_v39 = vpop.permute.xlu2 %1728 }
0x1625   :  { %1731 = vst.msk [vmem:[#allocation4] sm:$0xff] %vm23_vm0, %v1729_v39 }
0x163c   :  { %v1739_v40 = vpop.permute.xlu1 %1738 }
0x163d   :  { %1741 = vst.msk [vmem:[%s2724_s6] sm:$0xff] %vm250_vm15, %v1739_v40 }

// kernel: rnn_tagger_forward.4
= control target key start
LH: loop header
LB: loop body
LE: loop exit
PB: predicated region body
PF: predicated region fallthrough
CT: control target
= control target key end

     0   :  { %vm23_vm0 = vcmask 261120   ;;  %v2054_v0 = vmov 0.0   ;;  %s2055_s19 = smov 64   ;;  %s2056_s23 = smov 32   ;;  %vm36_vm1 = vcmask 523264   ;;  %vm54_vm2 = vcmask 785408   ;;  %s3128_s2 = inlined_call_operand.vmem [shape: f32[96,128], index: 2, kind: input, shape index: {}]   ;;  %s3129_s4 = inlined_call_operand.vmem [shape: f32[96,128], index: 4, kind: input, shape index: {}]   ;;  %s3130_s3 = inlined_call_operand.vmem [shape: f32[1,128], index: 3, kind: input, shape index: {}]   ;;  %s3131_s1 = inlined_call_operand.vmem [shape: f32[8,8,64], index: 1, kind: input, shape index: {}]   ;;  %s3132_s5 = inlined_call_operand.vmem [shape: f32[1,128], index: 5, kind: input, shape index: {}]   ;;  %s3133_s0 = inlined_call_operand.vmem [shape: s32[8,1], index: 0, kind: input, shape index: {}]   ;;  %s3134_s6 = inlined_call_operand.vmem [shape: f32[8,8,64], index: 6, kind: output, shape index: {}]  }
   0x1   :  { %24 = vst.msk [vmem:[#allocation2] sm:$0xff] %vm23_vm0, %v2054_v0  ;;  %v2098_v1 = vld [vmem:[%s3128_s2 + $0x58] sm:$0xff]  ;;  %v2103_v2 = vld [vmem:[%s3128_s2 + $0x50] sm:$0xff]  ;;  %v2117_v4 = vld [vmem:[%s3128_s2 + $0x48] sm:$0xff]  ;;  %v2057_v50 = vmov 0   ;;  %s2058_s10 = smov 96  }
   0x2   :  { %25 = vst.msk [vmem:[#allocation3] sm:$0xff] %vm23_vm0, %v2054_v0  ;;  %62 = vmatpush.msra.mxu0 %v2098_v1  ;;  %v2110_v3 = vld [vmem:[%s3129_s4 + $0x58] sm:$0xff]  ;;  %296 = vmatpush.msra.mxu2 %v2098_v1  ;;  %v2123_v5 = vld [vmem:[%s3129_s4 + $0x50] sm:$0xff]  ;;  %v2131_v6 = vld [vmem:[%s3129_s4 + $0x48] sm:$0xff] }
   0x3   :  { %26 = vst.msk [vmem:[#allocation4] sm:$0xff] %vm23_vm0, %v2054_v0  ;;  %178 = vmatpush.msra.mxu1 %v2110_v3  ;;  %413 = vmatpush.msra.mxu3 %v2110_v3  ;;  %v2137_v7 = vld [vmem:[%s3128_s2 + $0x40] sm:$0xff]  ;;  %v2145_v8 = vld [vmem:[%s3128_s2 + $0x38] sm:$0xff]  ;;  %v2161_v11 = vld [vmem:[%s3128_s2 + $0x30] sm:$0xff] }
   0x4   :  { %27 = vst.msk [vmem:[#allocation5] sm:$0xff] %vm23_vm0, %v2054_v0  ;;  %63 = vmatpush.msra.mxu0 %v2103_v2  ;;  %297 = vmatpush.msra.mxu2 %v2103_v2  ;;  %v2150_v9 = vld [vmem:[%s3129_s4 + $0x40] sm:$0xff]  ;;  %v2155_v10 = vld [vmem:[%s3129_s4 + $0x38] sm:$0xff]  ;;  %v2176_v13 = vld [vmem:[%s3129_s4 + $0x30] sm:$0xff] }
   0x5   :  { %179 = vmatpush.msra.mxu1 %v2123_v5  ;;  %414 = vmatpush.msra.mxu3 %v2123_v5  ;;  %v2182_v14 = vld [vmem:[%s3128_s2 + $0x28] sm:$0xff]  ;;  %v2196_v16 = vld [vmem:[%s3128_s2 + $0x20] sm:$0xff]  ;;  %v41_v18 = vld [vmem:[%s3128_s2 + $0x18] sm:$0xff] }
   0x6   :  { %64 = vmatpush.msra.mxu0 %v2117_v4  ;;  %298 = vmatpush.msra.mxu2 %v2117_v4  ;;  %v2190_v15 = vld [vmem:[%s3129_s4 + $0x28] sm:$0xff]  ;;  %v40_v19 = vld [vmem:[%s3128_s2 + $0x10] sm:$0xff]  ;;  %v38_v21 = vld [vmem:[%s3128_s2] sm:$0xff] }
   0x7   :  { %180 = vmatpush.msra.mxu1 %v2131_v6  ;;  %415 = vmatpush.msra.mxu3 %v2131_v6  ;;  %v39_v20 = vld [vmem:[%s3128_s2 + $0x8] sm:$0xff]  ;;  %v159_v22 = vld [vmem:[%s3129_s4 + $0x20] sm:$0xff]  ;;  %v158_v23 = vld [vmem:[%s3129_s4 + $0x18] sm:$0xff] }
   0x8   :  { %v2165_v12 = vld [vmem:[#allocation2] sm:$0xff]  ;;  %65 = vmatpush.msra.mxu0 %v2137_v7  ;;  %299 = vmatpush.msra.mxu2 %v2137_v7  ;;  %v157_v24 = vld [vmem:[%s3129_s4 + $0x10] sm:$0xff]  ;;  %v156_v25 = vld [vmem:[%s3129_s4 + $0x8] sm:$0xff] }
   0x9   :  { %33 = vrot.lane.b32.xlu0 %v2165_v12, %s2055_s19  ;;  %181 = vmatpush.msra.mxu1 %v2150_v9  ;;  %v155_v26 = vld [vmem:[%s3129_s4] sm:$0xff]  ;;  %v31_v27 = vld [vmem:[#allocation3] sm:$0xff]  ;;  %v1844_v32 = vld [vmem:[%s3131_s1 + $0x38] sm:$0xff] }
   0xa   :  { %66 = vmatpush.msra.mxu0 %v2145_v8  ;;  %416 = vmatpush.msra.mxu3 %v2150_v9  ;;  %v2200_v17 = vld [vmem:[#allocation4] sm:$0xff]  ;;  %v29_v29 = vld [vmem:[%s3131_s1] sm:$0xff] }
   0xb   :  { %182 = vmatpush.msra.mxu1 %v2155_v10  ;;  %300 = vmatpush.msra.mxu2 %v2145_v8  ;;  %v149_v28 = vld [vmem:[#allocation5] sm:$0xff]  ;;  %v1910_v35 = vld [vmem:[%s3130_s3] ss:$0 sm:$0xff] }
   0xc   :  { %67 = vmatpush.msra.mxu0 %v2161_v11  ;;  %417 = vmatpush.msra.mxu3 %v2155_v10  ;;  %v1911_v38 = vld [vmem:[%s3132_s5] ss:$0 sm:$0xff] }
   0xd   :  { %183 = vmatpush.msra.mxu1 %v2176_v13  ;;  %301 = vmatpush.msra.mxu2 %v2161_v11 }
   0xe   :  { %68 = vmatpush.msra.mxu0 %v2182_v14  ;;  %418 = vmatpush.msra.mxu3 %v2176_v13 }
   0xf   :  { %184 = vmatpush.msra.mxu1 %v2190_v15  ;;  %302 = vmatpush.msra.mxu2 %v2182_v14 }
  0x10   :  { %69 = vmatpush.msra.mxu0 %v2196_v16  ;;  %419 = vmatpush.msra.mxu3 %v2190_v15 }
  0x11   :  { %151 = vrot.lane.b32.xlu0 %v2200_v17, %s2055_s19  ;;  %303 = vmatpush.msra.mxu2 %v2196_v16 }
  0x12   :  { %70 = vmatpush.msra.mxu0 %v41_v18  ;;  %185 = vmatpush.msra.mxu1 %v159_v22 }
  0x13   :  { %304 = vmatpush.msra.mxu2 %v41_v18  ;;  %420 = vmatpush.msra.mxu3 %v159_v22 }
  0x14   :  { %71 = vmatpush.msra.mxu0 %v40_v19  ;;  %186 = vmatpush.msra.mxu1 %v158_v23 }
  0x15   :  { %305 = vmatpush.msra.mxu2 %v40_v19  ;;  %421 = vmatpush.msra.mxu3 %v158_v23 }
  0x16   :  { %72 = vmatpush.msra.mxu0 %v39_v20  ;;  %187 = vmatpush.msra.mxu1 %v157_v24 }
  0x17   :  { %306 = vmatpush.msra.mxu2 %v39_v20  ;;  %422 = vmatpush.msra.mxu3 %v157_v24 }
  0x18   :  { %73 = vmatpush.msra.mxu0 %v38_v21  ;;  %188 = vmatpush.msra.mxu1 %v156_v25 }
  0x19   :  { %307 = vmatpush.msra.mxu2 %v38_v21  ;;  %423 = vmatpush.msra.mxu3 %v156_v25 }
  0x1a   :  { %530 = vmatpush.msrb.mxu0 %v2098_v1  ;;  %189 = vmatpush.msra.mxu1 %v155_v26 }
  0x1b   :  { %764 = vmatpush.msrb.mxu2 %v2098_v1  ;;  %424 = vmatpush.msra.mxu3 %v155_v26 }
  0x1c   :  { %531 = vmatpush.msrb.mxu0 %v2103_v2  ;;  %647 = vmatpush.msrb.mxu1 %v2110_v3 }
  0x1d   :  { %765 = vmatpush.msrb.mxu2 %v2103_v2  ;;  %99 = vrot.lane.b32.xlu2 %v31_v27, %s2056_s23 }
  0x1e   :  { %532 = vmatpush.msrb.mxu0 %v2117_v4  ;;  %648 = vmatpush.msrb.mxu1 %v2123_v5 }
  0x1f   :  { %766 = vmatpush.msrb.mxu2 %v2117_v4  ;;  %881 = vmatpush.msrb.mxu3 %v2110_v3 }
  0x20   :  { %533 = vmatpush.msrb.mxu0 %v2137_v7  ;;  %649 = vmatpush.msrb.mxu1 %v2131_v6 }
  0x21   :  { %767 = vmatpush.msrb.mxu2 %v2137_v7  ;;  %882 = vmatpush.msrb.mxu3 %v2123_v5 }
  0x22   :  { %534 = vmatpush.msrb.mxu0 %v2145_v8  ;;  %650 = vmatpush.msrb.mxu1 %v2150_v9 }
  0x23   :  { %883 = vmatpush.msrb.mxu3 %v2131_v6  ;;  %1907 = vset.pattern.permute.xlu1 %v2057_v50 }
  0x24   :  { %535 = vmatpush.msrb.mxu0 %v2161_v11  ;;  %651 = vmatpush.msrb.mxu1 %v2155_v10 }
  0x25   :  { %884 = vmatpush.msrb.mxu3 %v2150_v9  ;;  %215 = vrot.lane.b32.xlu2 %v149_v28, %s2056_s23 }
  0x26   :  { %536 = vmatpush.msrb.mxu0 %v2182_v14  ;;  %652 = vmatpush.msrb.mxu1 %v2176_v13 }
  0x27   :  { %885 = vmatpush.msrb.mxu3 %v2155_v10  ;;  %1908 = vset.pattern.permute.xlu2 %v2057_v50  ;;  %v2291_v10 = vld [vmem:[%s3133_s0] sm:$0xff] }
  0x28   :  { %537 = vmatpush.msrb.mxu0 %v2196_v16  ;;  %653 = vmatpush.msrb.mxu1 %v2190_v15  ;;  %vm119_vm11 = vcmp.gt.s32.totalorder %v2291_v10, 0  ;;  %vm235_vm12 = vcmp.gt.s32.totalorder %v2291_v10, 7 }
  0x29   :  { %886 = vmatpush.msrb.mxu3 %v2176_v13  ;;  %1909 = vset.pattern.permute.xlu0 %v2057_v50  ;;  %v120_v13 = vsel %vm119_vm11, 1, %v2057_v50  ;;  %vm470_vm11 = vcmp.gt.s32.totalorder %v2291_v10, 6 }
  0x2a   :  { %538 = vmatpush.msrb.mxu0 %v41_v18  ;;  %654 = vmatpush.msrb.mxu1 %v159_v22 }
  0x2b   :  { %887 = vmatpush.msrb.mxu3 %v2190_v15 }
  0x2c   :  { %539 = vmatpush.msrb.mxu0 %v40_v19  ;;  %655 = vmatpush.msrb.mxu1 %v158_v23 }
  0x2d   :  { %888 = vmatpush.msrb.mxu3 %v159_v22 }
  0x2e   :  { %540 = vmatpush.msrb.mxu0 %v39_v20  ;;  %656 = vmatpush.msrb.mxu1 %v157_v24 }
  0x2f   :  { %889 = vmatpush.msrb.mxu3 %v158_v23 }
  0x30   :  { %541 = vmatpush.msrb.mxu0 %v38_v21  ;;  %657 = vmatpush.msrb.mxu1 %v156_v25 }
  0x31   :  { %890 = vmatpush.msrb.mxu3 %v157_v24 }
  0x32   :  { %658 = vmatpush.msrb.mxu1 %v155_v26 }
  0x33   :  { %891 = vmatpush.msrb.mxu3 %v156_v25 }
  0x35   :  { %892 = vmatpush.msrb.mxu3 %v155_v26  ;;  %v236_v26 = vsel %vm235_vm12, 1, %v2057_v50 }
  0x77   :  { %v100_v15 = vpop.permute.xlu2 %99 }
  0x7b   :  { %v34_v30 = vpop.permute.xlu0 %33 }
  0x7c   :  { %v37_v31 = vsel %vm36_vm1, %v29_v29, %v34_v30 }
  0x7d   :  { %1842 = vmatmul.msk.f32.vlgmr.msra.gmra.mxu0 %vm54_vm2, %v37_v31 }
  0x7f   :  { %v216_v21 = vpop.permute.xlu2 %215 }
  0x83   :  { %v152_v33 = vpop.permute.xlu0 %151 }
  0x84   :  { %v154_v34 = vsel %vm36_vm1, %v1844_v32, %v152_v33 }
  0x85   :  { %1845 = vmatmul.msk.f32.vlgmr.msra.gmra.mxu1 %vm54_vm2, %v154_v34 }
  0xfa   :  { %v75_v36 = vpop.f32.mrf.mxu0 }
  0xfb   :  { %v76_v37 = vadd.f32 %v1910_v35, %v75_v36 }
  0xfd   :  { %1926 = vtanh.f32 %v76_v37  ;;  %v1843_v43 = vmul.f32 -1.442695, %v76_v37 }
 0x102   :  { %v191_v39 = vpop.f32.mrf.mxu1 }
 0x103   :  { %v1927_v40 = vpop.eup %1926  ;;  %v192_v41 = vadd.f32 %v1911_v38, %v191_v39 }
 0x104   :  { %104 = vrot.lane.b32.xlu1 %v1927_v40, %s2055_s19 }
 0x105   :  { %1928 = vtanh.f32 %v192_v41  ;;  %v1846_v44 = vmul.f32 -1.442695, %v192_v41 }
 0x106   :  { %1930 = vpow2.f32 %v1843_v43 }
 0x107   :  { %1932 = vpow2.f32 %v1846_v44  ;;  %v1852_v44 = vld [vmem:[%s3131_s1 + $0x30] sm:$0xff] }
 0x10b   :  { %v1929_v42 = vpop.eup %1928 }
 0x10c   :  { %220 = vrot.lane.b32.xlu1 %v1929_v42, %s2055_s19  ;;  %v1931_v45 = vpop.eup %1930 }
 0x10d   :  { %v81_v46 = vadd.f32 1.0, %v1931_v45  ;;  %v1933_v47 = vpop.eup %1932 }
 0x10e   :  { %v197_v48 = vadd.f32 1.0, %v1933_v47  ;;  %v1848_v47 = vld [vmem:[%s3131_s1 + $0x8] sm:$0xff] }
 0x10f   :  { %1934 = vrcp.f32 %v81_v46  ;;  %v93_v58 = vand.u32 2147483648, %v81_v46  ;;  %vm87_vm4 = vweird.f32 %v81_v46  ;;  %v91_v59 = vand.u32 2147483647, %v81_v46 }
 0x110   :  { %1936 = vrcp.f32 %v197_v48  ;;  %v209_v3 = vand.u32 2147483648, %v197_v48  ;;  %vm203_vm8 = vweird.f32 %v197_v48  ;;  %v207_v4 = vand.u32 2147483647, %v197_v48 }
 0x111   :  { %v94_v62 = vor.u32 1.1754944e-38, %v93_v58  ;;  %vm92_vm6 = vcmp.eq.f32.partialorder %v91_v59, 8.507059e+37 }
 0x112   :  { %v210_v6 = vor.u32 1.1754944e-38, %v209_v3  ;;  %vm208_vm10 = vcmp.eq.f32.partialorder %v207_v4, 8.507059e+37 }
 0x115   :  { %v1935_v49 = vpop.eup %1934 }
 0x116   :  { %v83_v51 = vmul.f32 %v1935_v49, %v81_v46  ;;  %v1937_v53 = vpop.eup %1936  ;;  %vm88_vm3 = vweird.f32 %v1935_v49 }
 0x117   :  { %v199_v54 = vmul.f32 %v1937_v53, %v197_v48  ;;  %vm89_vm5 = vmor %vm87_vm4, %vm88_vm3  ;;  %vm204_vm7 = vweird.f32 %v1937_v53 }
 0x118   :  { %v84_v52 = vsub.f32 1.0, %v83_v51  ;;  %vm205_vm9 = vmor %vm203_vm8, %vm204_vm7 }
 0x119   :  { %v200_v56 = vsub.f32 1.0, %v199_v54 }
 0x11a   :  { %v85_v55 = vmul.f32 %v1935_v49, %v84_v52  ;;  %v1912_v52 = vld [vmem:[%s3132_s5] ss:$0 sm:$0xff] }
 0x11b   :  { %v201_v60 = vmul.f32 %v1937_v53, %v200_v56 }
 0x11c   :  { %v86_v57 = vadd.f32 %v1935_v49, %v85_v55  ;;  %v1913_v55 = vld [vmem:[%s3130_s3] ss:$0 sm:$0xff] }
 0x11d   :  { %v202_v1 = vadd.f32 %v1937_v53, %v201_v60 }
 0x11e   :  { %v90_v61 = vsel %vm89_vm5, %v1935_v49, %v86_v57 }
 0x11f   :  { %v95_v0 = vsel %vm92_vm6, %v94_v62, %v90_v61  ;;  %v206_v5 = vsel %vm205_vm9, %v1937_v53, %v202_v1 }
 0x120   :  { %v211_v7 = vsel %vm208_vm10, %v210_v6, %v206_v5  ;;  %v102_v18 = vmul.f32 %v100_v15, %v95_v0  ;;  %vm353_vm10 = vcmp.gt.s32.totalorder %v2291_v10, 1 }
 0x121   :  { %v218_v22 = vmul.f32 %v216_v21, %v211_v7 }
 0x176   :  { %v105_v63 = vpop.permute.xlu1 %104 }
 0x177   :  { %v107_v2 = vmul.f32 %v105_v63, %v95_v0 }
 0x179   :  { %109 = vrot.lane.b32.xlu0 %v107_v2, %s2056_s23 }
 0x17e   :  { %v221_v8 = vpop.permute.xlu1 %220 }
 0x17f   :  { %v223_v9 = vmul.f32 %v221_v8, %v211_v7 }
 0x181   :  { %225 = vrot.lane.b32.xlu1 %v223_v9, %s2056_s23 }
 0x189   :  { %122 = vperm.xlu1 %1907, %v120_v13  }
 0x191   :  { %241 = vrot.lane.b32.xlu1 %v2200_v17, %s2058_s10 }
 0x1eb   :  { %v110_v19 = vpop.permute.xlu0 %109 }
 0x1ec   :  { %v112_v20 = vadd.f32 %v110_v19, %v102_v18 }
 0x1ee   :  { %1938 = vtanh.f32 %v112_v20 }
 0x1f3   :  { %v226_v23 = vpop.permute.xlu1 %225 }
 0x1f4   :  { %v1939_v24 = vpop.eup %1938  ;;  %v228_v25 = vadd.f32 %v226_v23, %v218_v22 }
 0x1f5   :  { %115 = vrot.lane.b32.xlu2 %v1939_v24, %s2055_s19 }
 0x1f6   :  { %1940 = vtanh.f32 %v228_v25 }
 0x1fb   :  { %v2304_v28 = vpop.permute.xlu1 %122 }
 0x1fc   :  { %v1941_v27 = vpop.eup %1940  ;;  %vm3136_vm14 = vcmp.eq.s32.totalorder %v2304_v28, 1 }
 0x1fd   :  { %231 = vrot.lane.b32.xlu0 %v1941_v27, %s2055_s19  ;;  %238 = vperm.xlu2 %1908, %v236_v26   ;;  %v129_v36 = vsel %vm3136_vm14, %v112_v20, %v100_v15 }
 0x203   :  { %v242_v31 = vpop.permute.xlu1 %241 }
 0x205   :  { %125 = vrot.lane.b32.xlu0 %v2165_v12, %s2058_s10 }
 0x24f   :  { %v116_v17 = vpop.permute.xlu2 %115 }
 0x250   :  { %v2315_v34 = vmul.f32 %v116_v17, %v95_v0 }
 0x257   :  { %v2306_v29 = vpop.permute.xlu2 %238 }
 0x258   :  { %vm3135_vm13 = vcmp.eq.s32.totalorder %v2306_v29, 1 }
 0x259   :  { %v245_v39 = vsel %vm3135_vm13, %v228_v25, %v216_v21 }
 0x26f   :  { %v232_v30 = vpop.permute.xlu0 %231 }
 0x270   :  { %v2308_v32 = vmul.f32 %v232_v30, %v211_v7 }
 0x272   :  { %v244_v33 = vsel %vm3135_vm13, %v2308_v32, %v242_v31 }
 0x273   :  { %248 = vrot.lane.b32.xlu0 %v244_v33, %s2056_s23 }
 0x277   :  { %v126_v12 = vpop.permute.xlu0 %125 }
 0x278   :  { %v128_v35 = vsel %vm3136_vm14, %v2315_v34, %v126_v12 }
 0x279   :  { %132 = vrot.lane.b32.xlu2 %v128_v35, %s2056_s23  ;;  %v354_v35 = vsel %vm353_vm10, 1, %v2057_v50 }
 0x27b   :  { %137 = vrot.lane.b32.xlu0 %v129_v36, %s2058_s10 }
 0x2d3   :  { %v133_v37 = vpop.permute.xlu2 %132 }
 0x2d4   :  { %135 = vst.msk [vmem:[#allocation2] sm:$0xff] %vm23_vm0, %v133_v37 }
 0x2db   :  { %v2326_v38 = vld [vmem:[#allocation2] sm:$0xff] }
 0x2dc   :  { %269 = vrot.lane.b32.xlu1 %v2326_v38, %s2055_s19 }
 0x2e4   :  { %253 = vrot.lane.b32.xlu1 %v245_v39, %s2058_s10 }
 0x2e5   :  { %v249_v40 = vpop.permute.xlu0 %248 }
 0x2e6   :  { %251 = vst.msk [vmem:[#allocation4] sm:$0xff] %vm23_vm0, %v249_v40 }
 0x2ed   :  { %v138_v41 = vpop.permute.xlu0 %137  ;;  %v2334_v42 = vld [vmem:[#allocation4] sm:$0xff] }
 0x2ee   :  { %140 = vst.msk [vmem:[#allocation3] sm:$0xff] %vm23_vm0, %v138_v41  ;;  %386 = vrot.lane.b32.xlu2 %v2334_v42, %s2055_s19 }
 0x2f5   :  { %v267_v43 = vld [vmem:[#allocation3] sm:$0xff] }
 0x2f6   :  { %333 = vrot.lane.b32.xlu1 %v267_v43, %s2056_s23 }
 0x348   :  { %v387_v45 = vpop.permute.xlu2 %386 }
 0x349   :  { %v389_v46 = vsel %vm36_vm1, %v1852_v44, %v387_v45  ;;  %v471_v44 = vsel %vm470_vm11, 1, %v2057_v50  ;;  %vm587_vm11 = vcmp.gt.s32.totalorder %v2291_v10, 2 }
 0x34a   :  { %1853 = vmatmul.msk.f32.vlgmr.msra.gmra.mxu3 %vm54_vm2, %v389_v46 }
 0x34e   :  { %v270_v48 = vpop.permute.xlu1 %269 }
 0x34f   :  { %v272_v49 = vsel %vm36_vm1, %v1848_v47, %v270_v48 }
 0x350   :  { %1849 = vmatmul.msk.f32.vlgmr.msra.gmra.mxu2 %vm54_vm2, %v272_v49 }
 0x356   :  { %v254_v51 = vpop.permute.xlu1 %253 }
 0x357   :  { %256 = vst.msk [vmem:[#allocation5] sm:$0xff] %vm23_vm0, %v254_v51 }
 0x35e   :  { %v384_v60 = vld [vmem:[#allocation5] sm:$0xff] }
 0x368   :  { %v334_v36 = vpop.permute.xlu1 %333 }
 0x3cd   :  { %v426_v53 = vpop.f32.mrf.mxu3 }
 0x3ce   :  { %v427_v54 = vadd.f32 %v1912_v52, %v426_v53 }
 0x3d0   :  { %1942 = vtanh.f32 %v427_v54  ;;  %v1854_v0 = vmul.f32 -1.442695, %v427_v54 }
 0x3d3   :  { %v309_v56 = vpop.f32.mrf.mxu2 }
 0x3d4   :  { %v310_v57 = vadd.f32 %v1913_v55, %v309_v56 }
 0x3d6   :  { %v1943_v58 = vpop.eup %1942  ;;  %1944 = vtanh.f32 %v310_v57  ;;  %v1850_v61 = vmul.f32 -1.442695, %v310_v57 }
 0x3d7   :  { %455 = vrot.lane.b32.xlu0 %v1943_v58, %s2055_s19 }
 0x3d8   :  { %1946 = vpow2.f32 %v1850_v61 }
 0x3dc   :  { %v1945_v59 = vpop.eup %1944 }
 0x3dd   :  { %338 = vrot.lane.b32.xlu2 %v1945_v59, %s2055_s19 }
 0x3de   :  { %v1947_v62 = vpop.eup %1946 }
 0x3df   :  { %v315_v63 = vadd.f32 1.0, %v1947_v62 }
 0x3e1   :  { %1948 = vrcp.f32 %v315_v63  ;;  %v327_v8 = vand.u32 2147483648, %v315_v63  ;;  %vm321_vm3 = vweird.f32 %v315_v63  ;;  %v325_v9 = vand.u32 2147483647, %v315_v63 }
 0x3e2   :  { %1950 = vpow2.f32 %v1854_v0 }
 0x3e3   :  { %v328_v18 = vor.u32 1.1754944e-38, %v327_v8  ;;  %vm326_vm5 = vcmp.eq.f32.partialorder %v325_v9, 8.507059e+37  ;;  %v1914_v9 = vld [vmem:[%s3132_s5] ss:$0 sm:$0xff] }
 0x3e5   :  { %450 = vrot.lane.b32.xlu2 %v384_v60, %s2056_s23 }
 0x3e7   :  { %v1949_v1 = vpop.eup %1948 }
 0x3e8   :  { %v317_v2 = vmul.f32 %v1949_v1, %v315_v63  ;;  %v1951_v3 = vpop.eup %1950  ;;  %vm322_vm15 = vweird.f32 %v1949_v1 }
 0x3e9   :  { %v432_v5 = vadd.f32 1.0, %v1951_v3  ;;  %vm323_vm4 = vmor %vm321_vm3, %vm322_vm15 }
 0x3ea   :  { %v318_v4 = vsub.f32 1.0, %v317_v2  ;;  %v2411_v2 = vld [vmem:[%s3131_s1 + $0x28] sm:$0xff] }
 0x3eb   :  { %1952 = vrcp.f32 %v432_v5  ;;  %v444_v26 = vand.u32 2147483648, %v432_v5  ;;  %vm438_vm7 = vweird.f32 %v432_v5  ;;  %v442_v27 = vand.u32 2147483647, %v432_v5 }
 0x3ec   :  { %v319_v6 = vmul.f32 %v1949_v1, %v318_v4 }
 0x3ed   :  { %v445_v30 = vor.u32 1.1754944e-38, %v444_v26  ;;  %vm443_vm9 = vcmp.eq.f32.partialorder %v442_v27, 8.507059e+37 }
 0x3ee   :  { %v320_v7 = vadd.f32 %v1949_v1, %v319_v6 }
 0x3f0   :  { %v324_v15 = vsel %vm323_vm4, %v1949_v1, %v320_v7 }
 0x3f1   :  { %v1953_v13 = vpop.eup %1952  ;;  %v329_v21 = vsel %vm326_vm5, %v328_v18, %v324_v15  ;;  %v1915_v18 = vld [vmem:[%s3130_s3] ss:$0 sm:$0xff] }
 0x3f2   :  { %v434_v19 = vmul.f32 %v1953_v13, %v432_v5  ;;  %vm439_vm6 = vweird.f32 %v1953_v13  ;;  %v336_v37 = vmul.f32 %v334_v36, %v329_v21  ;;  %v2419_v5 = vld [vmem:[%s3131_s1 + $0x10] sm:$0xff] }
 0x3f3   :  { %vm440_vm8 = vmor %vm438_vm7, %vm439_vm6 }
 0x3f4   :  { %v435_v23 = vsub.f32 1.0, %v434_v19 }
 0x3f6   :  { %v436_v24 = vmul.f32 %v1953_v13, %v435_v23 }
 0x3f8   :  { %v437_v25 = vadd.f32 %v1953_v13, %v436_v24 }
 0x3fa   :  { %v441_v17 = vsel %vm440_vm8, %v1953_v13, %v437_v25 }
 0x3fb   :  { %v446_v31 = vsel %vm443_vm9, %v445_v30, %v441_v17 }
 0x437   :  { %v339_v20 = vpop.permute.xlu2 %338 }
 0x438   :  { %v341_v22 = vmul.f32 %v339_v20, %v329_v21 }
 0x43a   :  { %343 = vrot.lane.b32.xlu0 %v341_v22, %s2056_s23 }
 0x43f   :  { %v451_v43 = vpop.permute.xlu2 %450 }
 0x440   :  { %v453_v45 = vmul.f32 %v451_v43, %v446_v31 }
 0x449   :  { %v456_v33 = vpop.permute.xlu0 %455 }
 0x44a   :  { %v458_v12 = vmul.f32 %v456_v33, %v446_v31 }
 0x44c   :  { %460 = vrot.lane.b32.xlu1 %v458_v12, %s2056_s23 }
 0x454   :  { %356 = vperm.xlu1 %1907, %v354_v35  }
 0x45c   :  { %476 = vrot.lane.b32.xlu1 %v2334_v42, %s2058_s10 }
 0x4ac   :  { %v344_v39 = vpop.permute.xlu0 %343 }
 0x4ad   :  { %v346_v40 = vadd.f32 %v344_v39, %v336_v37 }
 0x4af   :  { %1954 = vtanh.f32 %v346_v40 }
 0x4b5   :  { %v1955_v41 = vpop.eup %1954 }
 0x4b6   :  { %349 = vrot.lane.b32.xlu2 %v1955_v41, %s2055_s19 }
 0x4be   :  { %473 = vperm.xlu2 %1908, %v471_v44   ;;  %v461_v46 = vpop.permute.xlu1 %460 }
 0x4bf   :  { %v463_v47 = vadd.f32 %v461_v46, %v453_v45 }
 0x4c1   :  { %1956 = vtanh.f32 %v463_v47 }
 0x4c6   :  { %v2372_v49 = vpop.permute.xlu1 %356 }
 0x4c7   :  { %v1957_v48 = vpop.eup %1956  ;;  %vm358_vm15 = vcmp.eq.s32.totalorder %v2372_v49, 1 }
 0x4c8   :  { %466 = vrot.lane.b32.xlu0 %v1957_v48, %s2055_s19  ;;  %v363_v58 = vsel %vm358_vm15, %v346_v40, %v334_v36 }
 0x4ce   :  { %v477_v54 = vpop.permute.xlu1 %476 }
 0x4d0   :  { %359 = vrot.lane.b32.xlu0 %v2326_v38, %s2058_s10 }
 0x510   :  { %v350_v42 = vpop.permute.xlu2 %349 }
 0x511   :  { %v2383_v56 = vmul.f32 %v350_v42, %v329_v21 }
 0x518   :  { %v2374_v51 = vpop.permute.xlu2 %473 }
 0x519   :  { %vm475_vm12 = vcmp.eq.s32.totalorder %v2374_v51, 1 }
 0x51a   :  { %v480_v61 = vsel %vm475_vm12, %v463_v47, %v451_v43 }
 0x53a   :  { %v467_v52 = vpop.permute.xlu0 %466 }
 0x53b   :  { %v2376_v53 = vmul.f32 %v467_v52, %v446_v31 }
 0x53d   :  { %v479_v55 = vsel %vm475_vm12, %v2376_v53, %v477_v54 }
 0x53e   :  { %483 = vrot.lane.b32.xlu0 %v479_v55, %s2056_s23 }
 0x542   :  { %v360_v38 = vpop.permute.xlu0 %359 }
 0x543   :  { %v362_v57 = vsel %vm358_vm15, %v2383_v56, %v360_v38 }
 0x544   :  { %366 = vrot.lane.b32.xlu2 %v362_v57, %s2056_s23 }
 0x546   :  { %371 = vrot.lane.b32.xlu0 %v363_v58, %s2058_s10 }
 0x59e   :  { %v367_v59 = vpop.permute.xlu2 %366 }
 0x59f   :  { %369 = vst.msk [vmem:[#allocation2] sm:$0xff] %vm23_vm0, %v367_v59 }
 0x5a6   :  { %v2394_v60 = vld [vmem:[#allocation2] sm:$0xff] }
 0x5a7   :  { %503 = vrot.lane.b32.xlu1 %v2394_v60, %s2055_s19 }
 0x5af   :  { %488 = vrot.lane.b32.xlu1 %v480_v61, %s2058_s10 }
 0x5b0   :  { %v484_v62 = vpop.permute.xlu0 %483 }
 0x5b1   :  { %486 = vst.msk [vmem:[#allocation4] sm:$0xff] %vm23_vm0, %v484_v62  ;;  %v588_v62 = vsel %vm587_vm11, 1, %v2057_v50 }
 0x5b8   :  { %v372_v63 = vpop.permute.xlu0 %371  ;;  %v2402_v0 = vld [vmem:[#allocation4] sm:$0xff] }
 0x5b9   :  { %374 = vst.msk [vmem:[#allocation3] sm:$0xff] %vm23_vm0, %v372_v63  ;;  %620 = vrot.lane.b32.xlu2 %v2402_v0, %s2055_s19 }
 0x5c0   :  { %v501_v1 = vld [vmem:[#allocation3] sm:$0xff] }
 0x5c1   :  { %567 = vrot.lane.b32.xlu1 %v501_v1, %s2056_s23 }
 0x613   :  { %v621_v3 = vpop.permute.xlu2 %620 }
 0x614   :  { %v623_v4 = vsel %vm36_vm1, %v2411_v2, %v621_v3 }
 0x615   :  { %1861 = vmatmul.msk.f32.vlgmr.msrb.gmra.mxu1 %vm54_vm2, %v623_v4 }
 0x619   :  { %v504_v6 = vpop.permute.xlu1 %503 }
 0x61a   :  { %v506_v7 = vsel %vm36_vm1, %v2419_v5, %v504_v6 }
 0x61b   :  { %1857 = vmatmul.msk.f32.vlgmr.msrb.gmra.mxu0 %vm54_vm2, %v506_v7 }
 0x621   :  { %v489_v8 = vpop.permute.xlu1 %488 }
 0x622   :  { %491 = vst.msk [vmem:[#allocation5] sm:$0xff] %vm23_vm0, %v489_v8 }
 0x629   :  { %v618_v23 = vld [vmem:[#allocation5] sm:$0xff] }
 0x633   :  { %v568_v63 = vpop.permute.xlu1 %567 }
 0x692   :  { %v660_v13 = vpop.f32.mrf.mxu1 }
 0x693   :  { %v661_v15 = vadd.f32 %v1914_v9, %v660_v13 }
 0x695   :  { %1958 = vtanh.f32 %v661_v15  ;;  %v1862_v27 = vmul.f32 -1.442695, %v661_v15 }
 0x698   :  { %v543_v19 = vpop.f32.mrf.mxu0 }
 0x699   :  { %v544_v20 = vadd.f32 %v1915_v18, %v543_v19 }
 0x69b   :  { %v1959_v21 = vpop.eup %1958  ;;  %1960 = vtanh.f32 %v544_v20  ;;  %v1858_v24 = vmul.f32 -1.442695, %v544_v20 }
 0x69c   :  { %689 = vrot.lane.b32.xlu0 %v1959_v21, %s2055_s19 }
 0x69d   :  { %1962 = vpow2.f32 %v1858_v24 }
 0x6a1   :  { %v1961_v22 = vpop.eup %1960 }
 0x6a2   :  { %572 = vrot.lane.b32.xlu2 %v1961_v22, %s2055_s19 }
 0x6a3   :  { %v1963_v25 = vpop.eup %1962 }
 0x6a4   :  { %v549_v26 = vadd.f32 1.0, %v1963_v25 }
 0x6a6   :  { %1964 = vrcp.f32 %v549_v26  ;;  %v561_v37 = vand.u32 2147483648, %v549_v26  ;;  %vm555_vm4 = vweird.f32 %v549_v26  ;;  %v559_v39 = vand.u32 2147483647, %v549_v26 }
 0x6a7   :  { %1966 = vpow2.f32 %v1862_v27 }
 0x6a8   :  { %v562_v43 = vor.u32 1.1754944e-38, %v561_v37  ;;  %vm560_vm6 = vcmp.eq.f32.partialorder %v559_v39, 8.507059e+37  ;;  %v2505_v37 = vld [vmem:[%s3128_s2 + $0x8] sm:$0xff]  ;;  %v2512_v39 = vld [vmem:[%s3128_s2] sm:$0xff] }
 0x6aa   :  { %684 = vrot.lane.b32.xlu2 %v618_v23, %s2056_s23 }
 0x6ac   :  { %v1965_v17 = vpop.eup %1964 }
 0x6ad   :  { %v551_v30 = vmul.f32 %v1965_v17, %v549_v26  ;;  %v1967_v31 = vpop.eup %1966  ;;  %vm556_vm3 = vweird.f32 %v1965_v17 }
 0x6ae   :  { %v666_v12 = vadd.f32 1.0, %v1967_v31  ;;  %vm557_vm5 = vmor %vm555_vm4, %vm556_vm3  ;;  %vm704_vm3 = vcmp.gt.s32.totalorder %v2291_v10, 5 }
 0x6af   :  { %v552_v33 = vsub.f32 1.0, %v551_v30  ;;  %v705_v8 = vsel %vm704_vm3, 1, %v2057_v50  ;;  %v2471_v30 = vld [vmem:[%s3128_s2 + $0x38] sm:$0xff] }
 0x6b0   :  { %1968 = vrcp.f32 %v666_v12  ;;  %v678_v54 = vand.u32 2147483648, %v666_v12  ;;  %vm672_vm8 = vweird.f32 %v666_v12  ;;  %v676_v55 = vand.u32 2147483647, %v666_v12  ;;  %768 = vmatpush.msrb.mxu2 %v2471_v30 }
 0x6b1   :  { %v553_v35 = vmul.f32 %v1965_v17, %v552_v33 }
 0x6b2   :  { %v679_v57 = vor.u32 1.1754944e-38, %v678_v54  ;;  %vm677_vm10 = vcmp.eq.f32.partialorder %v676_v55, 8.507059e+37  ;;  %769 = vmatpush.msrb.mxu2 %v2161_v11  ;;  %v1917_v54 = vld [vmem:[%s3130_s3] ss:$0 sm:$0xff] }
 0x6b3   :  { %v554_v36 = vadd.f32 %v1965_v17, %v553_v35 }
 0x6b4   :  { %770 = vmatpush.msrb.mxu2 %v2182_v14  ;;  %v2494_v14 = vld [vmem:[%s3128_s2 + $0x18] sm:$0xff] }
 0x6b5   :  { %v558_v41 = vsel %vm557_vm5, %v1965_v17, %v554_v36 }
 0x6b6   :  { %v1969_v40 = vpop.eup %1968  ;;  %v563_v46 = vsel %vm560_vm6, %v562_v43, %v558_v41  ;;  %771 = vmatpush.msrb.mxu2 %v2196_v16  ;;  %v2500_v16 = vld [vmem:[%s3128_s2 + $0x10] sm:$0xff] }
 0x6b7   :  { %v668_v44 = vmul.f32 %v1969_v40, %v666_v12  ;;  %vm673_vm7 = vweird.f32 %v1969_v40  ;;  %v570_v1 = vmul.f32 %v568_v63, %v563_v46 }
 0x6b8   :  { %vm674_vm9 = vmor %vm672_vm8, %vm673_vm7  ;;  %772 = vmatpush.msrb.mxu2 %v2494_v14 }
 0x6b9   :  { %v669_v48 = vsub.f32 1.0, %v668_v44  ;;  %v2526_v44 = vld [vmem:[%s3131_s1 + $0x18] sm:$0xff] }
 0x6ba   :  { %773 = vmatpush.msrb.mxu2 %v2500_v16 }
 0x6bb   :  { %v670_v42 = vmul.f32 %v1969_v40, %v669_v48  ;;  %v1916_v48 = vld [vmem:[%s3132_s5] ss:$0 sm:$0xff] }
 0x6bc   :  { %774 = vmatpush.msrb.mxu2 %v2505_v37 }
 0x6bd   :  { %v671_v52 = vadd.f32 %v1969_v40, %v670_v42 }
 0x6be   :  { %775 = vmatpush.msrb.mxu2 %v2512_v39 }
 0x6bf   :  { %v675_v38 = vsel %vm674_vm9, %v1969_v40, %v671_v52  ;;  %v2518_v40 = vld [vmem:[%s3131_s1 + $0x20] sm:$0xff] }
 0x6c0   :  { %v680_v58 = vsel %vm677_vm10, %v679_v57, %v675_v38 }
 0x6fc   :  { %v573_v45 = vpop.permute.xlu2 %572 }
 0x6fd   :  { %v575_v47 = vmul.f32 %v573_v45, %v563_v46 }
 0x6ff   :  { %577 = vrot.lane.b32.xlu0 %v575_v47, %s2056_s23 }
 0x704   :  { %v685_v7 = vpop.permute.xlu2 %684 }
 0x705   :  { %v687_v9 = vmul.f32 %v685_v7, %v680_v58 }
 0x70e   :  { %v690_v59 = vpop.permute.xlu0 %689 }
 0x70f   :  { %v692_v61 = vmul.f32 %v690_v59, %v680_v58 }
 0x711   :  { %694 = vrot.lane.b32.xlu1 %v692_v61, %s2056_s23 }
 0x719   :  { %590 = vperm.xlu1 %1907, %v588_v62  }
 0x721   :  { %710 = vrot.lane.b32.xlu1 %v2402_v0, %s2058_s10 }
 0x771   :  { %v578_v3 = vpop.permute.xlu0 %577 }
 0x772   :  { %v580_v4 = vadd.f32 %v578_v3, %v570_v1 }
 0x774   :  { %1970 = vtanh.f32 %v580_v4 }
 0x77a   :  { %v1971_v6 = vpop.eup %1970 }
 0x77b   :  { %583 = vrot.lane.b32.xlu2 %v1971_v6, %s2055_s19 }
 0x783   :  { %707 = vperm.xlu2 %1908, %v705_v8   ;;  %v695_v13 = vpop.permute.xlu1 %694 }
 0x784   :  { %v697_v15 = vadd.f32 %v695_v13, %v687_v9 }
 0x786   :  { %1972 = vtanh.f32 %v697_v15 }
 0x78b   :  { %v2446_v19 = vpop.permute.xlu1 %590 }
 0x78c   :  { %v1973_v18 = vpop.eup %1972  ;;  %vm592_vm5 = vcmp.eq.s32.totalorder %v2446_v19, 1 }
 0x78d   :  { %700 = vrot.lane.b32.xlu0 %v1973_v18, %s2055_s19  ;;  %v597_v27 = vsel %vm592_vm5, %v580_v4, %v568_v63 }
 0x793   :  { %v711_v23 = vpop.permute.xlu1 %710 }
 0x795   :  { %593 = vrot.lane.b32.xlu0 %v2394_v60, %s2058_s10 }
 0x7d5   :  { %v584_v0 = vpop.permute.xlu2 %583 }
 0x7d6   :  { %v2457_v25 = vmul.f32 %v584_v0, %v563_v46 }
 0x7dd   :  { %v2448_v20 = vpop.permute.xlu2 %707 }
 0x7de   :  { %vm709_vm4 = vcmp.eq.s32.totalorder %v2448_v20, 1 }
 0x7df   :  { %v714_v33 = vsel %vm709_vm4, %v697_v15, %v685_v7 }
 0x7ff   :  { %v701_v21 = vpop.permute.xlu0 %700 }
 0x800   :  { %v2450_v22 = vmul.f32 %v701_v21, %v680_v58 }
 0x802   :  { %v713_v24 = vsel %vm709_vm4, %v2450_v22, %v711_v23 }
 0x803   :  { %717 = vrot.lane.b32.xlu0 %v713_v24, %s2056_s23 }
 0x807   :  { %v594_v60 = vpop.permute.xlu0 %593 }
 0x808   :  { %v596_v26 = vsel %vm592_vm5, %v2457_v25, %v594_v60 }
 0x809   :  { %600 = vrot.lane.b32.xlu2 %v596_v26, %s2056_s23 }
 0x80b   :  { %605 = vrot.lane.b32.xlu0 %v597_v27, %s2058_s10 }
 0x863   :  { %v601_v17 = vpop.permute.xlu2 %600 }
 0x864   :  { %603 = vst.msk [vmem:[#allocation2] sm:$0xff] %vm23_vm0, %v601_v17 }
 0x86b   :  { %v2475_v31 = vld [vmem:[#allocation2] sm:$0xff] }
 0x86c   :  { %737 = vrot.lane.b32.xlu1 %v2475_v31, %s2055_s19 }
 0x874   :  { %722 = vrot.lane.b32.xlu1 %v714_v33, %s2058_s10 }
 0x875   :  { %v718_v12 = vpop.permute.xlu0 %717 }
 0x876   :  { %720 = vst.msk [vmem:[#allocation4] sm:$0xff] %vm23_vm0, %v718_v12 }
 0x87d   :  { %v606_v35 = vpop.permute.xlu0 %605  ;;  %v2485_v36 = vld [vmem:[#allocation4] sm:$0xff] }
 0x87e   :  { %608 = vst.msk [vmem:[#allocation3] sm:$0xff] %vm23_vm0, %v606_v35  ;;  %854 = vrot.lane.b32.xlu2 %v2485_v36, %s2055_s19 }
 0x885   :  { %v735_v11 = vld [vmem:[#allocation3] sm:$0xff] }
 0x886   :  { %801 = vrot.lane.b32.xlu1 %v735_v11, %s2056_s23 }
 0x8d8   :  { %v855_v41 = vpop.permute.xlu2 %854 }
 0x8d9   :  { %v857_v43 = vsel %vm36_vm1, %v2518_v40, %v855_v41 }
 0x8da   :  { %1869 = vmatmul.msk.f32.vlgmr.msrb.gmra.mxu3 %vm54_vm2, %v857_v43 }
 0x8de   :  { %v738_v45 = vpop.permute.xlu1 %737 }
 0x8df   :  { %v740_v46 = vsel %vm36_vm1, %v2526_v44, %v738_v45 }
 0x8e0   :  { %1865 = vmatmul.msk.f32.vlgmr.msrb.gmra.mxu2 %vm54_vm2, %v740_v46 }
 0x8e6   :  { %v723_v47 = vpop.permute.xlu1 %722 }
 0x8e7   :  { %725 = vst.msk [vmem:[#allocation5] sm:$0xff] %vm23_vm0, %v723_v47 }
 0x8ee   :  { %v852_v59 = vld [vmem:[#allocation5] sm:$0xff] }
 0x95d   :  { %v894_v42 = vpop.f32.mrf.mxu3 }
 0x95e   :  { %v895_v52 = vadd.f32 %v1916_v48, %v894_v42  ;;  %v802_v42 = vpop.permute.xlu1 %801 }
 0x960   :  { %1974 = vtanh.f32 %v895_v52  ;;  %v1870_v1 = vmul.f32 -1.442695, %v895_v52 }
 0x963   :  { %v777_v55 = vpop.f32.mrf.mxu2 }
 0x964   :  { %v778_v38 = vadd.f32 %v1917_v54, %v777_v55 }
 0x966   :  { %v1975_v57 = vpop.eup %1974  ;;  %1976 = vtanh.f32 %v778_v38  ;;  %v1866_v61 = vmul.f32 -1.442695, %v778_v38 }
 0x967   :  { %923 = vrot.lane.b32.xlu0 %v1975_v57, %s2055_s19 }
 0x968   :  { %1978 = vpow2.f32 %v1866_v61 }
 0x96c   :  { %v1977_v58 = vpop.eup %1976 }
 0x96d   :  { %806 = vrot.lane.b32.xlu2 %v1977_v58, %s2055_s19 }
 0x96e   :  { %v1979_v62 = vpop.eup %1978 }
 0x96f   :  { %v783_v63 = vadd.f32 1.0, %v1979_v62 }
 0x971   :  { %1980 = vrcp.f32 %v783_v63  ;;  %v795_v15 = vand.u32 2147483648, %v783_v63  ;;  %vm789_vm7 = vweird.f32 %v783_v63  ;;  %v793_v18 = vand.u32 2147483647, %v783_v63 }
 0x972   :  { %1982 = vpow2.f32 %v1870_v1 }
 0x973   :  { %v796_v23 = vor.u32 1.1754944e-38, %v795_v15  ;;  %vm794_vm9 = vcmp.eq.f32.partialorder %v793_v18, 8.507059e+37  ;;  %v2584_v15 = vld [vmem:[%s3129_s4 + $0x58] sm:$0xff]  ;;  %v2589_v18 = vld [vmem:[%s3129_s4 + $0x50] sm:$0xff] }
 0x974   :  { %1106 = vmatpush.msra.mxu1 %v2584_v15  ;;  %1324 = vmatpush.msra.mxu3 %v2584_v15 }
 0x975   :  { %918 = vrot.lane.b32.xlu2 %v852_v59, %s2056_s23 }
 0x976   :  { %1107 = vmatpush.msra.mxu1 %v2589_v18  ;;  %1325 = vmatpush.msra.mxu3 %v2589_v18 }
 0x977   :  { %v1981_v3 = vpop.eup %1980 }
 0x978   :  { %v785_v4 = vmul.f32 %v1981_v3, %v783_v63  ;;  %v1983_v6 = vpop.eup %1982  ;;  %vm790_vm6 = vweird.f32 %v1981_v3 }
 0x979   :  { %v900_v8 = vadd.f32 1.0, %v1983_v6  ;;  %vm791_vm8 = vmor %vm789_vm7, %vm790_vm6  ;;  %vm821_vm7 = vcmp.gt.s32.totalorder %v2291_v10, 3 }
 0x97a   :  { %v786_v7 = vsub.f32 1.0, %v785_v4  ;;  %v822_v48 = vsel %vm821_vm7, 1, %v2057_v50 }
 0x97b   :  { %1984 = vrcp.f32 %v900_v8  ;;  %v912_v35 = vand.u32 2147483648, %v900_v8  ;;  %vm906_vm11 = vweird.f32 %v900_v8  ;;  %v910_v11 = vand.u32 2147483647, %v900_v8 }
 0x97c   :  { %v787_v9 = vmul.f32 %v1981_v3, %v786_v7 }
 0x97d   :  { %v913_v43 = vor.u32 1.1754944e-38, %v912_v35  ;;  %vm911_vm6 = vcmp.eq.f32.partialorder %v910_v11, 8.507059e+37  ;;  %v2660_v35 = vld [vmem:[%s3129_s4 + $0x28] sm:$0xff] }
 0x97e   :  { %v788_v13 = vadd.f32 %v1981_v3, %v787_v9  ;;  %v2668_v11 = vld [vmem:[%s3128_s2 + $0x28] sm:$0xff] }
 0x980   :  { %v792_v21 = vsel %vm791_vm8, %v1981_v3, %v788_v13  ;;  %vm938_vm8 = vcmp.gt.s32.totalorder %v2291_v10, 4 }
 0x981   :  { %v1985_v0 = vpop.eup %1984  ;;  %v797_v26 = vsel %vm794_vm9, %v796_v23, %v792_v21  ;;  %v939_v58 = vsel %vm938_vm8, 1, %v2057_v50  ;;  %v2600_v21 = vld [vmem:[%s3128_s2 + $0x50] sm:$0xff]  ;;  %v2606_v23 = vld [vmem:[%s3129_s4 + $0x48] sm:$0xff] }
 0x982   :  { %v902_v24 = vmul.f32 %v1985_v0, %v900_v8  ;;  %vm907_vm10 = vweird.f32 %v1985_v0  ;;  %v804_v52 = vmul.f32 %v802_v42, %v797_v26  ;;  %1108 = vmatpush.msra.mxu1 %v2606_v23  ;;  %1326 = vmatpush.msra.mxu3 %v2606_v23 }
 0x983   :  { %vm908_vm3 = vmor %vm906_vm11, %vm907_vm10 }
 0x984   :  { %v903_v17 = vsub.f32 1.0, %v902_v24  ;;  %v2614_v24 = vld [vmem:[%s3128_s2 + $0x48] sm:$0xff] }
 0x986   :  { %v904_v33 = vmul.f32 %v1985_v0, %v903_v17  ;;  %v2638_v17 = vld [vmem:[%s3129_s4 + $0x38] sm:$0xff] }
 0x988   :  { %v905_v12 = vadd.f32 %v1985_v0, %v904_v33  ;;  %v2646_v33 = vld [vmem:[%s3129_s4 + $0x30] sm:$0xff] }
 0x98a   :  { %v909_v41 = vsel %vm908_vm3, %v1985_v0, %v905_v12  ;;  %v2595_v0 = vld [vmem:[%s3128_s2 + $0x58] sm:$0xff]  ;;  %v2654_v12 = vld [vmem:[%s3128_s2 + $0x30] sm:$0xff] }
 0x98b   :  { %v914_v45 = vsel %vm911_vm6, %v913_v43, %v909_v41  ;;  %997 = vmatpush.msra.mxu0 %v2595_v0  ;;  %1215 = vmatpush.msra.mxu2 %v2595_v0  ;;  %v2674_v41 = vld [vmem:[%s3129_s4 + $0x20] sm:$0xff] }
 0x98d   :  { %998 = vmatpush.msra.mxu0 %v2600_v21  ;;  %1216 = vmatpush.msra.mxu2 %v2600_v21 }
 0x98f   :  { %999 = vmatpush.msra.mxu0 %v2614_v24  ;;  %1217 = vmatpush.msra.mxu2 %v2614_v24 }
 0x9c7   :  { %v807_v60 = vpop.permute.xlu2 %806 }
 0x9c8   :  { %v809_v27 = vmul.f32 %v807_v60, %v797_v26  ;;  %v2620_v60 = vld [vmem:[%s3129_s4 + $0x40] sm:$0xff] }
 0x9c9   :  { %1109 = vmatpush.msra.mxu1 %v2620_v60  ;;  %1327 = vmatpush.msra.mxu3 %v2620_v60 }
 0x9ca   :  { %811 = vrot.lane.b32.xlu0 %v809_v27, %s2056_s23  ;;  %v2630_v27 = vld [vmem:[%s3128_s2 + $0x40] sm:$0xff] }
 0x9cb   :  { %1000 = vmatpush.msra.mxu0 %v2630_v27  ;;  %1110 = vmatpush.msra.mxu1 %v2638_v17 }
 0x9cc   :  { %1218 = vmatpush.msra.mxu2 %v2630_v27  ;;  %1328 = vmatpush.msra.mxu3 %v2638_v17 }
 0x9cd   :  { %1001 = vmatpush.msra.mxu0 %v2471_v30  ;;  %1111 = vmatpush.msra.mxu1 %v2646_v33 }
 0x9ce   :  { %1219 = vmatpush.msra.mxu2 %v2471_v30  ;;  %1329 = vmatpush.msra.mxu3 %v2646_v33 }
 0x9cf   :  { %v2549_v57 = vpop.permute.xlu2 %918  ;;  %1002 = vmatpush.msra.mxu0 %v2654_v12  ;;  %1112 = vmatpush.msra.mxu1 %v2660_v35 }
 0x9d0   :  { %v921_v59 = vmul.f32 %v2549_v57, %v914_v45  ;;  %1220 = vmatpush.msra.mxu2 %v2654_v12  ;;  %1330 = vmatpush.msra.mxu3 %v2660_v35 }
 0x9d1   :  { %1003 = vmatpush.msra.mxu0 %v2668_v11  ;;  %1113 = vmatpush.msra.mxu1 %v2674_v41 }
 0x9d2   :  { %1221 = vmatpush.msra.mxu2 %v2668_v11  ;;  %1331 = vmatpush.msra.mxu3 %v2674_v41 }
 0x9d9   :  { %v924_v46 = vpop.permute.xlu0 %923 }
 0x9da   :  { %v926_v47 = vmul.f32 %v924_v46, %v914_v45  ;;  %v2693_v46 = vld [vmem:[%s3129_s4 + $0x18] sm:$0xff] }
 0x9db   :  { %1114 = vmatpush.msra.mxu1 %v2693_v46  ;;  %1332 = vmatpush.msra.mxu3 %v2693_v46 }
 0x9dc   :  { %928 = vrot.lane.b32.xlu1 %v926_v47, %s2056_s23 }
 0x9e4   :  { %824 = vperm.xlu1 %1907, %v822_v48   ;;  %v2702_v48 = vld [vmem:[%s3129_s4 + $0x10] sm:$0xff] }
 0x9e5   :  { %1115 = vmatpush.msra.mxu1 %v2702_v48  ;;  %1333 = vmatpush.msra.mxu3 %v2702_v48 }
 0x9ec   :  { %944 = vrot.lane.b32.xlu1 %v2485_v36, %s2058_s10 }
 0xa3c   :  { %v812_v54 = vpop.permute.xlu0 %811 }
 0xa3d   :  { %v814_v55 = vadd.f32 %v812_v54, %v804_v52 }
 0xa3f   :  { %1986 = vtanh.f32 %v814_v55 }
 0xa45   :  { %v1987_v38 = vpop.eup %1986 }
 0xa46   :  { %817 = vrot.lane.b32.xlu2 %v1987_v38, %s2055_s19  ;;  %v1083_v38 = vld [vmem:[%s3129_s4] sm:$0xff] }
 0xa4e   :  { %941 = vperm.xlu2 %1908, %v939_v58   ;;  %v929_v61 = vpop.permute.xlu1 %928 }
 0xa4f   :  { %v2553_v62 = vadd.f32 %v929_v61, %v921_v59 }
 0xa51   :  { %1988 = vtanh.f32 %v2553_v62 }
 0xa56   :  { %v2559_v10 = vpop.permute.xlu1 %824 }
 0xa57   :  { %v1989_v36 = vpop.eup %1988  ;;  %vm3137_vm10 = vcmp.eq.s32.totalorder %v2559_v10, 1 }
 0xa58   :  { %934 = vrot.lane.b32.xlu0 %v1989_v36, %s2055_s19  ;;  %v831_v9 = vsel %vm3137_vm10, %v814_v55, %v802_v42  ;;  %v1084_v42 = vld [vmem:[%s3129_s4 + $0x8] sm:$0xff] }
 0xa59   :  { %1116 = vmatpush.msra.mxu1 %v1084_v42  ;;  %1334 = vmatpush.msra.mxu3 %v1084_v42 }
 0xa5b   :  { %1117 = vmatpush.msra.mxu1 %v1083_v38  ;;  %1335 = vmatpush.msra.mxu3 %v1083_v38 }
 0xa5d   :  { %1542 = vmatpush.msrb.mxu1 %v2584_v15  ;;  %1760 = vmatpush.msrb.mxu3 %v2584_v15 }
 0xa5e   :  { %v945_v4 = vpop.permute.xlu1 %944 }
 0xa5f   :  { %1543 = vmatpush.msrb.mxu1 %v2589_v18  ;;  %1761 = vmatpush.msrb.mxu3 %v2589_v18 }
 0xa60   :  { %827 = vrot.lane.b32.xlu0 %v2475_v31, %s2058_s10 }
 0xa61   :  { %1544 = vmatpush.msrb.mxu1 %v2606_v23  ;;  %1762 = vmatpush.msrb.mxu3 %v2606_v23 }
 0xa63   :  { %1545 = vmatpush.msrb.mxu1 %v2620_v60  ;;  %1763 = vmatpush.msrb.mxu3 %v2620_v60 }
 0xa65   :  { %1546 = vmatpush.msrb.mxu1 %v2638_v17  ;;  %1764 = vmatpush.msrb.mxu3 %v2638_v17 }
 0xa67   :  { %1547 = vmatpush.msrb.mxu1 %v2646_v33  ;;  %1765 = vmatpush.msrb.mxu3 %v2646_v33 }
 0xa69   :  { %1548 = vmatpush.msrb.mxu1 %v2660_v35  ;;  %1766 = vmatpush.msrb.mxu3 %v2660_v35 }
 0xa6b   :  { %1549 = vmatpush.msrb.mxu1 %v2674_v41  ;;  %1767 = vmatpush.msrb.mxu3 %v2674_v41 }
 0xa6d   :  { %1550 = vmatpush.msrb.mxu1 %v2693_v46  ;;  %1768 = vmatpush.msrb.mxu3 %v2693_v46 }
 0xa6f   :  { %1551 = vmatpush.msrb.mxu1 %v2702_v48  ;;  %1769 = vmatpush.msrb.mxu3 %v2702_v48 }
 0xa71   :  { %1552 = vmatpush.msrb.mxu1 %v1084_v42  ;;  %1770 = vmatpush.msrb.mxu3 %v1084_v42 }
 0xa73   :  { %1553 = vmatpush.msrb.mxu1 %v1083_v38  ;;  %1771 = vmatpush.msrb.mxu3 %v1083_v38 }
 0xaa0   :  { %v818_v63 = vpop.permute.xlu2 %817 }
 0xaa1   :  { %v2570_v7 = vmul.f32 %v818_v63, %v797_v26 }
 0xaa8   :  { %v2561_v1 = vpop.permute.xlu2 %941 }
 0xaa9   :  { %vm943_vm9 = vcmp.eq.s32.totalorder %v2561_v1, 1  ;;  %v481_v1 = vsel %vm475_vm12, %v2376_v53, 0.0 }
 0xaaa   :  { %v948_v43 = vsel %vm943_vm9, %v2553_v62, %v2549_v57  ;;  %v1918_v57 = vld [vmem:[%s3132_s5] ss:$0 sm:$0xff] }
 0xaca   :  { %v935_v50 = vpop.permute.xlu0 %934 }
 0xacb   :  { %v2563_v3 = vmul.f32 %v935_v50, %v914_v45  ;;  %v2686_v45 = vld [vmem:[%s3128_s2 + $0x20] sm:$0xff] }
 0xacc   :  { %1004 = vmatpush.msra.mxu0 %v2686_v45  ;;  %1222 = vmatpush.msra.mxu2 %v2686_v45 }
 0xacd   :  { %v947_v6 = vsel %vm943_vm9, %v2563_v3, %v945_v4 }
 0xace   :  { %951 = vrot.lane.b32.xlu0 %v947_v6, %s2056_s23  ;;  %1005 = vmatpush.msra.mxu0 %v2494_v14 }
 0xacf   :  { %1223 = vmatpush.msra.mxu2 %v2494_v14 }
 0xad0   :  { %1006 = vmatpush.msra.mxu0 %v2500_v16 }
 0xad1   :  { %1224 = vmatpush.msra.mxu2 %v2500_v16 }
 0xad2   :  { %v828_v31 = vpop.permute.xlu0 %827  ;;  %1007 = vmatpush.msra.mxu0 %v2505_v37 }
 0xad3   :  { %v830_v8 = vsel %vm3137_vm10, %v2570_v7, %v828_v31  ;;  %1225 = vmatpush.msra.mxu2 %v2505_v37 }
 0xad4   :  { %834 = vrot.lane.b32.xlu2 %v830_v8, %s2056_s23  ;;  %1008 = vmatpush.msra.mxu0 %v2512_v39 }
 0xad5   :  { %1226 = vmatpush.msra.mxu2 %v2512_v39 }
 0xad6   :  { %839 = vrot.lane.b32.xlu0 %v831_v9, %s2058_s10  ;;  %1433 = vmatpush.msrb.mxu0 %v2595_v0 }
 0xad7   :  { %1651 = vmatpush.msrb.mxu2 %v2595_v0 }
 0xad8   :  { %1434 = vmatpush.msrb.mxu0 %v2600_v21 }
 0xad9   :  { %1652 = vmatpush.msrb.mxu2 %v2600_v21 }
 0xada   :  { %1435 = vmatpush.msrb.mxu0 %v2614_v24 }
 0xadb   :  { %1653 = vmatpush.msrb.mxu2 %v2614_v24 }
 0xadc   :  { %1436 = vmatpush.msrb.mxu0 %v2630_v27 }
 0xadd   :  { %1654 = vmatpush.msrb.mxu2 %v2630_v27 }
 0xade   :  { %1437 = vmatpush.msrb.mxu0 %v2471_v30 }
 0xae0   :  { %1438 = vmatpush.msrb.mxu0 %v2654_v12 }
 0xae2   :  { %1439 = vmatpush.msrb.mxu0 %v2668_v11 }
 0xae4   :  { %1440 = vmatpush.msrb.mxu0 %v2686_v45 }
 0xae6   :  { %1441 = vmatpush.msrb.mxu0 %v2494_v14 }
 0xae8   :  { %1442 = vmatpush.msrb.mxu0 %v2500_v16 }
 0xaea   :  { %1443 = vmatpush.msrb.mxu0 %v2505_v37 }
 0xaec   :  { %1444 = vmatpush.msrb.mxu0 %v2512_v39 }
 0xb2e   :  { %v835_v13 = vpop.permute.xlu2 %834 }
 0xb2f   :  { %837 = vst.msk [vmem:[#allocation2] sm:$0xff] %vm23_vm0, %v835_v13 }
 0xb36   :  { %v2624_v26 = vld [vmem:[#allocation2] sm:$0xff] }
 0xb37   :  { %970 = vrot.lane.b32.xlu1 %v2624_v26, %s2055_s19 }
 0xb3f   :  { %956 = vrot.lane.b32.xlu1 %v948_v43, %s2058_s10 }
 0xb40   :  { %v952_v47 = vpop.permute.xlu0 %951 }
 0xb41   :  { %954 = vst.msk [vmem:[#allocation4] sm:$0xff] %vm23_vm0, %v952_v47 }
 0xb48   :  { %v840_v52 = vpop.permute.xlu0 %839  ;;  %v2720_v54 = vld [vmem:[#allocation4] sm:$0xff] }
 0xb49   :  { %842 = vst.msk [vmem:[#allocation3] sm:$0xff] %vm23_vm0, %v840_v52  ;;  %1079 = vrot.lane.b32.xlu2 %v2720_v54, %s2055_s19 }
 0xb50   :  { %v968_v55 = vld [vmem:[#allocation3] sm:$0xff] }
 0xb51   :  { %1034 = vrot.lane.b32.xlu1 %v968_v55, %s2056_s23 }
 0xba3   :  { %v1080_v30 = vpop.permute.xlu2 %1079 }
 0xba4   :  { %v1082_v14 = vsel %vm36_vm1, %v2526_v44, %v1080_v30  ;;  %v1919_v44 = vld [vmem:[%s3130_s3] ss:$0 sm:$0xff] }
 0xba5   :  { %1877 = vmatmul.msk.f32.vlgmr.msra.gmra.mxu1 %vm54_vm2, %v1082_v14 }
 0xba9   :  { %v971_v16 = vpop.permute.xlu1 %970 }
 0xbaa   :  { %v973_v37 = vsel %vm36_vm1, %v2518_v40, %v971_v16 }
 0xbab   :  { %1873 = vmatmul.msk.f32.vlgmr.msra.gmra.mxu0 %vm54_vm2, %v973_v37 }
 0xbb1   :  { %v957_v39 = vpop.permute.xlu1 %956 }
 0xbb2   :  { %959 = vst.msk [vmem:[#allocation5] sm:$0xff] %vm23_vm0, %v957_v39 }
 0xbb9   :  { %v1077_v63 = vld [vmem:[#allocation5] sm:$0xff] }
 0xbc3   :  { %v1035_v37 = vpop.permute.xlu1 %1034 }
 0xc22   :  { %v1119_v58 = vpop.f32.mrf.mxu1 }
 0xc23   :  { %v1120_v59 = vadd.f32 %v1918_v57, %v1119_v58 }
 0xc25   :  { %1990 = vtanh.f32 %v1120_v59  ;;  %v1878_v31 = vmul.f32 -1.442695, %v1120_v59 }
 0xc28   :  { %v1010_v61 = vpop.f32.mrf.mxu0 }
 0xc29   :  { %v1011_v62 = vadd.f32 %v1919_v44, %v1010_v61 }
 0xc2b   :  { %v1991_v36 = vpop.eup %1990  ;;  %1992 = vtanh.f32 %v1011_v62  ;;  %v1874_v50 = vmul.f32 -1.442695, %v1011_v62 }
 0xc2c   :  { %1148 = vrot.lane.b32.xlu0 %v1991_v36, %s2055_s19 }
 0xc2d   :  { %1994 = vpow2.f32 %v1874_v50 }
 0xc31   :  { %v1993_v40 = vpop.eup %1992 }
 0xc32   :  { %1039 = vrot.lane.b32.xlu2 %v1993_v40, %s2055_s19 }
 0xc33   :  { %v1995_v4 = vpop.eup %1994 }
 0xc34   :  { %v1016_v6 = vadd.f32 1.0, %v1995_v4 }
 0xc36   :  { %1996 = vrcp.f32 %v1016_v6  ;;  %v1028_v23 = vand.u32 2147483648, %v1016_v6  ;;  %vm1022_vm3 = vweird.f32 %v1016_v6  ;;  %v1026_v24 = vand.u32 2147483647, %v1016_v6 }
 0xc37   :  { %1998 = vpow2.f32 %v1878_v31 }
 0xc38   :  { %v1029_v17 = vor.u32 1.1754944e-38, %v1028_v23  ;;  %vm1027_vm7 = vcmp.eq.f32.partialorder %v1026_v24, 8.507059e+37 }
 0xc3a   :  { %1143 = vrot.lane.b32.xlu2 %v1077_v63, %s2056_s23 }
 0xc3c   :  { %v1997_v8 = vpop.eup %1996 }
 0xc3d   :  { %v1018_v9 = vmul.f32 %v1997_v8, %v1016_v6  ;;  %v1999_v13 = vpop.eup %1998  ;;  %vm1023_vm11 = vweird.f32 %v1997_v8 }
 0xc3e   :  { %v1125_v18 = vadd.f32 1.0, %v1999_v13  ;;  %vm1024_vm6 = vmor %vm1022_vm3, %vm1023_vm11 }
 0xc3f   :  { %v1019_v15 = vsub.f32 1.0, %v1018_v9 }
 0xc40   :  { %2000 = vrcp.f32 %v1125_v18  ;;  %v1137_v42 = vand.u32 2147483648, %v1125_v18  ;;  %vm1131_vm13 = vweird.f32 %v1125_v18  ;;  %v1135_v52 = vand.u32 2147483647, %v1125_v18 }
 0xc41   :  { %v1020_v0 = vmul.f32 %v1997_v8, %v1019_v15 }
 0xc42   :  { %v1138_v38 = vor.u32 1.1754944e-38, %v1137_v42  ;;  %vm1136_vm11 = vcmp.eq.f32.partialorder %v1135_v52, 8.507059e+37 }
 0xc43   :  { %v1021_v21 = vadd.f32 %v1997_v8, %v1020_v0 }
 0xc45   :  { %v1025_v27 = vsel %vm1024_vm6, %v1997_v8, %v1021_v21 }
 0xc46   :  { %v2001_v60 = vpop.eup %2000  ;;  %v1030_v41 = vsel %vm1027_vm7, %v1029_v17, %v1025_v27 }
 0xc47   :  { %v1127_v33 = vmul.f32 %v2001_v60, %v1125_v18  ;;  %vm1132_vm8 = vweird.f32 %v2001_v60  ;;  %v1037_v39 = vmul.f32 %v1035_v37, %v1030_v41 }
 0xc48   :  { %vm1133_vm14 = vmor %vm1131_vm13, %vm1132_vm8 }
 0xc49   :  { %v1128_v46 = vsub.f32 1.0, %v1127_v33 }
 0xc4b   :  { %v1129_v47 = vmul.f32 %v2001_v60, %v1128_v46 }
 0xc4d   :  { %v1130_v48 = vadd.f32 %v2001_v60, %v1129_v47 }
 0xc4f   :  { %v1134_v55 = vsel %vm1133_vm14, %v2001_v60, %v1130_v48  ;;  %v1921_v48 = vld [vmem:[%s3132_s5] ss:$0 sm:$0xff] }
 0xc50   :  { %v1139_v30 = vsel %vm1136_vm11, %v1138_v38, %v1134_v55 }
 0xc8c   :  { %v1040_v35 = vpop.permute.xlu2 %1039 }
 0xc8d   :  { %v1042_v43 = vmul.f32 %v1040_v35, %v1030_v41 }
 0xc8f   :  { %1044 = vrot.lane.b32.xlu0 %v1042_v43, %s2056_s23 }
 0xc94   :  { %v1144_v44 = vpop.permute.xlu2 %1143 }
 0xc95   :  { %v1146_v61 = vmul.f32 %v1144_v44, %v1139_v30 }
 0xc9e   :  { %v1149_v14 = vpop.permute.xlu0 %1148 }
 0xc9f   :  { %v1151_v16 = vmul.f32 %v1149_v14, %v1139_v30 }
 0xca1   :  { %1153 = vrot.lane.b32.xlu1 %v1151_v16, %s2056_s23 }
 0xca9   :  { %1054 = vrot.lane.b32.xlu1 %v2624_v26, %s2058_s10 }
 0xd01   :  { %v1045_v57 = vpop.permute.xlu0 %1044 }
 0xd02   :  { %v1047_v58 = vadd.f32 %v1045_v57, %v1037_v39 }
 0xd04   :  { %2002 = vtanh.f32 %v1047_v58  ;;  %v1058_v9 = vsel %vm943_vm9, %v1047_v58, %v1035_v37 }
 0xd0a   :  { %v2003_v59 = vpop.eup %2002 }
 0xd0b   :  { %1050 = vrot.lane.b32.xlu2 %v2003_v59, %s2055_s19 }
 0xd13   :  { %1163 = vrot.lane.b32.xlu2 %v2720_v54, %s2058_s10  ;;  %v1154_v62 = vpop.permute.xlu1 %1153 }
 0xd14   :  { %v1156_v36 = vadd.f32 %v1154_v62, %v1146_v61 }
 0xd16   :  { %2004 = vtanh.f32 %v1156_v36  ;;  %v1167_v18 = vsel %vm3137_vm10, %v1156_v36, %v1144_v44 }
 0xd1b   :  { %v1055_v50 = vpop.permute.xlu1 %1054 }
 0xd1c   :  { %v2005_v40 = vpop.eup %2004 }
 0xd1d   :  { %1159 = vrot.lane.b32.xlu0 %v2005_v40, %s2055_s19 }
 0xd65   :  { %v1051_v26 = vpop.permute.xlu2 %1050 }
 0xd66   :  { %v2792_v63 = vmul.f32 %v1051_v26, %v1030_v41  ;;  %v1920_v41 = vld [vmem:[%s3130_s3] ss:$0 sm:$0xff] }
 0xd68   :  { %v1057_v4 = vsel %vm943_vm9, %v2792_v63, %v1055_v50 }
 0xd69   :  { %1061 = vrot.lane.b32.xlu0 %v1057_v4, %s2056_s23 }
 0xd6d   :  { %v1164_v54 = vpop.permute.xlu2 %1163 }
 0xd8f   :  { %v1160_v6 = vpop.permute.xlu0 %1159 }
 0xd90   :  { %v2798_v31 = vmul.f32 %v1160_v6, %v1139_v30 }
 0xd92   :  { %v1166_v8 = vsel %vm3137_vm10, %v2798_v31, %v1164_v54 }
 0xd93   :  { %1170 = vrot.lane.b32.xlu1 %v1166_v8, %s2056_s23 }
 0xd9b   :  { %1066 = vrot.lane.b32.xlu1 %v1058_v9, %s2058_s10 }
 0xddb   :  { %v1062_v13 = vpop.permute.xlu0 %1061 }
 0xddc   :  { %1064 = vst.msk [vmem:[#allocation2] sm:$0xff] %vm23_vm0, %v1062_v13 }
 0xde3   :  { %v2808_v15 = vld [vmem:[#allocation2] sm:$0xff] }
 0xde4   :  { %1188 = vrot.lane.b32.xlu2 %v2808_v15, %s2055_s19 }
 0xdec   :  { %1175 = vrot.lane.b32.xlu2 %v1167_v18, %s2058_s10 }
 0xe05   :  { %v1171_v0 = vpop.permute.xlu1 %1170 }
 0xe06   :  { %1173 = vst.msk [vmem:[#allocation4] sm:$0xff] %vm23_vm0, %v1171_v0 }
 0xe0d   :  { %v1067_v21 = vpop.permute.xlu1 %1066  ;;  %v2816_v23 = vld [vmem:[#allocation4] sm:$0xff] }
 0xe0e   :  { %1069 = vst.msk [vmem:[#allocation3] sm:$0xff] %vm23_vm0, %v1067_v21  ;;  %1297 = vrot.lane.b32.xlu0 %v2816_v23, %s2055_s19 }
 0xe15   :  { %v1186_v24 = vld [vmem:[#allocation3] sm:$0xff] }
 0xe16   :  { %1252 = vrot.lane.b32.xlu2 %v1186_v24, %s2056_s23 }
 0xe3e   :  { %v1189_v60 = vpop.permute.xlu2 %1188 }
 0xe3f   :  { %v1191_v27 = vsel %vm36_vm1, %v2411_v2, %v1189_v60 }
 0xe40   :  { %1881 = vmatmul.msk.f32.vlgmr.msra.gmra.mxu2 %vm54_vm2, %v1191_v27 }
 0xe46   :  { %v1176_v17 = vpop.permute.xlu2 %1175 }
 0xe47   :  { %1178 = vst.msk [vmem:[#allocation5] sm:$0xff] %vm23_vm0, %v1176_v17 }
 0xe4e   :  { %v1295_v2 = vld [vmem:[#allocation5] sm:$0xff] }
 0xe80   :  { %v1298_v33 = vpop.permute.xlu0 %1297 }
 0xe81   :  { %v1300_v35 = vsel %vm36_vm1, %v2419_v5, %v1298_v33  ;;  %v1253_v33 = vpop.permute.xlu2 %1252 }
 0xe82   :  { %1885 = vmatmul.msk.f32.vlgmr.msra.gmra.mxu3 %vm54_vm2, %v1300_v35 }
 0xec3   :  { %v1228_v43 = vpop.f32.mrf.mxu2 }
 0xec4   :  { %v1229_v46 = vadd.f32 %v1920_v41, %v1228_v43 }
 0xec6   :  { %2006 = vtanh.f32 %v1229_v46  ;;  %v1882_v55 = vmul.f32 -1.442695, %v1229_v46 }
 0xecc   :  { %v2007_v47 = vpop.eup %2006 }
 0xecd   :  { %1257 = vrot.lane.b32.xlu0 %v2007_v47, %s2055_s19 }
 0xed5   :  { %1361 = vrot.lane.b32.xlu0 %v1295_v2, %s2056_s23 }
 0xf05   :  { %v1337_v5 = vpop.f32.mrf.mxu3 }
 0xf06   :  { %v1338_v42 = vadd.f32 %v1921_v48, %v1337_v5 }
 0xf08   :  { %2008 = vtanh.f32 %v1338_v42  ;;  %v1886_v26 = vmul.f32 -1.442695, %v1338_v42 }
 0xf09   :  { %2010 = vpow2.f32 %v1882_v55 }
 0xf0e   :  { %v2009_v52 = vpop.eup %2008 }
 0xf0f   :  { %1366 = vrot.lane.b32.xlu1 %v2009_v52, %s2055_s19  ;;  %v2011_v38 = vpop.eup %2010 }
 0xf10   :  { %v1234_v30 = vadd.f32 1.0, %v2011_v38 }
 0xf12   :  { %2012 = vrcp.f32 %v1234_v30  ;;  %v1246_v58 = vand.u32 2147483648, %v1234_v30  ;;  %vm1240_vm14 = vweird.f32 %v1234_v30  ;;  %v1244_v59 = vand.u32 2147483647, %v1234_v30 }
 0xf13   :  { %2014 = vpow2.f32 %v1886_v26 }
 0xf14   :  { %v1247_v61 = vor.u32 1.1754944e-38, %v1246_v58  ;;  %vm1245_vm6 = vcmp.eq.f32.partialorder %v1244_v59, 8.507059e+37 }
 0xf18   :  { %v2013_v14 = vpop.eup %2012 }
 0xf19   :  { %v1236_v16 = vmul.f32 %v2013_v14, %v1234_v30  ;;  %vm1241_vm13 = vweird.f32 %v2013_v14  ;;  %v2015_v50 = vpop.eup %2014 }
 0xf1a   :  { %vm1242_vm3 = vmor %vm1240_vm14, %vm1241_vm13  ;;  %v1343_v4 = vadd.f32 1.0, %v2015_v50 }
 0xf1b   :  { %v1237_v37 = vsub.f32 1.0, %v1236_v16 }
 0xf1c   :  { %2016 = vrcp.f32 %v1343_v4  ;;  %v1355_v18 = vand.u32 2147483648, %v1343_v4  ;;  %vm1349_vm8 = vweird.f32 %v1343_v4  ;;  %v1353_v0 = vand.u32 2147483647, %v1343_v4 }
 0xf1d   :  { %v1238_v39 = vmul.f32 %v2013_v14, %v1237_v37 }
 0xf1e   :  { %v1356_v24 = vor.u32 1.1754944e-38, %v1355_v18  ;;  %vm1354_vm13 = vcmp.eq.f32.partialorder %v1353_v0, 8.507059e+37  ;;  %v1923_v0 = vld [vmem:[%s3132_s5] ss:$0 sm:$0xff] }
 0xf1f   :  { %v1239_v57 = vadd.f32 %v2013_v14, %v1238_v39 }
 0xf21   :  { %v1243_v44 = vsel %vm1242_vm3, %v2013_v14, %v1239_v57 }
 0xf22   :  { %v1248_v62 = vsel %vm1245_vm6, %v1247_v61, %v1243_v44  ;;  %v2017_v6 = vpop.eup %2016 }
 0xf23   :  { %v1345_v54 = vmul.f32 %v2017_v6, %v1343_v4  ;;  %vm1350_vm7 = vweird.f32 %v2017_v6  ;;  %v1255_v35 = vmul.f32 %v1253_v33, %v1248_v62  ;;  %v1892_v4 = vld [vmem:[%s3131_s1 + $0x8] sm:$0xff] }
 0xf24   :  { %vm1351_vm11 = vmor %vm1349_vm8, %vm1350_vm7 }
 0xf25   :  { %v1346_v8 = vsub.f32 1.0, %v1345_v54 }
 0xf27   :  { %v1347_v9 = vmul.f32 %v2017_v6, %v1346_v8  ;;  %v1922_v8 = vld [vmem:[%s3130_s3] ss:$0 sm:$0xff] }
 0xf29   :  { %v1348_v13 = vadd.f32 %v2017_v6, %v1347_v9 }
 0xf2b   :  { %v1352_v21 = vsel %vm1351_vm11, %v2017_v6, %v1348_v13 }
 0xf2c   :  { %v1357_v60 = vsel %vm1354_vm13, %v1356_v24, %v1352_v21 }
 0xf3f   :  { %v1258_v36 = vpop.permute.xlu0 %1257 }
 0xf40   :  { %v1260_v40 = vmul.f32 %v1258_v36, %v1248_v62  ;;  %v1888_v36 = vld [vmem:[%s3131_s1 + $0x30] sm:$0xff] }
 0xf42   :  { %1262 = vrot.lane.b32.xlu1 %v1260_v40, %s2056_s23 }
 0xf47   :  { %v1362_v47 = vpop.permute.xlu0 %1361 }
 0xf48   :  { %v1364_v2 = vmul.f32 %v1362_v47, %v1357_v60 }
 0xf81   :  { %v1367_v27 = vpop.permute.xlu1 %1366 }
 0xf82   :  { %v1369_v17 = vmul.f32 %v1367_v27, %v1357_v60 }
 0xf84   :  { %1371 = vrot.lane.b32.xlu2 %v1369_v17, %s2056_s23 }
 0xf8c   :  { %1272 = vrot.lane.b32.xlu2 %v2808_v15, %s2058_s10 }
 0xfb4   :  { %v1263_v41 = vpop.permute.xlu1 %1262 }
 0xfb5   :  { %v1265_v43 = vadd.f32 %v1263_v41, %v1255_v35 }
 0xfb7   :  { %2018 = vtanh.f32 %v1265_v43  ;;  %v1276_v37 = vsel %vm709_vm4, %v1265_v43, %v1253_v33 }
 0xfbd   :  { %v2019_v46 = vpop.eup %2018 }
 0xfbe   :  { %1268 = vrot.lane.b32.xlu0 %v2019_v46, %s2055_s19 }
 0xfc6   :  { %1381 = vrot.lane.b32.xlu0 %v2816_v23, %s2058_s10 }
 0xfde   :  { %v1372_v48 = vpop.permute.xlu2 %1371 }
 0xfdf   :  { %v1374_v5 = vadd.f32 %v1372_v48, %v1364_v2 }
 0xfe1   :  { %2020 = vtanh.f32 %v1374_v5  ;;  %v1385_v58 = vsel %vm592_vm5, %v1374_v5, %v1362_v47 }
 0xfe6   :  { %v1273_v55 = vpop.permute.xlu2 %1272 }
 0xfe7   :  { %v2021_v42 = vpop.eup %2020 }
 0xfe8   :  { %1377 = vrot.lane.b32.xlu1 %v2021_v42, %s2055_s19 }
0x1030   :  { %v1269_v15 = vpop.permute.xlu0 %1268 }
0x1031   :  { %v2846_v52 = vmul.f32 %v1269_v15, %v1248_v62 }
0x1033   :  { %v1275_v38 = vsel %vm709_vm4, %v2846_v52, %v1273_v55 }
0x1034   :  { %1279 = vrot.lane.b32.xlu1 %v1275_v38, %s2056_s23 }
0x1038   :  { %v1382_v14 = vpop.permute.xlu0 %1381 }
0x105a   :  { %v1378_v30 = vpop.permute.xlu1 %1377 }
0x105b   :  { %v2852_v23 = vmul.f32 %v1378_v30, %v1357_v60 }
0x105d   :  { %v1384_v16 = vsel %vm592_vm5, %v2852_v23, %v1382_v14  ;;  %v1386_v20 = vsel %vm592_vm5, %v2852_v23, 0.0 }
0x105e   :  { %1388 = vrot.lane.b32.xlu2 %v1384_v16, %s2056_s23 }
0x1066   :  { %1284 = vrot.lane.b32.xlu2 %v1276_v37, %s2058_s10 }
0x10a6   :  { %v1280_v39 = vpop.permute.xlu1 %1279 }
0x10a7   :  { %1282 = vst.msk [vmem:[#allocation2] sm:$0xff] %vm23_vm0, %v1280_v39 }
0x10ae   :  { %v2862_v57 = vld [vmem:[#allocation2] sm:$0xff] }
0x10af   :  { %1406 = vrot.lane.b32.xlu0 %v2862_v57, %s2055_s19 }
0x10b7   :  { %1393 = vrot.lane.b32.xlu0 %v1385_v58, %s2058_s10 }
0x10b8   :  { %v1389_v59 = vpop.permute.xlu2 %1388 }
0x10b9   :  { %1391 = vst.msk [vmem:[#allocation4] sm:$0xff] %vm23_vm0, %v1389_v59 }
0x10c0   :  { %v1285_v44 = vpop.permute.xlu2 %1284  ;;  %v2870_v61 = vld [vmem:[#allocation4] sm:$0xff] }
0x10c1   :  { %1287 = vst.msk [vmem:[#allocation3] sm:$0xff] %vm23_vm0, %v1285_v44  ;;  %1515 = vrot.lane.b32.xlu1 %v2870_v61, %s2055_s19 }
0x10c8   :  { %v1404_v62 = vld [vmem:[#allocation3] sm:$0xff] }
0x10c9   :  { %1470 = vrot.lane.b32.xlu0 %v1404_v62, %s2056_s23 }
0x1121   :  { %v1407_v40 = vpop.permute.xlu0 %1406 }
0x1122   :  { %v1409_v26 = vsel %vm36_vm1, %v1888_v36, %v1407_v40 }
0x1123   :  { %1889 = vmatmul.msk.f32.vlgmr.msrb.gmra.mxu0 %vm54_vm2, %v1409_v26 }
0x1129   :  { %v1394_v50 = vpop.permute.xlu0 %1393 }
0x112a   :  { %1396 = vst.msk [vmem:[#allocation5] sm:$0xff] %vm23_vm0, %v1394_v50 }
0x1131   :  { %v1513_v21 = vld [vmem:[#allocation5] sm:$0xff] }
0x1133   :  { %v1516_v6 = vpop.permute.xlu1 %1515 }
0x1134   :  { %v1518_v54 = vsel %vm36_vm1, %v1892_v4, %v1516_v6 }
0x1135   :  { %1893 = vmatmul.msk.f32.vlgmr.msrb.gmra.mxu1 %vm54_vm2, %v1518_v54 }
0x11a0   :  { %v1446_v9 = vpop.f32.mrf.mxu0 }
0x11a1   :  { %v1447_v13 = vadd.f32 %v1922_v8, %v1446_v9  ;;  %v1471_v8 = vpop.permute.xlu0 %1470 }
0x11a3   :  { %2022 = vtanh.f32 %v1447_v13  ;;  %v1890_v33 = vmul.f32 -1.442695, %v1447_v13 }
0x11a9   :  { %v2023_v18 = vpop.eup %2022 }
0x11aa   :  { %1475 = vrot.lane.b32.xlu1 %v2023_v18, %s2055_s19 }
0x11b2   :  { %1579 = vrot.lane.b32.xlu1 %v1513_v21, %s2056_s23  ;;  %v1555_v24 = vpop.f32.mrf.mxu1 }
0x11b3   :  { %v1556_v60 = vadd.f32 %v1923_v0, %v1555_v24 }
0x11b5   :  { %2024 = vtanh.f32 %v1556_v60  ;;  %v1894_v17 = vmul.f32 -1.442695, %v1556_v60 }
0x11b7   :  { %2026 = vpow2.f32 %v1894_v17 }
0x11b8   :  { %2028 = vpow2.f32 %v1890_v33 }
0x11bb   :  { %v2025_v27 = vpop.eup %2024 }
0x11bc   :  { %1584 = vrot.lane.b32.xlu2 %v2025_v27, %s2055_s19 }
0x11bd   :  { %v2027_v35 = vpop.eup %2026 }
0x11be   :  { %v1561_v41 = vadd.f32 1.0, %v2027_v35  ;;  %v2029_v43 = vpop.eup %2028 }
0x11bf   :  { %v1452_v46 = vadd.f32 1.0, %v2029_v43 }
0x11c0   :  { %2030 = vrcp.f32 %v1561_v41  ;;  %v1573_v30 = vand.u32 2147483648, %v1561_v41  ;;  %vm1567_vm3 = vweird.f32 %v1561_v41  ;;  %v1571_v14 = vand.u32 2147483647, %v1561_v41 }
0x11c1   :  { %2032 = vrcp.f32 %v1452_v46  ;;  %v1464_v62 = vand.u32 2147483648, %v1452_v46  ;;  %vm1458_vm11 = vweird.f32 %v1452_v46  ;;  %v1462_v40 = vand.u32 2147483647, %v1452_v46 }
0x11c2   :  { %v1574_v39 = vor.u32 1.1754944e-38, %v1573_v30  ;;  %vm1572_vm7 = vcmp.eq.f32.partialorder %v1571_v14, 8.507059e+37  ;;  %v1629_v30 = vld [vmem:[%s3128_s2 + $0x8] sm:$0xff] }
0x11c3   :  { %v1465_v50 = vor.u32 1.1754944e-38, %v1464_v62  ;;  %vm1463_vm10 = vcmp.eq.f32.partialorder %v1462_v40, 8.507059e+37  ;;  %v1924_v40 = vld [vmem:[%s3130_s3] ss:$0 sm:$0xff] }
0x11c6   :  { %v2031_v47 = vpop.eup %2030 }
0x11c7   :  { %v1563_v2 = vmul.f32 %v2031_v47, %v1561_v41  ;;  %v2033_v48 = vpop.eup %2032  ;;  %vm1568_vm14 = vweird.f32 %v2031_v47 }
0x11c8   :  { %v1454_v42 = vmul.f32 %v2033_v48, %v1452_v46  ;;  %vm1569_vm6 = vmor %vm1567_vm3, %vm1568_vm14  ;;  %vm1459_vm8 = vweird.f32 %v2033_v48  ;;  %vm3138_vm3 = vcmp.eq.s32.totalorder %v2304_v28, 1 }
0x11c9   :  { %v1564_v5 = vsub.f32 1.0, %v1563_v2  ;;  %vm1460_vm13 = vmor %vm1458_vm11, %vm1459_vm8 }
0x11ca   :  { %v1455_v55 = vsub.f32 1.0, %v1454_v42  ;;  %v1635_v42 = vld [vmem:[%s3128_s2 + $0x38] sm:$0xff] }
0x11cb   :  { %v1565_v15 = vmul.f32 %v2031_v47, %v1564_v5  ;;  %1655 = vmatpush.msrb.mxu2 %v1635_v42 }
0x11cc   :  { %v1456_v16 = vmul.f32 %v2033_v48, %v1455_v55  ;;  %v1631_v55 = vld [vmem:[%s3128_s2 + $0x18] sm:$0xff] }
0x11cd   :  { %v1566_v38 = vadd.f32 %v2031_v47, %v1565_v15  ;;  %1656 = vmatpush.msrb.mxu2 %v2654_v12 }
0x11ce   :  { %v1457_v58 = vadd.f32 %v2033_v48, %v1456_v16  ;;  %v1628_v16 = vld [vmem:[%s3128_s2] sm:$0xff] }
0x11cf   :  { %v1570_v37 = vsel %vm1569_vm6, %v2031_v47, %v1566_v38  ;;  %1657 = vmatpush.msrb.mxu2 %v2668_v11  ;;  %v1630_v38 = vld [vmem:[%s3128_s2 + $0x10] sm:$0xff] }
0x11d0   :  { %v1575_v44 = vsel %vm1572_vm7, %v1574_v39, %v1570_v37  ;;  %v1461_v26 = vsel %vm1460_vm13, %v2033_v48, %v1457_v58  ;;  %v1896_v37 = vld [vmem:[%s3131_s1 + $0x38] sm:$0xff]  ;;  %vm3139_vm13 = vcmp.eq.s32.totalorder %v2306_v29, 1 }
0x11d1   :  { %v1466_v4 = vsel %vm1463_vm10, %v1465_v50, %v1461_v26  ;;  %1658 = vmatpush.msrb.mxu2 %v2686_v45 }
0x11d2   :  { %v1473_v9 = vmul.f32 %v1471_v8, %v1466_v4 }
0x11d3   :  { %1659 = vmatpush.msrb.mxu2 %v1631_v55 }
0x11d5   :  { %1660 = vmatpush.msrb.mxu2 %v1630_v38 }
0x11d7   :  { %1661 = vmatpush.msrb.mxu2 %v1629_v30  ;;  %v130_v30 = vsel %vm3138_vm3, %v2315_v34, 0.0  ;;  %v246_v34 = vsel %vm3139_vm13, %v2308_v32, 0.0 }
0x11d9   :  { %1662 = vmatpush.msrb.mxu2 %v1628_v16 }
0x1216   :  { %v1585_v59 = vpop.permute.xlu2 %1584 }
0x1217   :  { %v1587_v36 = vmul.f32 %v1585_v59, %v1575_v44  ;;  %v1729_v59 = vld [vmem:[%s3131_s1] sm:$0xff] }
0x1219   :  { %1589 = vrot.lane.b32.xlu0 %v1587_v36, %s2056_s23 }
0x121c   :  { %v1476_v6 = vpop.permute.xlu1 %1475 }
0x121d   :  { %v1478_v54 = vmul.f32 %v1476_v6, %v1466_v4 }
0x121f   :  { %1480 = vrot.lane.b32.xlu2 %v1478_v54, %s2056_s23 }
0x1221   :  { %1490 = vrot.lane.b32.xlu0 %v2862_v57, %s2058_s10 }
0x1224   :  { %v1580_v21 = vpop.permute.xlu1 %1579 }
0x1225   :  { %v1582_v24 = vmul.f32 %v1580_v21, %v1575_v44 }
0x1279   :  { %v1481_v13 = vpop.permute.xlu2 %1480 }
0x127a   :  { %v1483_v18 = vadd.f32 %v1481_v13, %v1473_v9 }
0x127c   :  { %2034 = vtanh.f32 %v1483_v18  ;;  %v1494_v2 = vsel %vm475_vm12, %v1483_v18, %v1471_v8 }
0x1282   :  { %v2035_v0 = vpop.eup %2034 }
0x1283   :  { %1486 = vrot.lane.b32.xlu1 %v2035_v0, %s2055_s19 }
0x128b   :  { %v1590_v60 = vpop.permute.xlu0 %1589  ;;  %1599 = vrot.lane.b32.xlu1 %v2870_v61, %s2058_s10 }
0x128c   :  { %v1592_v27 = vadd.f32 %v1590_v60, %v1582_v24 }
0x128e   :  { %2036 = vtanh.f32 %v1592_v27  ;;  %v1603_v15 = vsel %vm358_vm15, %v1592_v27, %v1580_v21 }
0x1293   :  { %v1491_v35 = vpop.permute.xlu0 %1490 }
0x1294   :  { %v2037_v17 = vpop.eup %2036 }
0x1295   :  { %1595 = vrot.lane.b32.xlu2 %v2037_v17, %s2055_s19 }
0x12ef   :  { %v1596_v43 = vpop.permute.xlu2 %1595 }
0x12f0   :  { %v2910_v46 = vmul.f32 %v1596_v43, %v1575_v44 }
0x12f2   :  { %v1604_v32 = vsel %vm358_vm15, %v2910_v46, 0.0 }
0x12f5   :  { %v1487_v57 = vpop.permute.xlu1 %1486 }
0x12f6   :  { %v2904_v33 = vmul.f32 %v1487_v57, %v1466_v4  ;;  %v1925_v4 = vld [vmem:[%s3132_s5] ss:$0 sm:$0xff] }
0x12f8   :  { %v1493_v41 = vsel %vm475_vm12, %v2904_v33, %v1491_v35 }
0x12f9   :  { %1497 = vrot.lane.b32.xlu2 %v1493_v41, %s2056_s23 }
0x12fd   :  { %v1600_v47 = vpop.permute.xlu1 %1599 }
0x12fe   :  { %v1602_v61 = vsel %vm358_vm15, %v2910_v46, %v1600_v47  ;;  %v715_v46 = vsel %vm709_vm4, %v2450_v22, 0.0 }
0x12ff   :  { %1606 = vrot.lane.b32.xlu0 %v1602_v61, %s2056_s23 }
0x1307   :  { %1502 = vrot.lane.b32.xlu0 %v1494_v2, %s2058_s10 }
0x1353   :  { %v1498_v48 = vpop.permute.xlu2 %1497 }
0x1354   :  { %1500 = vst.msk [vmem:[#allocation2] sm:$0xff] %vm23_vm0, %v1498_v48 }
0x135b   :  { %v2920_v5 = vld [vmem:[#allocation2] sm:$0xff] }
0x135c   :  { %1624 = vrot.lane.b32.xlu1 %v2920_v5, %s2055_s19 }
0x1364   :  { %1611 = vrot.lane.b32.xlu1 %v1603_v15, %s2058_s10 }
0x1371   :  { %v1607_v12 = vpop.permute.xlu0 %1606 }
0x1372   :  { %1609 = vst.msk [vmem:[#allocation4] sm:$0xff] %vm23_vm0, %v1607_v12 }
0x1379   :  { %v1503_v11 = vpop.permute.xlu0 %1502  ;;  %v1730_v14 = vld [vmem:[#allocation4] sm:$0xff] }
0x137a   :  { %1505 = vst.msk [vmem:[#allocation3] sm:$0xff] %vm23_vm0, %v1503_v11  ;;  %1733 = vrot.lane.b32.xlu2 %v1730_v14, %s2055_s19 }
0x1381   :  { %v1622_v45 = vld [vmem:[#allocation3] sm:$0xff] }
0x1382   :  { %1688 = vrot.lane.b32.xlu1 %v1622_v45, %s2056_s23 }
0x13ce   :  { %v1625_v39 = vpop.permute.xlu1 %1624 }
0x13cf   :  { %v1627_v58 = vsel %vm36_vm1, %v1896_v37, %v1625_v39 }
0x13d0   :  { %1897 = vmatmul.msk.f32.vlgmr.msrb.gmra.mxu2 %vm54_vm2, %v1627_v58 }
0x13d4   :  { %v1734_v44 = vpop.permute.xlu2 %1733 }
0x13d5   :  { %v1736_v62 = vsel %vm36_vm1, %v1729_v59, %v1734_v44 }
0x13d6   :  { %1900 = vmatmul.msk.f32.vlgmr.msrb.gmra.mxu3 %vm54_vm2, %v1736_v62  ;;  %v1612_v36 = vpop.permute.xlu1 %1611 }
0x13d7   :  { %1614 = vst.msk [vmem:[#allocation5] sm:$0xff] %vm23_vm0, %v1612_v36  ;;  %v598_v36 = vsel %vm592_vm5, %v2457_v25, 0.0 }
0x13de   :  { %v1731_v13 = vld [vmem:[#allocation5] sm:$0xff] }
0x13f4   :  { %v1689_v25 = vpop.permute.xlu1 %1688 }
0x1453   :  { %v1664_v26 = vpop.f32.mrf.mxu2 }
0x1454   :  { %v1665_v50 = vadd.f32 %v1924_v40, %v1664_v26  ;;  %v949_v40 = vsel %vm943_vm9, %v2563_v3, 0.0 }
0x1456   :  { %2038 = vtanh.f32 %v1665_v50  ;;  %v1898_v18 = vmul.f32 -1.442695, %v1665_v50 }
0x1459   :  { %v1773_v6 = vpop.f32.mrf.mxu3 }
0x145a   :  { %v1774_v54 = vadd.f32 %v1925_v4, %v1773_v6 }
0x145c   :  { %v2039_v8 = vpop.eup %2038  ;;  %2040 = vtanh.f32 %v1774_v54  ;;  %v1901_v27 = vmul.f32 -1.442695, %v1774_v54 }
0x145d   :  { %1693 = vrot.lane.b32.xlu2 %v2039_v8, %s2055_s19  ;;  %2042 = vpow2.f32 %v1898_v18  ;;  %v1059_v18 = vsel %vm943_vm9, %v2792_v63, 0.0  ;;  %vm3142_vm9 = vmmov %vm3139_vm13 }
0x1462   :  { %v2041_v9 = vpop.eup %2040 }
0x1463   :  { %1802 = vrot.lane.b32.xlu0 %v2041_v9, %s2055_s19  ;;  %v2043_v0 = vpop.eup %2042 }
0x1464   :  { %v1670_v21 = vadd.f32 1.0, %v2043_v0  ;;  %v1495_v0 = vsel %vm475_vm12, %v2904_v33, 0.0 }
0x1465   :  { %1797 = vrot.lane.b32.xlu2 %v1731_v13, %s2056_s23 }
0x1466   :  { %2044 = vrcp.f32 %v1670_v21  ;;  %v1682_v41 = vand.u32 2147483648, %v1670_v21  ;;  %vm1676_vm2 = vweird.f32 %v1670_v21  ;;  %v1680_v47 = vand.u32 2147483647, %v1670_v21 }
0x1467   :  { %2046 = vpow2.f32 %v1901_v27 }
0x1468   :  { %v1683_v48 = vor.u32 1.1754944e-38, %v1682_v41  ;;  %vm1681_vm14 = vcmp.eq.f32.partialorder %v1680_v47, 8.507059e+37 }
0x146c   :  { %v2045_v24 = vpop.eup %2044 }
0x146d   :  { %1817 = vrot.lane.b32.xlu2 %v1730_v14, %s2058_s10  ;;  %v1672_v60 = vmul.f32 %v2045_v24, %v1670_v21  ;;  %vm1677_vm1 = vweird.f32 %v2045_v24  ;;  %v2047_v43 = vpop.eup %2046 }
0x146e   :  { %vm1678_vm10 = vmor %vm1676_vm2, %vm1677_vm1  ;;  %v1779_v2 = vadd.f32 1.0, %v2047_v43 }
0x146f   :  { %v1673_v17 = vsub.f32 1.0, %v1672_v60  ;;  %vm3143_vm1 = vmmov %vm3138_vm3 }
0x1470   :  { %2048 = vrcp.f32 %v1779_v2  ;;  %v1791_v16 = vand.u32 2147483648, %v1779_v2  ;;  %vm1785_vm7 = vweird.f32 %v1779_v2  ;;  %v1789_v37 = vand.u32 2147483647, %v1779_v2  ;;  %vm3144_vm2 = vmmov %vm3142_vm9 }
0x1471   :  { %v1674_v57 = vmul.f32 %v2045_v24, %v1673_v17  ;;  %vm3145_vm12 = vmmov %vm3144_vm2 }
0x1472   :  { %v1792_v58 = vor.u32 1.1754944e-38, %v1791_v16  ;;  %vm1790_vm11 = vcmp.eq.f32.partialorder %v1789_v37, 8.507059e+37 }
0x1473   :  { %v1675_v35 = vadd.f32 %v2045_v24, %v1674_v57 }
0x1475   :  { %v1679_v61 = vsel %vm1678_vm10, %v2045_v24, %v1675_v35  ;;  %vm3146_vm10 = vmmov %vm3143_vm1 }
0x1476   :  { %v2970_v15 = vsel %vm1681_vm14, %v1683_v48, %v1679_v61  ;;  %v2049_v38 = vpop.eup %2048  ;;  %vm3147_vm14 = vmmov %vm3143_vm1 }
0x1477   :  { %v1781_v12 = vmul.f32 %v2049_v38, %v1779_v2  ;;  %vm1786_vm6 = vweird.f32 %v2049_v38  ;;  %v1691_v26 = vmul.f32 %v1689_v25, %v2970_v15 }
0x1478   :  { %vm1787_vm8 = vmor %vm1785_vm7, %vm1786_vm6 }
0x1479   :  { %v1782_v11 = vsub.f32 1.0, %v1781_v12 }
0x147b   :  { %v1783_v14 = vmul.f32 %v2049_v38, %v1782_v11 }
0x147d   :  { %v1784_v45 = vadd.f32 %v2049_v38, %v1783_v14 }
0x147f   :  { %v1788_v39 = vsel %vm1787_vm8, %v2049_v38, %v1784_v45 }
0x1480   :  { %v2978_v59 = vsel %vm1790_vm11, %v1792_v58, %v1788_v39 }
0x14b7   :  { %v1694_v42 = vpop.permute.xlu2 %1693 }
0x14b8   :  { %v1696_v55 = vmul.f32 %v1694_v42, %v2970_v15 }
0x14ba   :  { %1698 = vrot.lane.b32.xlu0 %v1696_v55, %s2056_s23 }
0x14bf   :  { %v1798_v54 = vpop.permute.xlu2 %1797 }
0x14c0   :  { %v1800_v8 = vmul.f32 %v1798_v54, %v2978_v59 }
0x14c2   :  { %142 = vrot.lane.b32.xlu0 %v130_v30, %s2056_s23 }
0x14d5   :  { %v1803_v44 = vpop.permute.xlu0 %1802 }
0x14d6   :  { %v1805_v62 = vmul.f32 %v1803_v44, %v2978_v59 }
0x14d8   :  { %1807 = vrot.lane.b32.xlu1 %v1805_v62, %s2056_s23 }
0x14e0   :  { %1708 = vrot.lane.b32.xlu1 %v2920_v5, %s2058_s10  ;;  %v1277_v5 = vsel %vm709_vm4, %v2846_v52, 0.0  ;;  %v364_v52 = vsel %vm358_vm15, %v2383_v56, 0.0  ;;  %vm262_vm15 = vcmask 523520   ;;  %vm3140_vm4 = vcmp.eq.s32.totalorder %v2559_v10, 1  ;;  %v1818_v10 = vpop.permute.xlu2 %1817 }
0x14e1   :  { %v832_v19 = vsel %vm3140_vm4, %v2570_v7, 0.0  ;;  %vm3141_vm5 = vmmov %vm3140_vm4 }
0x14e2   :  { %v1168_v53 = vsel %vm3141_vm5, %v2798_v31, 0.0 }
0x14e8   :  { %258 = vrot.lane.b32.xlu1 %v246_v34, %s2055_s19 }
0x14f0   :  { %610 = vrot.lane.b32.xlu1 %v598_v36, %s2056_s23 }
0x14f8   :  { %961 = vrot.lane.b32.xlu1 %v949_v40, %s2055_s19 }
0x1500   :  { %1289 = vrot.lane.b32.xlu1 %v1277_v5, %s2056_s23 }
0x1508   :  { %1616 = vrot.lane.b32.xlu1 %v1604_v32, %s2055_s19 }
0x152c   :  { %v1699_v50 = vpop.permute.xlu0 %1698 }
0x152d   :  { %v1701_v4 = vadd.f32 %v1699_v50, %v1691_v26 }
0x152f   :  { %2050 = vtanh.f32 %v1701_v4  ;;  %v1712_v7 = vsel %vm3142_vm9, %v1701_v4, %v1689_v25 }
0x1534   :  { %v143_v3 = vpop.permute.xlu0 %142 }
0x1535   :  { %v2051_v6 = vpop.eup %2050  ;;  %145 = vst.msk [vmem:[%s3134_s6] sm:$0xff] %vm23_vm0, %v143_v3 }
0x1536   :  { %1704 = vrot.lane.b32.xlu2 %v2051_v6, %s2055_s19 }
0x153e   :  { %376 = vrot.lane.b32.xlu2 %v364_v52, %s2056_s23 }
0x1546   :  { %727 = vrot.lane.b32.xlu2 %v715_v46, %s2055_s19 }
0x154a   :  { %v1808_v9 = vpop.permute.xlu1 %1807 }
0x154b   :  { %v1810_v13 = vadd.f32 %v1808_v9, %v1800_v8 }
0x154d   :  { %2052 = vtanh.f32 %v1810_v13  ;;  %v1821_v21 = vsel %vm3143_vm1, %v1810_v13, %v1798_v54 }
0x154e   :  { %1071 = vrot.lane.b32.xlu2 %v1059_v18, %s2056_s23 }
0x1552   :  { %v1709_v49 = vpop.permute.xlu1 %1708 }
0x1553   :  { %v2053_v56 = vpop.eup %2052 }
0x1554   :  { %1813 = vrot.lane.b32.xlu0 %v2053_v56, %s2055_s19 }
0x1556   :  { %1398 = vrot.lane.b32.xlu2 %v1386_v20, %s2055_s19 }
0x155a   :  { %v259_v22 = vpop.permute.xlu1 %258 }
0x155b   :  { %1847 = vst.msk [vmem:[%s3134_s6 + $0x38] sm:$0xff] %vm262_vm15, %v259_v22 }
0x155c   :  { %493 = vrot.lane.b32.xlu0 %v481_v1, %s2055_s19 }
0x1562   :  { %v611_v63 = vpop.permute.xlu1 %610 }
0x1563   :  { %1859 = vst.msk [vmem:[%s3134_s6 + $0x10] sm:$0xff] %vm23_vm0, %v611_v63 }
0x1564   :  { %844 = vrot.lane.b32.xlu0 %v832_v19, %s2056_s23 }
0x156a   :  { %v962_v23 = vpop.permute.xlu1 %961 }
0x156b   :  { %1871 = vst.msk [vmem:[%s3134_s6 + $0x20] sm:$0xff] %vm262_vm15, %v962_v23 }
0x156c   :  { %1180 = vrot.lane.b32.xlu0 %v1168_v53, %s2055_s19 }
0x1572   :  { %v1290_v31 = vpop.permute.xlu1 %1289 }
0x1574   :  { %1507 = vrot.lane.b32.xlu0 %v1495_v0, %s2056_s23 }
0x157a   :  { %v1617_v17 = vpop.permute.xlu1 %1616 }
0x157c   :  { %1720 = vrot.lane.b32.xlu0 %v1712_v7, %s2058_s10 }
0x1584   :  { %1829 = vrot.lane.b32.xlu0 %v1821_v21, %s2058_s10 }
0x1590   :  { %v1705_v24 = vpop.permute.xlu2 %1704 }
0x1591   :  { %v1707_v60 = vmul.f32 %v1705_v24, %v2970_v15 }
0x1593   :  { %v1713_v51 = vsel %vm3144_vm2, %v1707_v60, 0.0  ;;  %v1711_v33 = vsel %vm3145_vm12, %v1707_v60, %v1709_v49 }
0x1594   :  { %1725 = vrot.lane.b32.xlu1 %v1713_v51, %s2056_s23  ;;  %1715 = vrot.lane.b32.xlu2 %v1711_v33, %s2056_s23 }
0x1598   :  { %v377_v27 = vpop.permute.xlu2 %376 }
0x1599   :  { %1851 = vst.msk [vmem:[%s3134_s6 + $0x8] sm:$0xff] %vm23_vm0, %v377_v27 }
0x159a   :  { %1895 = vst.msk [vmem:[%s3134_s6 + $0x8] sm:$0xff] %vm262_vm15, %v1617_v17 }
0x15a0   :  { %v728_v57 = vpop.permute.xlu2 %727 }
0x15a1   :  { %1863 = vst.msk [vmem:[%s3134_s6 + $0x28] sm:$0xff] %vm262_vm15, %v728_v57 }
0x15a2   :  { %1883 = vst.msk [vmem:[%s3134_s6 + $0x28] sm:$0xff] %vm23_vm0, %v1290_v31 }
0x15a8   :  { %v1072_v29 = vpop.permute.xlu2 %1071 }
0x15a9   :  { %1875 = vst.msk [vmem:[%s3134_s6 + $0x20] sm:$0xff] %vm23_vm0, %v1072_v29 }
0x15b0   :  { %v1399_v35 = vpop.permute.xlu2 %1398 }
0x15b1   :  { %1887 = vst.msk [vmem:[%s3134_s6 + $0x10] sm:$0xff] %vm262_vm15, %v1399_v35 }
0x15c6   :  { %v1814_v41 = vpop.permute.xlu0 %1813 }
0x15c7   :  { %v1816_v43 = vmul.f32 %v1814_v41, %v2978_v59 }
0x15c9   :  { %v1822_v47 = vsel %vm3146_vm10, %v1816_v43, 0.0  ;;  %v1820_v61 = vsel %vm3147_vm14, %v1816_v43, %v1818_v10 }
0x15ca   :  { %1834 = vrot.lane.b32.xlu1 %v1822_v47, %s2055_s19  ;;  %1824 = vrot.lane.b32.xlu2 %v1820_v61, %s2056_s23 }
0x15ce   :  { %v494_v2 = vpop.permute.xlu0 %493 }
0x15cf   :  { %1855 = vst.msk [vmem:[%s3134_s6 + $0x30] sm:$0xff] %vm262_vm15, %v494_v2 }
0x15d6   :  { %v845_v48 = vpop.permute.xlu0 %844 }
0x15d7   :  { %1867 = vst.msk [vmem:[%s3134_s6 + $0x18] sm:$0xff] %vm23_vm0, %v845_v48 }
0x15de   :  { %v1181_v42 = vpop.permute.xlu0 %1180 }
0x15df   :  { %1879 = vst.msk [vmem:[%s3134_s6 + $0x18] sm:$0xff] %vm262_vm15, %v1181_v42 }
0x15e6   :  { %v1508_v28 = vpop.permute.xlu0 %1507 }
0x15e7   :  { %1891 = vst.msk [vmem:[%s3134_s6 + $0x30] sm:$0xff] %vm23_vm0, %v1508_v28 }
0x15ee   :  { %v1721_v15 = vpop.permute.xlu0 %1720  ;;  %v1716_v55 = vpop.permute.xlu2 %1715 }
0x15ef   :  { %1723 = vst.msk [vmem:[#allocation3] sm:$0xff] %vm23_vm0, %v1721_v15 }
0x15f0   :  { %1718 = vst.msk [vmem:[#allocation2] sm:$0xff] %vm23_vm0, %v1716_v55 }
0x15f6   :  { %v1830_v38 = vpop.permute.xlu0 %1829 }
0x15f7   :  { %1832 = vst.msk [vmem:[#allocation5] sm:$0xff] %vm23_vm0, %v1830_v38 }
0x1606   :  { %v1726_v30 = vpop.permute.xlu1 %1725 }
0x1607   :  { %1899 = vst.msk [vmem:[%s3134_s6 + $0x38] sm:$0xff] %vm23_vm0, %v1726_v30 }
0x1624   :  { %v1825_v12 = vpop.permute.xlu2 %1824 }
0x1625   :  { %1827 = vst.msk [vmem:[#allocation4] sm:$0xff] %vm23_vm0, %v1825_v12 }
0x163c   :  { %v1835_v11 = vpop.permute.xlu1 %1834 }
0x163d   :  { %1837 = vst.msk [vmem:[%s3134_s6] sm:$0xff] %vm262_vm15, %v1835_v11 }

</bundles_post_ra>
